<compile_context>
chip_gen: v6e
topology: v6e:2x2x1
jax: 0.10.0
libtpu: 0.0.40
codegen_flags: <defaults>
</compile_context>

<pallas_src>
import functools

import jax
import jax.numpy as jnp
from jax.experimental import pallas as pl
from jax.experimental.pallas import tpu as pltpu


# ----------------------------- fused Pallas kernel --------------------------


def _inception_kernel(x_ref, w1m_ref, b1m_ref, w35_ref, b35_ref, wp_ref, bp_ref,
                      o_ref, pad35_ref, poolpad_ref, *,
                      H, W, out_1, out_3, out_5):
    """Fused Inception block for one batch element.

    x_ref:    (1, H, W, Cin)                       input tile
    w1m_ref:  (Cin, out_1+red_3+red_5)             merged 1x1 weights
    b1m_ref:  (1, out_1+red_3+red_5)
    w35_ref:  (25, red_3+red_5, out_3+out_5)       block-structured 3x3/5x5 taps
    b35_ref:  (1, out_3+out_5)
    wp_ref:   (Cin, out_pool)                      pool-projection 1x1
    bp_ref:   (1, out_pool)
    o_ref:    (1, H, W, out_1+out_3+out_5+out_pool)
    pad35_ref:   (H+4, W+4, red_3+red_5)  f32 scratch (zero padded)
    poolpad_ref: (H+2, W+2, Cin)          f32 scratch (-inf padded)
    """
    HW = H * W
    Cin = x_ref.shape[-1]
    C35in = pad35_ref.shape[-1]
    C35out = out_3 + out_5
    out_pool = wp_ref.shape[-1]
    dt = o_ref.dtype

    x = x_ref[0].astype(jnp.float32)               # (H, W, Cin)
    xf = x.reshape(HW, Cin)

    # ---- merged 1x1 convs: [conv1 | conv3_red | conv5_red], one MXU pass ----
    y = jnp.dot(xf, w1m_ref[...].astype(jnp.float32),
                preferred_element_type=jnp.float32) + b1m_ref[...].astype(jnp.float32)
    c1 = y[:, :out_1]                               # (HW, out_1)
    r35 = y[:, out_1:]                              # (HW, red_3+red_5)

    # ---- 3x3 + 5x5 branches on a shared zero-padded (pad=2) intermediate ----
    pad35_ref[...] = jnp.zeros_like(pad35_ref)
    pad35_ref[2:2 + H, 2:2 + W, :] = r35.reshape(H, W, C35in)
    acc35 = jnp.zeros((HW, C35out), jnp.float32)
    for kh in range(5):
        for kw in range(5):
            patch = pad35_ref[kh:kh + H, kw:kw + W, :].reshape(HW, C35in)
            acc35 = acc35 + jnp.dot(patch, w35_ref[kh * 5 + kw],
                                    preferred_element_type=jnp.float32)
    acc35 = acc35 + b35_ref[...].astype(jnp.float32)   # columns = [conv3 | conv5]

    # ---- 3x3 / stride 1 / pad 1 max-pool (-inf padded) + 1x1 projection -----
    poolpad_ref[...] = jnp.full_like(poolpad_ref, -jnp.inf)
    poolpad_ref[1:1 + H, 1:1 + W, :] = x
    m = poolpad_ref[0:H, 0:W, :]
    for kh in range(3):
        for kw in range(3):
            if kh == 0 and kw == 0:
                continue
            m = jnp.maximum(m, poolpad_ref[kh:kh + H, kw:kw + W, :])
    c4 = jnp.dot(m.reshape(HW, Cin), wp_ref[...].astype(jnp.float32),
                 preferred_element_type=jnp.float32) + bp_ref[...].astype(jnp.float32)

    # ---- write branches into their channel slices: [conv1|conv3|conv5|pool] -
    o_ref[0, :, :, 0:out_1] = c1.reshape(H, W, out_1).astype(dt)
    o_ref[0, :, :, out_1:out_1 + C35out] = acc35.reshape(H, W, C35out).astype(dt)
    o_ref[0, :, :, out_1 + C35out:] = c4.reshape(H, W, out_pool).astype(dt)


# ------------------------------ wrapper --------------------------------------


def inception_forward(params, x_nchw):
    N, Cin, H, W = x_nchw.shape
    x = jnp.transpose(x_nchw, (0, 2, 3, 1))        # NCHW -> NHWC (cheap, tiny)

    w1, b1 = params["conv1"]                       # (1,1,Cin,out_1)
    w3r, b3r = params["conv3_red"]                 # (1,1,Cin,red_3)
    w3, b3 = params["conv3"]                       # (3,3,red_3,out_3)
    w5r, b5r = params["conv5_red"]                 # (1,1,Cin,red_5)
    w5, b5 = params["conv5"]                       # (5,5,red_5,out_5)
    wp, bp = params["pool_proj"]                   # (1,1,Cin,out_pool)

    out_1, red_3, out_3 = w1.shape[-1], w3r.shape[-1], w3.shape[-1]
    red_5, out_5, out_pool = w5r.shape[-1], w5.shape[-1], wp.shape[-1]
    C35in, C35out = red_3 + red_5, out_3 + out_5
    C_tot = out_1 + out_3 + out_5 + out_pool

    # merged 1x1 weights: [conv1 | conv3_red | conv5_red]
    w1m = jnp.concatenate([w1[0, 0], w3r[0, 0], w5r[0, 0]], axis=-1)  # (Cin, .)
    b1m = jnp.concatenate([b1, b3r, b5r])[None, :]

    # block-structured per-tap weights on the shared [red_3 | red_5] input.
    # The 3x3 kernel sits at taps (1..3, 1..3) of the 5x5 / pad=2 grid.
    f32 = jnp.float32
    w3_full = jnp.zeros((5, 5, red_3, out_3), f32).at[1:4, 1:4].set(w3)
    top = jnp.concatenate([w3_full, jnp.zeros((5, 5, red_3, out_5), f32)], axis=3)
    bot = jnp.concatenate([jnp.zeros((5, 5, red_5, out_3), f32), w5], axis=3)
    w35 = jnp.concatenate([top, bot], axis=2).reshape(25, C35in, C35out)
    b35 = jnp.concatenate([b3, b5])[None, :]

    wpm = wp[0, 0]                                  # (Cin, out_pool)
    bpm = bp[None, :]

    kernel = functools.partial(_inception_kernel, H=H, W=W,
                               out_1=out_1, out_3=out_3, out_5=out_5)

    out_nhwc = pl.pallas_call(
        kernel,
        out_shape=jax.ShapeDtypeStruct((N, H, W, C_tot), x.dtype),
        grid=(N,),
        in_specs=[
            pl.BlockSpec((1, H, W, Cin), lambda n: (n, 0, 0, 0)),
            pl.BlockSpec(w1m.shape, lambda n: (0, 0)),
            pl.BlockSpec(b1m.shape, lambda n: (0, 0)),
            pl.BlockSpec(w35.shape, lambda n: (0, 0, 0)),
            pl.BlockSpec(b35.shape, lambda n: (0, 0)),
            pl.BlockSpec(wpm.shape, lambda n: (0, 0)),
            pl.BlockSpec(bpm.shape, lambda n: (0, 0)),
        ],
        out_specs=pl.BlockSpec((1, H, W, C_tot), lambda n: (n, 0, 0, 0)),
        scratch_shapes=[
            pltpu.VMEM((H + 4, W + 4, C35in), jnp.float32),   # zero-padded r3|r5
            pltpu.VMEM((H + 2, W + 2, Cin), jnp.float32),     # -inf padded x
        ],
        compiler_params=pltpu.CompilerParams(
            dimension_semantics=("parallel",)),
    )(x, w1m, b1m, w35, b35, wpm, bpm)

    # NHWC -> NCHW (matches torch.cat(..., dim=1) on NCHW tensors)
    return jnp.transpose(out_nhwc, (0, 3, 1, 2))


# ------------------------- parameter initialization --------------------------


def init_conv_params(key, kh, kw, cin, cout):
    kw_key, kb_key = jax.random.split(key)
    fan_in = cin * kh * kw
    bound = 1.0 / float(fan_in) ** 0.5
    w = jax.random.uniform(kw_key, (kh, kw, cin, cout), jnp.float32, -bound, bound)
    b = jax.random.uniform(kb_key, (cout,), jnp.float32, -bound, bound)
    return w, b


def init_inception_params(key, in_channels, out_1, red_3, out_3, red_5, out_5,
                          out_pool):
    keys = jax.random.split(key, 6)
    return {
        "conv1": init_conv_params(keys[0], 1, 1, in_channels, out_1),
        "conv3_red": init_conv_params(keys[1], 1, 1, in_channels, red_3),
        "conv3": init_conv_params(keys[2], 3, 3, red_3, out_3),
        "conv5_red": init_conv_params(keys[3], 1, 1, in_channels, red_5),
        "conv5": init_conv_params(keys[4], 5, 5, red_5, out_5),
        "pool_proj": init_conv_params(keys[5], 1, 1, in_channels, out_pool),
    }


# ----------------------------- pure-JAX reference ----------------------------


def _conv_ref(x, w, b, padding):
    out = jax.lax.conv_general_dilated(
        x, w, window_strides=(1, 1),
        padding=((padding, padding), (padding, padding)),
        dimension_numbers=("NHWC", "HWIO", "NHWC"))
    return out + b


def _maxpool_ref(x):
    return jax.lax.reduce_window(
        x, -jnp.inf, jax.lax.max,
        window_dimensions=(1, 3, 3, 1), window_strides=(1, 1, 1, 1),
        padding=((0, 0), (1, 1), (1, 1), (0, 0)))


def inception_ref(params, x_nchw):
    x = jnp.transpose(x_nchw, (0, 2, 3, 1))
    b1 = _conv_ref(x, *params["conv1"], 0)
    b2 = _conv_ref(_conv_ref(x, *params["conv3_red"], 0), *params["conv3"], 1)
    b3 = _conv_ref(_conv_ref(x, *params["conv5_red"], 0), *params["conv5"], 2)
    b4 = _conv_ref(_maxpool_ref(x), *params["pool_proj"], 0)
    out = jnp.concatenate([b1, b2, b3, b4], axis=-1)
    return jnp.transpose(out, (0, 3, 1, 2))


# --------------------------------- main ---------------------------------------

if __name__ == "__main__":
    key = jax.random.PRNGKey(0)
    k_x, k_p = jax.random.split(key)

    # Small shapes consistent with the module: batch=2, in_channels=4, 16x16.
    N, C, H, W = 2, 4, 16, 16
    out_1, red_3, out_3, red_5, out_5, out_pool = 8, 4, 8, 4, 8, 8

    x = jax.random.normal(k_x, (N, C, H, W), jnp.float32)
    params = init_inception_params(k_p, C, out_1, red_3, out_3, red_5, out_5,
                                   out_pool)

    out = jax.jit(inception_forward)(params, x)
    out = jax.block_until_ready(out)

    expected_c = out_1 + out_3 + out_5 + out_pool
    assert out.shape == (N, expected_c, H, W), out.shape

    ref = jax.block_until_ready(inception_ref(params, x))
    assert jnp.allclose(out, ref, rtol=1e-3, atol=1e-3), (
        float(jnp.max(jnp.abs(out - ref))))

    print("KERNEL_OK")
</pallas_src>

<mosaic_0001>
module attributes {stable_mosaic.version = 11 : i64} {
  func.func @_inception_kernel(%arg0: i32, %arg1: memref<1x16x16x4xf32, #tpu.memory_space<vmem>>, %arg2: memref<4x16xf32, #tpu.memory_space<vmem>>, %arg3: memref<1x16xf32, #tpu.memory_space<vmem>>, %arg4: memref<25x8x16xf32, #tpu.memory_space<vmem>>, %arg5: memref<1x16xf32, #tpu.memory_space<vmem>>, %arg6: memref<4x8xf32, #tpu.memory_space<vmem>>, %arg7: memref<1x8xf32, #tpu.memory_space<vmem>>, %arg8: memref<1x16x16x32xf32, #tpu.memory_space<vmem>>, %arg9: memref<20x20x8xf32, #tpu.memory_space<vmem>>, %arg10: memref<18x18x4xf32, #tpu.memory_space<vmem>>) attributes {dimension_semantics = [#tpu.dimension_semantics<parallel>], iteration_bounds = array<i64: 2>, scalar_prefetch = 0 : i64, scratch_operands = 2 : i64, tpu.core_type = #tpu.core_type<tc>, window_params = [{transform_indices = @transform_0, window_bounds = array<i64: 1, 16, 16, 4>}, {pipeline_mode = #tpu.pipeline_mode<synchronous>, transform_indices = @transform_1, window_bounds = array<i64: 4, 16>}, {pipeline_mode = #tpu.pipeline_mode<synchronous>, transform_indices = @transform_2, window_bounds = array<i64: 1, 16>}, {pipeline_mode = #tpu.pipeline_mode<synchronous>, transform_indices = @transform_3, window_bounds = array<i64: 25, 8, 16>}, {pipeline_mode = #tpu.pipeline_mode<synchronous>, transform_indices = @transform_4, window_bounds = array<i64: 1, 16>}, {pipeline_mode = #tpu.pipeline_mode<synchronous>, transform_indices = @transform_5, window_bounds = array<i64: 4, 8>}, {pipeline_mode = #tpu.pipeline_mode<synchronous>, transform_indices = @transform_6, window_bounds = array<i64: 1, 8>}, {transform_indices = @transform_7, window_bounds = array<i64: 1, 16, 16, 32>}]} {
    %c0 = arith.constant 0 : index
    %c0_0 = arith.constant 0 : index
    %c0_1 = arith.constant 0 : index
    %c0_2 = arith.constant 0 : index
    %0 = vector.load %arg1[%c0, %c0_0, %c0_1, %c0_2] : memref<1x16x16x4xf32, #tpu.memory_space<vmem>>, vector<1x16x16x4xf32>
    %1 = vector.shape_cast %0 : vector<1x16x16x4xf32> to vector<16x16x4xf32>
    %2 = vector.shape_cast %1 : vector<16x16x4xf32> to vector<256x4xf32>
    %c0_3 = arith.constant 0 : index
    %c0_4 = arith.constant 0 : index
    %3 = vector.load %arg2[%c0_3, %c0_4] : memref<4x16xf32, #tpu.memory_space<vmem>>, vector<4x16xf32>
    %cst = arith.constant dense<0.000000e+00> : vector<256x16xf32>
    %4 = tpu.matmul %2, %3, %cst {dimension_numbers = #tpu.dot_dimension_numbers<[1], [0], [0], [1], [0, 0, 1, 1], [], []>} : vector<256x4xf32>, vector<4x16xf32>, vector<256x16xf32> -> vector<256x16xf32>
    %c0_5 = arith.constant 0 : index
    %c0_6 = arith.constant 0 : index
    %5 = vector.load %arg3[%c0_5, %c0_6] : memref<1x16xf32, #tpu.memory_space<vmem>>, vector<1x16xf32>
    %6 = vector.broadcast %5 : vector<1x16xf32> to vector<256x16xf32>
    %7 = arith.addf %4, %6 : vector<256x16xf32>
    %8 = vector.extract_strided_slice %7 {offsets = [0, 0], sizes = [256, 8], strides = [1, 1]} : vector<256x16xf32> to vector<256x8xf32>
    %9 = vector.extract_strided_slice %7 {offsets = [0, 8], sizes = [256, 8], strides = [1, 1]} : vector<256x16xf32> to vector<256x8xf32>
    %cst_7 = arith.constant 0.000000e+00 : f32
    %10 = vector.broadcast %cst_7 : f32 to vector<20x20x8xf32>
    %c0_8 = arith.constant 0 : index
    %c0_9 = arith.constant 0 : index
    %c0_10 = arith.constant 0 : index
    %11 = vector.load %arg9[%c0_8, %c0_9, %c0_10] : memref<20x20x8xf32, #tpu.memory_space<vmem>>, vector<20x20x8xf32>
    tpu.vector_store %arg9[%c0_8, %c0_9, %c0_10], %10 {strides = array<i32>} : memref<20x20x8xf32, #tpu.memory_space<vmem>>, vector<20x20x8xf32>,
    %12 = vector.shape_cast %9 : vector<256x8xf32> to vector<16x16x8xf32>
    %c2 = arith.constant 2 : index
    %c2_11 = arith.constant 2 : index
    %c0_12 = arith.constant 0 : index
    %13 = vector.load %arg9[%c2, %c2_11, %c0_12] : memref<20x20x8xf32, #tpu.memory_space<vmem>>, vector<16x16x8xf32>
    tpu.vector_store %arg9[%c2, %c2_11, %c0_12], %12 {strides = array<i32>} : memref<20x20x8xf32, #tpu.memory_space<vmem>>, vector<16x16x8xf32>,
    %cst_13 = arith.constant 0.000000e+00 : f32
    %14 = vector.broadcast %cst_13 : f32 to vector<256x16xf32>
    %c0_14 = arith.constant 0 : index
    %c0_15 = arith.constant 0 : index
    %c0_16 = arith.constant 0 : index
    %15 = vector.load %arg9[%c0_14, %c0_15, %c0_16] : memref<20x20x8xf32, #tpu.memory_space<vmem>>, vector<16x16x8xf32>
    %16 = vector.shape_cast %15 : vector<16x16x8xf32> to vector<256x8xf32>
    %c0_17 = arith.constant 0 : index
    %c0_18 = arith.constant 0 : index
    %c0_19 = arith.constant 0 : index
    %17 = vector.load %arg4[%c0_17, %c0_18, %c0_19] : memref<25x8x16xf32, #tpu.memory_space<vmem>>, vector<1x8x16xf32>
    %18 = vector.shape_cast %17 : vector<1x8x16xf32> to vector<8x16xf32>
    %cst_20 = arith.constant dense<0.000000e+00> : vector<256x16xf32>
    %19 = tpu.matmul %16, %18, %cst_20 {dimension_numbers = #tpu.dot_dimension_numbers<[1], [0], [0], [1], [0, 0, 1, 1], [], []>} : vector<256x8xf32>, vector<8x16xf32>, vector<256x16xf32> -> vector<256x16xf32>
    %20 = arith.addf %14, %19 : vector<256x16xf32>
    %c0_21 = arith.constant 0 : index
    %c1 = arith.constant 1 : index
    %c0_22 = arith.constant 0 : index
    %21 = vector.load %arg9[%c0_21, %c1, %c0_22] : memref<20x20x8xf32, #tpu.memory_space<vmem>>, vector<16x16x8xf32>
    %22 = vector.shape_cast %21 : vector<16x16x8xf32> to vector<256x8xf32>
    %c1_23 = arith.constant 1 : index
    %c0_24 = arith.constant 0 : index
    %c0_25 = arith.constant 0 : index
    %23 = vector.load %arg4[%c1_23, %c0_24, %c0_25] : memref<25x8x16xf32, #tpu.memory_space<vmem>>, vector<1x8x16xf32>
    %24 = vector.shape_cast %23 : vector<1x8x16xf32> to vector<8x16xf32>
    %cst_26 = arith.constant dense<0.000000e+00> : vector<256x16xf32>
    %25 = tpu.matmul %22, %24, %cst_26 {dimension_numbers = #tpu.dot_dimension_numbers<[1], [0], [0], [1], [0, 0, 1, 1], [], []>} : vector<256x8xf32>, vector<8x16xf32>, vector<256x16xf32> -> vector<256x16xf32>
    %26 = arith.addf %20, %25 : vector<256x16xf32>
    %c0_27 = arith.constant 0 : index
    %c2_28 = arith.constant 2 : index
    %c0_29 = arith.constant 0 : index
    %27 = vector.load %arg9[%c0_27, %c2_28, %c0_29] : memref<20x20x8xf32, #tpu.memory_space<vmem>>, vector<16x16x8xf32>
    %28 = vector.shape_cast %27 : vector<16x16x8xf32> to vector<256x8xf32>
    %c2_30 = arith.constant 2 : index
    %c0_31 = arith.constant 0 : index
    %c0_32 = arith.constant 0 : index
    %29 = vector.load %arg4[%c2_30, %c0_31, %c0_32] : memref<25x8x16xf32, #tpu.memory_space<vmem>>, vector<1x8x16xf32>
    %30 = vector.shape_cast %29 : vector<1x8x16xf32> to vector<8x16xf32>
    %cst_33 = arith.constant dense<0.000000e+00> : vector<256x16xf32>
    %31 = tpu.matmul %28, %30, %cst_33 {dimension_numbers = #tpu.dot_dimension_numbers<[1], [0], [0], [1], [0, 0, 1, 1], [], []>} : vector<256x8xf32>, vector<8x16xf32>, vector<256x16xf32> -> vector<256x16xf32>
    %32 = arith.addf %26, %31 : vector<256x16xf32>
    %c0_34 = arith.constant 0 : index
    %c3 = arith.constant 3 : index
    %c0_35 = arith.constant 0 : index
    %33 = vector.load %arg9[%c0_34, %c3, %c0_35] : memref<20x20x8xf32, #tpu.memory_space<vmem>>, vector<16x16x8xf32>
    %34 = vector.shape_cast %33 : vector<16x16x8xf32> to vector<256x8xf32>
    %c3_36 = arith.constant 3 : index
    %c0_37 = arith.constant 0 : index
    %c0_38 = arith.constant 0 : index
    %35 = vector.load %arg4[%c3_36, %c0_37, %c0_38] : memref<25x8x16xf32, #tpu.memory_space<vmem>>, vector<1x8x16xf32>
    %36 = vector.shape_cast %35 : vector<1x8x16xf32> to vector<8x16xf32>
    %cst_39 = arith.constant dense<0.000000e+00> : vector<256x16xf32>
    %37 = tpu.matmul %34, %36, %cst_39 {dimension_numbers = #tpu.dot_dimension_numbers<[1], [0], [0], [1], [0, 0, 1, 1], [], []>} : vector<256x8xf32>, vector<8x16xf32>, vector<256x16xf32> -> vector<256x16xf32>
    %38 = arith.addf %32, %37 : vector<256x16xf32>
    %c0_40 = arith.constant 0 : index
    %c4 = arith.constant 4 : index
    %c0_41 = arith.constant 0 : index
    %39 = vector.load %arg9[%c0_40, %c4, %c0_41] : memref<20x20x8xf32, #tpu.memory_space<vmem>>, vector<16x16x8xf32>
    %40 = vector.shape_cast %39 : vector<16x16x8xf32> to vector<256x8xf32>
    %c4_42 = arith.constant 4 : index
    %c0_43 = arith.constant 0 : index
    %c0_44 = arith.constant 0 : index
    %41 = vector.load %arg4[%c4_42, %c0_43, %c0_44] : memref<25x8x16xf32, #tpu.memory_space<vmem>>, vector<1x8x16xf32>
    %42 = vector.shape_cast %41 : vector<1x8x16xf32> to vector<8x16xf32>
    %cst_45 = arith.constant dense<0.000000e+00> : vector<256x16xf32>
    %43 = tpu.matmul %40, %42, %cst_45 {dimension_numbers = #tpu.dot_dimension_numbers<[1], [0], [0], [1], [0, 0, 1, 1], [], []>} : vector<256x8xf32>, vector<8x16xf32>, vector<256x16xf32> -> vector<256x16xf32>
    %44 = arith.addf %38, %43 : vector<256x16xf32>
    %c1_46 = arith.constant 1 : index
    %c0_47 = arith.constant 0 : index
    %c0_48 = arith.constant 0 : index
    %45 = vector.load %arg9[%c1_46, %c0_47, %c0_48] : memref<20x20x8xf32, #tpu.memory_space<vmem>>, vector<16x16x8xf32>
    %46 = vector.shape_cast %45 : vector<16x16x8xf32> to vector<256x8xf32>
    %c5 = arith.constant 5 : index
    %c0_49 = arith.constant 0 : index
    %c0_50 = arith.constant 0 : index
    %47 = vector.load %arg4[%c5, %c0_49, %c0_50] : memref<25x8x16xf32, #tpu.memory_space<vmem>>, vector<1x8x16xf32>
    %48 = vector.shape_cast %47 : vector<1x8x16xf32> to vector<8x16xf32>
    %cst_51 = arith.constant dense<0.000000e+00> : vector<256x16xf32>
    %49 = tpu.matmul %46, %48, %cst_51 {dimension_numbers = #tpu.dot_dimension_numbers<[1], [0], [0], [1], [0, 0, 1, 1], [], []>} : vector<256x8xf32>, vector<8x16xf32>, vector<256x16xf32> -> vector<256x16xf32>
    %50 = arith.addf %44, %49 : vector<256x16xf32>
    %c1_52 = arith.constant 1 : index
    %c1_53 = arith.constant 1 : index
    %c0_54 = arith.constant 0 : index
    %51 = vector.load %arg9[%c1_52, %c1_53, %c0_54] : memref<20x20x8xf32, #tpu.memory_space<vmem>>, vector<16x16x8xf32>
    %52 = vector.shape_cast %51 : vector<16x16x8xf32> to vector<256x8xf32>
    %c6 = arith.constant 6 : index
    %c0_55 = arith.constant 0 : index
    %c0_56 = arith.constant 0 : index
    %53 = vector.load %arg4[%c6, %c0_55, %c0_56] : memref<25x8x16xf32, #tpu.memory_space<vmem>>, vector<1x8x16xf32>
    %54 = vector.shape_cast %53 : vector<1x8x16xf32> to vector<8x16xf32>
    %cst_57 = arith.constant dense<0.000000e+00> : vector<256x16xf32>
    %55 = tpu.matmul %52, %54, %cst_57 {dimension_numbers = #tpu.dot_dimension_numbers<[1], [0], [0], [1], [0, 0, 1, 1], [], []>} : vector<256x8xf32>, vector<8x16xf32>, vector<256x16xf32> -> vector<256x16xf32>
    %56 = arith.addf %50, %55 : vector<256x16xf32>
    %c1_58 = arith.constant 1 : index
    %c2_59 = arith.constant 2 : index
    %c0_60 = arith.constant 0 : index
    %57 = vector.load %arg9[%c1_58, %c2_59, %c0_60] : memref<20x20x8xf32, #tpu.memory_space<vmem>>, vector<16x16x8xf32>
    %58 = vector.shape_cast %57 : vector<16x16x8xf32> to vector<256x8xf32>
    %c7 = arith.constant 7 : index
    %c0_61 = arith.constant 0 : index
    %c0_62 = arith.constant 0 : index
    %59 = vector.load %arg4[%c7, %c0_61, %c0_62] : memref<25x8x16xf32, #tpu.memory_space<vmem>>, vector<1x8x16xf32>
    %60 = vector.shape_cast %59 : vector<1x8x16xf32> to vector<8x16xf32>
    %cst_63 = arith.constant dense<0.000000e+00> : vector<256x16xf32>
    %61 = tpu.matmul %58, %60, %cst_63 {dimension_numbers = #tpu.dot_dimension_numbers<[1], [0], [0], [1], [0, 0, 1, 1], [], []>} : vector<256x8xf32>, vector<8x16xf32>, vector<256x16xf32> -> vector<256x16xf32>
    %62 = arith.addf %56, %61 : vector<256x16xf32>
    %c1_64 = arith.constant 1 : index
    %c3_65 = arith.constant 3 : index
    %c0_66 = arith.constant 0 : index
    %63 = vector.load %arg9[%c1_64, %c3_65, %c0_66] : memref<20x20x8xf32, #tpu.memory_space<vmem>>, vector<16x16x8xf32>
    %64 = vector.shape_cast %63 : vector<16x16x8xf32> to vector<256x8xf32>
    %c8 = arith.constant 8 : index
    %c0_67 = arith.constant 0 : index
    %c0_68 = arith.constant 0 : index
    %65 = vector.load %arg4[%c8, %c0_67, %c0_68] : memref<25x8x16xf32, #tpu.memory_space<vmem>>, vector<1x8x16xf32>
    %66 = vector.shape_cast %65 : vector<1x8x16xf32> to vector<8x16xf32>
    %cst_69 = arith.constant dense<0.000000e+00> : vector<256x16xf32>
    %67 = tpu.matmul %64, %66, %cst_69 {dimension_numbers = #tpu.dot_dimension_numbers<[1], [0], [0], [1], [0, 0, 1, 1], [], []>} : vector<256x8xf32>, vector<8x16xf32>, vector<256x16xf32> -> vector<256x16xf32>
    %68 = arith.addf %62, %67 : vector<256x16xf32>
    %c1_70 = arith.constant 1 : index
    %c4_71 = arith.constant 4 : index
    %c0_72 = arith.constant 0 : index
    %69 = vector.load %arg9[%c1_70, %c4_71, %c0_72] : memref<20x20x8xf32, #tpu.memory_space<vmem>>, vector<16x16x8xf32>
    %70 = vector.shape_cast %69 : vector<16x16x8xf32> to vector<256x8xf32>
    %c9 = arith.constant 9 : index
    %c0_73 = arith.constant 0 : index
    %c0_74 = arith.constant 0 : index
    %71 = vector.load %arg4[%c9, %c0_73, %c0_74] : memref<25x8x16xf32, #tpu.memory_space<vmem>>, vector<1x8x16xf32>
    %72 = vector.shape_cast %71 : vector<1x8x16xf32> to vector<8x16xf32>
    %cst_75 = arith.constant dense<0.000000e+00> : vector<256x16xf32>
    %73 = tpu.matmul %70, %72, %cst_75 {dimension_numbers = #tpu.dot_dimension_numbers<[1], [0], [0], [1], [0, 0, 1, 1], [], []>} : vector<256x8xf32>, vector<8x16xf32>, vector<256x16xf32> -> vector<256x16xf32>
    %74 = arith.addf %68, %73 : vector<256x16xf32>
    %c2_76 = arith.constant 2 : index
    %c0_77 = arith.constant 0 : index
    %c0_78 = arith.constant 0 : index
    %75 = vector.load %arg9[%c2_76, %c0_77, %c0_78] : memref<20x20x8xf32, #tpu.memory_space<vmem>>, vector<16x16x8xf32>
    %76 = vector.shape_cast %75 : vector<16x16x8xf32> to vector<256x8xf32>
    %c10 = arith.constant 10 : index
    %c0_79 = arith.constant 0 : index
    %c0_80 = arith.constant 0 : index
    %77 = vector.load %arg4[%c10, %c0_79, %c0_80] : memref<25x8x16xf32, #tpu.memory_space<vmem>>, vector<1x8x16xf32>
    %78 = vector.shape_cast %77 : vector<1x8x16xf32> to vector<8x16xf32>
    %cst_81 = arith.constant dense<0.000000e+00> : vector<256x16xf32>
    %79 = tpu.matmul %76, %78, %cst_81 {dimension_numbers = #tpu.dot_dimension_numbers<[1], [0], [0], [1], [0, 0, 1, 1], [], []>} : vector<256x8xf32>, vector<8x16xf32>, vector<256x16xf32> -> vector<256x16xf32>
    %80 = arith.addf %74, %79 : vector<256x16xf32>
    %c2_82 = arith.constant 2 : index
    %c1_83 = arith.constant 1 : index
    %c0_84 = arith.constant 0 : index
    %81 = vector.load %arg9[%c2_82, %c1_83, %c0_84] : memref<20x20x8xf32, #tpu.memory_space<vmem>>, vector<16x16x8xf32>
    %82 = vector.shape_cast %81 : vector<16x16x8xf32> to vector<256x8xf32>
    %c11 = arith.constant 11 : index
    %c0_85 = arith.constant 0 : index
    %c0_86 = arith.constant 0 : index
    %83 = vector.load %arg4[%c11, %c0_85, %c0_86] : memref<25x8x16xf32, #tpu.memory_space<vmem>>, vector<1x8x16xf32>
    %84 = vector.shape_cast %83 : vector<1x8x16xf32> to vector<8x16xf32>
    %cst_87 = arith.constant dense<0.000000e+00> : vector<256x16xf32>
    %85 = tpu.matmul %82, %84, %cst_87 {dimension_numbers = #tpu.dot_dimension_numbers<[1], [0], [0], [1], [0, 0, 1, 1], [], []>} : vector<256x8xf32>, vector<8x16xf32>, vector<256x16xf32> -> vector<256x16xf32>
    %86 = arith.addf %80, %85 : vector<256x16xf32>
    %c2_88 = arith.constant 2 : index
    %c2_89 = arith.constant 2 : index
    %c0_90 = arith.constant 0 : index
    %87 = vector.load %arg9[%c2_88, %c2_89, %c0_90] : memref<20x20x8xf32, #tpu.memory_space<vmem>>, vector<16x16x8xf32>
    %88 = vector.shape_cast %87 : vector<16x16x8xf32> to vector<256x8xf32>
    %c12 = arith.constant 12 : index
    %c0_91 = arith.constant 0 : index
    %c0_92 = arith.constant 0 : index
    %89 = vector.load %arg4[%c12, %c0_91, %c0_92] : memref<25x8x16xf32, #tpu.memory_space<vmem>>, vector<1x8x16xf32>
    %90 = vector.shape_cast %89 : vector<1x8x16xf32> to vector<8x16xf32>
    %cst_93 = arith.constant dense<0.000000e+00> : vector<256x16xf32>
    %91 = tpu.matmul %88, %90, %cst_93 {dimension_numbers = #tpu.dot_dimension_numbers<[1], [0], [0], [1], [0, 0, 1, 1], [], []>} : vector<256x8xf32>, vector<8x16xf32>, vector<256x16xf32> -> vector<256x16xf32>
    %92 = arith.addf %86, %91 : vector<256x16xf32>
    %c2_94 = arith.constant 2 : index
    %c3_95 = arith.constant 3 : index
    %c0_96 = arith.constant 0 : index
    %93 = vector.load %arg9[%c2_94, %c3_95, %c0_96] : memref<20x20x8xf32, #tpu.memory_space<vmem>>, vector<16x16x8xf32>
    %94 = vector.shape_cast %93 : vector<16x16x8xf32> to vector<256x8xf32>
    %c13 = arith.constant 13 : index
    %c0_97 = arith.constant 0 : index
    %c0_98 = arith.constant 0 : index
    %95 = vector.load %arg4[%c13, %c0_97, %c0_98] : memref<25x8x16xf32, #tpu.memory_space<vmem>>, vector<1x8x16xf32>
    %96 = vector.shape_cast %95 : vector<1x8x16xf32> to vector<8x16xf32>
    %cst_99 = arith.constant dense<0.000000e+00> : vector<256x16xf32>
    %97 = tpu.matmul %94, %96, %cst_99 {dimension_numbers = #tpu.dot_dimension_numbers<[1], [0], [0], [1], [0, 0, 1, 1], [], []>} : vector<256x8xf32>, vector<8x16xf32>, vector<256x16xf32> -> vector<256x16xf32>
    %98 = arith.addf %92, %97 : vector<256x16xf32>
    %c2_100 = arith.constant 2 : index
    %c4_101 = arith.constant 4 : index
    %c0_102 = arith.constant 0 : index
    %99 = vector.load %arg9[%c2_100, %c4_101, %c0_102] : memref<20x20x8xf32, #tpu.memory_space<vmem>>, vector<16x16x8xf32>
    %100 = vector.shape_cast %99 : vector<16x16x8xf32> to vector<256x8xf32>
    %c14 = arith.constant 14 : index
    %c0_103 = arith.constant 0 : index
    %c0_104 = arith.constant 0 : index
    %101 = vector.load %arg4[%c14, %c0_103, %c0_104] : memref<25x8x16xf32, #tpu.memory_space<vmem>>, vector<1x8x16xf32>
    %102 = vector.shape_cast %101 : vector<1x8x16xf32> to vector<8x16xf32>
    %cst_105 = arith.constant dense<0.000000e+00> : vector<256x16xf32>
    %103 = tpu.matmul %100, %102, %cst_105 {dimension_numbers = #tpu.dot_dimension_numbers<[1], [0], [0], [1], [0, 0, 1, 1], [], []>} : vector<256x8xf32>, vector<8x16xf32>, vector<256x16xf32> -> vector<256x16xf32>
    %104 = arith.addf %98, %103 : vector<256x16xf32>
    %c3_106 = arith.constant 3 : index
    %c0_107 = arith.constant 0 : index
    %c0_108 = arith.constant 0 : index
    %105 = vector.load %arg9[%c3_106, %c0_107, %c0_108] : memref<20x20x8xf32, #tpu.memory_space<vmem>>, vector<16x16x8xf32>
    %106 = vector.shape_cast %105 : vector<16x16x8xf32> to vector<256x8xf32>
    %c15 = arith.constant 15 : index
    %c0_109 = arith.constant 0 : index
    %c0_110 = arith.constant 0 : index
    %107 = vector.load %arg4[%c15, %c0_109, %c0_110] : memref<25x8x16xf32, #tpu.memory_space<vmem>>, vector<1x8x16xf32>
    %108 = vector.shape_cast %107 : vector<1x8x16xf32> to vector<8x16xf32>
    %cst_111 = arith.constant dense<0.000000e+00> : vector<256x16xf32>
    %109 = tpu.matmul %106, %108, %cst_111 {dimension_numbers = #tpu.dot_dimension_numbers<[1], [0], [0], [1], [0, 0, 1, 1], [], []>} : vector<256x8xf32>, vector<8x16xf32>, vector<256x16xf32> -> vector<256x16xf32>
    %110 = arith.addf %104, %109 : vector<256x16xf32>
    %c3_112 = arith.constant 3 : index
    %c1_113 = arith.constant 1 : index
    %c0_114 = arith.constant 0 : index
    %111 = vector.load %arg9[%c3_112, %c1_113, %c0_114] : memref<20x20x8xf32, #tpu.memory_space<vmem>>, vector<16x16x8xf32>
    %112 = vector.shape_cast %111 : vector<16x16x8xf32> to vector<256x8xf32>
    %c16 = arith.constant 16 : index
    %c0_115 = arith.constant 0 : index
    %c0_116 = arith.constant 0 : index
    %113 = vector.load %arg4[%c16, %c0_115, %c0_116] : memref<25x8x16xf32, #tpu.memory_space<vmem>>, vector<1x8x16xf32>
    %114 = vector.shape_cast %113 : vector<1x8x16xf32> to vector<8x16xf32>
    %cst_117 = arith.constant dense<0.000000e+00> : vector<256x16xf32>
    %115 = tpu.matmul %112, %114, %cst_117 {dimension_numbers = #tpu.dot_dimension_numbers<[1], [0], [0], [1], [0, 0, 1, 1], [], []>} : vector<256x8xf32>, vector<8x16xf32>, vector<256x16xf32> -> vector<256x16xf32>
    %116 = arith.addf %110, %115 : vector<256x16xf32>
    %c3_118 = arith.constant 3 : index
    %c2_119 = arith.constant 2 : index
    %c0_120 = arith.constant 0 : index
    %117 = vector.load %arg9[%c3_118, %c2_119, %c0_120] : memref<20x20x8xf32, #tpu.memory_space<vmem>>, vector<16x16x8xf32>
    %118 = vector.shape_cast %117 : vector<16x16x8xf32> to vector<256x8xf32>
    %c17 = arith.constant 17 : index
    %c0_121 = arith.constant 0 : index
    %c0_122 = arith.constant 0 : index
    %119 = vector.load %arg4[%c17, %c0_121, %c0_122] : memref<25x8x16xf32, #tpu.memory_space<vmem>>, vector<1x8x16xf32>
    %120 = vector.shape_cast %119 : vector<1x8x16xf32> to vector<8x16xf32>
    %cst_123 = arith.constant dense<0.000000e+00> : vector<256x16xf32>
    %121 = tpu.matmul %118, %120, %cst_123 {dimension_numbers = #tpu.dot_dimension_numbers<[1], [0], [0], [1], [0, 0, 1, 1], [], []>} : vector<256x8xf32>, vector<8x16xf32>, vector<256x16xf32> -> vector<256x16xf32>
    %122 = arith.addf %116, %121 : vector<256x16xf32>
    %c3_124 = arith.constant 3 : index
    %c3_125 = arith.constant 3 : index
    %c0_126 = arith.constant 0 : index
    %123 = vector.load %arg9[%c3_124, %c3_125, %c0_126] : memref<20x20x8xf32, #tpu.memory_space<vmem>>, vector<16x16x8xf32>
    %124 = vector.shape_cast %123 : vector<16x16x8xf32> to vector<256x8xf32>
    %c18 = arith.constant 18 : index
    %c0_127 = arith.constant 0 : index
    %c0_128 = arith.constant 0 : index
    %125 = vector.load %arg4[%c18, %c0_127, %c0_128] : memref<25x8x16xf32, #tpu.memory_space<vmem>>, vector<1x8x16xf32>
    %126 = vector.shape_cast %125 : vector<1x8x16xf32> to vector<8x16xf32>
    %cst_129 = arith.constant dense<0.000000e+00> : vector<256x16xf32>
    %127 = tpu.matmul %124, %126, %cst_129 {dimension_numbers = #tpu.dot_dimension_numbers<[1], [0], [0], [1], [0, 0, 1, 1], [], []>} : vector<256x8xf32>, vector<8x16xf32>, vector<256x16xf32> -> vector<256x16xf32>
    %128 = arith.addf %122, %127 : vector<256x16xf32>
    %c3_130 = arith.constant 3 : index
    %c4_131 = arith.constant 4 : index
    %c0_132 = arith.constant 0 : index
    %129 = vector.load %arg9[%c3_130, %c4_131, %c0_132] : memref<20x20x8xf32, #tpu.memory_space<vmem>>, vector<16x16x8xf32>
    %130 = vector.shape_cast %129 : vector<16x16x8xf32> to vector<256x8xf32>
    %c19 = arith.constant 19 : index
    %c0_133 = arith.constant 0 : index
    %c0_134 = arith.constant 0 : index
    %131 = vector.load %arg4[%c19, %c0_133, %c0_134] : memref<25x8x16xf32, #tpu.memory_space<vmem>>, vector<1x8x16xf32>
    %132 = vector.shape_cast %131 : vector<1x8x16xf32> to vector<8x16xf32>
    %cst_135 = arith.constant dense<0.000000e+00> : vector<256x16xf32>
    %133 = tpu.matmul %130, %132, %cst_135 {dimension_numbers = #tpu.dot_dimension_numbers<[1], [0], [0], [1], [0, 0, 1, 1], [], []>} : vector<256x8xf32>, vector<8x16xf32>, vector<256x16xf32> -> vector<256x16xf32>
    %134 = arith.addf %128, %133 : vector<256x16xf32>
    %c4_136 = arith.constant 4 : index
    %c0_137 = arith.constant 0 : index
    %c0_138 = arith.constant 0 : index
    %135 = vector.load %arg9[%c4_136, %c0_137, %c0_138] : memref<20x20x8xf32, #tpu.memory_space<vmem>>, vector<16x16x8xf32>
    %136 = vector.shape_cast %135 : vector<16x16x8xf32> to vector<256x8xf32>
    %c20 = arith.constant 20 : index
    %c0_139 = arith.constant 0 : index
    %c0_140 = arith.constant 0 : index
    %137 = vector.load %arg4[%c20, %c0_139, %c0_140] : memref<25x8x16xf32, #tpu.memory_space<vmem>>, vector<1x8x16xf32>
    %138 = vector.shape_cast %137 : vector<1x8x16xf32> to vector<8x16xf32>
    %cst_141 = arith.constant dense<0.000000e+00> : vector<256x16xf32>
    %139 = tpu.matmul %136, %138, %cst_141 {dimension_numbers = #tpu.dot_dimension_numbers<[1], [0], [0], [1], [0, 0, 1, 1], [], []>} : vector<256x8xf32>, vector<8x16xf32>, vector<256x16xf32> -> vector<256x16xf32>
    %140 = arith.addf %134, %139 : vector<256x16xf32>
    %c4_142 = arith.constant 4 : index
    %c1_143 = arith.constant 1 : index
    %c0_144 = arith.constant 0 : index
    %141 = vector.load %arg9[%c4_142, %c1_143, %c0_144] : memref<20x20x8xf32, #tpu.memory_space<vmem>>, vector<16x16x8xf32>
    %142 = vector.shape_cast %141 : vector<16x16x8xf32> to vector<256x8xf32>
    %c21 = arith.constant 21 : index
    %c0_145 = arith.constant 0 : index
    %c0_146 = arith.constant 0 : index
    %143 = vector.load %arg4[%c21, %c0_145, %c0_146] : memref<25x8x16xf32, #tpu.memory_space<vmem>>, vector<1x8x16xf32>
    %144 = vector.shape_cast %143 : vector<1x8x16xf32> to vector<8x16xf32>
    %cst_147 = arith.constant dense<0.000000e+00> : vector<256x16xf32>
    %145 = tpu.matmul %142, %144, %cst_147 {dimension_numbers = #tpu.dot_dimension_numbers<[1], [0], [0], [1], [0, 0, 1, 1], [], []>} : vector<256x8xf32>, vector<8x16xf32>, vector<256x16xf32> -> vector<256x16xf32>
    %146 = arith.addf %140, %145 : vector<256x16xf32>
    %c4_148 = arith.constant 4 : index
    %c2_149 = arith.constant 2 : index
    %c0_150 = arith.constant 0 : index
    %147 = vector.load %arg9[%c4_148, %c2_149, %c0_150] : memref<20x20x8xf32, #tpu.memory_space<vmem>>, vector<16x16x8xf32>
    %148 = vector.shape_cast %147 : vector<16x16x8xf32> to vector<256x8xf32>
    %c22 = arith.constant 22 : index
    %c0_151 = arith.constant 0 : index
    %c0_152 = arith.constant 0 : index
    %149 = vector.load %arg4[%c22, %c0_151, %c0_152] : memref<25x8x16xf32, #tpu.memory_space<vmem>>, vector<1x8x16xf32>
    %150 = vector.shape_cast %149 : vector<1x8x16xf32> to vector<8x16xf32>
    %cst_153 = arith.constant dense<0.000000e+00> : vector<256x16xf32>
    %151 = tpu.matmul %148, %150, %cst_153 {dimension_numbers = #tpu.dot_dimension_numbers<[1], [0], [0], [1], [0, 0, 1, 1], [], []>} : vector<256x8xf32>, vector<8x16xf32>, vector<256x16xf32> -> vector<256x16xf32>
    %152 = arith.addf %146, %151 : vector<256x16xf32>
    %c4_154 = arith.constant 4 : index
    %c3_155 = arith.constant 3 : index
    %c0_156 = arith.constant 0 : index
    %153 = vector.load %arg9[%c4_154, %c3_155, %c0_156] : memref<20x20x8xf32, #tpu.memory_space<vmem>>, vector<16x16x8xf32>
    %154 = vector.shape_cast %153 : vector<16x16x8xf32> to vector<256x8xf32>
    %c23 = arith.constant 23 : index
    %c0_157 = arith.constant 0 : index
    %c0_158 = arith.constant 0 : index
    %155 = vector.load %arg4[%c23, %c0_157, %c0_158] : memref<25x8x16xf32, #tpu.memory_space<vmem>>, vector<1x8x16xf32>
    %156 = vector.shape_cast %155 : vector<1x8x16xf32> to vector<8x16xf32>
    %cst_159 = arith.constant dense<0.000000e+00> : vector<256x16xf32>
    %157 = tpu.matmul %154, %156, %cst_159 {dimension_numbers = #tpu.dot_dimension_numbers<[1], [0], [0], [1], [0, 0, 1, 1], [], []>} : vector<256x8xf32>, vector<8x16xf32>, vector<256x16xf32> -> vector<256x16xf32>
    %158 = arith.addf %152, %157 : vector<256x16xf32>
    %c4_160 = arith.constant 4 : index
    %c4_161 = arith.constant 4 : index
    %c0_162 = arith.constant 0 : index
    %159 = vector.load %arg9[%c4_160, %c4_161, %c0_162] : memref<20x20x8xf32, #tpu.memory_space<vmem>>, vector<16x16x8xf32>
    %160 = vector.shape_cast %159 : vector<16x16x8xf32> to vector<256x8xf32>
    %c24 = arith.constant 24 : index
    %c0_163 = arith.constant 0 : index
    %c0_164 = arith.constant 0 : index
    %161 = vector.load %arg4[%c24, %c0_163, %c0_164] : memref<25x8x16xf32, #tpu.memory_space<vmem>>, vector<1x8x16xf32>
    %162 = vector.shape_cast %161 : vector<1x8x16xf32> to vector<8x16xf32>
    %cst_165 = arith.constant dense<0.000000e+00> : vector<256x16xf32>
    %163 = tpu.matmul %160, %162, %cst_165 {dimension_numbers = #tpu.dot_dimension_numbers<[1], [0], [0], [1], [0, 0, 1, 1], [], []>} : vector<256x8xf32>, vector<8x16xf32>, vector<256x16xf32> -> vector<256x16xf32>
    %164 = arith.addf %158, %163 : vector<256x16xf32>
    %c0_166 = arith.constant 0 : index
    %c0_167 = arith.constant 0 : index
    %165 = vector.load %arg5[%c0_166, %c0_167] : memref<1x16xf32, #tpu.memory_space<vmem>>, vector<1x16xf32>
    %166 = vector.broadcast %165 : vector<1x16xf32> to vector<256x16xf32>
    %167 = arith.addf %164, %166 : vector<256x16xf32>
    %cst_168 = arith.constant 0xFF800000 : f32
    %168 = vector.broadcast %cst_168 : f32 to vector<18x18x4xf32>
    %c0_169 = arith.constant 0 : index
    %c0_170 = arith.constant 0 : index
    %c0_171 = arith.constant 0 : index
    %169 = vector.load %arg10[%c0_169, %c0_170, %c0_171] : memref<18x18x4xf32, #tpu.memory_space<vmem>>, vector<18x18x4xf32>
    tpu.vector_store %arg10[%c0_169, %c0_170, %c0_171], %168 {strides = array<i32>} : memref<18x18x4xf32, #tpu.memory_space<vmem>>, vector<18x18x4xf32>,
    %c1_172 = arith.constant 1 : index
    %c1_173 = arith.constant 1 : index
    %c0_174 = arith.constant 0 : index
    %170 = vector.load %arg10[%c1_172, %c1_173, %c0_174] : memref<18x18x4xf32, #tpu.memory_space<vmem>>, vector<16x16x4xf32>
    tpu.vector_store %arg10[%c1_172, %c1_173, %c0_174], %1 {strides = array<i32>} : memref<18x18x4xf32, #tpu.memory_space<vmem>>, vector<16x16x4xf32>,
    %c0_175 = arith.constant 0 : index
    %c0_176 = arith.constant 0 : index
    %c0_177 = arith.constant 0 : index
    %171 = vector.load %arg10[%c0_175, %c0_176, %c0_177] : memref<18x18x4xf32, #tpu.memory_space<vmem>>, vector<16x16x4xf32>
    %c0_178 = arith.constant 0 : index
    %c1_179 = arith.constant 1 : index
    %c0_180 = arith.constant 0 : index
    %172 = vector.load %arg10[%c0_178, %c1_179, %c0_180] : memref<18x18x4xf32, #tpu.memory_space<vmem>>, vector<16x16x4xf32>
    %173 = arith.maximumf %171, %172 : vector<16x16x4xf32>
    %c0_181 = arith.constant 0 : index
    %c2_182 = arith.constant 2 : index
    %c0_183 = arith.constant 0 : index
    %174 = vector.load %arg10[%c0_181, %c2_182, %c0_183] : memref<18x18x4xf32, #tpu.memory_space<vmem>>, vector<16x16x4xf32>
    %175 = arith.maximumf %173, %174 : vector<16x16x4xf32>
    %c1_184 = arith.constant 1 : index
    %c0_185 = arith.constant 0 : index
    %c0_186 = arith.constant 0 : index
    %176 = vector.load %arg10[%c1_184, %c0_185, %c0_186] : memref<18x18x4xf32, #tpu.memory_space<vmem>>, vector<16x16x4xf32>
    %177 = arith.maximumf %175, %176 : vector<16x16x4xf32>
    %c1_187 = arith.constant 1 : index
    %c1_188 = arith.constant 1 : index
    %c0_189 = arith.constant 0 : index
    %178 = vector.load %arg10[%c1_187, %c1_188, %c0_189] : memref<18x18x4xf32, #tpu.memory_space<vmem>>, vector<16x16x4xf32>
    %179 = arith.maximumf %177, %178 : vector<16x16x4xf32>
    %c1_190 = arith.constant 1 : index
    %c2_191 = arith.constant 2 : index
    %c0_192 = arith.constant 0 : index
    %180 = vector.load %arg10[%c1_190, %c2_191, %c0_192] : memref<18x18x4xf32, #tpu.memory_space<vmem>>, vector<16x16x4xf32>
    %181 = arith.maximumf %179, %180 : vector<16x16x4xf32>
    %c2_193 = arith.constant 2 : index
    %c0_194 = arith.constant 0 : index
    %c0_195 = arith.constant 0 : index
    %182 = vector.load %arg10[%c2_193, %c0_194, %c0_195] : memref<18x18x4xf32, #tpu.memory_space<vmem>>, vector<16x16x4xf32>
    %183 = arith.maximumf %181, %182 : vector<16x16x4xf32>
    %c2_196 = arith.constant 2 : index
    %c1_197 = arith.constant 1 : index
    %c0_198 = arith.constant 0 : index
    %184 = vector.load %arg10[%c2_196, %c1_197, %c0_198] : memref<18x18x4xf32, #tpu.memory_space<vmem>>, vector<16x16x4xf32>
    %185 = arith.maximumf %183, %184 : vector<16x16x4xf32>
    %c2_199 = arith.constant 2 : index
    %c2_200 = arith.constant 2 : index
    %c0_201 = arith.constant 0 : index
    %186 = vector.load %arg10[%c2_199, %c2_200, %c0_201] : memref<18x18x4xf32, #tpu.memory_space<vmem>>, vector<16x16x4xf32>
    %187 = arith.maximumf %185, %186 : vector<16x16x4xf32>
    %188 = vector.shape_cast %187 : vector<16x16x4xf32> to vector<256x4xf32>
    %c0_202 = arith.constant 0 : index
    %c0_203 = arith.constant 0 : index
    %189 = vector.load %arg6[%c0_202, %c0_203] : memref<4x8xf32, #tpu.memory_space<vmem>>, vector<4x8xf32>
    %cst_204 = arith.constant dense<0.000000e+00> : vector<256x8xf32>
    %190 = tpu.matmul %188, %189, %cst_204 {dimension_numbers = #tpu.dot_dimension_numbers<[1], [0], [0], [1], [0, 0, 1, 1], [], []>} : vector<256x4xf32>, vector<4x8xf32>, vector<256x8xf32> -> vector<256x8xf32>
    %c0_205 = arith.constant 0 : index
    %c0_206 = arith.constant 0 : index
    %191 = vector.load %arg7[%c0_205, %c0_206] : memref<1x8xf32, #tpu.memory_space<vmem>>, vector<1x8xf32>
    %192 = vector.broadcast %191 : vector<1x8xf32> to vector<256x8xf32>
    %193 = arith.addf %190, %192 : vector<256x8xf32>
    %194 = vector.shape_cast %8 : vector<256x8xf32> to vector<16x16x8xf32>
    %c0_207 = arith.constant 0 : index
    %c0_208 = arith.constant 0 : index
    %c0_209 = arith.constant 0 : index
    %c0_210 = arith.constant 0 : index
    %195 = vector.load %arg8[%c0_207, %c0_208, %c0_209, %c0_210] : memref<1x16x16x32xf32, #tpu.memory_space<vmem>>, vector<1x16x16x8xf32>
    %196 = vector.shape_cast %195 : vector<1x16x16x8xf32> to vector<16x16x8xf32>
    %197 = vector.shape_cast %194 : vector<16x16x8xf32> to vector<1x16x16x8xf32>
    tpu.vector_store %arg8[%c0_207, %c0_208, %c0_209, %c0_210], %197 {strides = array<i32>} : memref<1x16x16x32xf32, #tpu.memory_space<vmem>>, vector<1x16x16x8xf32>,
    %198 = vector.shape_cast %167 : vector<256x16xf32> to vector<16x16x16xf32>
    %c0_211 = arith.constant 0 : index
    %c0_212 = arith.constant 0 : index
    %c0_213 = arith.constant 0 : index
    %c8_214 = arith.constant 8 : index
    %199 = vector.load %arg8[%c0_211, %c0_212, %c0_213, %c8_214] : memref<1x16x16x32xf32, #tpu.memory_space<vmem>>, vector<1x16x16x16xf32>
    %200 = vector.shape_cast %199 : vector<1x16x16x16xf32> to vector<16x16x16xf32>
    %201 = vector.shape_cast %198 : vector<16x16x16xf32> to vector<1x16x16x16xf32>
    tpu.vector_store %arg8[%c0_211, %c0_212, %c0_213, %c8_214], %201 {strides = array<i32>} : memref<1x16x16x32xf32, #tpu.memory_space<vmem>>, vector<1x16x16x16xf32>,
    %202 = vector.shape_cast %193 : vector<256x8xf32> to vector<16x16x8xf32>
    %c0_215 = arith.constant 0 : index
    %c0_216 = arith.constant 0 : index
    %c0_217 = arith.constant 0 : index
    %c24_218 = arith.constant 24 : index
    %203 = vector.load %arg8[%c0_215, %c0_216, %c0_217, %c24_218] : memref<1x16x16x32xf32, #tpu.memory_space<vmem>>, vector<1x16x16x8xf32>
    %204 = vector.shape_cast %203 : vector<1x16x16x8xf32> to vector<16x16x8xf32>
    %205 = vector.shape_cast %202 : vector<16x16x8xf32> to vector<1x16x16x8xf32>
    tpu.vector_store %arg8[%c0_215, %c0_216, %c0_217, %c24_218], %205 {strides = array<i32>} : memref<1x16x16x32xf32, #tpu.memory_space<vmem>>, vector<1x16x16x8xf32>,
    return
  }
  func.func @transform_0(%arg0: i32) -> (i32, i32, i32, i32) {
    %c0_i32 = arith.constant 0 : i32
    %c0_i32_0 = arith.constant 0 : i32
    %c0_i32_1 = arith.constant 0 : i32
    %c0_i32_2 = arith.constant 0 : i32
    return %arg0, %c0_i32, %c0_i32_0, %c0_i32_1 : i32, i32, i32, i32
  }
  func.func @transform_1(%arg0: i32) -> (i32, i32) {
    %c0_i32 = arith.constant 0 : i32
    %c0_i32_0 = arith.constant 0 : i32
    %c0_i32_1 = arith.constant 0 : i32
    return %c0_i32, %c0_i32_0 : i32, i32
  }
  func.func @transform_2(%arg0: i32) -> (i32, i32) {
    %c0_i32 = arith.constant 0 : i32
    %c0_i32_0 = arith.constant 0 : i32
    %c0_i32_1 = arith.constant 0 : i32
    return %c0_i32, %c0_i32_0 : i32, i32
  }
  func.func @transform_3(%arg0: i32) -> (i32, i32, i32) {
    %c0_i32 = arith.constant 0 : i32
    %c0_i32_0 = arith.constant 0 : i32
    %c0_i32_1 = arith.constant 0 : i32
    %c0_i32_2 = arith.constant 0 : i32
    return %c0_i32, %c0_i32_0, %c0_i32_1 : i32, i32, i32
  }
  func.func @transform_4(%arg0: i32) -> (i32, i32) {
    %c0_i32 = arith.constant 0 : i32
    %c0_i32_0 = arith.constant 0 : i32
    %c0_i32_1 = arith.constant 0 : i32
    return %c0_i32, %c0_i32_0 : i32, i32
  }
  func.func @transform_5(%arg0: i32) -> (i32, i32) {
    %c0_i32 = arith.constant 0 : i32
    %c0_i32_0 = arith.constant 0 : i32
    %c0_i32_1 = arith.constant 0 : i32
    return %c0_i32, %c0_i32_0 : i32, i32
  }
  func.func @transform_6(%arg0: i32) -> (i32, i32) {
    %c0_i32 = arith.constant 0 : i32
    %c0_i32_0 = arith.constant 0 : i32
    %c0_i32_1 = arith.constant 0 : i32
    return %c0_i32, %c0_i32_0 : i32, i32
  }
  func.func @transform_7(%arg0: i32) -> (i32, i32, i32, i32) {
    %c0_i32 = arith.constant 0 : i32
    %c0_i32_0 = arith.constant 0 : i32
    %c0_i32_1 = arith.constant 0 : i32
    %c0_i32_2 = arith.constant 0 : i32
    return %arg0, %c0_i32, %c0_i32_0, %c0_i32_1 : i32, i32, i32, i32
  }
}

</mosaic_0001>

<bundles_post_ra>
// kernel: inception_forward.1
= control target key start
LH: loop header
LB: loop body
LE: loop exit
PB: predicated region body
PF: predicated region fallthrough
CT: control target
= control target key end

     0   :  { %12 = vsyncpa [#allocation5], 0  ;;  %s19834_s0 = inlined_call_operand.vmem [shape: f32[2,16,16,4], index: 0, kind: input, shape index: {}]   ;;  %s19835_s1 = inlined_call_operand.vmem [shape: f32[4,16], index: 1, kind: input, shape index: {}]   ;;  %s19836_s2 = inlined_call_operand.vmem [shape: f32[1,16], index: 2, kind: input, shape index: {}]   ;;  %s19837_s3 = inlined_call_operand.vmem [shape: f32[25,8,16], index: 3, kind: input, shape index: {}]   ;;  %s19838_s4 = inlined_call_operand.vmem [shape: f32[1,16], index: 4, kind: input, shape index: {}]   ;;  %s19839_s5 = inlined_call_operand.vmem [shape: f32[4,8], index: 5, kind: input, shape index: {}]   ;;  %s19840_s6 = inlined_call_operand.vmem [shape: f32[1,8], index: 6, kind: input, shape index: {}]   ;;  %s19841_s7 = inlined_call_operand.hbm [shape: f32[2,16,16,32], index: 7, kind: output, shape index: {}]  }
   0x1   :  { %14 = vsyncpa [#allocation5 + $0x1], 0  ;;  %s15236_s24 = smov 0   ;;  %s15238_s25 = smov 0  }
   0x2   :  { %s15240_s26 = smov 0   ;;  %s15242_s27 = smov 0  }
   0x3 LB: > { %s15257_s28 = sadd.s32 4294967295, %s15187_s27   ;;  %s11913_s29 = sadd.s32 4294967294, %s15187_s27   ;;  %s15187_s27 = sphi %s15242_s27, %s20326_s27   ;;  %s15183_s26 = sphi %s15240_s26, %s20325_s26   ;;  %s15179_s25 = sphi %s15238_s25, %s20324_s25   ;;  %s15175_s24 = sphi %s15236_s24, %s20323_s24  }
   0x4   : > { %s15261_s30 = sadd.s32 1, %s15187_s27   ;;  %s179_s8 = sadd.s32 1, %s15183_s26 }
   0x5   : > { %s176_s9 = ssub.s32 %s15187_s27, %s15261_s30  ;;  %p189_p0 = scmp.ne.s32.totalorder %s15183_s26, %s15179_s25 }
   0x6   : > { %p177_p1 = scmp.eq.s32.totalorder %s176_s9, 0  ;;  %p190_p2 = scmp.eq.s32.totalorder %s15257_s28, 1 }
   0x7   : > { %p195_p3 = scmp.ne.s32.totalorder %s15179_s25, %s15175_s24  ;;  %p196_p4 = scmp.eq.s32.totalorder %s11913_s29, 1 }
   0x8   : > { %s15272_s10 = scalar_select %p177_p1, %s15183_s26, %s179_s8  }
   0x9   : > { %p15274_p5 = por %p190_p2, %p189_p0  ;;  %p15278_p6 = por %p196_p4, %p195_p3 }
   0xa   : > { %p11916_p7 = scmp.ge.s32.totalorder %s15187_s27, 1  ;;  %p240_p8 = scmp.lt.s32.totalorder %s15187_s27, 3 }
   0xc   : > { %p241_p9 = pnand %p11916_p7, %p240_p8 }
   0xe   : > { %244 = sbr.rel (%p241_p9) target bundleno = 1563 (0x61b), region = 48 }
  0x13   : > { %v15287_v0 = vld [vmem:[%s19835_s1] sm:$0xf]  ;;  %vm414_vm0 = vcmask 1043456   ;;  %p272_p10 = scmp.lt.s32.totalorder %s15257_s28, 1  ;;  %vm317_vm1 = vcmask 31744   ;;  %v15189_v1 = vmov -inf  }
  0x14   : > { %13711 = vmatprep.subr.msk.mxu0 %vm414_vm0, %v15287_v0  ;;  %10522 = vst.msk [vmem:[#allocation3 + $0x18] sm:$0xff] %vm317_vm1, %v15189_v1  ;;  %10523 = vst.msk [vmem:[#allocation3 + $0x20] sm:$0xff] %vm317_vm1, %v15189_v1  ;;  %vm10520_vm2 = vcmask 25600   ;;  %15061 = vmatprep.subr.msk.mxu1 %vm414_vm0, %v15287_v0  ;;  %vm643_vm3 = vcmask 64512   ;;  %v898_v32 = vld [vmem:[%s19837_s3] sm:$0xff]  ;;  %v11954_v33 = vld [vmem:[%s19837_s3 + $0x8] sm:$0xff] }
  0x15   : > { %10518 = vst.msk [vmem:[#allocation3] sm:$0xff] %vm317_vm1, %v15189_v1  ;;  %10519 = vst.msk [vmem:[#allocation3 + $0x8] sm:$0xff] %vm317_vm1, %v15189_v1  ;;  %13712 = vmatpush3.msk.msra.mxu0 %vm414_vm0, %v15287_v0  ;;  %s273_s15 = scalar_select %p272_p10, %s15257_s28, 1  ;;  %15062 = vmatpush3.msk.msra.mxu1 %vm414_vm0, %v15287_v0  ;;  %v15190_v36 = vmov 0.0   ;;  %vm646_vm4 = vcmask 60416   ;;  %v12052_v41 = vld [vmem:[%s19837_s3 + $0x18] sm:$0xff] }
  0x16   : > { %10525 = vst.msk [vmem:[#allocation3 + $0x30] sm:$0xff] %vm317_vm1, %v15189_v1  ;;  %10526 = vst.msk [vmem:[#allocation3 + $0x38] sm:$0xff] %vm317_vm1, %v15189_v1  ;;  %13811 = vmatprep.subr.mxu0 %v898_v32  ;;  %13761 = vmatprep.subr.mxu1 %v11954_v33  ;;  %s269_s9 = sand.u32 1, %s15179_s25   ;;  %v12019_v44 = vld [vmem:[%s19837_s3 + $0x10] sm:$0xff]  ;;  %v15605_v47 = vld [vmem:[%s19836_s2] ss:$0 sm:$0xff] }
  0x17   : > { %10528 = vst.msk [vmem:[#allocation3 + $0x48] sm:$0xff] %vm317_vm1, %v15189_v1  ;;  %10529 = vst.msk [vmem:[#allocation3 + $0x50] sm:$0xff] %vm317_vm1, %v15189_v1  ;;  %s12818_s16 = sshll.u32 %s273_s15, 8  ;;  %s11917_s15 = sshll.u32 %s269_s9, 8  ;;  %vm11643_vm5 = vcmask 195648   ;;  %vm11804_vm6 = vcmask 261312  }
  0x18   : > { %10531 = vst.msk [vmem:[#allocation3 + $0x60] sm:$0xff] %vm317_vm1, %v15189_v1  ;;  %10532 = vst.msk [vmem:[#allocation3 + $0x68] sm:$0xff] %vm317_vm1, %v15189_v1  ;;  %s15358_s19 = scalar_lea.vmem %s19834_s0, %s12818_s16  ;;  %s15611_s18 = scalar_lea.vmem [#allocation4], %s11917_s15 }
  0x19   : > { %10534 = vst.msk [vmem:[#allocation3 + $0x78] sm:$0xff] %vm317_vm1, %v15189_v1  ;;  %10535 = vst.msk [vmem:[#allocation3 + $0x80] sm:$0xff] %vm317_vm1, %v15189_v1  ;;  %v277_v2 = vld [vmem:[%s15358_s19] sm:$0xff]  ;;  %v278_v3 = vld [vmem:[%s15358_s19 + $0x8] sm:$0xff]  ;;  %s15192_s20 = smov 24   ;;  %s15193_s21 = smov 8  }
  0x1a   : > { %10537 = vst.msk [vmem:[#allocation3 + $0x90] sm:$0xff] %vm317_vm1, %v15189_v1  ;;  %10538 = vst.msk [vmem:[#allocation3 + $0x98] sm:$0xff] %vm317_vm1, %v15189_v1  ;;  %v279_v4 = vld [vmem:[%s15358_s19 + $0x10] sm:$0xff]  ;;  %13713 = vmatprep.mubr.msk.f32.mxu0 %vm317_vm1, %v277_v2  ;;  %v280_v5 = vld [vmem:[%s15358_s19 + $0x18] sm:$0xff]  ;;  %s12819_s22 = sshll.u32 %s15257_s28, 12  ;;  %s11851_s23 = sshll.u32 %s15611_s18, 4  ;;  %s19787_s23 = int_to_ptr.vmem [resolvable:$true] %s11851_s23 }
  0x1b   : > { %10540 = vst.msk [vmem:[#allocation3 + $0xa8] sm:$0xff] %vm317_vm1, %v15189_v1  ;;  %10541 = vst.msk [vmem:[#allocation3 + $0xb0] sm:$0xff] %vm317_vm1, %v15189_v1  ;;  %v281_v6 = vld [vmem:[%s15358_s19 + $0x20] sm:$0xff]  ;;  %v282_v7 = vld [vmem:[%s15358_s19 + $0x28] sm:$0xff]  ;;  %13714 = vmatmul.mubr.msk.f32.vlgmr.msra.gmra.mxu0 %vm317_vm1, %v278_v3  ;;  %s19783_s13 = scalar_lea.hbm %s19841_s7, %s12819_s22  ;;  %s19793_s28 = scalar_lea.sflag [#allocation5], %s269_s9 }
  0x1c   : > { %10543 = vst.msk [vmem:[#allocation3 + $0xc0] sm:$0xff] %vm317_vm1, %v15189_v1  ;;  %10544 = vst.msk [vmem:[#allocation3 + $0xc8] sm:$0xff] %vm317_vm1, %v15189_v1  ;;  %v283_v8 = vld [vmem:[%s15358_s19 + $0x30] sm:$0xff]  ;;  %v284_v9 = vld [vmem:[%s15358_s19 + $0x38] sm:$0xff]  ;;  %13716 = vmatprep.mubr.msk.f32.mxu0 %vm317_vm1, %v279_v4  ;;  %13812 = vmatpush3.msra.mxu0 %v898_v32  ;;  %s15127_s14 = scalar_lea.vmem %s19787_s23, 4096  ;;  %s15194_s15 = smov [#allocation4]  }
  0x1d   : > { %10546 = vst.msk [vmem:[#allocation3 + $0xd8] sm:$0xff] %vm317_vm1, %v15189_v1  ;;  %10547 = vst.msk [vmem:[#allocation3 + $0xe0] sm:$0xff] %vm317_vm1, %v15189_v1  ;;  %v285_v10 = vld [vmem:[%s15358_s19 + $0x40] sm:$0xff]  ;;  %v286_v11 = vld [vmem:[%s15358_s19 + $0x48] sm:$0xff]  ;;  %13911 = vmatprep.subr.mxu0 %v12052_v41  ;;  %p15128_p11 = scmp.ne.s32.totalorder %s19787_s23, %s15127_s14  ;;  %s15131_s16 = sshll.u32 %s15194_s15, 4  ;;  %s15132_s16 = int_to_ptr.vmem [resolvable:$false] %s15131_s16 }
  0x1e   : > { %10549 = vst.msk [vmem:[#allocation3 + $0xf0] sm:$0xff] %vm317_vm1, %v15189_v1  ;;  %10550 = vst.msk [vmem:[#allocation3 + $0xf8] sm:$0xff] %vm317_vm1, %v15189_v1  ;;  %v287_v12 = vld [vmem:[%s15358_s19 + $0x50] sm:$0xff]  ;;  %v288_v13 = vld [vmem:[%s15358_s19 + $0x58] sm:$0xff]  ;;  %s15133_s17 = scalar_lea.vmem %s15132_s16, 8192  ;;  %p15134_p0 = scmp.lt.s32.totalorder %s19787_s23, %s15132_s16 }
  0x1f   : > { %10552 = vst.msk [vmem:[#allocation3 + $0x108] sm:$0xff] %vm317_vm1, %v15189_v1  ;;  %10553 = vst.msk [vmem:[#allocation3 + $0x110] sm:$0xff] %vm317_vm1, %v15189_v1  ;;  %v289_v14 = vld [vmem:[%s15358_s19 + $0x60] sm:$0xff]  ;;  %v290_v15 = vld [vmem:[%s15358_s19 + $0x68] sm:$0xff]  ;;  %13717 = vmatmul.mubr.msk.f32.gmra.mxu0 %vm317_vm1, %v280_v5  ;;  %p15129_p12 = pnand %p15128_p11, %p15274_p5  ;;  %p15135_p1 = scmp.lt.s32.totalorder %s15133_s17, %s15127_s14 }
  0x20   : > { %10555 = vst.msk [vmem:[#allocation3 + $0x120] sm:$0xff] %vm317_vm1, %v15189_v1  ;;  %10556 = vst.msk [vmem:[#allocation3 + $0x128] sm:$0xff] %vm317_vm1, %v15189_v1  ;;  %v291_v16 = vld [vmem:[%s15358_s19 + $0x70] sm:$0xff]  ;;  %v292_v17 = vld [vmem:[%s15358_s19 + $0x78] sm:$0xff]  ;;  %13719 = vmatprep.mubr.msk.f32.mxu0 %vm317_vm1, %v281_v6 }
  0x21   : > { %10558 = vst.msk [vmem:[#allocation3 + $0x138] sm:$0xff] %vm317_vm1, %v15189_v1  ;;  %10559 = vst.msk [vmem:[#allocation3 + $0x140] sm:$0xff] %vm317_vm1, %v15189_v1  ;;  %v293_v18 = vld [vmem:[%s15358_s19 + $0x80] sm:$0xff]  ;;  %v294_v19 = vld [vmem:[%s15358_s19 + $0x88] sm:$0xff]  ;;  %p15130_p13 = pneg %p15129_p12  ;;  %p15136_p2 = por %p15135_p1, %p15134_p0 }
  0x22   : > { %10561 = vst.msk [vmem:[#allocation3 + $0x150] sm:$0xff] %vm317_vm1, %v15189_v1  ;;  %10562 = vst.msk [vmem:[#allocation3 + $0x158] sm:$0xff] %vm317_vm1, %v15189_v1  ;;  %13737 = vmatprep.mubr.msk.f32.mxu1 %vm317_vm1, %v293_v18  ;;  %v295_v20 = vld [vmem:[%s15358_s19 + $0x90] sm:$0xff]  ;;  %v296_v21 = vld [vmem:[%s15358_s19 + $0x98] sm:$0xff] }
  0x23   : > { %10564 = vst.msk [vmem:[#allocation3 + $0x168] sm:$0xff] %vm317_vm1, %v15189_v1  ;;  %10565 = vst.msk [vmem:[#allocation3 + $0x170] sm:$0xff] %vm317_vm1, %v15189_v1  ;;  %v297_v22 = vld [vmem:[%s15358_s19 + $0xa0] sm:$0xff]  ;;  %13738 = vmatmul.mubr.msk.f32.vlgmr.msra.gmra.mxu1 %vm317_vm1, %v294_v19  ;;  %v298_v23 = vld [vmem:[%s15358_s19 + $0xa8] sm:$0xff]  ;;  %13720 = vmatmul.mubr.msk.f32.gmra.mxu0 %vm317_vm1, %v282_v7  ;;  %p15137_p3 = pnand %p15136_p2, %p15130_p13 }
  0x24   : > { %10567 = vst.msk [vmem:[#allocation3 + $0x180] sm:$0xff] %vm317_vm1, %v15189_v1  ;;  %10568 = vst.msk [vmem:[#allocation3 + $0x188] sm:$0xff] %vm317_vm1, %v15189_v1  ;;  %v299_v24 = vld [vmem:[%s15358_s19 + $0xb0] sm:$0xff]  ;;  %v300_v25 = vld [vmem:[%s15358_s19 + $0xb8] sm:$0xff]  ;;  %13740 = vmatprep.mubr.msk.f32.mxu1 %vm317_vm1, %v295_v20  ;;  %13722 = vmatprep.mubr.msk.f32.mxu0 %vm317_vm1, %v283_v8 }
  0x25   : > { %10570 = vst.msk [vmem:[#allocation3 + $0x198] sm:$0xff] %vm317_vm1, %v15189_v1  ;;  %10571 = vst.msk [vmem:[#allocation3 + $0x1a0] sm:$0xff] %vm317_vm1, %v15189_v1  ;;  %v301_v26 = vld [vmem:[%s15358_s19 + $0xc0] sm:$0xff]  ;;  %v302_v27 = vld [vmem:[%s15358_s19 + $0xc8] sm:$0xff]  ;;  %13762 = vmatpush3.msra.mxu1 %v11954_v33 }
  0x26   : > { %10524 = vst.msk [vmem:[#allocation3 + $0x28] sm:$0x3] %vm10520_vm2, %v15189_v1  ;;  %10521 = vst.msk [vmem:[#allocation3 + $0x10] sm:$0x3] %vm10520_vm2, %v15189_v1  ;;  %v303_v28 = vld [vmem:[%s15358_s19 + $0xd0] sm:$0xff]  ;;  %v304_v29 = vld [vmem:[%s15358_s19 + $0xd8] sm:$0xff]  ;;  %13861 = vmatprep.subr.mxu1 %v12019_v44 }
  0x27   : > { %10527 = vst.msk [vmem:[#allocation3 + $0x40] sm:$0x3] %vm10520_vm2, %v15189_v1  ;;  %10530 = vst.msk [vmem:[#allocation3 + $0x58] sm:$0x3] %vm10520_vm2, %v15189_v1  ;;  %v305_v30 = vld [vmem:[%s15358_s19 + $0xe0] sm:$0xff]  ;;  %v306_v31 = vld [vmem:[%s15358_s19 + $0xe8] sm:$0xff]  ;;  %13741 = vmatmul.mubr.msk.f32.gmra.mxu1 %vm317_vm1, %v296_v21  ;;  %13723 = vmatmul.mubr.msk.f32.gmra.mxu0 %vm317_vm1, %v284_v9 }
  0x28   : > { %10533 = vst.msk [vmem:[#allocation3 + $0x70] sm:$0x3] %vm10520_vm2, %v15189_v1  ;;  %10536 = vst.msk [vmem:[#allocation3 + $0x88] sm:$0x3] %vm10520_vm2, %v15189_v1  ;;  %13743 = vmatprep.mubr.msk.f32.mxu1 %vm317_vm1, %v297_v22  ;;  %13725 = vmatprep.mubr.msk.f32.mxu0 %vm317_vm1, %v285_v10  ;;  %v307_v34 = vld [vmem:[%s15358_s19 + $0xf0] sm:$0xff]  ;;  %v308_v35 = vld [vmem:[%s15358_s19 + $0xf8] sm:$0xff] }
  0x29   : > { %10539 = vst.msk [vmem:[#allocation3 + $0xa0] sm:$0x3] %vm10520_vm2, %v15189_v1  ;;  %10542 = vst.msk [vmem:[#allocation3 + $0xb8] sm:$0x3] %vm10520_vm2, %v15189_v1  ;;  %s15191_s19 = smov 120  }
  0x2a   : > { %10545 = vst.msk [vmem:[#allocation3 + $0xd0] sm:$0x3] %vm10520_vm2, %v15189_v1  ;;  %10548 = vst.msk [vmem:[#allocation3 + $0xe8] sm:$0x3] %vm10520_vm2, %v15189_v1 }
  0x2b   : > { %10551 = vst.msk [vmem:[#allocation3 + $0x100] sm:$0x3] %vm10520_vm2, %v15189_v1  ;;  %10554 = vst.msk [vmem:[#allocation3 + $0x118] sm:$0x3] %vm10520_vm2, %v15189_v1  ;;  %13744 = vmatmul.mubr.msk.f32.gmra.mxu1 %vm317_vm1, %v298_v23  ;;  %13726 = vmatmul.mubr.msk.f32.gmra.mxu0 %vm317_vm1, %v286_v11 }
  0x2c   : > { %10557 = vst.msk [vmem:[#allocation3 + $0x130] sm:$0x3] %vm10520_vm2, %v15189_v1  ;;  %10560 = vst.msk [vmem:[#allocation3 + $0x148] sm:$0x3] %vm10520_vm2, %v15189_v1  ;;  %13746 = vmatprep.mubr.msk.f32.mxu1 %vm317_vm1, %v299_v24  ;;  %13728 = vmatprep.mubr.msk.f32.mxu0 %vm317_vm1, %v287_v12 }
  0x2d   : > { %10563 = vst.msk [vmem:[#allocation3 + $0x160] sm:$0x3] %vm10520_vm2, %v15189_v1  ;;  %10566 = vst.msk [vmem:[#allocation3 + $0x178] sm:$0x3] %vm10520_vm2, %v15189_v1 }
  0x2e   : > { %10569 = vst.msk [vmem:[#allocation3 + $0x190] sm:$0x3] %vm10520_vm2, %v15189_v1  ;;  %10572 = vst.msk [vmem:[#allocation3 + $0x1a8] sm:$0x3] %vm10520_vm2, %v15189_v1 }
  0x2f   : > { %10574 = vst.msk [vmem:[#allocation3 + $0x19] sm:$0xff] %vm317_vm1, %v277_v2  ;;  %10575 = vst.msk [vmem:[#allocation3 + $0x21] sm:$0xff] %vm317_vm1, %v278_v3  ;;  %13747 = vmatmul.mubr.msk.f32.gmra.mxu1 %vm317_vm1, %v300_v25  ;;  %13729 = vmatmul.mubr.msk.f32.gmra.mxu0 %vm317_vm1, %v288_v13 }
  0x30   : > { %10576 = vst.msk [vmem:[#allocation3 + $0x31] sm:$0xff] %vm317_vm1, %v279_v4  ;;  %10577 = vst.msk [vmem:[#allocation3 + $0x39] sm:$0xff] %vm317_vm1, %v280_v5  ;;  %13749 = vmatprep.mubr.msk.f32.mxu1 %vm317_vm1, %v301_v26  ;;  %13731 = vmatprep.mubr.msk.f32.mxu0 %vm317_vm1, %v289_v14 }
  0x31   : > { %10578 = vst.msk [vmem:[#allocation3 + $0x49] sm:$0xff] %vm317_vm1, %v281_v6  ;;  %10579 = vst.msk [vmem:[#allocation3 + $0x51] sm:$0xff] %vm317_vm1, %v282_v7 }
  0x32   : > { %10580 = vst.msk [vmem:[#allocation3 + $0x61] sm:$0xff] %vm317_vm1, %v283_v8  ;;  %10581 = vst.msk [vmem:[#allocation3 + $0x69] sm:$0xff] %vm317_vm1, %v284_v9 }
  0x33   : > { %10582 = vst.msk [vmem:[#allocation3 + $0x79] sm:$0xff] %vm317_vm1, %v285_v10  ;;  %10583 = vst.msk [vmem:[#allocation3 + $0x81] sm:$0xff] %vm317_vm1, %v286_v11  ;;  %13750 = vmatmul.mubr.msk.f32.gmra.mxu1 %vm317_vm1, %v302_v27  ;;  %13732 = vmatmul.mubr.msk.f32.gmra.mxu0 %vm317_vm1, %v290_v15 }
  0x34   : > { %10584 = vst.msk [vmem:[#allocation3 + $0x91] sm:$0xff] %vm317_vm1, %v287_v12  ;;  %10585 = vst.msk [vmem:[#allocation3 + $0x99] sm:$0xff] %vm317_vm1, %v288_v13  ;;  %13752 = vmatprep.mubr.msk.f32.mxu1 %vm317_vm1, %v303_v28  ;;  %13734 = vmatprep.mubr.msk.f32.mxu0 %vm317_vm1, %v291_v16 }
  0x35   : > { %10586 = vst.msk [vmem:[#allocation3 + $0xa9] sm:$0xff] %vm317_vm1, %v289_v14  ;;  %10587 = vst.msk [vmem:[#allocation3 + $0xb1] sm:$0xff] %vm317_vm1, %v290_v15 }
  0x36   : > { %10588 = vst.msk [vmem:[#allocation3 + $0xc1] sm:$0xff] %vm317_vm1, %v291_v16  ;;  %10589 = vst.msk [vmem:[#allocation3 + $0xc9] sm:$0xff] %vm317_vm1, %v292_v17 }
  0x37   : > { %10590 = vst.msk [vmem:[#allocation3 + $0xd9] sm:$0xff] %vm317_vm1, %v293_v18  ;;  %10591 = vst.msk [vmem:[#allocation3 + $0xe1] sm:$0xff] %vm317_vm1, %v294_v19  ;;  %13753 = vmatmul.mubr.msk.f32.gmra.mxu1 %vm317_vm1, %v304_v29  ;;  %13735 = vmatmul.mubr.msk.f32.gmra.mxu0 %vm317_vm1, %v292_v17 }
  0x38   : > { %10592 = vst.msk [vmem:[#allocation3 + $0xf1] sm:$0xff] %vm317_vm1, %v295_v20  ;;  %10593 = vst.msk [vmem:[#allocation3 + $0xf9] sm:$0xff] %vm317_vm1, %v296_v21  ;;  %13755 = vmatprep.mubr.msk.f32.mxu1 %vm317_vm1, %v305_v30 }
  0x39   : > { %10594 = vst.msk [vmem:[#allocation3 + $0x109] sm:$0xff] %vm317_vm1, %v297_v22  ;;  %10595 = vst.msk [vmem:[#allocation3 + $0x111] sm:$0xff] %vm317_vm1, %v298_v23 }
  0x3a   : > { %10596 = vst.msk [vmem:[#allocation3 + $0x121] sm:$0xff] %vm317_vm1, %v299_v24  ;;  %10597 = vst.msk [vmem:[#allocation3 + $0x129] sm:$0xff] %vm317_vm1, %v300_v25 }
  0x3b   : > { %10598 = vst.msk [vmem:[#allocation3 + $0x139] sm:$0xff] %vm317_vm1, %v301_v26  ;;  %10599 = vst.msk [vmem:[#allocation3 + $0x141] sm:$0xff] %vm317_vm1, %v302_v27  ;;  %13756 = vmatmul.mubr.msk.f32.gmra.mxu1 %vm317_vm1, %v306_v31 }
  0x3c   : > { %10600 = vst.msk [vmem:[#allocation3 + $0x151] sm:$0xff] %vm317_vm1, %v303_v28  ;;  %10601 = vst.msk [vmem:[#allocation3 + $0x159] sm:$0xff] %vm317_vm1, %v304_v29  ;;  %13758 = vmatprep.mubr.msk.f32.mxu1 %vm317_vm1, %v307_v34 }
  0x3d   : > { %10602 = vst.msk [vmem:[#allocation3 + $0x169] sm:$0xff] %vm317_vm1, %v305_v30  ;;  %10603 = vst.msk [vmem:[#allocation3 + $0x171] sm:$0xff] %vm317_vm1, %v306_v31 }
  0x3e   : > { %10604 = vst.msk [vmem:[#allocation3 + $0x181] sm:$0xff] %vm317_vm1, %v307_v34  ;;  %10605 = vst.msk [vmem:[#allocation3 + $0x189] sm:$0xff] %vm317_vm1, %v308_v35 }
  0x3f   : > { %651 = vst.msk [vmem:[#allocation2 + $0x30] sm:$0xff] %vm643_vm3, %v15190_v36  ;;  %652 = vst.msk [vmem:[#allocation2 + $0x38] sm:$0xff] %vm643_vm3, %v15190_v36  ;;  %13759 = vmatmul.mubr.msk.f32.gmra.mxu1 %vm317_vm1, %v308_v35 }
  0x40   : > { %644 = vst.msk [vmem:[#allocation2] sm:$0xff] %vm643_vm3, %v15190_v36  ;;  %645 = vst.msk [vmem:[#allocation2 + $0x8] sm:$0xff] %vm643_vm3, %v15190_v36 }
  0x41   : > { %648 = vst.msk [vmem:[#allocation2 + $0x18] sm:$0xff] %vm643_vm3, %v15190_v36  ;;  %649 = vst.msk [vmem:[#allocation2 + $0x20] sm:$0xff] %vm643_vm3, %v15190_v36 }
  0x42   : > { %654 = vst.msk [vmem:[#allocation2 + $0x48] sm:$0xff] %vm643_vm3, %v15190_v36  ;;  %655 = vst.msk [vmem:[#allocation2 + $0x50] sm:$0xff] %vm643_vm3, %v15190_v36 }
  0x43   : > { %657 = vst.msk [vmem:[#allocation2 + $0x60] sm:$0xff] %vm643_vm3, %v15190_v36  ;;  %658 = vst.msk [vmem:[#allocation2 + $0x68] sm:$0xff] %vm643_vm3, %v15190_v36 }
  0x44   : > { %660 = vst.msk [vmem:[#allocation2 + $0x78] sm:$0xff] %vm643_vm3, %v15190_v36  ;;  %661 = vst.msk [vmem:[#allocation2 + $0x80] sm:$0xff] %vm643_vm3, %v15190_v36 }
  0x45   : > { %663 = vst.msk [vmem:[#allocation2 + $0x90] sm:$0xff] %vm643_vm3, %v15190_v36  ;;  %664 = vst.msk [vmem:[#allocation2 + $0x98] sm:$0xff] %vm643_vm3, %v15190_v36 }
  0x46   : > { %666 = vst.msk [vmem:[#allocation2 + $0xa8] sm:$0xff] %vm643_vm3, %v15190_v36  ;;  %667 = vst.msk [vmem:[#allocation2 + $0xb0] sm:$0xff] %vm643_vm3, %v15190_v36 }
  0x47   : > { %669 = vst.msk [vmem:[#allocation2 + $0xc0] sm:$0xff] %vm643_vm3, %v15190_v36  ;;  %670 = vst.msk [vmem:[#allocation2 + $0xc8] sm:$0xff] %vm643_vm3, %v15190_v36  ;;  %v899_v37 = vld [vmem:[#allocation2 + $0x1] sm:$0xff] }
  0x48   : > { %672 = vst.msk [vmem:[#allocation2 + $0xd8] sm:$0xff] %vm643_vm3, %v15190_v36  ;;  %673 = vst.msk [vmem:[#allocation2 + $0xe0] sm:$0xff] %vm643_vm3, %v15190_v36  ;;  %v866_v38 = vld [vmem:[#allocation2] sm:$0xff]  ;;  %v867_v39 = vld [vmem:[#allocation2 + $0x8] sm:$0xff]  ;;  %13763 = vmatprep.mubr.msk.f32.mxu1 %vm643_vm3, %v899_v37 }
  0x49   : > { %675 = vst.msk [vmem:[#allocation2 + $0xf0] sm:$0xff] %vm643_vm3, %v15190_v36  ;;  %676 = vst.msk [vmem:[#allocation2 + $0xf8] sm:$0xff] %vm643_vm3, %v15190_v36  ;;  %13813 = vmatprep.mubr.msk.f32.mxu0 %vm643_vm3, %v866_v38  ;;  %v901_v42 = vld [vmem:[#allocation2 + $0x19] sm:$0xff] }
  0x4a   : > { %678 = vst.msk [vmem:[#allocation2 + $0x108] sm:$0xff] %vm643_vm3, %v15190_v36  ;;  %679 = vst.msk [vmem:[#allocation2 + $0x110] sm:$0xff] %vm643_vm3, %v15190_v36  ;;  %13814 = vmatmul.mubr.msk.f32.vlgmr.msra.gmra.mxu0 %vm643_vm3, %v867_v39  ;;  %v15590_v43 = vld [vmem:[#allocation2 + $0x18] sm:$0xff]  ;;  %v15600_v46 = vld [vmem:[#allocation2 + $0x20] sm:$0xff] }
  0x4b   : > { %681 = vst.msk [vmem:[#allocation2 + $0x120] sm:$0xff] %vm643_vm3, %v15190_v36  ;;  %682 = vst.msk [vmem:[#allocation2 + $0x128] sm:$0xff] %vm643_vm3, %v15190_v36  ;;  %13912 = vmatpush3.msra.mxu0 %v12052_v41  ;;  %13816 = vmatprep.mubr.msk.f32.mxu0 %vm643_vm3, %v15590_v43 }
  0x4c   : > { %684 = vst.msk [vmem:[#allocation2 + $0x138] sm:$0xff] %vm643_vm3, %v15190_v36  ;;  %685 = vst.msk [vmem:[#allocation2 + $0x140] sm:$0xff] %vm643_vm3, %v15190_v36 }
  0x4d   : > { %687 = vst.msk [vmem:[#allocation2 + $0x150] sm:$0xff] %vm643_vm3, %v15190_v36  ;;  %688 = vst.msk [vmem:[#allocation2 + $0x158] sm:$0xff] %vm643_vm3, %v15190_v36 }
  0x4e   : > { %690 = vst.msk [vmem:[#allocation2 + $0x168] sm:$0xff] %vm643_vm3, %v15190_v36  ;;  %691 = vst.msk [vmem:[#allocation2 + $0x170] sm:$0xff] %vm643_vm3, %v15190_v36  ;;  %13817 = vmatmul.mubr.msk.f32.gmra.mxu0 %vm643_vm3, %v15600_v46 }
  0x4f   : > { %693 = vst.msk [vmem:[#allocation2 + $0x180] sm:$0xff] %vm643_vm3, %v15190_v36  ;;  %694 = vst.msk [vmem:[#allocation2 + $0x188] sm:$0xff] %vm643_vm3, %v15190_v36 }
  0x50   : > { %696 = vst.msk [vmem:[#allocation2 + $0x198] sm:$0xff] %vm643_vm3, %v15190_v36  ;;  %697 = vst.msk [vmem:[#allocation2 + $0x1a0] sm:$0xff] %vm643_vm3, %v15190_v36 }
  0x51   : > { %699 = vst.msk [vmem:[#allocation2 + $0x1b0] sm:$0xff] %vm643_vm3, %v15190_v36  ;;  %700 = vst.msk [vmem:[#allocation2 + $0x1b8] sm:$0xff] %vm643_vm3, %v15190_v36 }
  0x52   : > { %702 = vst.msk [vmem:[#allocation2 + $0x1c8] sm:$0xff] %vm643_vm3, %v15190_v36  ;;  %703 = vst.msk [vmem:[#allocation2 + $0x1d0] sm:$0xff] %vm643_vm3, %v15190_v36 }
  0x53   : > { %647 = vst.msk [vmem:[#allocation2 + $0x10] sm:$0xf] %vm646_vm4, %v15190_v36  ;;  %650 = vst.msk [vmem:[#allocation2 + $0x28] sm:$0xf] %vm646_vm4, %v15190_v36 }
  0x54   : > { %653 = vst.msk [vmem:[#allocation2 + $0x40] sm:$0xf] %vm646_vm4, %v15190_v36  ;;  %656 = vst.msk [vmem:[#allocation2 + $0x58] sm:$0xf] %vm646_vm4, %v15190_v36 }
  0x55   : > { %659 = vst.msk [vmem:[#allocation2 + $0x70] sm:$0xf] %vm646_vm4, %v15190_v36  ;;  %662 = vst.msk [vmem:[#allocation2 + $0x88] sm:$0xf] %vm646_vm4, %v15190_v36 }
  0x56   : > { %665 = vst.msk [vmem:[#allocation2 + $0xa0] sm:$0xf] %vm646_vm4, %v15190_v36  ;;  %668 = vst.msk [vmem:[#allocation2 + $0xb8] sm:$0xf] %vm646_vm4, %v15190_v36 }
  0x57   : > { %671 = vst.msk [vmem:[#allocation2 + $0xd0] sm:$0xf] %vm646_vm4, %v15190_v36  ;;  %674 = vst.msk [vmem:[#allocation2 + $0xe8] sm:$0xf] %vm646_vm4, %v15190_v36 }
  0x58   : > { %677 = vst.msk [vmem:[#allocation2 + $0x100] sm:$0xf] %vm646_vm4, %v15190_v36  ;;  %680 = vst.msk [vmem:[#allocation2 + $0x118] sm:$0xf] %vm646_vm4, %v15190_v36 }
  0x59   : > { %683 = vst.msk [vmem:[#allocation2 + $0x130] sm:$0xf] %vm646_vm4, %v15190_v36  ;;  %686 = vst.msk [vmem:[#allocation2 + $0x148] sm:$0xf] %vm646_vm4, %v15190_v36 }
  0x5a   : > { %689 = vst.msk [vmem:[#allocation2 + $0x160] sm:$0xf] %vm646_vm4, %v15190_v36  ;;  %692 = vst.msk [vmem:[#allocation2 + $0x178] sm:$0xf] %vm646_vm4, %v15190_v36  ;;  %v900_v40 = vld [vmem:[#allocation2 + $0x9] sm:$0xff]  ;;  %v902_v45 = vld [vmem:[#allocation2 + $0x21] sm:$0xff] }
  0x5b   : > { %695 = vst.msk [vmem:[#allocation2 + $0x190] sm:$0xf] %vm646_vm4, %v15190_v36  ;;  %698 = vst.msk [vmem:[#allocation2 + $0x1a8] sm:$0xf] %vm646_vm4, %v15190_v36  ;;  %13764 = vmatmul.mubr.msk.f32.vlgmr.msra.gmra.mxu1 %vm643_vm3, %v900_v40 }
  0x5c   : > { %701 = vst.msk [vmem:[#allocation2 + $0x1c0] sm:$0xf] %vm646_vm4, %v15190_v36  ;;  %704 = vst.msk [vmem:[#allocation2 + $0x1d8] sm:$0xf] %vm646_vm4, %v15190_v36  ;;  %13766 = vmatprep.mubr.msk.f32.mxu1 %vm643_vm3, %v901_v42  ;;  %13862 = vmatpush3.msra.mxu1 %v12019_v44 }
  0x5f   : > { %13767 = vmatmul.mubr.msk.f32.gmra.mxu1 %vm643_vm3, %v902_v45  ;;  %v15752_v45 = vld [vmem:[%s19837_s3 + $0x28] sm:$0xff] }
  0x60   : > { %14011 = vmatprep.subr.mxu0 %v15752_v45 }
  0xdb   : > { %v13715_v48 = vpop.f32.mrf.mxu0 }
  0xdc   : > { %v490_v49 = vadd.f32 %v13715_v48, %v15605_v47  ;;  %v15760_v48 = vld [vmem:[%s19837_s3 + $0x20] sm:$0xff] }
  0xdd   : > { %v484_v50 = vpop.f32.mrf.mxu0  ;;  %13961 = vmatprep.subr.mxu1 %v15760_v48 }
  0xde   : > { %11484 = vst.msk [vmem:[%s15611_s18 + $0x8] sm:$0xff] %vm643_vm3, %v490_v49  ;;  %v485_v51 = vadd.f32 %v15605_v47, %v484_v50 }
  0xdf   : > { %v13718_v52 = vpop.f32.mrf.mxu0 }
  0xe0   : > { %v500_v53 = vadd.f32 %v13718_v52, %v15605_v47  ;;  %737 = vrot.lane.b32.xlu0 %v485_v51, %s15191_s19  ;;  %11483 = vst.msk [vmem:[%s15611_s18] sm:$0xff] %vm643_vm3, %v485_v51 }
  0xe1   : > { %v494_v55 = vpop.f32.mrf.mxu0 }
  0xe2   : > { %11486 = vst.msk [vmem:[%s15611_s18 + $0x18] sm:$0xff] %vm643_vm3, %v500_v53  ;;  %v495_v57 = vadd.f32 %v15605_v47, %v494_v55 }
  0xe3   : > { %v13739_v54 = vpop.f32.mrf.mxu1  ;;  %v13721_v59 = vpop.f32.mrf.mxu0 }
  0xe4   : > { %v15621_v56 = vadd.f32 %v13739_v54, %v15605_v47  ;;  %v510_v61 = vadd.f32 %v13721_v59, %v15605_v47  ;;  %741 = vrot.lane.b32.xlu1 %v495_v57, %s15191_s19  ;;  %11485 = vst.msk [vmem:[%s15611_s18 + $0x10] sm:$0xff] %vm643_vm3, %v495_v57  ;;  %739 = vrot.lane.b32.xlu0 %v490_v49, %s15191_s19 }
  0xe5   : > { %v564_v58 = vpop.f32.mrf.mxu1  ;;  %v504_v63 = vpop.f32.mrf.mxu0 }
  0xe6   : > { %11500 = vst.msk [vmem:[%s15611_s18 + $0x88] sm:$0xff] %vm643_vm3, %v15621_v56  ;;  %v15630_v60 = vadd.f32 %v15605_v47, %v564_v58  ;;  %11488 = vst.msk [vmem:[%s15611_s18 + $0x28] sm:$0xff] %vm643_vm3, %v510_v61  ;;  %v505_v1 = vadd.f32 %v15605_v47, %v504_v63 }
  0xe7   : > { %v13742_v62 = vpop.f32.mrf.mxu1  ;;  %v13724_v3 = vpop.f32.mrf.mxu0 }
  0xe8   : > { %11499 = vst.msk [vmem:[%s15611_s18 + $0x80] sm:$0xff] %vm643_vm3, %v15630_v60  ;;  %v15641_v0 = vadd.f32 %v13742_v62, %v15605_v47  ;;  %11487 = vst.msk [vmem:[%s15611_s18 + $0x20] sm:$0xff] %vm643_vm3, %v505_v1  ;;  %v520_v5 = vadd.f32 %v13724_v3, %v15605_v47  ;;  %743 = vrot.lane.b32.xlu1 %v500_v53, %s15191_s19  ;;  %745 = vrot.lane.b32.xlu0 %v505_v1, %s15191_s19 }
  0xe9   : > { %v574_v2 = vpop.f32.mrf.mxu1  ;;  %v514_v7 = vpop.f32.mrf.mxu0 }
  0xea   : > { %11502 = vst.msk [vmem:[%s15611_s18 + $0x98] sm:$0xff] %vm643_vm3, %v15641_v0  ;;  %v15650_v4 = vadd.f32 %v15605_v47, %v574_v2  ;;  %11490 = vst.msk [vmem:[%s15611_s18 + $0x38] sm:$0xff] %vm643_vm3, %v520_v5  ;;  %v515_v9 = vadd.f32 %v15605_v47, %v514_v7 }
  0xeb   : > { %v13745_v6 = vpop.f32.mrf.mxu1  ;;  %v13727_v11 = vpop.f32.mrf.mxu0 }
  0xec   : > { %11501 = vst.msk [vmem:[%s15611_s18 + $0x90] sm:$0xff] %vm643_vm3, %v15650_v4  ;;  %v15661_v8 = vadd.f32 %v13745_v6, %v15605_v47  ;;  %11489 = vst.msk [vmem:[%s15611_s18 + $0x30] sm:$0xff] %vm643_vm3, %v515_v9  ;;  %v530_v13 = vadd.f32 %v13727_v11, %v15605_v47  ;;  %747 = vrot.lane.b32.xlu1 %v510_v61, %s15191_s19  ;;  %749 = vrot.lane.b32.xlu0 %v515_v9, %s15191_s19 }
  0xed   : > { %v584_v10 = vpop.f32.mrf.mxu1  ;;  %v524_v15 = vpop.f32.mrf.mxu0 }
  0xee   : > { %11504 = vst.msk [vmem:[%s15611_s18 + $0xa8] sm:$0xff] %vm643_vm3, %v15661_v8  ;;  %v585_v12 = vadd.f32 %v15605_v47, %v584_v10  ;;  %11492 = vst.msk [vmem:[%s15611_s18 + $0x48] sm:$0xff] %vm643_vm3, %v530_v13  ;;  %v525_v17 = vadd.f32 %v15605_v47, %v524_v15 }
  0xef   : > { %v13748_v14 = vpop.f32.mrf.mxu1  ;;  %v13730_v19 = vpop.f32.mrf.mxu0 }
  0xf0   : > { %11503 = vst.msk [vmem:[%s15611_s18 + $0xa0] sm:$0xff] %vm643_vm3, %v585_v12  ;;  %v600_v16 = vadd.f32 %v13748_v14, %v15605_v47  ;;  %11491 = vst.msk [vmem:[%s15611_s18 + $0x40] sm:$0xff] %vm643_vm3, %v525_v17  ;;  %v540_v21 = vadd.f32 %v13730_v19, %v15605_v47  ;;  %751 = vrot.lane.b32.xlu1 %v520_v5, %s15191_s19  ;;  %753 = vrot.lane.b32.xlu0 %v525_v17, %s15191_s19 }
  0xf1   : > { %v594_v18 = vpop.f32.mrf.mxu1  ;;  %v534_v23 = vpop.f32.mrf.mxu0 }
  0xf2   : > { %11506 = vst.msk [vmem:[%s15611_s18 + $0xb8] sm:$0xff] %vm643_vm3, %v600_v16  ;;  %v595_v20 = vadd.f32 %v15605_v47, %v594_v18  ;;  %11494 = vst.msk [vmem:[%s15611_s18 + $0x58] sm:$0xff] %vm643_vm3, %v540_v21  ;;  %v535_v25 = vadd.f32 %v15605_v47, %v534_v23 }
  0xf3   : > { %v13751_v22 = vpop.f32.mrf.mxu1  ;;  %v13733_v27 = vpop.f32.mrf.mxu0 }
  0xf4   : > { %11505 = vst.msk [vmem:[%s15611_s18 + $0xb0] sm:$0xff] %vm643_vm3, %v595_v20  ;;  %v610_v24 = vadd.f32 %v13751_v22, %v15605_v47  ;;  %11493 = vst.msk [vmem:[%s15611_s18 + $0x50] sm:$0xff] %vm643_vm3, %v535_v25  ;;  %v550_v29 = vadd.f32 %v13733_v27, %v15605_v47  ;;  %755 = vrot.lane.b32.xlu1 %v530_v13, %s15191_s19  ;;  %757 = vrot.lane.b32.xlu0 %v535_v25, %s15191_s19 }
  0xf5   : > { %v604_v26 = vpop.f32.mrf.mxu1  ;;  %v544_v31 = vpop.f32.mrf.mxu0 }
  0xf6   : > { %11508 = vst.msk [vmem:[%s15611_s18 + $0xc8] sm:$0xff] %vm643_vm3, %v610_v24  ;;  %v605_v28 = vadd.f32 %v15605_v47, %v604_v26  ;;  %11496 = vst.msk [vmem:[%s15611_s18 + $0x68] sm:$0xff] %vm643_vm3, %v550_v29  ;;  %v545_v33 = vadd.f32 %v15605_v47, %v544_v31 }
  0xf7   : > { %v13754_v30 = vpop.f32.mrf.mxu1  ;;  %v13736_v35 = vpop.f32.mrf.mxu0 }
  0xf8   : > { %11507 = vst.msk [vmem:[%s15611_s18 + $0xc0] sm:$0xff] %vm643_vm3, %v605_v28  ;;  %v620_v32 = vadd.f32 %v13754_v30, %v15605_v47  ;;  %11495 = vst.msk [vmem:[%s15611_s18 + $0x60] sm:$0xff] %vm643_vm3, %v545_v33  ;;  %v560_v37 = vadd.f32 %v13736_v35, %v15605_v47  ;;  %759 = vrot.lane.b32.xlu1 %v540_v21, %s15191_s19  ;;  %761 = vrot.lane.b32.xlu0 %v545_v33, %s15191_s19 }
  0xf9   : > { %v614_v34 = vpop.f32.mrf.mxu1  ;;  %v554_v38 = vpop.f32.mrf.mxu0 }
  0xfa   : > { %11510 = vst.msk [vmem:[%s15611_s18 + $0xd8] sm:$0xff] %vm643_vm3, %v620_v32  ;;  %v615_v36 = vadd.f32 %v15605_v47, %v614_v34  ;;  %11498 = vst.msk [vmem:[%s15611_s18 + $0x78] sm:$0xff] %vm643_vm3, %v560_v37  ;;  %v555_v39 = vadd.f32 %v15605_v47, %v554_v38 }
  0xfb   : > { %v13757_v40 = vpop.f32.mrf.mxu1 }
  0xfc   : > { %11509 = vst.msk [vmem:[%s15611_s18 + $0xd0] sm:$0xff] %vm643_vm3, %v615_v36  ;;  %11497 = vst.msk [vmem:[%s15611_s18 + $0x70] sm:$0xff] %vm643_vm3, %v555_v39  ;;  %763 = vrot.lane.b32.xlu1 %v550_v29, %s15191_s19  ;;  %765 = vrot.lane.b32.xlu0 %v555_v39, %s15191_s19  ;;  %v630_v41 = vadd.f32 %v13757_v40, %v15605_v47 }
  0xfd   : > { %v624_v42 = vpop.f32.mrf.mxu1 }
  0xfe   : > { %11512 = vst.msk [vmem:[%s15611_s18 + $0xe8] sm:$0xff] %vm643_vm3, %v630_v41  ;;  %v625_v44 = vadd.f32 %v15605_v47, %v624_v42 }
 0x100   : > { %767 = vrot.lane.b32.xlu1 %v560_v37, %s15191_s19  ;;  %769 = vrot.lane.b32.xlu0 %v15630_v60, %s15191_s19  ;;  %11511 = vst.msk [vmem:[%s15611_s18 + $0xe0] sm:$0xff] %vm643_vm3, %v625_v44 }
 0x104   : > { %771 = vrot.lane.b32.xlu1 %v15621_v56, %s15191_s19  ;;  %773 = vrot.lane.b32.xlu0 %v15650_v4, %s15191_s19 }
 0x108   : > { %775 = vrot.lane.b32.xlu1 %v15641_v0, %s15191_s19  ;;  %777 = vrot.lane.b32.xlu0 %v585_v12, %s15191_s19 }
 0x10c   : > { %779 = vrot.lane.b32.xlu1 %v15661_v8, %s15191_s19  ;;  %781 = vrot.lane.b32.xlu0 %v595_v20, %s15191_s19 }
 0x110   : > { %783 = vrot.lane.b32.xlu1 %v600_v16, %s15191_s19  ;;  %785 = vrot.lane.b32.xlu0 %v605_v28, %s15191_s19 }
 0x114   : > { %787 = vrot.lane.b32.xlu1 %v610_v24, %s15191_s19  ;;  %789 = vrot.lane.b32.xlu0 %v615_v36, %s15191_s19 }
 0x118   : > { %791 = vrot.lane.b32.xlu1 %v620_v32, %s15191_s19  ;;  %793 = vrot.lane.b32.xlu0 %v625_v44, %s15191_s19 }
 0x11c   : > { %795 = vrot.lane.b32.xlu1 %v630_v41, %s15191_s19 }
 0x152   : > { %v738_v49 = vpop.permute.xlu0 %737 }
 0x153   : > { %834 = vst.msk [vmem:[#allocation2 + $0x32] sm:$0xff] %vm643_vm3, %v738_v49 }
 0x156   : > { %v742_v50 = vpop.permute.xlu1 %741  ;;  %v740_v51 = vpop.permute.xlu0 %739 }
 0x157   : > { %836 = vst.msk [vmem:[#allocation2 + $0x4a] sm:$0xff] %vm643_vm3, %v742_v50  ;;  %835 = vst.msk [vmem:[#allocation2 + $0x3a] sm:$0xff] %vm643_vm3, %v740_v51 }
 0x15a   : > { %v744_v52 = vpop.permute.xlu1 %743  ;;  %v15767_v53 = vld [vmem:[#allocation2 + $0x31] sm:$0xff]  ;;  %v746_v55 = vpop.permute.xlu0 %745 }
 0x15b   : > { %v15769_v54 = vld [vmem:[#allocation2 + $0x30] sm:$0xff]  ;;  %837 = vst.msk [vmem:[#allocation2 + $0x52] sm:$0xff] %vm643_vm3, %v744_v52  ;;  %13769 = vmatprep.mubr.msk.f32.mxu1 %vm643_vm3, %v15767_v53  ;;  %838 = vst.msk [vmem:[#allocation2 + $0x62] sm:$0xff] %vm643_vm3, %v746_v55 }
 0x15c   : > { %13819 = vmatprep.mubr.msk.f32.mxu0 %vm643_vm3, %v15769_v54 }
 0x15e   : > { %v748_v56 = vpop.permute.xlu1 %747  ;;  %v15777_v57 = vld [vmem:[#allocation2 + $0x39] sm:$0xff]  ;;  %v750_v59 = vpop.permute.xlu0 %749  ;;  %v15781_v60 = vld [vmem:[#allocation2 + $0x49] sm:$0xff] }
 0x15f   : > { %v15779_v58 = vld [vmem:[#allocation2 + $0x38] sm:$0xff]  ;;  %839 = vst.msk [vmem:[#allocation2 + $0x6a] sm:$0xff] %vm643_vm3, %v748_v56  ;;  %13770 = vmatmul.mubr.msk.f32.gmra.mxu1 %vm643_vm3, %v15777_v57  ;;  %840 = vst.msk [vmem:[#allocation2 + $0x7a] sm:$0xff] %vm643_vm3, %v750_v59  ;;  %v15789_v61 = vld [vmem:[#allocation2 + $0x48] sm:$0xff] }
 0x160   : > { %13820 = vmatmul.mubr.msk.f32.gmra.mxu0 %vm643_vm3, %v15779_v58  ;;  %13772 = vmatprep.mubr.msk.f32.mxu1 %vm643_vm3, %v15781_v60 }
 0x161   : > { %13822 = vmatprep.mubr.msk.f32.mxu0 %vm643_vm3, %v15789_v61 }
 0x162   : > { %v752_v62 = vpop.permute.xlu1 %751  ;;  %v15795_v63 = vld [vmem:[#allocation2 + $0x51] sm:$0xff]  ;;  %v754_v1 = vpop.permute.xlu0 %753  ;;  %v15799_v2 = vld [vmem:[#allocation2 + $0x61] sm:$0xff] }
 0x163   : > { %v15797_v0 = vld [vmem:[#allocation2 + $0x50] sm:$0xff]  ;;  %841 = vst.msk [vmem:[#allocation2 + $0x82] sm:$0xff] %vm643_vm3, %v752_v62  ;;  %13773 = vmatmul.mubr.msk.f32.gmra.mxu1 %vm643_vm3, %v15795_v63  ;;  %842 = vst.msk [vmem:[#allocation2 + $0x92] sm:$0xff] %vm643_vm3, %v754_v1  ;;  %v15807_v3 = vld [vmem:[#allocation2 + $0x60] sm:$0xff] }
 0x164   : > { %13823 = vmatmul.mubr.msk.f32.gmra.mxu0 %vm643_vm3, %v15797_v0  ;;  %13775 = vmatprep.mubr.msk.f32.mxu1 %vm643_vm3, %v15799_v2 }
 0x165   : > { %13825 = vmatprep.mubr.msk.f32.mxu0 %vm643_vm3, %v15807_v3 }
 0x166   : > { %v756_v4 = vpop.permute.xlu1 %755  ;;  %v15813_v5 = vld [vmem:[#allocation2 + $0x69] sm:$0xff]  ;;  %v758_v7 = vpop.permute.xlu0 %757  ;;  %v15817_v8 = vld [vmem:[#allocation2 + $0x79] sm:$0xff] }
 0x167   : > { %v15815_v6 = vld [vmem:[#allocation2 + $0x68] sm:$0xff]  ;;  %843 = vst.msk [vmem:[#allocation2 + $0x9a] sm:$0xff] %vm643_vm3, %v756_v4  ;;  %13776 = vmatmul.mubr.msk.f32.gmra.mxu1 %vm643_vm3, %v15813_v5  ;;  %844 = vst.msk [vmem:[#allocation2 + $0xaa] sm:$0xff] %vm643_vm3, %v758_v7  ;;  %v15825_v9 = vld [vmem:[#allocation2 + $0x78] sm:$0xff] }
 0x168   : > { %13826 = vmatmul.mubr.msk.f32.gmra.mxu0 %vm643_vm3, %v15815_v6  ;;  %13778 = vmatprep.mubr.msk.f32.mxu1 %vm643_vm3, %v15817_v8 }
 0x169   : > { %13828 = vmatprep.mubr.msk.f32.mxu0 %vm643_vm3, %v15825_v9 }
 0x16a   : > { %v760_v10 = vpop.permute.xlu1 %759  ;;  %v15831_v11 = vld [vmem:[#allocation2 + $0x81] sm:$0xff]  ;;  %v762_v13 = vpop.permute.xlu0 %761  ;;  %v15835_v14 = vld [vmem:[#allocation2 + $0x91] sm:$0xff] }
 0x16b   : > { %v15833_v12 = vld [vmem:[#allocation2 + $0x80] sm:$0xff]  ;;  %845 = vst.msk [vmem:[#allocation2 + $0xb2] sm:$0xff] %vm643_vm3, %v760_v10  ;;  %13779 = vmatmul.mubr.msk.f32.gmra.mxu1 %vm643_vm3, %v15831_v11  ;;  %846 = vst.msk [vmem:[#allocation2 + $0xc2] sm:$0xff] %vm643_vm3, %v762_v13  ;;  %v15843_v15 = vld [vmem:[#allocation2 + $0x90] sm:$0xff] }
 0x16c   : > { %13829 = vmatmul.mubr.msk.f32.gmra.mxu0 %vm643_vm3, %v15833_v12  ;;  %13781 = vmatprep.mubr.msk.f32.mxu1 %vm643_vm3, %v15835_v14 }
 0x16d   : > { %13831 = vmatprep.mubr.msk.f32.mxu0 %vm643_vm3, %v15843_v15 }
 0x16e   : > { %v764_v16 = vpop.permute.xlu1 %763  ;;  %v15849_v17 = vld [vmem:[#allocation2 + $0x99] sm:$0xff]  ;;  %v766_v19 = vpop.permute.xlu0 %765  ;;  %v15853_v20 = vld [vmem:[#allocation2 + $0xa9] sm:$0xff] }
 0x16f   : > { %v15851_v18 = vld [vmem:[#allocation2 + $0x98] sm:$0xff]  ;;  %847 = vst.msk [vmem:[#allocation2 + $0xca] sm:$0xff] %vm643_vm3, %v764_v16  ;;  %13782 = vmatmul.mubr.msk.f32.gmra.mxu1 %vm643_vm3, %v15849_v17  ;;  %848 = vst.msk [vmem:[#allocation2 + $0xda] sm:$0xff] %vm643_vm3, %v766_v19  ;;  %v15861_v21 = vld [vmem:[#allocation2 + $0xa8] sm:$0xff] }
 0x170   : > { %13832 = vmatmul.mubr.msk.f32.gmra.mxu0 %vm643_vm3, %v15851_v18  ;;  %13784 = vmatprep.mubr.msk.f32.mxu1 %vm643_vm3, %v15853_v20 }
 0x171   : > { %13834 = vmatprep.mubr.msk.f32.mxu0 %vm643_vm3, %v15861_v21 }
 0x172   : > { %v768_v22 = vpop.permute.xlu1 %767  ;;  %v15867_v23 = vld [vmem:[#allocation2 + $0xb1] sm:$0xff]  ;;  %v770_v25 = vpop.permute.xlu0 %769  ;;  %v15871_v26 = vld [vmem:[#allocation2 + $0xc1] sm:$0xff] }
 0x173   : > { %v15869_v24 = vld [vmem:[#allocation2 + $0xb0] sm:$0xff]  ;;  %19981 = vst [vmem:[#allocation7_spill] sm:$0xff] %v15871_v26  ;;  %849 = vst.msk [vmem:[#allocation2 + $0xe2] sm:$0xff] %vm643_vm3, %v768_v22  ;;  %13785 = vmatmul.mubr.msk.f32.gmra.mxu1 %vm643_vm3, %v15867_v23  ;;  %v15879_v27 = vld [vmem:[#allocation2 + $0xc0] sm:$0xff] }
 0x174   : > { %13835 = vmatmul.mubr.msk.f32.gmra.mxu0 %vm643_vm3, %v15869_v24  ;;  %850 = vst.msk [vmem:[#allocation2 + $0xf2] sm:$0xff] %vm643_vm3, %v770_v25  ;;  %13787 = vmatprep.mubr.msk.f32.mxu1 %vm643_vm3, %v15871_v26 }
 0x175   : > { %13837 = vmatprep.mubr.msk.f32.mxu0 %vm643_vm3, %v15879_v27 }
 0x176   : > { %v772_v28 = vpop.permute.xlu1 %771  ;;  %v15885_v29 = vld [vmem:[#allocation2 + $0xc9] sm:$0xff]  ;;  %v774_v31 = vpop.permute.xlu0 %773  ;;  %v15889_v32 = vld [vmem:[#allocation2 + $0xd9] sm:$0xff] }
 0x177   : > { %19982 = vst [vmem:[#allocation8_spill] sm:$0xff] %v15885_v29  ;;  %v15887_v30 = vld [vmem:[#allocation2 + $0xc8] sm:$0xff]  ;;  %19983 = vst [vmem:[#allocation9_spill] sm:$0xff] %v15889_v32  ;;  %13788 = vmatmul.mubr.msk.f32.gmra.mxu1 %vm643_vm3, %v15885_v29  ;;  %v15897_v33 = vld [vmem:[#allocation2 + $0xd8] sm:$0xff] }
 0x178   : > { %851 = vst.msk [vmem:[#allocation2 + $0xfa] sm:$0xff] %vm643_vm3, %v772_v28  ;;  %13838 = vmatmul.mubr.msk.f32.gmra.mxu0 %vm643_vm3, %v15887_v30  ;;  %852 = vst.msk [vmem:[#allocation2 + $0x10a] sm:$0xff] %vm643_vm3, %v774_v31  ;;  %13790 = vmatprep.mubr.msk.f32.mxu1 %vm643_vm3, %v15889_v32  ;;  %v1977_v32 = vld [vmem:[#allocation2 + $0xb3] sm:$0xff]  ;;  %v1978_v29 = vld [vmem:[#allocation2 + $0xc3] sm:$0xff] }
 0x179   : > { %13840 = vmatprep.mubr.msk.f32.mxu0 %vm643_vm3, %v15897_v33  ;;  %v1979_v26 = vld [vmem:[#allocation2 + $0xcb] sm:$0xff] }
 0x17a   : > { %v776_v34 = vpop.permute.xlu1 %775  ;;  %v15903_v35 = vld [vmem:[#allocation2 + $0xe1] sm:$0xff]  ;;  %v778_v37 = vpop.permute.xlu0 %777 }
 0x17b   : > { %19984 = vst [vmem:[#allocation10_spill] sm:$0xff] %v15903_v35  ;;  %v15905_v36 = vld [vmem:[#allocation2 + $0xe0] sm:$0xff]  ;;  %v15907_v38 = vld [vmem:[#allocation2 + $0xf1] sm:$0xff]  ;;  %853 = vst.msk [vmem:[#allocation2 + $0x112] sm:$0xff] %vm643_vm3, %v776_v34  ;;  %13791 = vmatmul.mubr.msk.f32.gmra.mxu1 %vm643_vm3, %v15903_v35 }
 0x17c   : > { %19985 = vst [vmem:[#allocation11_spill] sm:$0xff] %v15907_v38  ;;  %13841 = vmatmul.mubr.msk.f32.gmra.mxu0 %vm643_vm3, %v15905_v36  ;;  %854 = vst.msk [vmem:[#allocation2 + $0x122] sm:$0xff] %vm643_vm3, %v778_v37  ;;  %v15915_v39 = vld [vmem:[#allocation2 + $0xf0] sm:$0xff]  ;;  %13793 = vmatprep.mubr.msk.f32.mxu1 %vm643_vm3, %v15907_v38  ;;  %v1975_v38 = vld [vmem:[#allocation2 + $0x9b] sm:$0xff] }
 0x17d   : > { %13843 = vmatprep.mubr.msk.f32.mxu0 %vm643_vm3, %v15915_v39  ;;  %v1976_v35 = vld [vmem:[#allocation2 + $0xab] sm:$0xff] }
 0x17e   : > { %v780_v40 = vpop.permute.xlu1 %779  ;;  %v782_v44 = vpop.permute.xlu0 %781 }
 0x17f   : > { %v15921_v41 = vld [vmem:[#allocation2 + $0xf9] sm:$0xff]  ;;  %v15925_v49 = vld [vmem:[#allocation2 + $0x109] sm:$0xff]  ;;  %855 = vst.msk [vmem:[#allocation2 + $0x12a] sm:$0xff] %vm643_vm3, %v780_v40  ;;  %856 = vst.msk [vmem:[#allocation2 + $0x13a] sm:$0xff] %vm643_vm3, %v782_v44 }
 0x180   : > { %19986 = vst [vmem:[#allocation12_spill] sm:$0xff] %v15921_v41  ;;  %v15923_v42 = vld [vmem:[#allocation2 + $0xf8] sm:$0xff]  ;;  %19987 = vst [vmem:[#allocation13_spill] sm:$0xff] %v15925_v49  ;;  %13794 = vmatmul.mubr.msk.f32.gmra.mxu1 %vm643_vm3, %v15921_v41  ;;  %v15933_v50 = vld [vmem:[#allocation2 + $0x108] sm:$0xff] }
 0x181   : > { %13844 = vmatmul.mubr.msk.f32.gmra.mxu0 %vm643_vm3, %v15923_v42  ;;  %13796 = vmatprep.mubr.msk.f32.mxu1 %vm643_vm3, %v15925_v49  ;;  %v1973_v49 = vld [vmem:[#allocation2 + $0x83] sm:$0xff]  ;;  %v1974_v41 = vld [vmem:[#allocation2 + $0x93] sm:$0xff] }
 0x182   : > { %13846 = vmatprep.mubr.msk.f32.mxu0 %vm643_vm3, %v15933_v50  ;;  %v784_v51 = vpop.permute.xlu1 %783  ;;  %v15939_v52 = vld [vmem:[#allocation2 + $0x111] sm:$0xff]  ;;  %v786_v56 = vpop.permute.xlu0 %785 }
 0x183   : > { %19988 = vst [vmem:[#allocation14_spill] sm:$0xff] %v15939_v52  ;;  %v15941_v55 = vld [vmem:[#allocation2 + $0x110] sm:$0xff]  ;;  %v15943_v59 = vld [vmem:[#allocation2 + $0x121] sm:$0xff]  ;;  %857 = vst.msk [vmem:[#allocation2 + $0x142] sm:$0xff] %vm643_vm3, %v784_v51 }
 0x184   : > { %19989 = vst [vmem:[#allocation15_spill] sm:$0xff] %v15943_v59  ;;  %13797 = vmatmul.mubr.msk.f32.gmra.mxu1 %vm643_vm3, %v15939_v52  ;;  %858 = vst.msk [vmem:[#allocation2 + $0x152] sm:$0xff] %vm643_vm3, %v786_v56  ;;  %v15951_v62 = vld [vmem:[#allocation2 + $0x120] sm:$0xff] }
 0x185   : > { %13847 = vmatmul.mubr.msk.f32.gmra.mxu0 %vm643_vm3, %v15941_v55  ;;  %13799 = vmatprep.mubr.msk.f32.mxu1 %vm643_vm3, %v15943_v59  ;;  %v16030_v59 = vld [vmem:[#allocation2 + $0x1b] sm:$0xff] }
 0x186   : > { %13849 = vmatprep.mubr.msk.f32.mxu0 %vm643_vm3, %v15951_v62  ;;  %v788_v1 = vpop.permute.xlu1 %787  ;;  %v15957_v4 = vld [vmem:[#allocation2 + $0x129] sm:$0xff]  ;;  %v790_v10 = vpop.permute.xlu0 %789  ;;  %v15961_v13 = vld [vmem:[#allocation2 + $0x139] sm:$0xff]  ;;  %19997 = vst [vmem:[#allocation23_spill] sm:$0xff] %v16030_v59 }
 0x187   : > { %19990 = vst [vmem:[#allocation16_spill] sm:$0xff] %v15957_v4  ;;  %v15959_v7 = vld [vmem:[#allocation2 + $0x128] sm:$0xff]  ;;  %19991 = vst [vmem:[#allocation17_spill] sm:$0xff] %v15961_v13  ;;  %v15969_v16 = vld [vmem:[#allocation2 + $0x138] sm:$0xff] }
 0x188   : > { %859 = vst.msk [vmem:[#allocation2 + $0x15a] sm:$0xff] %vm643_vm3, %v788_v1  ;;  %13800 = vmatmul.mubr.msk.f32.gmra.mxu1 %vm643_vm3, %v15957_v4  ;;  %860 = vst.msk [vmem:[#allocation2 + $0x16a] sm:$0xff] %vm643_vm3, %v790_v10  ;;  %v13760_v1 = vpop.f32.mrf.mxu1  ;;  %v1575_v10 = vld [vmem:[#allocation2 + $0x2] sm:$0xff]  ;;  %v13815_v4 = vpop.f32.mrf.mxu0 }
 0x189   : > { %13850 = vmatmul.mubr.msk.f32.gmra.mxu0 %vm643_vm3, %v15959_v7  ;;  %13802 = vmatprep.mubr.msk.f32.mxu1 %vm643_vm3, %v15961_v13 }
 0x18a   : > { %13852 = vmatprep.mubr.msk.f32.mxu0 %vm643_vm3, %v15969_v16  ;;  %v792_v19 = vpop.permute.xlu1 %791  ;;  %v15975_v22 = vld [vmem:[#allocation2 + $0x141] sm:$0xff]  ;;  %v794_v31 = vpop.permute.xlu0 %793 }
 0x18b   : > { %19992 = vst [vmem:[#allocation18_spill] sm:$0xff] %v15975_v22  ;;  %v15977_v25 = vld [vmem:[#allocation2 + $0x140] sm:$0xff]  ;;  %v15979_v28 = vld [vmem:[#allocation2 + $0x151] sm:$0xff]  ;;  %861 = vst.msk [vmem:[#allocation2 + $0x172] sm:$0xff] %vm643_vm3, %v792_v19 }
 0x18c   : > { %19993 = vst [vmem:[#allocation19_spill] sm:$0xff] %v15979_v28  ;;  %13803 = vmatmul.mubr.msk.f32.gmra.mxu1 %vm643_vm3, %v15975_v22  ;;  %v15986_v34 = vld [vmem:[#allocation2 + $0x150] sm:$0xff]  ;;  %862 = vst.msk [vmem:[#allocation2 + $0x182] sm:$0xff] %vm643_vm3, %v794_v31  ;;  %v1962_v19 = vld [vmem:[#allocation2 + $0x3] sm:$0xff]  ;;  %v640_v31 = vadd.f32 %v13760_v1, %v15605_v47  ;;  %v634_v22 = vpop.f32.mrf.mxu1 }
 0x18d   : > { %13853 = vmatmul.mubr.msk.f32.gmra.mxu0 %vm643_vm3, %v15977_v25  ;;  %13805 = vmatprep.mubr.msk.f32.mxu1 %vm643_vm3, %v15979_v28  ;;  %v1576_v1 = vld [vmem:[#allocation2 + $0xa] sm:$0xff] }
 0x18e   : > { %13855 = vmatprep.mubr.msk.f32.mxu0 %vm643_vm3, %v15986_v34  ;;  %v796_v51 = vpop.permute.xlu1 %795  ;;  %11514 = vst.msk [vmem:[%s15611_s18 + $0xf8] sm:$0xff] %vm643_vm3, %v640_v31  ;;  %v13765_v13 = vpop.f32.mrf.mxu1  ;;  %799 = vrot.lane.b32.xlu1 %v640_v31, %s15191_s19 }
 0x18f   : > { %v15993_v37 = vld [vmem:[#allocation2 + $0x159] sm:$0xff]  ;;  %v15997_v44 = vld [vmem:[#allocation2 + $0x169] sm:$0xff]  ;;  %863 = vst.msk [vmem:[#allocation2 + $0x18a] sm:$0xff] %vm643_vm3, %v796_v51  ;;  %v635_v51 = vadd.f32 %v15605_v47, %v634_v22  ;;  %v16032_v52 = vadd.f32 %v13815_v4, %v13765_v13 }
 0x190   : > { %19994 = vst [vmem:[#allocation20_spill] sm:$0xff] %v15993_v37  ;;  %v15995_v40 = vld [vmem:[#allocation2 + $0x158] sm:$0xff]  ;;  %19995 = vst [vmem:[#allocation21_spill] sm:$0xff] %v15997_v44  ;;  %13806 = vmatmul.mubr.msk.f32.gmra.mxu1 %vm643_vm3, %v15993_v37  ;;  %v16003_v56 = vld [vmem:[#allocation2 + $0x168] sm:$0xff] }
 0x191   : > { %13856 = vmatmul.mubr.msk.f32.gmra.mxu0 %vm643_vm3, %v15995_v40  ;;  %13808 = vmatprep.mubr.msk.f32.mxu1 %vm643_vm3, %v15997_v44  ;;  %v1963_v44 = vld [vmem:[#allocation2 + $0xb] sm:$0xff]  ;;  %11513 = vst.msk [vmem:[%s15611_s18 + $0xf0] sm:$0xff] %vm643_vm3, %v635_v51  ;;  %19998 = vst [vmem:[#allocation24_spill] sm:$0xff] %v16032_v52  ;;  %v16039_v47 = vld [vmem:[%s19837_s3 + $0x38] sm:$0xff] }
 0x192   : > { %13858 = vmatprep.mubr.msk.f32.mxu0 %vm643_vm3, %v16003_v56  ;;  %v16011_v37 = vld [vmem:[#allocation2 + $0x171] sm:$0xff]  ;;  %797 = vrot.lane.b32.xlu0 %v635_v51, %s15191_s19  ;;  %v16052_v4 = vld [vmem:[#allocation2 + $0x22] sm:$0xff] }
 0x193   : > { %19996 = vst [vmem:[#allocation22_spill] sm:$0xff] %v16011_v37  ;;  %v16013_v28 = vld [vmem:[#allocation2 + $0x170] sm:$0xff]  ;;  %v16054_v13 = vld [vmem:[#allocation2 + $0x23] sm:$0xff]  ;;  %v16078_v52 = vld [vmem:[#allocation2 + $0x3b] sm:$0xff] }
 0x194   : > { %13809 = vmatmul.mubr.msk.f32.gmra.mxu1 %vm643_vm3, %v16011_v37  ;;  %v16028_v37 = vld [vmem:[#allocation2 + $0x1a] sm:$0xff]  ;;  %v16044_v22 = vld [vmem:[%s19837_s3 + $0x30] sm:$0xff]  ;;  %20001 = vst [vmem:[#allocation27_spill] sm:$0xff] %v16054_v13  ;;  %20004 = vst [vmem:[#allocation30_spill] sm:$0xff] %v16078_v52 }
 0x195   : > { %13859 = vmatmul.mubr.msk.f32.gmra.mxu0 %vm643_vm3, %v16013_v28  ;;  %13863 = vmatprep.mubr.msk.f32.mxu1 %vm643_vm3, %v1575_v10  ;;  %v16046_v10 = vpop.f32.mrf.mxu1 }
 0x196   : > { %13913 = vmatprep.mubr.msk.f32.mxu0 %vm643_vm3, %v1962_v19  ;;  %19999 = vst [vmem:[#allocation25_spill] sm:$0xff] %v16046_v10  ;;  %v16048_v19 = vpop.f32.mrf.mxu0  ;;  %v16102_v10 = vld [vmem:[#allocation2 + $0x6a] sm:$0xff] }
 0x197   : > { %20000 = vst [vmem:[#allocation26_spill] sm:$0xff] %v16048_v19  ;;  %v16084_v19 = vld [vmem:[#allocation2 + $0x4a] sm:$0xff] }
 0x198   : > { %13864 = vmatmul.mubr.msk.f32.vlgmr.msra.gmra.mxu1 %vm643_vm3, %v1576_v1  ;;  %v13818_v31 = vpop.f32.mrf.mxu0  ;;  %v16076_v1 = vld [vmem:[#allocation2 + $0x3a] sm:$0xff] }
 0x199   : > { %13914 = vmatmul.mubr.msk.f32.vlgmr.msra.gmra.mxu0 %vm643_vm3, %v1963_v44  ;;  %13962 = vmatpush3.msra.mxu1 %v15760_v48  ;;  %v13768_v44 = vpop.f32.mrf.mxu1  ;;  %v16068_v48 = vld [vmem:[#allocation2 + $0x33] sm:$0xff] }
 0x19a   : > { %14012 = vmatpush3.msra.mxu0 %v15752_v45  ;;  %13866 = vmatprep.mubr.msk.f32.mxu1 %vm643_vm3, %v16028_v37  ;;  %v16066_v45 = vld [vmem:[#allocation2 + $0x32] sm:$0xff]  ;;  %20002 = vst [vmem:[#allocation28_spill] sm:$0xff] %v16068_v48  ;;  %v16070_v51 = vadd.f32 %v13818_v31, %v13768_v44 }
 0x19b   : > { %13916 = vmatprep.mubr.msk.f32.mxu0 %vm643_vm3, %v16030_v59  ;;  %14111 = vmatprep.subr.mxu0 %v16039_v47  ;;  %v16086_v44 = vld [vmem:[#allocation2 + $0x4b] sm:$0xff]  ;;  %v1972_v59 = vld [vmem:[#allocation2 + $0x7b] sm:$0xff] }
 0x19c   : > { %14061 = vmatprep.subr.mxu1 %v16044_v22  ;;  %13867 = vmatmul.mubr.msk.f32.gmra.mxu1 %vm643_vm3, %v16052_v4  ;;  %20003 = vst [vmem:[#allocation29_spill] sm:$0xff] %v16070_v51  ;;  %20005 = vst [vmem:[#allocation31_spill] sm:$0xff] %v16086_v44  ;;  %v16092_v31 = vld [vmem:[#allocation2 + $0x52] sm:$0xff] }
 0x19d   : > { %13917 = vmatmul.mubr.msk.f32.gmra.mxu0 %vm643_vm3, %v16054_v13  ;;  %13869 = vmatprep.mubr.msk.f32.mxu1 %vm643_vm3, %v16066_v45  ;;  %v1969_v51 = vld [vmem:[#allocation2 + $0x53] sm:$0xff]  ;;  %v1971_v13 = vld [vmem:[#allocation2 + $0x6b] sm:$0xff] }
 0x19e   : > { %13919 = vmatprep.mubr.msk.f32.mxu0 %vm643_vm3, %v16068_v48  ;;  %v16097_v48 = vld [vmem:[#allocation2 + $0x62] sm:$0xff] }
 0x1a0   : > { %13870 = vmatmul.mubr.msk.f32.gmra.mxu1 %vm643_vm3, %v16076_v1 }
 0x1a1   : > { %13920 = vmatmul.mubr.msk.f32.gmra.mxu0 %vm643_vm3, %v16078_v52  ;;  %13872 = vmatprep.mubr.msk.f32.mxu1 %vm643_vm3, %v16084_v19  ;;  %v1970_v52 = vld [vmem:[#allocation2 + $0x63] sm:$0xff] }
 0x1a2   : > { %13922 = vmatprep.mubr.msk.f32.mxu0 %vm643_vm3, %v16086_v44  ;;  %v16107_v44 = vld [vmem:[#allocation2 + $0x7a] sm:$0xff] }
 0x1a4   : > { %13873 = vmatmul.mubr.msk.f32.gmra.mxu1 %vm643_vm3, %v16092_v31 }
 0x1a5   : > { %13923 = vmatmul.mubr.msk.f32.gmra.mxu0 %vm643_vm3, %v1969_v51  ;;  %13875 = vmatprep.mubr.msk.f32.mxu1 %vm643_vm3, %v16097_v48  ;;  %v16112_v51 = vld [vmem:[#allocation2 + $0x82] sm:$0xff] }
 0x1a6   : > { %13925 = vmatprep.mubr.msk.f32.mxu0 %vm643_vm3, %v1970_v52  ;;  %v16117_v52 = vld [vmem:[#allocation2 + $0x92] sm:$0xff] }
 0x1a8   : > { %13876 = vmatmul.mubr.msk.f32.gmra.mxu1 %vm643_vm3, %v16102_v10 }
 0x1a9   : > { %13926 = vmatmul.mubr.msk.f32.gmra.mxu0 %vm643_vm3, %v1971_v13  ;;  %13878 = vmatprep.mubr.msk.f32.mxu1 %vm643_vm3, %v16107_v44  ;;  %v16122_v13 = vld [vmem:[#allocation2 + $0x9a] sm:$0xff] }
 0x1aa   : > { %13928 = vmatprep.mubr.msk.f32.mxu0 %vm643_vm3, %v1972_v59  ;;  %v16127_v59 = vld [vmem:[#allocation2 + $0xaa] sm:$0xff] }
 0x1ac   : > { %13879 = vmatmul.mubr.msk.f32.gmra.mxu1 %vm643_vm3, %v16112_v51 }
 0x1ad   : > { %13929 = vmatmul.mubr.msk.f32.gmra.mxu0 %vm643_vm3, %v1973_v49  ;;  %13881 = vmatprep.mubr.msk.f32.mxu1 %vm643_vm3, %v16117_v52  ;;  %v16132_v49 = vld [vmem:[#allocation2 + $0xb2] sm:$0xff] }
 0x1ae   : > { %13931 = vmatprep.mubr.msk.f32.mxu0 %vm643_vm3, %v1974_v41  ;;  %20006 = vst [vmem:[#allocation32_spill] sm:$0xff] %v16132_v49  ;;  %v16137_v41 = vld [vmem:[#allocation2 + $0xc2] sm:$0xff] }
 0x1af   : > { %20007 = vst [vmem:[#allocation33_spill] sm:$0xff] %v16137_v41 }
 0x1b0   : > { %13882 = vmatmul.mubr.msk.f32.gmra.mxu1 %vm643_vm3, %v16122_v13 }
 0x1b1   : > { %13932 = vmatmul.mubr.msk.f32.gmra.mxu0 %vm643_vm3, %v1975_v38  ;;  %13884 = vmatprep.mubr.msk.f32.mxu1 %vm643_vm3, %v16127_v59  ;;  %v16142_v38 = vld [vmem:[#allocation2 + $0xca] sm:$0xff] }
 0x1b2   : > { %13934 = vmatprep.mubr.msk.f32.mxu0 %vm643_vm3, %v1976_v35  ;;  %20008 = vst [vmem:[#allocation34_spill] sm:$0xff] %v16142_v38  ;;  %v16147_v35 = vld [vmem:[#allocation2 + $0xda] sm:$0xff] }
 0x1b3   : > { %20009 = vst [vmem:[#allocation35_spill] sm:$0xff] %v16147_v35 }
 0x1b4   : > { %13885 = vmatmul.mubr.msk.f32.gmra.mxu1 %vm643_vm3, %v16132_v49  ;;  %v1980_v49 = vld [vmem:[#allocation2 + $0xdb] sm:$0xff] }
 0x1b5   : > { %13935 = vmatmul.mubr.msk.f32.gmra.mxu0 %vm643_vm3, %v1977_v32  ;;  %13887 = vmatprep.mubr.msk.f32.mxu1 %vm643_vm3, %v16137_v41  ;;  %v16152_v32 = vld [vmem:[#allocation2 + $0xe2] sm:$0xff] }
 0x1b6   : > { %13937 = vmatprep.mubr.msk.f32.mxu0 %vm643_vm3, %v1978_v29  ;;  %20010 = vst [vmem:[#allocation36_spill] sm:$0xff] %v16152_v32  ;;  %v1981_v41 = vld [vmem:[#allocation2 + $0xe3] sm:$0xff]  ;;  %v16157_v29 = vld [vmem:[#allocation2 + $0xf2] sm:$0xff] }
 0x1b7   : > { %20011 = vst [vmem:[#allocation37_spill] sm:$0xff] %v16157_v29 }
 0x1b8   : > { %13888 = vmatmul.mubr.msk.f32.gmra.mxu1 %vm643_vm3, %v16142_v38  ;;  %v1982_v38 = vld [vmem:[#allocation2 + $0xf3] sm:$0xff] }
 0x1b9   : > { %13938 = vmatmul.mubr.msk.f32.gmra.mxu0 %vm643_vm3, %v1979_v26  ;;  %13890 = vmatprep.mubr.msk.f32.mxu1 %vm643_vm3, %v16147_v35  ;;  %v16162_v26 = vld [vmem:[#allocation2 + $0xfa] sm:$0xff] }
 0x1ba   : > { %13940 = vmatprep.mubr.msk.f32.mxu0 %vm643_vm3, %v1980_v49  ;;  %20012 = vst [vmem:[#allocation38_spill] sm:$0xff] %v16162_v26  ;;  %v1983_v35 = vld [vmem:[#allocation2 + $0xfb] sm:$0xff]  ;;  %v16167_v49 = vld [vmem:[#allocation2 + $0x10a] sm:$0xff] }
 0x1bb   : > { %20013 = vst [vmem:[#allocation39_spill] sm:$0xff] %v16167_v49 }
 0x1bc   : > { %13891 = vmatmul.mubr.msk.f32.gmra.mxu1 %vm643_vm3, %v16152_v32  ;;  %v1984_v32 = vld [vmem:[#allocation2 + $0x10b] sm:$0xff] }
 0x1bd   : > { %13941 = vmatmul.mubr.msk.f32.gmra.mxu0 %vm643_vm3, %v1981_v41  ;;  %13893 = vmatprep.mubr.msk.f32.mxu1 %vm643_vm3, %v16157_v29  ;;  %v16172_v41 = vld [vmem:[#allocation2 + $0x112] sm:$0xff] }
 0x1be   : > { %13943 = vmatprep.mubr.msk.f32.mxu0 %vm643_vm3, %v1982_v38  ;;  %20014 = vst [vmem:[#allocation40_spill] sm:$0xff] %v16172_v41  ;;  %v1985_v29 = vld [vmem:[#allocation2 + $0x113] sm:$0xff]  ;;  %v16177_v38 = vld [vmem:[#allocation2 + $0x122] sm:$0xff] }
 0x1bf   : > { %20015 = vst [vmem:[#allocation41_spill] sm:$0xff] %v16177_v38 }
 0x1c0   : > { %13894 = vmatmul.mubr.msk.f32.gmra.mxu1 %vm643_vm3, %v16162_v26  ;;  %v1986_v26 = vld [vmem:[#allocation2 + $0x123] sm:$0xff] }
 0x1c1   : > { %13944 = vmatmul.mubr.msk.f32.gmra.mxu0 %vm643_vm3, %v1983_v35  ;;  %13896 = vmatprep.mubr.msk.f32.mxu1 %vm643_vm3, %v16167_v49  ;;  %v16182_v35 = vld [vmem:[#allocation2 + $0x12a] sm:$0xff] }
 0x1c2   : > { %13946 = vmatprep.mubr.msk.f32.mxu0 %vm643_vm3, %v1984_v32  ;;  %20016 = vst [vmem:[#allocation42_spill] sm:$0xff] %v16182_v35  ;;  %v1987_v49 = vld [vmem:[#allocation2 + $0x12b] sm:$0xff]  ;;  %v16187_v32 = vld [vmem:[#allocation2 + $0x13a] sm:$0xff] }
 0x1c3   : > { %20017 = vst [vmem:[#allocation43_spill] sm:$0xff] %v16187_v32 }
 0x1c4   : > { %13897 = vmatmul.mubr.msk.f32.gmra.mxu1 %vm643_vm3, %v16172_v41  ;;  %v1988_v41 = vld [vmem:[#allocation2 + $0x13b] sm:$0xff] }
 0x1c5   : > { %13947 = vmatmul.mubr.msk.f32.gmra.mxu0 %vm643_vm3, %v1985_v29  ;;  %13899 = vmatprep.mubr.msk.f32.mxu1 %vm643_vm3, %v16177_v38  ;;  %v16192_v29 = vld [vmem:[#allocation2 + $0x142] sm:$0xff] }
 0x1c6   : > { %13949 = vmatprep.mubr.msk.f32.mxu0 %vm643_vm3, %v1986_v26  ;;  %20018 = vst [vmem:[#allocation44_spill] sm:$0xff] %v16192_v29  ;;  %v1989_v38 = vld [vmem:[#allocation2 + $0x143] sm:$0xff]  ;;  %v16197_v26 = vld [vmem:[#allocation2 + $0x152] sm:$0xff] }
 0x1c7   : > { %20019 = vst [vmem:[#allocation45_spill] sm:$0xff] %v16197_v26 }
 0x1c8   : > { %13900 = vmatmul.mubr.msk.f32.gmra.mxu1 %vm643_vm3, %v16182_v35  ;;  %v1990_v35 = vld [vmem:[#allocation2 + $0x153] sm:$0xff] }
 0x1c9   : > { %13950 = vmatmul.mubr.msk.f32.gmra.mxu0 %vm643_vm3, %v1987_v49  ;;  %13902 = vmatprep.mubr.msk.f32.mxu1 %vm643_vm3, %v16187_v32  ;;  %v16202_v49 = vld [vmem:[#allocation2 + $0x15a] sm:$0xff] }
 0x1ca   : > { %13952 = vmatprep.mubr.msk.f32.mxu0 %vm643_vm3, %v1988_v41  ;;  %20020 = vst [vmem:[#allocation46_spill] sm:$0xff] %v16202_v49  ;;  %v1991_v32 = vld [vmem:[#allocation2 + $0x15b] sm:$0xff]  ;;  %v16207_v41 = vld [vmem:[#allocation2 + $0x16a] sm:$0xff] }
 0x1cc   : > { %13903 = vmatmul.mubr.msk.f32.gmra.mxu1 %vm643_vm3, %v16192_v29  ;;  %v1992_v29 = vld [vmem:[#allocation2 + $0x16b] sm:$0xff] }
 0x1cd   : > { %13953 = vmatmul.mubr.msk.f32.gmra.mxu0 %vm643_vm3, %v1989_v38  ;;  %13905 = vmatprep.mubr.msk.f32.mxu1 %vm643_vm3, %v16197_v26  ;;  %v2349_v38 = vld [vmem:[#allocation2 + $0x4] sm:$0xff]  ;;  %v16212_v26 = vld [vmem:[#allocation2 + $0x172] sm:$0xff] }
 0x1ce   : > { %13955 = vmatprep.mubr.msk.f32.mxu0 %vm643_vm3, %v1990_v35  ;;  %v1993_v35 = vld [vmem:[#allocation2 + $0x173] sm:$0xff] }
 0x1d0   : > { %13906 = vmatmul.mubr.msk.f32.gmra.mxu1 %vm643_vm3, %v16202_v49  ;;  %v16220_v49 = vld [vmem:[#allocation2 + $0x1c] sm:$0xff] }
 0x1d1   : > { %13956 = vmatmul.mubr.msk.f32.gmra.mxu0 %vm643_vm3, %v1991_v32  ;;  %13908 = vmatprep.mubr.msk.f32.mxu1 %vm643_vm3, %v16207_v41  ;;  %v2350_v32 = vld [vmem:[#allocation2 + $0xc] sm:$0xff] }
 0x1d2   : > { %13958 = vmatprep.mubr.msk.f32.mxu0 %vm643_vm3, %v1992_v29  ;;  %v16228_v29 = vld [vmem:[%s19837_s3 + $0x48] sm:$0xff] }
 0x1d4   : > { %13909 = vmatmul.mubr.msk.f32.gmra.mxu1 %vm643_vm3, %v16212_v26 }
 0x1d5   : > { %13959 = vmatmul.mubr.msk.f32.gmra.mxu0 %vm643_vm3, %v1993_v35  ;;  %13963 = vmatprep.mubr.msk.f32.mxu1 %vm643_vm3, %v2349_v38  ;;  %v16233_v38 = vld [vmem:[%s19837_s3 + $0x40] sm:$0xff] }
 0x1d6   : > { %14013 = vmatprep.mubr.msk.f32.mxu0 %vm643_vm3, %v15590_v43  ;;  %v16238_v43 = vld [vmem:[#allocation2 + $0x24] sm:$0xff] }
 0x1d7   : > { %v2767_v35 = vld [vmem:[#allocation2 + $0x180] sm:$0xff] }
 0x1d8   : > { %13964 = vmatmul.mubr.msk.f32.vlgmr.msra.gmra.mxu1 %vm643_vm3, %v2350_v32  ;;  %v2768_v32 = vld [vmem:[#allocation2 + $0x188] sm:$0xff] }
 0x1d9   : > { %14014 = vmatmul.mubr.msk.f32.vlgmr.msra.gmra.mxu0 %vm643_vm3, %v15600_v46  ;;  %14062 = vmatpush3.msra.mxu1 %v16044_v22  ;;  %v16249_v46 = vld [vmem:[#allocation2 + $0x34] sm:$0xff] }
 0x1da   : > { %14112 = vmatpush3.msra.mxu0 %v16039_v47  ;;  %14016 = vmatprep.mubr.msk.f32.mxu0 %vm643_vm3, %v15769_v54  ;;  %v16255_v54 = vld [vmem:[#allocation2 + $0x3c] sm:$0xff]  ;;  %v16261_v47 = vld [vmem:[#allocation2 + $0x4c] sm:$0xff] }
 0x1db   : > { %13966 = vmatprep.mubr.msk.f32.mxu1 %vm643_vm3, %v16220_v49  ;;  %14211 = vmatprep.subr.mxu0 %v16228_v29 }
 0x1dc   : > { %14161 = vmatprep.subr.mxu1 %v16233_v38  ;;  %13967 = vmatmul.mubr.msk.f32.gmra.mxu1 %vm643_vm3, %v16238_v43 }
 0x1dd   : > { %14017 = vmatmul.mubr.msk.f32.gmra.mxu0 %vm643_vm3, %v15779_v58  ;;  %13969 = vmatprep.mubr.msk.f32.mxu1 %vm643_vm3, %v16249_v46  ;;  %v16267_v58 = vld [vmem:[#allocation2 + $0x54] sm:$0xff] }
 0x1de   : > { %14019 = vmatprep.mubr.msk.f32.mxu0 %vm643_vm3, %v15789_v61  ;;  %v16273_v61 = vld [vmem:[#allocation2 + $0x64] sm:$0xff] }
 0x1e0   : > { %13970 = vmatmul.mubr.msk.f32.gmra.mxu1 %vm643_vm3, %v16255_v54 }
 0x1e1   : > { %14020 = vmatmul.mubr.msk.f32.gmra.mxu0 %vm643_vm3, %v15797_v0  ;;  %13972 = vmatprep.mubr.msk.f32.mxu1 %vm643_vm3, %v16261_v47  ;;  %v16279_v0 = vld [vmem:[#allocation2 + $0x6c] sm:$0xff] }
 0x1e2   : > { %14022 = vmatprep.mubr.msk.f32.mxu0 %vm643_vm3, %v15807_v3  ;;  %v16285_v3 = vld [vmem:[#allocation2 + $0x7c] sm:$0xff] }
 0x1e4   : > { %13973 = vmatmul.mubr.msk.f32.gmra.mxu1 %vm643_vm3, %v16267_v58 }
 0x1e5   : > { %14023 = vmatmul.mubr.msk.f32.gmra.mxu0 %vm643_vm3, %v15815_v6  ;;  %13975 = vmatprep.mubr.msk.f32.mxu1 %vm643_vm3, %v16273_v61  ;;  %v16291_v6 = vld [vmem:[#allocation2 + $0x84] sm:$0xff] }
 0x1e6   : > { %14025 = vmatprep.mubr.msk.f32.mxu0 %vm643_vm3, %v15825_v9  ;;  %v16297_v9 = vld [vmem:[#allocation2 + $0x94] sm:$0xff] }
 0x1e8   : > { %13976 = vmatmul.mubr.msk.f32.gmra.mxu1 %vm643_vm3, %v16279_v0 }
 0x1e9   : > { %14026 = vmatmul.mubr.msk.f32.gmra.mxu0 %vm643_vm3, %v15833_v12  ;;  %13978 = vmatprep.mubr.msk.f32.mxu1 %vm643_vm3, %v16285_v3  ;;  %v16303_v12 = vld [vmem:[#allocation2 + $0x9c] sm:$0xff] }
 0x1ea   : > { %14028 = vmatprep.mubr.msk.f32.mxu0 %vm643_vm3, %v15843_v15  ;;  %v16309_v15 = vld [vmem:[#allocation2 + $0xac] sm:$0xff] }
 0x1ec   : > { %13979 = vmatmul.mubr.msk.f32.gmra.mxu1 %vm643_vm3, %v16291_v6 }
 0x1ed   : > { %14029 = vmatmul.mubr.msk.f32.gmra.mxu0 %vm643_vm3, %v15851_v18  ;;  %13981 = vmatprep.mubr.msk.f32.mxu1 %vm643_vm3, %v16297_v9  ;;  %v16315_v18 = vld [vmem:[#allocation2 + $0xb4] sm:$0xff] }
 0x1ee   : > { %14031 = vmatprep.mubr.msk.f32.mxu0 %vm643_vm3, %v15861_v21  ;;  %v16321_v21 = vld [vmem:[#allocation2 + $0xc4] sm:$0xff] }
 0x1f0   : > { %13982 = vmatmul.mubr.msk.f32.gmra.mxu1 %vm643_vm3, %v16303_v12 }
 0x1f1   : > { %14032 = vmatmul.mubr.msk.f32.gmra.mxu0 %vm643_vm3, %v15869_v24  ;;  %13984 = vmatprep.mubr.msk.f32.mxu1 %vm643_vm3, %v16309_v15  ;;  %v16327_v24 = vld [vmem:[#allocation2 + $0xcc] sm:$0xff] }
 0x1f2   : > { %14034 = vmatprep.mubr.msk.f32.mxu0 %vm643_vm3, %v15879_v27  ;;  %v16333_v27 = vld [vmem:[#allocation2 + $0xdc] sm:$0xff] }
 0x1f4   : > { %13985 = vmatmul.mubr.msk.f32.gmra.mxu1 %vm643_vm3, %v16315_v18 }
 0x1f5   : > { %14035 = vmatmul.mubr.msk.f32.gmra.mxu0 %vm643_vm3, %v15887_v30  ;;  %13987 = vmatprep.mubr.msk.f32.mxu1 %vm643_vm3, %v16321_v21  ;;  %v16339_v30 = vld [vmem:[#allocation2 + $0xe4] sm:$0xff] }
 0x1f6   : > { %14037 = vmatprep.mubr.msk.f32.mxu0 %vm643_vm3, %v15897_v33  ;;  %v16345_v33 = vld [vmem:[#allocation2 + $0xf4] sm:$0xff] }
 0x1f8   : > { %13988 = vmatmul.mubr.msk.f32.gmra.mxu1 %vm643_vm3, %v16327_v24 }
 0x1f9   : > { %14038 = vmatmul.mubr.msk.f32.gmra.mxu0 %vm643_vm3, %v15905_v36  ;;  %13990 = vmatprep.mubr.msk.f32.mxu1 %vm643_vm3, %v16333_v27  ;;  %v16351_v36 = vld [vmem:[#allocation2 + $0xfc] sm:$0xff] }
 0x1fa   : > { %14040 = vmatprep.mubr.msk.f32.mxu0 %vm643_vm3, %v15915_v39  ;;  %v16357_v39 = vld [vmem:[#allocation2 + $0x10c] sm:$0xff] }
 0x1fc   : > { %13991 = vmatmul.mubr.msk.f32.gmra.mxu1 %vm643_vm3, %v16339_v30 }
 0x1fd   : > { %14041 = vmatmul.mubr.msk.f32.gmra.mxu0 %vm643_vm3, %v15923_v42  ;;  %13993 = vmatprep.mubr.msk.f32.mxu1 %vm643_vm3, %v16345_v33  ;;  %v16363_v42 = vld [vmem:[#allocation2 + $0x114] sm:$0xff] }
 0x1fe   : > { %14043 = vmatprep.mubr.msk.f32.mxu0 %vm643_vm3, %v15933_v50  ;;  %v16369_v50 = vld [vmem:[#allocation2 + $0x124] sm:$0xff] }
 0x200   : > { %13994 = vmatmul.mubr.msk.f32.gmra.mxu1 %vm643_vm3, %v16351_v36 }
 0x201   : > { %14044 = vmatmul.mubr.msk.f32.gmra.mxu0 %vm643_vm3, %v15941_v55  ;;  %13996 = vmatprep.mubr.msk.f32.mxu1 %vm643_vm3, %v16357_v39  ;;  %v16375_v55 = vld [vmem:[#allocation2 + $0x12c] sm:$0xff] }
 0x202   : > { %14046 = vmatprep.mubr.msk.f32.mxu0 %vm643_vm3, %v15951_v62  ;;  %v16381_v62 = vld [vmem:[#allocation2 + $0x13c] sm:$0xff] }
 0x204   : > { %13997 = vmatmul.mubr.msk.f32.gmra.mxu1 %vm643_vm3, %v16363_v42  ;;  %v798_v22 = vpop.permute.xlu0 %797 }
 0x205   : > { %14047 = vmatmul.mubr.msk.f32.gmra.mxu0 %vm643_vm3, %v15959_v7  ;;  %13999 = vmatprep.mubr.msk.f32.mxu1 %vm643_vm3, %v16369_v50  ;;  %v16387_v7 = vld [vmem:[#allocation2 + $0x144] sm:$0xff]  ;;  %864 = vst.msk [vmem:[#allocation2 + $0x19a] sm:$0xff] %vm643_vm3, %v798_v22  ;;  %v16426_v22 = vld [vmem:[%s19837_s3 + $0x58] sm:$0xff] }
 0x206   : > { %14049 = vmatprep.mubr.msk.f32.mxu0 %vm643_vm3, %v15969_v16  ;;  %20021 = vst [vmem:[#allocation47_spill] sm:$0xff] %v16387_v7  ;;  %v16393_v16 = vld [vmem:[#allocation2 + $0x154] sm:$0xff] }
 0x207   : > { %20022 = vst [vmem:[#allocation48_spill] sm:$0xff] %v16393_v16 }
 0x208   : > { %14000 = vmatmul.mubr.msk.f32.gmra.mxu1 %vm643_vm3, %v16375_v55 }
 0x209   : > { %14050 = vmatmul.mubr.msk.f32.gmra.mxu0 %vm643_vm3, %v15977_v25  ;;  %14002 = vmatprep.mubr.msk.f32.mxu1 %vm643_vm3, %v16381_v62  ;;  %v800_v25 = vpop.permute.xlu1 %799 }
 0x20a   : > { %14052 = vmatprep.mubr.msk.f32.mxu0 %vm643_vm3, %v15986_v34  ;;  %865 = vst.msk [vmem:[#allocation2 + $0x1a2] sm:$0xff] %vm643_vm3, %v800_v25  ;;  %v16401_v34 = vld [vmem:[#allocation2 + $0x15c] sm:$0xff] }
 0x20b   : > { %20023 = vst [vmem:[#allocation49_spill] sm:$0xff] %v16401_v34  ;;  %v15108_v25 = vld [vmem:[#allocation2 + $0x19] sm:$0xff] }
 0x20c   : > { %14003 = vmatmul.mubr.msk.f32.gmra.mxu1 %vm643_vm3, %v16387_v7  ;;  %v20054_v7 = vld [vmem:[#allocation20_spill] sm:$0xff] }
 0x20d   : > { %14053 = vmatmul.mubr.msk.f32.gmra.mxu0 %vm643_vm3, %v15995_v40  ;;  %14005 = vmatprep.mubr.msk.f32.mxu1 %vm643_vm3, %v16393_v16  ;;  %v16407_v40 = vld [vmem:[#allocation2 + $0x16c] sm:$0xff] }
 0x20e   : > { %14055 = vmatprep.mubr.msk.f32.mxu0 %vm643_vm3, %v16003_v56  ;;  %20024 = vst [vmem:[#allocation50_spill] sm:$0xff] %v16407_v40  ;;  %v16412_v56 = vld [vmem:[#allocation2 + $0x174] sm:$0xff] }
 0x20f   : > { %20025 = vst [vmem:[#allocation51_spill] sm:$0xff] %v16412_v56 }
 0x210   : > { %14006 = vmatmul.mubr.msk.f32.gmra.mxu1 %vm643_vm3, %v16401_v34  ;;  %v20049_v34 = vld [vmem:[#allocation18_spill] sm:$0xff] }
 0x211   : > { %14056 = vmatmul.mubr.msk.f32.gmra.mxu0 %vm643_vm3, %v16013_v28  ;;  %14008 = vmatprep.mubr.msk.f32.mxu1 %vm643_vm3, %v16407_v40  ;;  %v15109_v28 = vld [vmem:[#allocation2 + $0x21] sm:$0xff] }
 0x212   : > { %14058 = vmatprep.mubr.msk.f32.mxu0 %vm643_vm3, %v2767_v35  ;;  %v16431_v35 = vld [vmem:[%s19837_s3 + $0x50] sm:$0xff] }
 0x214   : > { %14009 = vmatmul.mubr.msk.f32.gmra.mxu1 %vm643_vm3, %v16412_v56  ;;  %v20045_v56 = vld [vmem:[#allocation16_spill] sm:$0xff] }
 0x215   : > { %14059 = vmatmul.mubr.msk.f32.gmra.mxu0 %vm643_vm3, %v2768_v32  ;;  %14063 = vmatprep.mubr.msk.f32.mxu1 %vm643_vm3, %v15108_v25 }
 0x216   : > { %14113 = vmatprep.mubr.msk.f32.mxu0 %vm643_vm3, %v16028_v37  ;;  %v16451_v37 = vpop.f32.mrf.mxu0 }
 0x218   : > { %14064 = vmatmul.mubr.msk.f32.vlgmr.msra.gmra.mxu1 %vm643_vm3, %v15109_v28 }
 0x219   : > { %14114 = vmatmul.mubr.msk.f32.vlgmr.msra.gmra.mxu0 %vm643_vm3, %v16052_v4  ;;  %14066 = vmatprep.mubr.msk.f32.mxu1 %vm643_vm3, %v15767_v53  ;;  %v16449_v53 = vpop.f32.mrf.mxu1 }
 0x21a   : > { %14212 = vmatpush3.msra.mxu0 %v16228_v29  ;;  %14116 = vmatprep.mubr.msk.f32.mxu0 %vm643_vm3, %v16066_v45 }
 0x21b   : > { %14162 = vmatpush3.msra.mxu1 %v16233_v38  ;;  %14311 = vmatprep.subr.mxu0 %v16426_v22 }
 0x21c   : > { %14261 = vmatprep.subr.mxu1 %v16431_v35  ;;  %14067 = vmatmul.mubr.msk.f32.gmra.mxu1 %vm643_vm3, %v15777_v57 }
 0x21d   : > { %14117 = vmatmul.mubr.msk.f32.gmra.mxu0 %vm643_vm3, %v16076_v1  ;;  %14069 = vmatprep.mubr.msk.f32.mxu1 %vm643_vm3, %v15781_v60 }
 0x21e   : > { %14119 = vmatprep.mubr.msk.f32.mxu0 %vm643_vm3, %v16084_v19 }
 0x21f   : > { %v13771_v4 = vpop.f32.mrf.mxu1 }
 0x220   : > { %v13821_v45 = vpop.f32.mrf.mxu0  ;;  %14070 = vmatmul.mubr.msk.f32.gmra.mxu1 %vm643_vm3, %v15795_v63 }
 0x221   : > { %14120 = vmatmul.mubr.msk.f32.gmra.mxu0 %vm643_vm3, %v16092_v31  ;;  %v16457_v57 = vadd.f32 %v13821_v45, %v13771_v4  ;;  %14072 = vmatprep.mubr.msk.f32.mxu1 %vm643_vm3, %v15799_v2  ;;  %v1115_v60 = vpop.f32.mrf.mxu1 }
 0x222   : > { %14122 = vmatprep.mubr.msk.f32.mxu0 %vm643_vm3, %v16097_v48  ;;  %v1436_v19 = vpop.f32.mrf.mxu0 }
 0x223   : > { %v16463_v1 = vadd.f32 %v1436_v19, %v1115_v60  ;;  %v13774_v29 = vpop.f32.mrf.mxu1  ;;  %v20027_v19 = vld [vmem:[#allocation7_spill] sm:$0xff] }
 0x224   : > { %v13824_v38 = vpop.f32.mrf.mxu0  ;;  %14073 = vmatmul.mubr.msk.f32.gmra.mxu1 %vm643_vm3, %v15813_v5 }
 0x225   : > { %14123 = vmatmul.mubr.msk.f32.gmra.mxu0 %vm643_vm3, %v16102_v10  ;;  %v16469_v63 = vadd.f32 %v13824_v38, %v13774_v29  ;;  %14075 = vmatprep.mubr.msk.f32.mxu1 %vm643_vm3, %v15817_v8  ;;  %v1125_v2 = vpop.f32.mrf.mxu1 }
 0x226   : > { %14125 = vmatprep.mubr.msk.f32.mxu0 %vm643_vm3, %v16107_v44  ;;  %v1446_v48 = vpop.f32.mrf.mxu0 }
 0x227   : > { %v16475_v31 = vadd.f32 %v1446_v48, %v1125_v2  ;;  %v13777_v32 = vpop.f32.mrf.mxu1 }
 0x228   : > { %v13827_v25 = vpop.f32.mrf.mxu0  ;;  %14076 = vmatmul.mubr.msk.f32.gmra.mxu1 %vm643_vm3, %v15831_v11 }
 0x229   : > { %14126 = vmatmul.mubr.msk.f32.gmra.mxu0 %vm643_vm3, %v16112_v51  ;;  %v16481_v5 = vadd.f32 %v13827_v25, %v13777_v32  ;;  %14078 = vmatprep.mubr.msk.f32.mxu1 %vm643_vm3, %v15835_v14  ;;  %v1135_v8 = vpop.f32.mrf.mxu1  ;;  %v20029_v32 = vld [vmem:[#allocation8_spill] sm:$0xff] }
 0x22a   : > { %14128 = vmatprep.mubr.msk.f32.mxu0 %vm643_vm3, %v16117_v52  ;;  %v1456_v10 = vpop.f32.mrf.mxu0 }
 0x22b   : > { %v16487_v44 = vadd.f32 %v1456_v10, %v1135_v8  ;;  %v13780_v28 = vpop.f32.mrf.mxu1  ;;  %v20031_v8 = vld [vmem:[#allocation9_spill] sm:$0xff]  ;;  %v20032_v10 = vld [vmem:[#allocation35_spill] sm:$0xff] }
 0x22c   : > { %v13830_v4 = vpop.f32.mrf.mxu0  ;;  %14079 = vmatmul.mubr.msk.f32.gmra.mxu1 %vm643_vm3, %v15849_v17  ;;  %v20026_v17 = vld [vmem:[#allocation32_spill] sm:$0xff] }
 0x22d   : > { %14129 = vmatmul.mubr.msk.f32.gmra.mxu0 %vm643_vm3, %v16122_v13  ;;  %v16493_v11 = vadd.f32 %v13830_v4, %v13780_v28  ;;  %14081 = vmatprep.mubr.msk.f32.mxu1 %vm643_vm3, %v15853_v20  ;;  %v1145_v14 = vpop.f32.mrf.mxu1  ;;  %v20028_v20 = vld [vmem:[#allocation33_spill] sm:$0xff] }
 0x22e   : > { %14131 = vmatprep.mubr.msk.f32.mxu0 %vm643_vm3, %v16127_v59  ;;  %v1466_v51 = vpop.f32.mrf.mxu0 }
 0x22f   : > { %v16499_v52 = vadd.f32 %v1466_v51, %v1145_v14  ;;  %v13783_v45 = vpop.f32.mrf.mxu1 }
 0x230   : > { %v13833_v60 = vpop.f32.mrf.mxu0  ;;  %14082 = vmatmul.mubr.msk.f32.gmra.mxu1 %vm643_vm3, %v15867_v23  ;;  %v20030_v23 = vld [vmem:[#allocation34_spill] sm:$0xff] }
 0x231   : > { %14132 = vmatmul.mubr.msk.f32.gmra.mxu0 %vm643_vm3, %v20026_v17  ;;  %v16505_v13 = vadd.f32 %v13833_v60, %v13783_v45  ;;  %14084 = vmatprep.mubr.msk.f32.mxu1 %vm643_vm3, %v20027_v19  ;;  %v1155_v59 = vpop.f32.mrf.mxu1  ;;  %v20033_v60 = vld [vmem:[#allocation10_spill] sm:$0xff]  ;;  %v20034_v17 = vld [vmem:[#allocation36_spill] sm:$0xff] }
 0x232   : > { %14134 = vmatprep.mubr.msk.f32.mxu0 %vm643_vm3, %v20028_v20  ;;  %v1476_v29 = vpop.f32.mrf.mxu0  ;;  %v20035_v20 = vld [vmem:[#allocation11_spill] sm:$0xff] }
 0x233   : > { %v16511_v38 = vadd.f32 %v1476_v29, %v1155_v59  ;;  %v13786_v2 = vpop.f32.mrf.mxu1  ;;  %v20036_v59 = vld [vmem:[#allocation37_spill] sm:$0xff] }
 0x234   : > { %v13836_v48 = vpop.f32.mrf.mxu0  ;;  %14085 = vmatmul.mubr.msk.f32.gmra.mxu1 %vm643_vm3, %v20029_v32 }
 0x235   : > { %14135 = vmatmul.mubr.msk.f32.gmra.mxu0 %vm643_vm3, %v20030_v23  ;;  %v16517_v25 = vadd.f32 %v13836_v48, %v13786_v2  ;;  %14087 = vmatprep.mubr.msk.f32.mxu1 %vm643_vm3, %v20031_v8  ;;  %v1165_v28 = vpop.f32.mrf.mxu1  ;;  %v20037_v8 = vld [vmem:[#allocation12_spill] sm:$0xff] }
 0x236   : > { %14137 = vmatprep.mubr.msk.f32.mxu0 %vm643_vm3, %v20032_v10  ;;  %v1486_v4 = vpop.f32.mrf.mxu0  ;;  %v20038_v10 = vld [vmem:[#allocation38_spill] sm:$0xff] }
 0x237   : > { %v16523_v14 = vadd.f32 %v1486_v4, %v1165_v28  ;;  %v13789_v51 = vpop.f32.mrf.mxu1  ;;  %v20039_v4 = vld [vmem:[#allocation13_spill] sm:$0xff] }
 0x238   : > { %v13839_v45 = vpop.f32.mrf.mxu0  ;;  %14088 = vmatmul.mubr.msk.f32.gmra.mxu1 %vm643_vm3, %v20033_v60 }
 0x239   : > { %14138 = vmatmul.mubr.msk.f32.gmra.mxu0 %vm643_vm3, %v20034_v17  ;;  %v16529_v19 = vadd.f32 %v13839_v45, %v13789_v51  ;;  %14090 = vmatprep.mubr.msk.f32.mxu1 %vm643_vm3, %v20035_v20  ;;  %v1175_v29 = vpop.f32.mrf.mxu1  ;;  %v20040_v51 = vld [vmem:[#allocation39_spill] sm:$0xff] }
 0x23a   : > { %14140 = vmatprep.mubr.msk.f32.mxu0 %vm643_vm3, %v20036_v59  ;;  %v1496_v2 = vpop.f32.mrf.mxu0 }
 0x23b   : > { %v16535_v48 = vadd.f32 %v1496_v2, %v1175_v29  ;;  %v13792_v32 = vpop.f32.mrf.mxu1  ;;  %v20041_v29 = vld [vmem:[#allocation14_spill] sm:$0xff]  ;;  %v20042_v2 = vld [vmem:[#allocation40_spill] sm:$0xff] }
 0x23c   : > { %v13842_v23 = vpop.f32.mrf.mxu0  ;;  %14091 = vmatmul.mubr.msk.f32.gmra.mxu1 %vm643_vm3, %v20037_v8  ;;  %v20044_v8 = vld [vmem:[#allocation41_spill] sm:$0xff] }
 0x23d   : > { %14141 = vmatmul.mubr.msk.f32.gmra.mxu0 %vm643_vm3, %v20038_v10  ;;  %v16541_v28 = vadd.f32 %v13842_v23, %v13792_v32  ;;  %14093 = vmatprep.mubr.msk.f32.mxu1 %vm643_vm3, %v20039_v4  ;;  %v1185_v45 = vpop.f32.mrf.mxu1  ;;  %v20043_v23 = vld [vmem:[#allocation15_spill] sm:$0xff] }
 0x23e   : > { %14143 = vmatprep.mubr.msk.f32.mxu0 %vm643_vm3, %v20040_v51  ;;  %v1506_v60 = vpop.f32.mrf.mxu0 }
 0x23f   : > { %v16547_v17 = vadd.f32 %v1506_v60, %v1185_v45 }
 0x240   : > { %v13795_v20 = vpop.f32.mrf.mxu1  ;;  %14094 = vmatmul.mubr.msk.f32.gmra.mxu1 %vm643_vm3, %v20041_v29  ;;  %v20046_v29 = vld [vmem:[#allocation42_spill] sm:$0xff] }
 0x241   : > { %v13845_v59 = vpop.f32.mrf.mxu0  ;;  %14144 = vmatmul.mubr.msk.f32.gmra.mxu0 %vm643_vm3, %v20042_v2  ;;  %14096 = vmatprep.mubr.msk.f32.mxu1 %vm643_vm3, %v20043_v23  ;;  %v20048_v2 = vld [vmem:[#allocation43_spill] sm:$0xff] }
 0x242   : > { %v16553_v32 = vadd.f32 %v13845_v59, %v13795_v20  ;;  %14146 = vmatprep.mubr.msk.f32.mxu0 %vm643_vm3, %v20044_v8  ;;  %v1195_v10 = vpop.f32.mrf.mxu1  ;;  %v20047_v59 = vld [vmem:[#allocation17_spill] sm:$0xff] }
 0x243   : > { %v1516_v4 = vpop.f32.mrf.mxu0 }
 0x244   : > { %v16559_v51 = vadd.f32 %v1516_v4, %v1195_v10  ;;  %v13798_v45 = vpop.f32.mrf.mxu1  ;;  %14097 = vmatmul.mubr.msk.f32.gmra.mxu1 %vm643_vm3, %v20045_v56  ;;  %v20050_v56 = vld [vmem:[#allocation44_spill] sm:$0xff] }
 0x245   : > { %v13848_v60 = vpop.f32.mrf.mxu0  ;;  %14147 = vmatmul.mubr.msk.f32.gmra.mxu0 %vm643_vm3, %v20046_v29  ;;  %14099 = vmatprep.mubr.msk.f32.mxu1 %vm643_vm3, %v20047_v59  ;;  %v20052_v29 = vld [vmem:[#allocation45_spill] sm:$0xff] }
 0x246   : > { %v16565_v20 = vadd.f32 %v13848_v60, %v13798_v45  ;;  %14149 = vmatprep.mubr.msk.f32.mxu0 %vm643_vm3, %v20048_v2  ;;  %v1205_v23 = vpop.f32.mrf.mxu1  ;;  %v20051_v60 = vld [vmem:[#allocation19_spill] sm:$0xff] }
 0x247   : > { %v1526_v8 = vpop.f32.mrf.mxu0 }
 0x248   : > { %v16571_v10 = vadd.f32 %v1526_v8, %v1205_v23  ;;  %v13801_v4 = vpop.f32.mrf.mxu1  ;;  %14100 = vmatmul.mubr.msk.f32.gmra.mxu1 %vm643_vm3, %v20049_v34  ;;  %v20055_v34 = vld [vmem:[#allocation46_spill] sm:$0xff] }
 0x249   : > { %v13851_v40 = vpop.f32.mrf.mxu0  ;;  %14150 = vmatmul.mubr.msk.f32.gmra.mxu0 %vm643_vm3, %v20050_v56  ;;  %14102 = vmatprep.mubr.msk.f32.mxu1 %vm643_vm3, %v20051_v60 }
 0x24a   : > { %v16577_v45 = vadd.f32 %v13851_v40, %v13801_v4  ;;  %14152 = vmatprep.mubr.msk.f32.mxu0 %vm643_vm3, %v20052_v29  ;;  %v1215_v59 = vpop.f32.mrf.mxu1  ;;  %v20056_v4 = vld [vmem:[#allocation21_spill] sm:$0xff] }
 0x24b   : > { %v1536_v2 = vpop.f32.mrf.mxu0 }
 0x24c   : > { %v16583_v23 = vadd.f32 %v1536_v2, %v1215_v59  ;;  %v13804_v8 = vpop.f32.mrf.mxu1  ;;  %14103 = vmatmul.mubr.msk.f32.gmra.mxu1 %vm643_vm3, %v20054_v7  ;;  %v16601_v7 = vld [vmem:[#allocation2 + $0x181] sm:$0xff] }
 0x24d   : > { %v13854_v16 = vpop.f32.mrf.mxu0  ;;  %14153 = vmatmul.mubr.msk.f32.gmra.mxu0 %vm643_vm3, %v20055_v34  ;;  %14105 = vmatprep.mubr.msk.f32.mxu1 %vm643_vm3, %v20056_v4  ;;  %20059 = vst [vmem:[#allocation33_spill] sm:$0xff] %v16601_v7 }
 0x24e   : > { %20053 = vst [vmem:[#allocation32_spill] sm:$0xff] %v16583_v23  ;;  %v16589_v40 = vadd.f32 %v13854_v16, %v13804_v8  ;;  %14155 = vmatprep.mubr.msk.f32.mxu0 %vm643_vm3, %v16207_v41  ;;  %v1225_v56 = vpop.f32.mrf.mxu1  ;;  %v20058_v23 = vld [vmem:[#allocation22_spill] sm:$0xff] }
 0x24f   : > { %v1546_v60 = vpop.f32.mrf.mxu0  ;;  %v3541_v16 = vld [vmem:[#allocation2 + $0x182] sm:$0xff] }
 0x250   : > { %v16595_v29 = vadd.f32 %v1546_v60, %v1225_v56  ;;  %v13807_v59 = vpop.f32.mrf.mxu1  ;;  %14106 = vmatmul.mubr.msk.f32.gmra.mxu1 %vm643_vm3, %v20058_v23  ;;  %v3155_v56 = vld [vmem:[#allocation2 + $0x189] sm:$0xff] }
 0x251   : > { %v13857_v2 = vpop.f32.mrf.mxu0  ;;  %14156 = vmatmul.mubr.msk.f32.gmra.mxu0 %vm643_vm3, %v16212_v26  ;;  %14108 = vmatprep.mubr.msk.f32.mxu1 %vm643_vm3, %v16601_v7  ;;  %v3542_v60 = vld [vmem:[#allocation2 + $0x18a] sm:$0xff] }
 0x252   : > { %20057 = vst [vmem:[#allocation7_spill] sm:$0xff] %v16595_v29  ;;  %v16603_v8 = vadd.f32 %v13857_v2, %v13807_v59  ;;  %14158 = vmatprep.mubr.msk.f32.mxu0 %vm643_vm3, %v3541_v16  ;;  %v1235_v41 = vpop.f32.mrf.mxu1  ;;  %v20062_v59 = vld [vmem:[#allocation23_spill] sm:$0xff] }
 0x253   : > { %v1556_v34 = vpop.f32.mrf.mxu0 }
 0x254   : > { %v16608_v4 = vadd.f32 %v1556_v34, %v1235_v41  ;;  %v13810_v23 = vpop.f32.mrf.mxu1  ;;  %14109 = vmatmul.mubr.msk.f32.gmra.mxu1 %vm643_vm3, %v3155_v56  ;;  %v20066_v56 = vld [vmem:[#allocation25_spill] sm:$0xff] }
 0x255   : > { %v13860_v29 = vpop.f32.mrf.mxu0  ;;  %14159 = vmatmul.mubr.msk.f32.gmra.mxu0 %vm643_vm3, %v3542_v60  ;;  %14163 = vmatprep.mubr.msk.f32.mxu1 %vm643_vm3, %v20062_v59  ;;  %v20067_v60 = vld [vmem:[#allocation26_spill] sm:$0xff]  ;;  %v20068_v59 = vld [vmem:[#allocation24_spill] sm:$0xff] }
 0x256   : > { %20060 = vst [vmem:[#allocation8_spill] sm:$0xff] %v16608_v4  ;;  %v16612_v26 = vadd.f32 %v13860_v29, %v13810_v23  ;;  %14213 = vmatprep.mubr.msk.f32.mxu0 %vm643_vm3, %v16220_v49  ;;  %v1245_v2 = vpop.f32.mrf.mxu1  ;;  %v20064_v4 = vld [vmem:[#allocation27_spill] sm:$0xff]  ;;  %v16627_v29 = vld [vmem:[%s19837_s3 + $0x68] sm:$0xff]  ;;  %v16632_v49 = vld [vmem:[%s19837_s3 + $0x60] sm:$0xff]  ;;  %v1417_v23 = vadd.f32 %v20067_v60, %v20066_v56 }
 0x257   : > { %v1566_v16 = vpop.f32.mrf.mxu0  ;;  %20065 = vst [vmem:[#allocation35_spill] sm:$0xff] %v16632_v49 }
 0x258   : > { %20061 = vst [vmem:[#allocation34_spill] sm:$0xff] %v16612_v26  ;;  %v16618_v41 = vadd.f32 %v1566_v16, %v1245_v2  ;;  %v13865_v34 = vpop.f32.mrf.mxu1  ;;  %14164 = vmatmul.mubr.msk.f32.vlgmr.msra.gmra.mxu1 %vm643_vm3, %v20064_v4  ;;  %v20069_v4 = vld [vmem:[#allocation28_spill] sm:$0xff] }
 0x259   : > { %v13915_v7 = vpop.f32.mrf.mxu0  ;;  %14214 = vmatmul.mubr.msk.f32.vlgmr.msra.gmra.mxu0 %vm643_vm3, %v16238_v43  ;;  %v1931_v2 = vadd.f32 %v13865_v34, %v20068_v59  ;;  %14166 = vmatprep.mubr.msk.f32.mxu1 %vm643_vm3, %v20069_v4 }
 0x25a   : > { %20063 = vst [vmem:[#allocation9_spill] sm:$0xff] %v16618_v41  ;;  %14312 = vmatpush3.msra.mxu0 %v16426_v22  ;;  %14216 = vmatprep.mubr.msk.f32.mxu0 %vm643_vm3, %v16249_v46  ;;  %v1771_v43 = vpop.f32.mrf.mxu1  ;;  %v20070_v22 = vld [vmem:[#allocation30_spill] sm:$0xff]  ;;  %v1427_v46 = vadd.f32 %v16451_v37, %v16449_v53 }
 0x25b   : > { %v2158_v16 = vpop.f32.mrf.mxu0  ;;  %14262 = vmatpush3.msra.mxu1 %v16431_v35  ;;  %v16643_v41 = vadd.f32 %v13915_v7, %v1931_v2  ;;  %v1930_v26 = vadd.f32 %v1771_v43, %v1417_v23  ;;  %14411 = vmatprep.subr.mxu0 %v16627_v29  ;;  %v20071_v35 = vld [vmem:[#allocation29_spill] sm:$0xff]  ;;  %v20072_v23 = vld [vmem:[#allocation31_spill] sm:$0xff] }
 0x25c   : > { %14361 = vmatprep.subr.mxu1 %v16632_v49  ;;  %v13868_v34 = vpop.f32.mrf.mxu1  ;;  %14167 = vmatmul.mubr.msk.f32.gmra.mxu1 %vm643_vm3, %v20070_v22  ;;  %v3903_v22 = vld [vmem:[#allocation2 + $0x53] sm:$0xff]  ;;  %v3904_v53 = vld [vmem:[#allocation2 + $0x63] sm:$0xff] }
 0x25d   : > { %v13918_v56 = vpop.f32.mrf.mxu0  ;;  %14217 = vmatmul.mubr.msk.f32.gmra.mxu0 %vm643_vm3, %v16255_v54  ;;  %v16653_v60 = vadd.f32 %v2158_v16, %v1930_v26  ;;  %v1933_v7 = vadd.f32 %v13868_v34, %v20071_v35  ;;  %14169 = vmatprep.mubr.msk.f32.mxu1 %vm643_vm3, %v20072_v23 }
 0x25e   : > { %14219 = vmatprep.mubr.msk.f32.mxu0 %vm643_vm3, %v16261_v47  ;;  %v1781_v59 = vpop.f32.mrf.mxu1 }
 0x25f   : > { %v2168_v2 = vpop.f32.mrf.mxu0  ;;  %v16660_v4 = vadd.f32 %v13918_v56, %v1933_v7  ;;  %v1932_v43 = vadd.f32 %v1781_v59, %v1427_v46  ;;  %v3905_v46 = vld [vmem:[#allocation2 + $0x6b] sm:$0xff] }
 0x260   : > { %v13871_v54 = vpop.f32.mrf.mxu1  ;;  %14170 = vmatmul.mubr.msk.f32.gmra.mxu1 %vm643_vm3, %v3903_v22 }
 0x261   : > { %v13921_v49 = vpop.f32.mrf.mxu0  ;;  %14220 = vmatmul.mubr.msk.f32.gmra.mxu0 %vm643_vm3, %v16267_v58  ;;  %v16665_v37 = vadd.f32 %v2168_v2, %v1932_v43  ;;  %v1935_v26 = vadd.f32 %v13871_v54, %v16457_v57  ;;  %14172 = vmatprep.mubr.msk.f32.mxu1 %vm643_vm3, %v3904_v53  ;;  %v3906_v58 = vld [vmem:[#allocation2 + $0x7b] sm:$0xff]  ;;  %v3907_v2 = vld [vmem:[#allocation2 + $0x83] sm:$0xff] }
 0x262   : > { %14222 = vmatprep.mubr.msk.f32.mxu0 %vm643_vm3, %v16273_v61  ;;  %v1791_v47 = vpop.f32.mrf.mxu1 }
 0x263   : > { %v2178_v16 = vpop.f32.mrf.mxu0  ;;  %v16671_v34 = vadd.f32 %v13921_v49, %v1935_v26  ;;  %v1934_v56 = vadd.f32 %v1791_v47, %v16463_v1  ;;  %v3909_v47 = vld [vmem:[#allocation2 + $0x9b] sm:$0xff] }
 0x264   : > { %v13874_v35 = vpop.f32.mrf.mxu1  ;;  %14173 = vmatmul.mubr.msk.f32.gmra.mxu1 %vm643_vm3, %v3905_v46 }
 0x265   : > { %v13924_v7 = vpop.f32.mrf.mxu0  ;;  %14223 = vmatmul.mubr.msk.f32.gmra.mxu0 %vm643_vm3, %v16279_v0  ;;  %v16677_v57 = vadd.f32 %v2178_v16, %v1934_v56  ;;  %v1937_v23 = vadd.f32 %v13874_v35, %v16469_v63  ;;  %14175 = vmatprep.mubr.msk.f32.mxu1 %vm643_vm3, %v3906_v58  ;;  %v3908_v0 = vld [vmem:[#allocation2 + $0x93] sm:$0xff] }
 0x266   : > { %14225 = vmatprep.mubr.msk.f32.mxu0 %vm643_vm3, %v16285_v3  ;;  %v1801_v61 = vpop.f32.mrf.mxu1  ;;  %v3911_v58 = vld [vmem:[#allocation2 + $0xb3] sm:$0xff] }
 0x267   : > { %v2188_v1 = vpop.f32.mrf.mxu0  ;;  %v16683_v49 = vadd.f32 %v13924_v7, %v1937_v23  ;;  %v1936_v59 = vadd.f32 %v1801_v61, %v16475_v31 }
 0x268   : > { %v13877_v43 = vpop.f32.mrf.mxu1  ;;  %14176 = vmatmul.mubr.msk.f32.gmra.mxu1 %vm643_vm3, %v3907_v2 }
 0x269   : > { %v13927_v22 = vpop.f32.mrf.mxu0  ;;  %14226 = vmatmul.mubr.msk.f32.gmra.mxu0 %vm643_vm3, %v16291_v6  ;;  %v16689_v63 = vadd.f32 %v2188_v1, %v1936_v59  ;;  %v1939_v54 = vadd.f32 %v13877_v43, %v16481_v5  ;;  %14178 = vmatprep.mubr.msk.f32.mxu1 %vm643_vm3, %v3908_v0  ;;  %v3910_v6 = vld [vmem:[#allocation2 + $0xab] sm:$0xff] }
 0x26a   : > { %14228 = vmatprep.mubr.msk.f32.mxu0 %vm643_vm3, %v16297_v9  ;;  %v1811_v3 = vpop.f32.mrf.mxu1  ;;  %v3913_v43 = vld [vmem:[#allocation2 + $0xcb] sm:$0xff] }
 0x26b   : > { %v2198_v31 = vpop.f32.mrf.mxu0  ;;  %v16695_v53 = vadd.f32 %v13927_v22, %v1939_v54  ;;  %v1938_v26 = vadd.f32 %v1811_v3, %v16487_v44 }
 0x26c   : > { %v13880_v16 = vpop.f32.mrf.mxu1  ;;  %14179 = vmatmul.mubr.msk.f32.gmra.mxu1 %vm643_vm3, %v3909_v47 }
 0x26d   : > { %v13930_v56 = vpop.f32.mrf.mxu0  ;;  %14229 = vmatmul.mubr.msk.f32.gmra.mxu0 %vm643_vm3, %v16303_v12  ;;  %v16701_v5 = vadd.f32 %v2198_v31, %v1938_v26  ;;  %v1941_v46 = vadd.f32 %v13880_v16, %v16493_v11  ;;  %14181 = vmatprep.mubr.msk.f32.mxu1 %vm643_vm3, %v3910_v6  ;;  %v3912_v12 = vld [vmem:[#allocation2 + $0xc3] sm:$0xff] }
 0x26e   : > { %14231 = vmatprep.mubr.msk.f32.mxu0 %vm643_vm3, %v16309_v15  ;;  %v1821_v9 = vpop.f32.mrf.mxu1  ;;  %v3915_v26 = vld [vmem:[#allocation2 + $0xe3] sm:$0xff] }
 0x26f   : > { %v2208_v44 = vpop.f32.mrf.mxu0  ;;  %v16707_v35 = vadd.f32 %v13930_v56, %v1941_v46  ;;  %v1940_v7 = vadd.f32 %v1821_v9, %v16499_v52  ;;  %v3917_v9 = vld [vmem:[#allocation2 + $0xfb] sm:$0xff] }
 0x270   : > { %v13883_v23 = vpop.f32.mrf.mxu1  ;;  %14182 = vmatmul.mubr.msk.f32.gmra.mxu1 %vm643_vm3, %v3911_v58 }
 0x271   : > { %v13933_v61 = vpop.f32.mrf.mxu0  ;;  %14232 = vmatmul.mubr.msk.f32.gmra.mxu0 %vm643_vm3, %v16315_v18  ;;  %v16713_v11 = vadd.f32 %v2208_v44, %v1940_v7  ;;  %v1943_v1 = vadd.f32 %v13883_v23, %v16505_v13  ;;  %14184 = vmatprep.mubr.msk.f32.mxu1 %vm643_vm3, %v3912_v12  ;;  %v3914_v18 = vld [vmem:[#allocation2 + $0xdb] sm:$0xff]  ;;  %v3919_v12 = vld [vmem:[#allocation2 + $0x113] sm:$0xff] }
 0x272   : > { %14234 = vmatprep.mubr.msk.f32.mxu0 %vm643_vm3, %v16321_v21  ;;  %v1831_v15 = vpop.f32.mrf.mxu1 }
 0x273   : > { %v2218_v52 = vpop.f32.mrf.mxu0  ;;  %v16719_v59 = vadd.f32 %v13933_v61, %v1943_v1  ;;  %v1942_v2 = vadd.f32 %v1831_v15, %v16511_v38 }
 0x274   : > { %v13886_v22 = vpop.f32.mrf.mxu1  ;;  %14185 = vmatmul.mubr.msk.f32.gmra.mxu1 %vm643_vm3, %v3913_v43 }
 0x275   : > { %v13936_v0 = vpop.f32.mrf.mxu0  ;;  %14235 = vmatmul.mubr.msk.f32.gmra.mxu0 %vm643_vm3, %v16327_v24  ;;  %v16725_v13 = vadd.f32 %v2218_v52, %v1942_v2  ;;  %v1945_v54 = vadd.f32 %v13886_v22, %v16517_v25  ;;  %14187 = vmatprep.mubr.msk.f32.mxu1 %vm643_vm3, %v3914_v18  ;;  %v3916_v24 = vld [vmem:[#allocation2 + $0xf3] sm:$0xff]  ;;  %v3921_v22 = vld [vmem:[#allocation2 + $0x12b] sm:$0xff] }
 0x276   : > { %14237 = vmatprep.mubr.msk.f32.mxu0 %vm643_vm3, %v16333_v27  ;;  %v1841_v21 = vpop.f32.mrf.mxu1 }
 0x277   : > { %v2228_v38 = vpop.f32.mrf.mxu0  ;;  %v16731_v3 = vadd.f32 %v13936_v0, %v1945_v54  ;;  %v1944_v31 = vadd.f32 %v1841_v21, %v16523_v14 }
 0x278   : > { %v13889_v47 = vpop.f32.mrf.mxu1  ;;  %14188 = vmatmul.mubr.msk.f32.gmra.mxu1 %vm643_vm3, %v3915_v26 }
 0x279   : > { %v13939_v16 = vpop.f32.mrf.mxu0  ;;  %14238 = vmatmul.mubr.msk.f32.gmra.mxu0 %vm643_vm3, %v16339_v30  ;;  %v16737_v25 = vadd.f32 %v2228_v38, %v1944_v31  ;;  %v1947_v56 = vadd.f32 %v13889_v47, %v16529_v19  ;;  %14190 = vmatprep.mubr.msk.f32.mxu1 %vm643_vm3, %v3916_v24  ;;  %v3918_v30 = vld [vmem:[#allocation2 + $0x10b] sm:$0xff]  ;;  %v3923_v31 = vld [vmem:[#allocation2 + $0x143] sm:$0xff] }
 0x27a   : > { %14240 = vmatprep.mubr.msk.f32.mxu0 %vm643_vm3, %v16345_v33  ;;  %v1851_v27 = vpop.f32.mrf.mxu1 }
 0x27b   : > { %v2238_v14 = vpop.f32.mrf.mxu0  ;;  %v16743_v6 = vadd.f32 %v13939_v16, %v1947_v56  ;;  %v1946_v46 = vadd.f32 %v1851_v27, %v16535_v48 }
 0x27c   : > { %v13892_v44 = vpop.f32.mrf.mxu1  ;;  %14191 = vmatmul.mubr.msk.f32.gmra.mxu1 %vm643_vm3, %v3917_v9  ;;  %v16794_v9 = vld [vmem:[#allocation2 + $0x15b] sm:$0xff] }
 0x27d   : > { %v13942_v7 = vpop.f32.mrf.mxu0  ;;  %14241 = vmatmul.mubr.msk.f32.gmra.mxu0 %vm643_vm3, %v16351_v36  ;;  %v16749_v19 = vadd.f32 %v2238_v14, %v1946_v46  ;;  %v1949_v58 = vadd.f32 %v13892_v44, %v16541_v28  ;;  %14193 = vmatprep.mubr.msk.f32.mxu1 %vm643_vm3, %v3918_v30  ;;  %v3920_v36 = vld [vmem:[#allocation2 + $0x123] sm:$0xff]  ;;  %v20075_v14 = vld [vmem:[#allocation32_spill] sm:$0xff] }
 0x27e   : > { %14243 = vmatprep.mubr.msk.f32.mxu0 %vm643_vm3, %v16357_v39  ;;  %v1861_v33 = vpop.f32.mrf.mxu1  ;;  %v20076_v30 = vld [vmem:[#allocation49_spill] sm:$0xff] }
 0x27f   : > { %v2248_v48 = vpop.f32.mrf.mxu0  ;;  %v16755_v23 = vadd.f32 %v13942_v7, %v1949_v58  ;;  %v1948_v61 = vadd.f32 %v1861_v33, %v16547_v17 }
 0x280   : > { %v13895_v1 = vpop.f32.mrf.mxu1  ;;  %14194 = vmatmul.mubr.msk.f32.gmra.mxu1 %vm643_vm3, %v3919_v12 }
 0x281   : > { %v13945_v15 = vpop.f32.mrf.mxu0  ;;  %14244 = vmatmul.mubr.msk.f32.gmra.mxu0 %vm643_vm3, %v16363_v42  ;;  %v16761_v28 = vadd.f32 %v2248_v48, %v1948_v61  ;;  %v1951_v52 = vadd.f32 %v13895_v1, %v16553_v32  ;;  %14196 = vmatprep.mubr.msk.f32.mxu1 %vm643_vm3, %v3920_v36  ;;  %v3922_v42 = vld [vmem:[#allocation2 + $0x13b] sm:$0xff]  ;;  %v20077_v48 = vld [vmem:[#allocation50_spill] sm:$0xff] }
 0x282   : > { %14246 = vmatprep.mubr.msk.f32.mxu0 %vm643_vm3, %v16369_v50  ;;  %v1871_v39 = vpop.f32.mrf.mxu1 }
 0x283   : > { %v2258_v17 = vpop.f32.mrf.mxu0  ;;  %v16767_v2 = vadd.f32 %v13945_v15, %v1951_v52  ;;  %v1950_v43 = vadd.f32 %v1871_v39, %v16559_v51  ;;  %v20078_v15 = vld [vmem:[#allocation7_spill] sm:$0xff] }
 0x284   : > { %v13898_v0 = vpop.f32.mrf.mxu1  ;;  %14197 = vmatmul.mubr.msk.f32.gmra.mxu1 %vm643_vm3, %v3921_v22  ;;  %v16812_v52 = vld [vmem:[#allocation2 + $0x173] sm:$0xff]  ;;  %v4315_v22 = vld [vmem:[#allocation2 + $0x184] sm:$0xff] }
 0x285   : > { %v13948_v18 = vpop.f32.mrf.mxu0  ;;  %14247 = vmatmul.mubr.msk.f32.gmra.mxu0 %vm643_vm3, %v16375_v55  ;;  %v16773_v32 = vadd.f32 %v2258_v17, %v1950_v43  ;;  %v1953_v54 = vadd.f32 %v13898_v0, %v16565_v20  ;;  %14199 = vmatprep.mubr.msk.f32.mxu1 %vm643_vm3, %v3922_v42  ;;  %v20073_v55 = vld [vmem:[#allocation47_spill] sm:$0xff]  ;;  %v16818_v43 = vld [vmem:[#allocation2 + $0x183] sm:$0xff] }
 0x286   : > { %14249 = vmatprep.mubr.msk.f32.mxu0 %vm643_vm3, %v16381_v62  ;;  %v1881_v50 = vpop.f32.mrf.mxu1  ;;  %v3924_v20 = vld [vmem:[#allocation2 + $0x153] sm:$0xff] }
 0x287   : > { %v2268_v51 = vpop.f32.mrf.mxu0  ;;  %v16779_v21 = vadd.f32 %v13948_v18, %v1953_v54  ;;  %v1952_v38 = vadd.f32 %v1881_v50, %v16571_v10  ;;  %v20074_v62 = vld [vmem:[#allocation48_spill] sm:$0xff] }
 0x288   : > { %v13901_v26 = vpop.f32.mrf.mxu1  ;;  %14200 = vmatmul.mubr.msk.f32.gmra.mxu1 %vm643_vm3, %v3923_v31  ;;  %v16829_v31 = vld [vmem:[#allocation2 + $0x18b] sm:$0xff] }
 0x289   : > { %v13951_v47 = vpop.f32.mrf.mxu0  ;;  %14250 = vmatmul.mubr.msk.f32.gmra.mxu0 %vm643_vm3, %v20073_v55  ;;  %v16785_v16 = vadd.f32 %v2268_v51, %v1952_v38  ;;  %v1955_v24 = vadd.f32 %v13901_v26, %v16577_v45  ;;  %14202 = vmatprep.mubr.msk.f32.mxu1 %vm643_vm3, %v3924_v20  ;;  %v16800_v45 = vld [vmem:[#allocation2 + $0x16b] sm:$0xff]  ;;  %v20080_v51 = vld [vmem:[#allocation8_spill] sm:$0xff] }
 0x28a   : > { %14252 = vmatprep.mubr.msk.f32.mxu0 %vm643_vm3, %v20074_v62  ;;  %v1891_v56 = vpop.f32.mrf.mxu1  ;;  %v4316_v26 = vld [vmem:[#allocation2 + $0x18c] sm:$0xff] }
 0x28b   : > { %v2278_v10 = vpop.f32.mrf.mxu0  ;;  %v16791_v27 = vadd.f32 %v13951_v47, %v1955_v24  ;;  %v1954_v46 = vadd.f32 %v1891_v56, %v20075_v14  ;;  %v5059_v20 = vld [vmem:[#allocation2 + $0x31] sm:$0xff]  ;;  %v20081_v62 = vld [vmem:[#allocation34_spill] sm:$0xff] }
 0x28c   : > { %v13904_v44 = vpop.f32.mrf.mxu1  ;;  %14203 = vmatmul.mubr.msk.f32.gmra.mxu1 %vm643_vm3, %v16794_v9 }
 0x28d   : > { %v13954_v7 = vpop.f32.mrf.mxu0  ;;  %14253 = vmatmul.mubr.msk.f32.gmra.mxu0 %vm643_vm3, %v20076_v30  ;;  %v16802_v58 = vadd.f32 %v2278_v10, %v1954_v46  ;;  %v1957_v33 = vadd.f32 %v13904_v44, %v16589_v40  ;;  %14205 = vmatprep.mubr.msk.f32.mxu1 %vm643_vm3, %v16800_v45  ;;  %v20079_v40 = vld [vmem:[#allocation51_spill] sm:$0xff]  ;;  %v20082_v44 = vld [vmem:[#allocation9_spill] sm:$0xff]  ;;  %v4673_v30 = vld [vmem:[#allocation2 + $0x38] sm:$0xff] }
 0x28e   : > { %14255 = vmatprep.mubr.msk.f32.mxu0 %vm643_vm3, %v20077_v48  ;;  %v1901_v61 = vpop.f32.mrf.mxu1 }
 0x28f   : > { %v2288_v12 = vpop.f32.mrf.mxu0  ;;  %v16809_v1 = vadd.f32 %v13954_v7, %v1957_v33  ;;  %v1956_v36 = vadd.f32 %v1901_v61, %v20078_v15  ;;  %v5060_v33 = vld [vmem:[#allocation2 + $0x39] sm:$0xff] }
 0x290   : > { %v13907_v39 = vpop.f32.mrf.mxu1  ;;  %14206 = vmatmul.mubr.msk.f32.gmra.mxu1 %vm643_vm3, %v16812_v52  ;;  %v16849_v15 = vld [vmem:[%s19837_s3 + $0x78] sm:$0xff] }
 0x291   : > { %v13957_v17 = vpop.f32.mrf.mxu0  ;;  %14256 = vmatmul.mubr.msk.f32.gmra.mxu0 %vm643_vm3, %v20079_v40  ;;  %v16820_v0 = vadd.f32 %v2288_v12, %v1956_v36  ;;  %v1959_v18 = vadd.f32 %v13907_v39, %v16603_v8  ;;  %14208 = vmatprep.mubr.msk.f32.mxu1 %vm643_vm3, %v16818_v43  ;;  %v4672_v8 = vld [vmem:[#allocation2 + $0x30] sm:$0xff]  ;;  %v16844_v12 = vld [vmem:[#allocation2 + $0x48] sm:$0xff] }
 0x292   : > { %14258 = vmatprep.mubr.msk.f32.mxu0 %vm643_vm3, %v4315_v22  ;;  %v1911_v42 = vpop.f32.mrf.mxu1  ;;  %v16854_v36 = vld [vmem:[%s19837_s3 + $0x70] sm:$0xff] }
 0x293   : > { %v2298_v54 = vpop.f32.mrf.mxu0  ;;  %v16826_v50 = vadd.f32 %v13957_v17, %v1959_v18  ;;  %v1958_v38 = vadd.f32 %v1911_v42, %v20080_v51  ;;  %v5061_v40 = vld [vmem:[#allocation2 + $0x49] sm:$0xff] }
 0x294   : > { %v13910_v47 = vpop.f32.mrf.mxu1  ;;  %14209 = vmatmul.mubr.msk.f32.gmra.mxu1 %vm643_vm3, %v16829_v31  ;;  %v20083_v42 = vld [vmem:[#allocation35_spill] sm:$0xff] }
 0x295   : > { %v13960_v55 = vpop.f32.mrf.mxu0  ;;  %14259 = vmatmul.mubr.msk.f32.gmra.mxu0 %vm643_vm3, %v4316_v26  ;;  %v16834_v24 = vadd.f32 %v2298_v54, %v1958_v38  ;;  %v1961_v56 = vadd.f32 %v13910_v47, %v20081_v62  ;;  %14263 = vmatprep.mubr.msk.f32.mxu1 %vm643_vm3, %v4672_v8  ;;  %v16867_v38 = vld [vmem:[#allocation2 + $0x50] sm:$0xff]  ;;  %v16874_v47 = vld [vmem:[#allocation2 + $0x60] sm:$0xff] }
 0x296   : > { %14313 = vmatprep.mubr.msk.f32.mxu0 %vm643_vm3, %v5059_v20  ;;  %v1921_v10 = vpop.f32.mrf.mxu1  ;;  %v5062_v26 = vld [vmem:[#allocation2 + $0x51] sm:$0xff] }
 0x297   : > { %v2308_v14 = vpop.f32.mrf.mxu0  ;;  %v16839_v46 = vadd.f32 %v13960_v55, %v1961_v56  ;;  %v1960_v7 = vadd.f32 %v1921_v10, %v20082_v44  ;;  %v5063_v55 = vld [vmem:[#allocation2 + $0x61] sm:$0xff]  ;;  %v5064_v44 = vld [vmem:[#allocation2 + $0x69] sm:$0xff] }
 0x298   : > { %v13965_v48 = vpop.f32.mrf.mxu1  ;;  %14264 = vmatmul.mubr.msk.f32.vlgmr.msra.gmra.mxu1 %vm643_vm3, %v4673_v30 }
 0x299   : > { %v14015_v61 = vpop.f32.mrf.mxu0  ;;  %14314 = vmatmul.mubr.msk.f32.vlgmr.msra.gmra.mxu0 %vm643_vm3, %v5060_v33  ;;  %v16856_v39 = vadd.f32 %v2308_v14, %v1960_v7  ;;  %v2705_v17 = vadd.f32 %v13965_v48, %v16643_v41  ;;  %14266 = vmatprep.mubr.msk.f32.mxu1 %vm643_vm3, %v16844_v12  ;;  %v16885_v14 = vld [vmem:[#allocation2 + $0x68] sm:$0xff]  ;;  %v5065_v33 = vld [vmem:[#allocation2 + $0x79] sm:$0xff] }
 0x29a   : > { %14412 = vmatpush3.msra.mxu0 %v16627_v29  ;;  %14316 = vmatprep.mubr.msk.f32.mxu0 %vm643_vm3, %v5061_v40  ;;  %v2545_v22 = vpop.f32.mrf.mxu1 }
 0x29b   : > { %v2933_v18 = vpop.f32.mrf.mxu0  ;;  %14362 = vmatpush3.msra.mxu1 %v20083_v42  ;;  %v16864_v54 = vadd.f32 %v14015_v61, %v2705_v17  ;;  %v2704_v51 = vadd.f32 %v2545_v22, %v16653_v60  ;;  %14511 = vmatprep.subr.mxu0 %v16849_v15  ;;  %v5066_v42 = vld [vmem:[#allocation2 + $0x81] sm:$0xff] }
 0x29c   : > { %14461 = vmatprep.subr.mxu1 %v16854_v36  ;;  %v13968_v41 = vpop.f32.mrf.mxu1  ;;  %14267 = vmatmul.mubr.msk.f32.gmra.mxu1 %vm643_vm3, %v16867_v38 }
 0x29d   : > { %v14018_v29 = vpop.f32.mrf.mxu0  ;;  %14317 = vmatmul.mubr.msk.f32.gmra.mxu0 %vm643_vm3, %v5062_v26  ;;  %v16876_v8 = vadd.f32 %v2933_v18, %v2704_v51  ;;  %v2707_v60 = vadd.f32 %v13968_v41, %v16660_v4  ;;  %14269 = vmatprep.mubr.msk.f32.mxu1 %vm643_vm3, %v16874_v47  ;;  %v16890_v4 = vld [vmem:[#allocation2 + $0x78] sm:$0xff]  ;;  %v16901_v18 = vld [vmem:[#allocation2 + $0x80] sm:$0xff] }
 0x29e   : > { %14319 = vmatprep.mubr.msk.f32.mxu0 %vm643_vm3, %v5063_v55  ;;  %v2555_v20 = vpop.f32.mrf.mxu1  ;;  %v5067_v41 = vld [vmem:[#allocation2 + $0x91] sm:$0xff] }
 0x29f   : > { %v2943_v62 = vpop.f32.mrf.mxu0  ;;  %v16882_v56 = vadd.f32 %v14018_v29, %v2707_v60  ;;  %v2706_v10 = vadd.f32 %v2555_v20, %v16665_v37 }
 0x2a0   : > { %v13971_v7 = vpop.f32.mrf.mxu1  ;;  %14270 = vmatmul.mubr.msk.f32.gmra.mxu1 %vm643_vm3, %v16885_v14 }
 0x2a1   : > { %v14021_v30 = vpop.f32.mrf.mxu0  ;;  %14320 = vmatmul.mubr.msk.f32.gmra.mxu0 %vm643_vm3, %v5064_v44  ;;  %v16892_v48 = vadd.f32 %v2943_v62, %v2706_v10  ;;  %v2709_v61 = vadd.f32 %v13971_v7, %v16671_v34  ;;  %14272 = vmatprep.mubr.msk.f32.mxu1 %vm643_vm3, %v16890_v4  ;;  %v16906_v34 = vld [vmem:[#allocation2 + $0x90] sm:$0xff]  ;;  %v16917_v10 = vld [vmem:[#allocation2 + $0x98] sm:$0xff] }
 0x2a2   : > { %14322 = vmatprep.mubr.msk.f32.mxu0 %vm643_vm3, %v5065_v33  ;;  %v2565_v37 = vpop.f32.mrf.mxu1  ;;  %v5068_v44 = vld [vmem:[#allocation2 + $0x99] sm:$0xff]  ;;  %v5069_v33 = vld [vmem:[#allocation2 + $0xa9] sm:$0xff] }
 0x2a3   : > { %v2953_v17 = vpop.f32.mrf.mxu0  ;;  %v16898_v40 = vadd.f32 %v14021_v30, %v2709_v61  ;;  %v2708_v22 = vadd.f32 %v2565_v37, %v16677_v57 }
 0x2a4   : > { %v13974_v51 = vpop.f32.mrf.mxu1  ;;  %14273 = vmatmul.mubr.msk.f32.gmra.mxu1 %vm643_vm3, %v16901_v18 }
 0x2a5   : > { %v14024_v26 = vpop.f32.mrf.mxu0  ;;  %14323 = vmatmul.mubr.msk.f32.gmra.mxu0 %vm643_vm3, %v5066_v42  ;;  %v16908_v29 = vadd.f32 %v2953_v17, %v2708_v22  ;;  %v2711_v55 = vadd.f32 %v13974_v51, %v16683_v49  ;;  %14275 = vmatprep.mubr.msk.f32.mxu1 %vm643_vm3, %v16906_v34  ;;  %v16922_v49 = vld [vmem:[#allocation2 + $0xa8] sm:$0xff]  ;;  %v16933_v51 = vld [vmem:[#allocation2 + $0xb0] sm:$0xff] }
 0x2a6   : > { %14325 = vmatprep.mubr.msk.f32.mxu0 %vm643_vm3, %v5067_v41  ;;  %v2575_v57 = vpop.f32.mrf.mxu1 }
 0x2a7   : > { %v2963_v60 = vpop.f32.mrf.mxu0  ;;  %v16914_v20 = vadd.f32 %v14024_v26, %v2711_v55  ;;  %v2710_v62 = vadd.f32 %v2575_v57, %v16689_v63  ;;  %v5070_v26 = vld [vmem:[#allocation2 + $0xb1] sm:$0xff]  ;;  %v5071_v57 = vld [vmem:[#allocation2 + $0xc1] sm:$0xff] }
 0x2a8   : > { %v13977_v7 = vpop.f32.mrf.mxu1  ;;  %14276 = vmatmul.mubr.msk.f32.gmra.mxu1 %vm643_vm3, %v16917_v10 }
 0x2a9   : > { %v14027_v30 = vpop.f32.mrf.mxu0  ;;  %14326 = vmatmul.mubr.msk.f32.gmra.mxu0 %vm643_vm3, %v5068_v44  ;;  %v16924_v61 = vadd.f32 %v2963_v60, %v2710_v62  ;;  %v2713_v37 = vadd.f32 %v13977_v7, %v16695_v53  ;;  %14278 = vmatprep.mubr.msk.f32.mxu1 %vm643_vm3, %v16922_v49  ;;  %v16938_v53 = vld [vmem:[#allocation2 + $0xc0] sm:$0xff] }
 0x2aa   : > { %14328 = vmatprep.mubr.msk.f32.mxu0 %vm643_vm3, %v5069_v33  ;;  %v2585_v63 = vpop.f32.mrf.mxu1  ;;  %20084 = vst [vmem:[#allocation10_spill] sm:$0xff] %v16938_v53  ;;  %v16949_v33 = vld [vmem:[#allocation2 + $0xc8] sm:$0xff] }
 0x2ab   : > { %v2973_v17 = vpop.f32.mrf.mxu0  ;;  %v16930_v22 = vadd.f32 %v14027_v30, %v2713_v37  ;;  %v2712_v42 = vadd.f32 %v2585_v63, %v16701_v5  ;;  %20085 = vst [vmem:[#allocation36_spill] sm:$0xff] %v16949_v33  ;;  %v5072_v37 = vld [vmem:[#allocation2 + $0xc9] sm:$0xff] }
 0x2ac   : > { %v13980_v41 = vpop.f32.mrf.mxu1  ;;  %14279 = vmatmul.mubr.msk.f32.gmra.mxu1 %vm643_vm3, %v16933_v51 }
 0x2ad   : > { %v14030_v55 = vpop.f32.mrf.mxu0  ;;  %14329 = vmatmul.mubr.msk.f32.gmra.mxu0 %vm643_vm3, %v5070_v26  ;;  %v16940_v60 = vadd.f32 %v2973_v17, %v2712_v42  ;;  %v2715_v62 = vadd.f32 %v13980_v41, %v16707_v35  ;;  %14281 = vmatprep.mubr.msk.f32.mxu1 %vm643_vm3, %v16938_v53  ;;  %v16954_v35 = vld [vmem:[#allocation2 + $0xd8] sm:$0xff] }
 0x2ae   : > { %14331 = vmatprep.mubr.msk.f32.mxu0 %vm643_vm3, %v5071_v57  ;;  %v2595_v5 = vpop.f32.mrf.mxu1  ;;  %20086 = vst [vmem:[#allocation11_spill] sm:$0xff] %v16954_v35  ;;  %v5073_v17 = vld [vmem:[#allocation2 + $0xd9] sm:$0xff] }
 0x2af   : > { %v2983_v44 = vpop.f32.mrf.mxu0  ;;  %v16946_v7 = vadd.f32 %v14030_v55, %v2715_v62  ;;  %v2714_v30 = vadd.f32 %v2595_v5, %v16713_v11  ;;  %v16965_v5 = vld [vmem:[#allocation2 + $0xe0] sm:$0xff] }
 0x2b0   : > { %v13983_v63 = vpop.f32.mrf.mxu1  ;;  %14282 = vmatmul.mubr.msk.f32.gmra.mxu1 %vm643_vm3, %v16949_v33  ;;  %20087 = vst [vmem:[#allocation37_spill] sm:$0xff] %v16965_v5 }
 0x2b1   : > { %v14033_v26 = vpop.f32.mrf.mxu0  ;;  %14332 = vmatmul.mubr.msk.f32.gmra.mxu0 %vm643_vm3, %v5072_v37  ;;  %v16956_v42 = vadd.f32 %v2983_v44, %v2714_v30  ;;  %v2717_v41 = vadd.f32 %v13983_v63, %v16719_v59  ;;  %14284 = vmatprep.mubr.msk.f32.mxu1 %vm643_vm3, %v16954_v35  ;;  %v5074_v37 = vld [vmem:[#allocation2 + $0xe1] sm:$0xff]  ;;  %v16970_v59 = vld [vmem:[#allocation2 + $0xf0] sm:$0xff] }
 0x2b2   : > { %14334 = vmatprep.mubr.msk.f32.mxu0 %vm643_vm3, %v5073_v17  ;;  %v2605_v11 = vpop.f32.mrf.mxu1  ;;  %20088 = vst [vmem:[#allocation12_spill] sm:$0xff] %v16970_v59  ;;  %v5075_v44 = vld [vmem:[#allocation2 + $0xf1] sm:$0xff] }
 0x2b3   : > { %v2993_v55 = vpop.f32.mrf.mxu0  ;;  %v16962_v57 = vadd.f32 %v14033_v26, %v2717_v41  ;;  %v2716_v62 = vadd.f32 %v2605_v11, %v16725_v13  ;;  %v16981_v11 = vld [vmem:[#allocation2 + $0xf8] sm:$0xff] }
 0x2b4   : > { %v13986_v33 = vpop.f32.mrf.mxu1  ;;  %14285 = vmatmul.mubr.msk.f32.gmra.mxu1 %vm643_vm3, %v16965_v5  ;;  %20089 = vst [vmem:[#allocation38_spill] sm:$0xff] %v16981_v11 }
 0x2b5   : > { %v14036_v53 = vpop.f32.mrf.mxu0  ;;  %14335 = vmatmul.mubr.msk.f32.gmra.mxu0 %vm643_vm3, %v5074_v37  ;;  %v16972_v30 = vadd.f32 %v2993_v55, %v2716_v62  ;;  %v2719_v63 = vadd.f32 %v13986_v33, %v16731_v3  ;;  %14287 = vmatprep.mubr.msk.f32.mxu1 %vm643_vm3, %v16970_v59  ;;  %v5076_v37 = vld [vmem:[#allocation2 + $0xf9] sm:$0xff]  ;;  %v16986_v3 = vld [vmem:[#allocation2 + $0x108] sm:$0xff] }
 0x2b6   : > { %14337 = vmatprep.mubr.msk.f32.mxu0 %vm643_vm3, %v5075_v44  ;;  %v2615_v13 = vpop.f32.mrf.mxu1  ;;  %20090 = vst [vmem:[#allocation13_spill] sm:$0xff] %v16986_v3  ;;  %v5077_v33 = vld [vmem:[#allocation2 + $0x109] sm:$0xff] }
 0x2b7   : > { %v3003_v26 = vpop.f32.mrf.mxu0  ;;  %v16978_v17 = vadd.f32 %v14036_v53, %v2719_v63  ;;  %v2718_v41 = vadd.f32 %v2615_v13, %v16737_v25  ;;  %v16997_v13 = vld [vmem:[#allocation2 + $0x110] sm:$0xff] }
 0x2b8   : > { %v13989_v5 = vpop.f32.mrf.mxu1  ;;  %14288 = vmatmul.mubr.msk.f32.gmra.mxu1 %vm643_vm3, %v16981_v11  ;;  %20091 = vst [vmem:[#allocation39_spill] sm:$0xff] %v16997_v13 }
 0x2b9   : > { %v14039_v35 = vpop.f32.mrf.mxu0  ;;  %14338 = vmatmul.mubr.msk.f32.gmra.mxu0 %vm643_vm3, %v5076_v37  ;;  %v16988_v55 = vadd.f32 %v3003_v26, %v2718_v41  ;;  %v2721_v53 = vadd.f32 %v13989_v5, %v16743_v6  ;;  %14290 = vmatprep.mubr.msk.f32.mxu1 %vm643_vm3, %v16986_v3  ;;  %v5078_v37 = vld [vmem:[#allocation2 + $0x111] sm:$0xff]  ;;  %v17002_v6 = vld [vmem:[#allocation2 + $0x120] sm:$0xff] }
 0x2ba   : > { %14340 = vmatprep.mubr.msk.f32.mxu0 %vm643_vm3, %v5077_v33  ;;  %v2625_v25 = vpop.f32.mrf.mxu1  ;;  %20092 = vst [vmem:[#allocation14_spill] sm:$0xff] %v17002_v6  ;;  %v5079_v5 = vld [vmem:[#allocation2 + $0x121] sm:$0xff] }
 0x2bb   : > { %v3013_v62 = vpop.f32.mrf.mxu0  ;;  %v16994_v44 = vadd.f32 %v14039_v35, %v2721_v53  ;;  %v2720_v63 = vadd.f32 %v2625_v25, %v16749_v19  ;;  %v17013_v25 = vld [vmem:[#allocation2 + $0x128] sm:$0xff] }
 0x2bc   : > { %v13992_v11 = vpop.f32.mrf.mxu1  ;;  %14291 = vmatmul.mubr.msk.f32.gmra.mxu1 %vm643_vm3, %v16997_v13  ;;  %20093 = vst [vmem:[#allocation40_spill] sm:$0xff] %v17013_v25 }
 0x2bd   : > { %v14042_v59 = vpop.f32.mrf.mxu0  ;;  %14341 = vmatmul.mubr.msk.f32.gmra.mxu0 %vm643_vm3, %v5078_v37  ;;  %v17004_v26 = vadd.f32 %v3013_v62, %v2720_v63  ;;  %v2723_v35 = vadd.f32 %v13992_v11, %v16755_v23  ;;  %14293 = vmatprep.mubr.msk.f32.mxu1 %vm643_vm3, %v17002_v6  ;;  %v5080_v37 = vld [vmem:[#allocation2 + $0x129] sm:$0xff]  ;;  %v17018_v23 = vld [vmem:[#allocation2 + $0x138] sm:$0xff] }
 0x2be   : > { %14343 = vmatprep.mubr.msk.f32.mxu0 %vm643_vm3, %v5079_v5  ;;  %v2635_v19 = vpop.f32.mrf.mxu1  ;;  %20094 = vst [vmem:[#allocation15_spill] sm:$0xff] %v17018_v23  ;;  %v5081_v11 = vld [vmem:[#allocation2 + $0x139] sm:$0xff] }
 0x2bf   : > { %v3023_v41 = vpop.f32.mrf.mxu0  ;;  %v17010_v33 = vadd.f32 %v14042_v59, %v2723_v35  ;;  %v2722_v53 = vadd.f32 %v2635_v19, %v16761_v28  ;;  %v17029_v19 = vld [vmem:[#allocation2 + $0x140] sm:$0xff] }
 0x2c0   : > { %v13995_v13 = vpop.f32.mrf.mxu1  ;;  %14294 = vmatmul.mubr.msk.f32.gmra.mxu1 %vm643_vm3, %v17013_v25  ;;  %20095 = vst [vmem:[#allocation41_spill] sm:$0xff] %v17029_v19 }
 0x2c1   : > { %v14045_v3 = vpop.f32.mrf.mxu0  ;;  %14344 = vmatmul.mubr.msk.f32.gmra.mxu0 %vm643_vm3, %v5080_v37  ;;  %v17020_v62 = vadd.f32 %v3023_v41, %v2722_v53  ;;  %v2725_v59 = vadd.f32 %v13995_v13, %v16767_v2  ;;  %14296 = vmatprep.mubr.msk.f32.mxu1 %vm643_vm3, %v17018_v23  ;;  %v5082_v37 = vld [vmem:[#allocation2 + $0x141] sm:$0xff]  ;;  %v17034_v2 = vld [vmem:[#allocation2 + $0x150] sm:$0xff] }
 0x2c2   : > { %14346 = vmatprep.mubr.msk.f32.mxu0 %vm643_vm3, %v5081_v11  ;;  %v2645_v28 = vpop.f32.mrf.mxu1  ;;  %20096 = vst [vmem:[#allocation16_spill] sm:$0xff] %v17034_v2  ;;  %v5083_v13 = vld [vmem:[#allocation2 + $0x151] sm:$0xff] }
 0x2c3   : > { %v3033_v63 = vpop.f32.mrf.mxu0  ;;  %v17026_v5 = vadd.f32 %v14045_v3, %v2725_v59  ;;  %v2724_v35 = vadd.f32 %v2645_v28, %v16773_v32  ;;  %v17045_v28 = vld [vmem:[#allocation2 + $0x158] sm:$0xff] }
 0x2c4   : > { %v13998_v25 = vpop.f32.mrf.mxu1  ;;  %14297 = vmatmul.mubr.msk.f32.gmra.mxu1 %vm643_vm3, %v17029_v19  ;;  %20097 = vst [vmem:[#allocation42_spill] sm:$0xff] %v17045_v28 }
 0x2c5   : > { %v14048_v6 = vpop.f32.mrf.mxu0  ;;  %14347 = vmatmul.mubr.msk.f32.gmra.mxu0 %vm643_vm3, %v5082_v37  ;;  %v17036_v41 = vadd.f32 %v3033_v63, %v2724_v35  ;;  %v2727_v3 = vadd.f32 %v13998_v25, %v16779_v21  ;;  %14299 = vmatprep.mubr.msk.f32.mxu1 %vm643_vm3, %v17034_v2  ;;  %v5084_v37 = vld [vmem:[#allocation2 + $0x159] sm:$0xff]  ;;  %v17050_v21 = vld [vmem:[#allocation2 + $0x168] sm:$0xff] }
 0x2c6   : > { %14349 = vmatprep.mubr.msk.f32.mxu0 %vm643_vm3, %v5083_v13  ;;  %v2655_v32 = vpop.f32.mrf.mxu1  ;;  %20098 = vst [vmem:[#allocation17_spill] sm:$0xff] %v17050_v21  ;;  %v5085_v25 = vld [vmem:[#allocation2 + $0x169] sm:$0xff] }
 0x2c7   : > { %v3043_v53 = vpop.f32.mrf.mxu0  ;;  %v17042_v11 = vadd.f32 %v14048_v6, %v2727_v3  ;;  %v2726_v59 = vadd.f32 %v2655_v32, %v16785_v16  ;;  %v17061_v32 = vld [vmem:[#allocation2 + $0x170] sm:$0xff] }
 0x2c8   : > { %v14001_v19 = vpop.f32.mrf.mxu1  ;;  %14300 = vmatmul.mubr.msk.f32.gmra.mxu1 %vm643_vm3, %v17045_v28  ;;  %20099 = vst [vmem:[#allocation43_spill] sm:$0xff] %v17061_v32 }
 0x2c9   : > { %v14051_v23 = vpop.f32.mrf.mxu0  ;;  %14350 = vmatmul.mubr.msk.f32.gmra.mxu0 %vm643_vm3, %v5084_v37  ;;  %v17052_v63 = vadd.f32 %v3043_v53, %v2726_v59  ;;  %v2729_v6 = vadd.f32 %v14001_v19, %v16791_v27  ;;  %14302 = vmatprep.mubr.msk.f32.mxu1 %vm643_vm3, %v17050_v21  ;;  %v5086_v37 = vld [vmem:[#allocation2 + $0x171] sm:$0xff]  ;;  %v17066_v27 = vld [vmem:[#allocation2 + $0x180] sm:$0xff] }
 0x2ca   : > { %14352 = vmatprep.mubr.msk.f32.mxu0 %vm643_vm3, %v5085_v25  ;;  %v2665_v16 = vpop.f32.mrf.mxu1  ;;  %20100 = vst [vmem:[#allocation18_spill] sm:$0xff] %v17066_v27 }
 0x2cb   : > { %v3053_v35 = vpop.f32.mrf.mxu0  ;;  %v17058_v13 = vadd.f32 %v14051_v23, %v2729_v6  ;;  %v2728_v3 = vadd.f32 %v2665_v16, %v16802_v58  ;;  %v20101_v58 = vld [vmem:[#allocation33_spill] sm:$0xff]  ;;  %v17078_v16 = vld [vmem:[#allocation2 + $0x188] sm:$0xff] }
 0x2cc   : > { %v14004_v28 = vpop.f32.mrf.mxu1  ;;  %14303 = vmatmul.mubr.msk.f32.gmra.mxu1 %vm643_vm3, %v17061_v32  ;;  %20102 = vst [vmem:[#allocation44_spill] sm:$0xff] %v17078_v16 }
 0x2cd   : > { %v14054_v2 = vpop.f32.mrf.mxu0  ;;  %14353 = vmatmul.mubr.msk.f32.gmra.mxu0 %vm643_vm3, %v5086_v37  ;;  %v17068_v19 = vadd.f32 %v3053_v35, %v2728_v3  ;;  %v2731_v53 = vadd.f32 %v14004_v28, %v16809_v1  ;;  %14305 = vmatprep.mubr.msk.f32.mxu1 %vm643_vm3, %v17066_v27  ;;  %v5088_v37 = vld [vmem:[#allocation2 + $0x189] sm:$0xff]  ;;  %v17083_v1 = vld [vmem:[#allocation2 + $0x198] sm:$0xff] }
 0x2ce   : > { %14355 = vmatprep.mubr.msk.f32.mxu0 %vm643_vm3, %v20101_v58  ;;  %v2675_v23 = vpop.f32.mrf.mxu1  ;;  %20103 = vst [vmem:[#allocation19_spill] sm:$0xff] %v17083_v1  ;;  %v5089_v28 = vld [vmem:[#allocation2 + $0x199] sm:$0xff] }
 0x2cf   : > { %v3063_v59 = vpop.f32.mrf.mxu0  ;;  %v17075_v25 = vadd.f32 %v14054_v2, %v2731_v53  ;;  %v2730_v6 = vadd.f32 %v2675_v23, %v16820_v0 }
 0x2d0   : > { %v14007_v32 = vpop.f32.mrf.mxu1  ;;  %14306 = vmatmul.mubr.msk.f32.gmra.mxu1 %vm643_vm3, %v17078_v16  ;;  %v17094_v16 = vld [vmem:[#allocation2 + $0x1a0] sm:$0xff] }
 0x2d1   : > { %v14057_v35 = vpop.f32.mrf.mxu0  ;;  %14356 = vmatmul.mubr.msk.f32.gmra.mxu0 %vm643_vm3, %v5088_v37  ;;  %v17085_v3 = vadd.f32 %v3063_v59, %v2730_v6  ;;  %v2733_v2 = vadd.f32 %v14007_v32, %v16826_v50  ;;  %14308 = vmatprep.mubr.msk.f32.mxu1 %vm643_vm3, %v17083_v1  ;;  %20104 = vst [vmem:[#allocation45_spill] sm:$0xff] %v17094_v16  ;;  %v5090_v37 = vld [vmem:[#allocation2 + $0x1a1] sm:$0xff]  ;;  %v5446_v50 = vld [vmem:[#allocation2 + $0x32] sm:$0xff] }
 0x2d2   : > { %14358 = vmatprep.mubr.msk.f32.mxu0 %vm643_vm3, %v5089_v28  ;;  %v2685_v0 = vpop.f32.mrf.mxu1  ;;  %v5833_v32 = vld [vmem:[#allocation2 + $0x33] sm:$0xff] }
 0x2d3   : > { %v3073_v53 = vpop.f32.mrf.mxu0  ;;  %v17091_v58 = vadd.f32 %v14057_v35, %v2733_v2  ;;  %v2732_v23 = vadd.f32 %v2685_v0, %v16834_v24  ;;  %v5447_v0 = vld [vmem:[#allocation2 + $0x3a] sm:$0xff] }
 0x2d4   : > { %v14010_v27 = vpop.f32.mrf.mxu1  ;;  %14309 = vmatmul.mubr.msk.f32.gmra.mxu1 %vm643_vm3, %v17094_v16  ;;  %v5834_v16 = vld [vmem:[#allocation2 + $0x3b] sm:$0xff] }
 0x2d5   : > { %v14060_v21 = vpop.f32.mrf.mxu0  ;;  %14359 = vmatmul.mubr.msk.f32.gmra.mxu0 %vm643_vm3, %v5090_v37  ;;  %v17099_v59 = vadd.f32 %v3073_v53, %v2732_v23  ;;  %v2735_v6 = vadd.f32 %v14010_v27, %v16839_v46  ;;  %14363 = vmatprep.mubr.msk.f32.mxu1 %vm643_vm3, %v5446_v50  ;;  %v17109_v53 = vld [vmem:[#allocation2 + $0x4a] sm:$0xff] }
 0x2d6   : > { %14413 = vmatprep.mubr.msk.f32.mxu0 %vm643_vm3, %v5833_v32  ;;  %v2695_v24 = vpop.f32.mrf.mxu1  ;;  %20105 = vst [vmem:[#allocation20_spill] sm:$0xff] %v17109_v53  ;;  %v17114_v46 = vld [vmem:[%s19837_s3 + $0x88] sm:$0xff] }
 0x2d7   : > { %v3083_v35 = vpop.f32.mrf.mxu0  ;;  %v17104_v28 = vadd.f32 %v14060_v21, %v2735_v6  ;;  %v2734_v2 = vadd.f32 %v2695_v24, %v16856_v39  ;;  %v17119_v21 = vld [vmem:[%s19837_s3 + $0x80] sm:$0xff]  ;;  %v17132_v24 = vld [vmem:[#allocation2 + $0x52] sm:$0xff] }
 0x2d8   : > { %v14065_v1 = vpop.f32.mrf.mxu1  ;;  %14364 = vmatmul.mubr.msk.f32.vlgmr.msra.gmra.mxu1 %vm643_vm3, %v5447_v0  ;;  %20106 = vst [vmem:[#allocation46_spill] sm:$0xff] %v17132_v24 }
 0x2d9   : > { %v14115_v37 = vpop.f32.mrf.mxu0  ;;  %14414 = vmatmul.mubr.msk.f32.vlgmr.msra.gmra.mxu0 %vm643_vm3, %v5834_v16  ;;  %v17121_v39 = vadd.f32 %v3083_v35, %v2734_v2  ;;  %v3480_v27 = vadd.f32 %v14065_v1, %v16864_v54  ;;  %14366 = vmatprep.mubr.msk.f32.mxu1 %vm643_vm3, %v17109_v53  ;;  %v5835_v16 = vld [vmem:[#allocation2 + $0x4b] sm:$0xff]  ;;  %v5836_v35 = vld [vmem:[#allocation2 + $0x53] sm:$0xff]  ;;  %v17139_v1 = vld [vmem:[#allocation2 + $0x62] sm:$0xff] }
 0x2da   : > { %14512 = vmatpush3.msra.mxu0 %v16849_v15  ;;  %14416 = vmatprep.mubr.msk.f32.mxu0 %vm643_vm3, %v5835_v16  ;;  %v3320_v23 = vpop.f32.mrf.mxu1  ;;  %20107 = vst [vmem:[#allocation21_spill] sm:$0xff] %v17139_v1 }
 0x2db   : > { %v3707_v50 = vpop.f32.mrf.mxu0  ;;  %14462 = vmatpush3.msra.mxu1 %v16854_v36  ;;  %v17129_v32 = vadd.f32 %v14115_v37, %v3480_v27  ;;  %v3479_v6 = vadd.f32 %v3320_v23, %v16876_v8  ;;  %14611 = vmatprep.subr.mxu0 %v17114_v46  ;;  %v5837_v36 = vld [vmem:[#allocation2 + $0x63] sm:$0xff] }
 0x2dc   : > { %14561 = vmatprep.subr.mxu1 %v17119_v21  ;;  %v14068_v15 = vpop.f32.mrf.mxu1  ;;  %14367 = vmatmul.mubr.msk.f32.gmra.mxu1 %vm643_vm3, %v17132_v24  ;;  %v17150_v23 = vld [vmem:[#allocation2 + $0x6a] sm:$0xff] }
 0x2dd   : > { %v14118_v54 = vpop.f32.mrf.mxu0  ;;  %14417 = vmatmul.mubr.msk.f32.gmra.mxu0 %vm643_vm3, %v5836_v35  ;;  %v17141_v2 = vadd.f32 %v3707_v50, %v3479_v6  ;;  %v3482_v8 = vadd.f32 %v14068_v15, %v16882_v56  ;;  %14369 = vmatprep.mubr.msk.f32.mxu1 %vm643_vm3, %v17139_v1  ;;  %20108 = vst [vmem:[#allocation22_spill] sm:$0xff] %v17150_v23  ;;  %v5838_v35 = vld [vmem:[#allocation2 + $0x6b] sm:$0xff]  ;;  %v17155_v56 = vld [vmem:[#allocation2 + $0x7a] sm:$0xff] }
 0x2de   : > { %14419 = vmatprep.mubr.msk.f32.mxu0 %vm643_vm3, %v5837_v36  ;;  %v3330_v0 = vpop.f32.mrf.mxu1  ;;  %20109 = vst [vmem:[#allocation23_spill] sm:$0xff] %v17155_v56  ;;  %v5839_v50 = vld [vmem:[#allocation2 + $0x7b] sm:$0xff] }
 0x2df   : > { %v3717_v37 = vpop.f32.mrf.mxu0  ;;  %v17147_v27 = vadd.f32 %v14118_v54, %v3482_v8  ;;  %v3481_v16 = vadd.f32 %v3330_v0, %v16892_v48  ;;  %v17166_v0 = vld [vmem:[#allocation2 + $0x82] sm:$0xff] }
 0x2e0   : > { %v14071_v24 = vpop.f32.mrf.mxu1  ;;  %14370 = vmatmul.mubr.msk.f32.gmra.mxu1 %vm643_vm3, %v17150_v23  ;;  %20110 = vst [vmem:[#allocation27_spill] sm:$0xff] %v17166_v0 }
 0x2e1   : > { %v14121_v53 = vpop.f32.mrf.mxu0  ;;  %14420 = vmatmul.mubr.msk.f32.gmra.mxu0 %vm643_vm3, %v5838_v35  ;;  %v17157_v6 = vadd.f32 %v3717_v37, %v3481_v16  ;;  %v3484_v15 = vadd.f32 %v14071_v24, %v16898_v40  ;;  %14372 = vmatprep.mubr.msk.f32.mxu1 %vm643_vm3, %v17155_v56  ;;  %v5840_v35 = vld [vmem:[#allocation2 + $0x83] sm:$0xff]  ;;  %v17171_v40 = vld [vmem:[#allocation2 + $0x92] sm:$0xff] }
 0x2e2   : > { %14422 = vmatprep.mubr.msk.f32.mxu0 %vm643_vm3, %v5839_v50  ;;  %v3340_v48 = vpop.f32.mrf.mxu1  ;;  %20111 = vst [vmem:[#allocation25_spill] sm:$0xff] %v17171_v40  ;;  %v5841_v24 = vld [vmem:[#allocation2 + $0x93] sm:$0xff] }
 0x2e3   : > { %v3727_v54 = vpop.f32.mrf.mxu0  ;;  %v17163_v36 = vadd.f32 %v14121_v53, %v3484_v15  ;;  %v3483_v8 = vadd.f32 %v3340_v48, %v16908_v29  ;;  %v17182_v48 = vld [vmem:[#allocation2 + $0x9a] sm:$0xff] }
 0x2e4   : > { %v14074_v23 = vpop.f32.mrf.mxu1  ;;  %14373 = vmatmul.mubr.msk.f32.gmra.mxu1 %vm643_vm3, %v17166_v0  ;;  %20112 = vst [vmem:[#allocation26_spill] sm:$0xff] %v17182_v48 }
 0x2e5   : > { %v14124_v1 = vpop.f32.mrf.mxu0  ;;  %14423 = vmatmul.mubr.msk.f32.gmra.mxu0 %vm643_vm3, %v5840_v35  ;;  %v17173_v37 = vadd.f32 %v3727_v54, %v3483_v8  ;;  %v3486_v53 = vadd.f32 %v14074_v23, %v16914_v20  ;;  %14375 = vmatprep.mubr.msk.f32.mxu1 %vm643_vm3, %v17171_v40  ;;  %v5842_v35 = vld [vmem:[#allocation2 + $0x9b] sm:$0xff]  ;;  %v17187_v20 = vld [vmem:[#allocation2 + $0xaa] sm:$0xff] }
 0x2e6   : > { %14425 = vmatprep.mubr.msk.f32.mxu0 %vm643_vm3, %v5841_v24  ;;  %v3350_v29 = vpop.f32.mrf.mxu1  ;;  %20113 = vst [vmem:[#allocation24_spill] sm:$0xff] %v17187_v20  ;;  %v5843_v23 = vld [vmem:[#allocation2 + $0xab] sm:$0xff] }
 0x2e7   : > { %v3737_v16 = vpop.f32.mrf.mxu0  ;;  %v17179_v50 = vadd.f32 %v14124_v1, %v3486_v53  ;;  %v3485_v15 = vadd.f32 %v3350_v29, %v16924_v61  ;;  %v17198_v29 = vld [vmem:[#allocation2 + $0xb2] sm:$0xff] }
 0x2e8   : > { %v14077_v0 = vpop.f32.mrf.mxu1  ;;  %14376 = vmatmul.mubr.msk.f32.gmra.mxu1 %vm643_vm3, %v17182_v48  ;;  %20114 = vst [vmem:[#allocation28_spill] sm:$0xff] %v17198_v29 }
 0x2e9   : > { %v14127_v56 = vpop.f32.mrf.mxu0  ;;  %14426 = vmatmul.mubr.msk.f32.gmra.mxu0 %vm643_vm3, %v5842_v35  ;;  %v17189_v54 = vadd.f32 %v3737_v16, %v3485_v15  ;;  %v3488_v1 = vadd.f32 %v14077_v0, %v16930_v22  ;;  %14378 = vmatprep.mubr.msk.f32.mxu1 %vm643_vm3, %v17187_v20  ;;  %v5844_v35 = vld [vmem:[#allocation2 + $0xb3] sm:$0xff]  ;;  %v17203_v22 = vld [vmem:[#allocation2 + $0xc2] sm:$0xff] }
 0x2ea   : > { %14428 = vmatprep.mubr.msk.f32.mxu0 %vm643_vm3, %v5843_v23  ;;  %v3360_v61 = vpop.f32.mrf.mxu1  ;;  %20115 = vst [vmem:[#allocation30_spill] sm:$0xff] %v17203_v22  ;;  %v5845_v0 = vld [vmem:[#allocation2 + $0xc3] sm:$0xff] }
 0x2eb   : > { %v3747_v8 = vpop.f32.mrf.mxu0  ;;  %v17195_v24 = vadd.f32 %v14127_v56, %v3488_v1  ;;  %v3487_v53 = vadd.f32 %v3360_v61, %v16940_v60  ;;  %v17214_v61 = vld [vmem:[#allocation2 + $0xca] sm:$0xff] }
 0x2ec   : > { %v14080_v48 = vpop.f32.mrf.mxu1  ;;  %14379 = vmatmul.mubr.msk.f32.gmra.mxu1 %vm643_vm3, %v17198_v29  ;;  %20116 = vst [vmem:[#allocation29_spill] sm:$0xff] %v17214_v61 }
 0x2ed   : > { %v14130_v40 = vpop.f32.mrf.mxu0  ;;  %14429 = vmatmul.mubr.msk.f32.gmra.mxu0 %vm643_vm3, %v5844_v35  ;;  %v17205_v16 = vadd.f32 %v3747_v8, %v3487_v53  ;;  %v3490_v56 = vadd.f32 %v14080_v48, %v16946_v7  ;;  %14381 = vmatprep.mubr.msk.f32.mxu1 %vm643_vm3, %v17203_v22  ;;  %v5846_v35 = vld [vmem:[#allocation2 + $0xcb] sm:$0xff]  ;;  %v17219_v7 = vld [vmem:[#allocation2 + $0xda] sm:$0xff] }
 0x2ee   : > { %14431 = vmatprep.mubr.msk.f32.mxu0 %vm643_vm3, %v5845_v0  ;;  %v3370_v60 = vpop.f32.mrf.mxu1  ;;  %20117 = vst [vmem:[#allocation31_spill] sm:$0xff] %v17219_v7  ;;  %v5847_v48 = vld [vmem:[#allocation2 + $0xdb] sm:$0xff] }
 0x2ef   : > { %v3757_v15 = vpop.f32.mrf.mxu0  ;;  %v17211_v23 = vadd.f32 %v14130_v40, %v3490_v56  ;;  %v3489_v1 = vadd.f32 %v3370_v60, %v16956_v42  ;;  %v17230_v60 = vld [vmem:[#allocation2 + $0xe2] sm:$0xff] }
 0x2f0   : > { %v14083_v29 = vpop.f32.mrf.mxu1  ;;  %14382 = vmatmul.mubr.msk.f32.gmra.mxu1 %vm643_vm3, %v17214_v61  ;;  %20118 = vst [vmem:[#allocation47_spill] sm:$0xff] %v17230_v60 }
 0x2f1   : > { %v14133_v20 = vpop.f32.mrf.mxu0  ;;  %14432 = vmatmul.mubr.msk.f32.gmra.mxu0 %vm643_vm3, %v5846_v35  ;;  %v17221_v8 = vadd.f32 %v3757_v15, %v3489_v1  ;;  %v3492_v40 = vadd.f32 %v14083_v29, %v16962_v57  ;;  %14384 = vmatprep.mubr.msk.f32.mxu1 %vm643_vm3, %v17219_v7  ;;  %v5848_v35 = vld [vmem:[#allocation2 + $0xe3] sm:$0xff]  ;;  %v17235_v57 = vld [vmem:[#allocation2 + $0xf2] sm:$0xff] }
 0x2f2   : > { %14434 = vmatprep.mubr.msk.f32.mxu0 %vm643_vm3, %v5847_v48  ;;  %v3380_v42 = vpop.f32.mrf.mxu1  ;;  %20119 = vst [vmem:[#allocation48_spill] sm:$0xff] %v17235_v57  ;;  %v5849_v29 = vld [vmem:[#allocation2 + $0xf3] sm:$0xff] }
 0x2f3   : > { %v3767_v53 = vpop.f32.mrf.mxu0  ;;  %v17227_v0 = vadd.f32 %v14133_v20, %v3492_v40  ;;  %v3491_v56 = vadd.f32 %v3380_v42, %v16972_v30  ;;  %v17246_v42 = vld [vmem:[#allocation2 + $0xfa] sm:$0xff] }
 0x2f4   : > { %v14086_v61 = vpop.f32.mrf.mxu1  ;;  %14385 = vmatmul.mubr.msk.f32.gmra.mxu1 %vm643_vm3, %v17230_v60  ;;  %20120 = vst [vmem:[#allocation32_spill] sm:$0xff] %v17246_v42 }
 0x2f5   : > { %v14136_v22 = vpop.f32.mrf.mxu0  ;;  %14435 = vmatmul.mubr.msk.f32.gmra.mxu0 %vm643_vm3, %v5848_v35  ;;  %v17237_v15 = vadd.f32 %v3767_v53, %v3491_v56  ;;  %v3494_v20 = vadd.f32 %v14086_v61, %v16978_v17  ;;  %14387 = vmatprep.mubr.msk.f32.mxu1 %vm643_vm3, %v17235_v57  ;;  %v5850_v35 = vld [vmem:[#allocation2 + $0xfb] sm:$0xff]  ;;  %v17251_v17 = vld [vmem:[#allocation2 + $0x10a] sm:$0xff] }
 0x2f6   : > { %14437 = vmatprep.mubr.msk.f32.mxu0 %vm643_vm3, %v5849_v29  ;;  %v3390_v30 = vpop.f32.mrf.mxu1  ;;  %20121 = vst [vmem:[#allocation49_spill] sm:$0xff] %v17251_v17  ;;  %v5851_v61 = vld [vmem:[#allocation2 + $0x10b] sm:$0xff] }
 0x2f7   : > { %v3777_v1 = vpop.f32.mrf.mxu0  ;;  %v17243_v48 = vadd.f32 %v14136_v22, %v3494_v20  ;;  %v3493_v40 = vadd.f32 %v3390_v30, %v16988_v55  ;;  %v17262_v30 = vld [vmem:[#allocation2 + $0x112] sm:$0xff] }
 0x2f8   : > { %v14089_v60 = vpop.f32.mrf.mxu1  ;;  %14388 = vmatmul.mubr.msk.f32.gmra.mxu1 %vm643_vm3, %v17246_v42  ;;  %20122 = vst [vmem:[#allocation50_spill] sm:$0xff] %v17262_v30 }
 0x2f9   : > { %v14139_v7 = vpop.f32.mrf.mxu0  ;;  %14438 = vmatmul.mubr.msk.f32.gmra.mxu0 %vm643_vm3, %v5850_v35  ;;  %v17253_v53 = vadd.f32 %v3777_v1, %v3493_v40  ;;  %v3496_v22 = vadd.f32 %v14089_v60, %v16994_v44  ;;  %14390 = vmatprep.mubr.msk.f32.mxu1 %vm643_vm3, %v17251_v17  ;;  %v5852_v35 = vld [vmem:[#allocation2 + $0x113] sm:$0xff]  ;;  %v17267_v44 = vld [vmem:[#allocation2 + $0x122] sm:$0xff] }
 0x2fa   : > { %14440 = vmatprep.mubr.msk.f32.mxu0 %vm643_vm3, %v5851_v61  ;;  %v3400_v55 = vpop.f32.mrf.mxu1  ;;  %20123 = vst [vmem:[#allocation7_spill] sm:$0xff] %v17267_v44  ;;  %v5853_v60 = vld [vmem:[#allocation2 + $0x123] sm:$0xff] }
 0x2fb   : > { %v3787_v56 = vpop.f32.mrf.mxu0  ;;  %v17259_v29 = vadd.f32 %v14139_v7, %v3496_v22  ;;  %v3495_v20 = vadd.f32 %v3400_v55, %v17004_v26  ;;  %v17278_v55 = vld [vmem:[#allocation2 + $0x12a] sm:$0xff] }
 0x2fc   : > { %v14092_v42 = vpop.f32.mrf.mxu1  ;;  %14391 = vmatmul.mubr.msk.f32.gmra.mxu1 %vm643_vm3, %v17262_v30  ;;  %20124 = vst [vmem:[#allocation51_spill] sm:$0xff] %v17278_v55 }
 0x2fd   : > { %v14142_v57 = vpop.f32.mrf.mxu0  ;;  %14441 = vmatmul.mubr.msk.f32.gmra.mxu0 %vm643_vm3, %v5852_v35  ;;  %v17269_v1 = vadd.f32 %v3787_v56, %v3495_v20  ;;  %v3498_v7 = vadd.f32 %v14092_v42, %v17010_v33  ;;  %14393 = vmatprep.mubr.msk.f32.mxu1 %vm643_vm3, %v17267_v44  ;;  %v5854_v35 = vld [vmem:[#allocation2 + $0x12b] sm:$0xff]  ;;  %v17283_v33 = vld [vmem:[#allocation2 + $0x13a] sm:$0xff] }
 0x2fe   : > { %14443 = vmatprep.mubr.msk.f32.mxu0 %vm643_vm3, %v5853_v60  ;;  %v3410_v26 = vpop.f32.mrf.mxu1  ;;  %v5855_v42 = vld [vmem:[#allocation2 + $0x13b] sm:$0xff] }
 0x2ff   : > { %v3797_v40 = vpop.f32.mrf.mxu0  ;;  %v17275_v61 = vadd.f32 %v14142_v57, %v3498_v7  ;;  %v3497_v22 = vadd.f32 %v3410_v26, %v17020_v62  ;;  %v17294_v26 = vld [vmem:[#allocation2 + $0x142] sm:$0xff] }
 0x300   : > { %v14095_v30 = vpop.f32.mrf.mxu1  ;;  %14394 = vmatmul.mubr.msk.f32.gmra.mxu1 %vm643_vm3, %v17278_v55  ;;  %20125 = vst [vmem:[#allocation8_spill] sm:$0xff] %v17294_v26 }
 0x301   : > { %v14145_v17 = vpop.f32.mrf.mxu0  ;;  %14444 = vmatmul.mubr.msk.f32.gmra.mxu0 %vm643_vm3, %v5854_v35  ;;  %v17285_v56 = vadd.f32 %v3797_v40, %v3497_v22  ;;  %v3500_v57 = vadd.f32 %v14095_v30, %v17026_v5  ;;  %14396 = vmatprep.mubr.msk.f32.mxu1 %vm643_vm3, %v17283_v33  ;;  %v5856_v35 = vld [vmem:[#allocation2 + $0x143] sm:$0xff]  ;;  %v17299_v5 = vld [vmem:[#allocation2 + $0x152] sm:$0xff] }
 0x302   : > { %14446 = vmatprep.mubr.msk.f32.mxu0 %vm643_vm3, %v5855_v42  ;;  %v3420_v62 = vpop.f32.mrf.mxu1  ;;  %v5857_v30 = vld [vmem:[#allocation2 + $0x153] sm:$0xff] }
 0x303   : > { %v3807_v20 = vpop.f32.mrf.mxu0  ;;  %v17291_v60 = vadd.f32 %v14145_v17, %v3500_v57  ;;  %v3499_v7 = vadd.f32 %v3420_v62, %v17036_v41  ;;  %v17310_v62 = vld [vmem:[#allocation2 + $0x15a] sm:$0xff] }
 0x304   : > { %v14098_v55 = vpop.f32.mrf.mxu1  ;;  %14397 = vmatmul.mubr.msk.f32.gmra.mxu1 %vm643_vm3, %v17294_v26 }
 0x305   : > { %v14148_v44 = vpop.f32.mrf.mxu0  ;;  %14447 = vmatmul.mubr.msk.f32.gmra.mxu0 %vm643_vm3, %v5856_v35  ;;  %v17301_v40 = vadd.f32 %v3807_v20, %v3499_v7  ;;  %v3502_v17 = vadd.f32 %v14098_v55, %v17042_v11  ;;  %14399 = vmatprep.mubr.msk.f32.mxu1 %vm643_vm3, %v17299_v5  ;;  %v17316_v11 = vld [vmem:[#allocation2 + $0x16a] sm:$0xff] }
 0x306   : > { %14449 = vmatprep.mubr.msk.f32.mxu0 %vm643_vm3, %v5857_v30  ;;  %v3430_v41 = vpop.f32.mrf.mxu1 }
 0x307   : > { %v3817_v22 = vpop.f32.mrf.mxu0  ;;  %v17307_v42 = vadd.f32 %v14148_v44, %v3502_v17  ;;  %v3501_v57 = vadd.f32 %v3430_v41, %v17052_v63  ;;  %v17328_v17 = vld [vmem:[#allocation2 + $0x172] sm:$0xff] }
 0x308   : > { %v14101_v35 = vpop.f32.mrf.mxu1  ;;  %14400 = vmatmul.mubr.msk.f32.gmra.mxu1 %vm643_vm3, %v17310_v62 }
 0x309   : > { %v14151_v26 = vpop.f32.mrf.mxu0  ;;  %14450 = vmatmul.mubr.msk.f32.gmra.mxu0 %vm643_vm3, %v16794_v9  ;;  %v17318_v55 = vadd.f32 %v3817_v22, %v3501_v57  ;;  %v3504_v20 = vadd.f32 %v14101_v35, %v17058_v13  ;;  %14402 = vmatprep.mubr.msk.f32.mxu1 %vm643_vm3, %v17316_v11  ;;  %v17334_v13 = vld [vmem:[#allocation2 + $0x182] sm:$0xff] }
 0x30a   : > { %14452 = vmatprep.mubr.msk.f32.mxu0 %vm643_vm3, %v16800_v45  ;;  %v3440_v63 = vpop.f32.mrf.mxu1  ;;  %20126 = vst [vmem:[#allocation34_spill] sm:$0xff] %v17334_v13 }
 0x30b   : > { %v3827_v44 = vpop.f32.mrf.mxu0  ;;  %v17325_v7 = vadd.f32 %v14151_v26, %v3504_v20  ;;  %v3503_v30 = vadd.f32 %v3440_v63, %v17068_v19  ;;  %v17346_v20 = vld [vmem:[#allocation2 + $0x18a] sm:$0xff] }
 0x30c   : > { %v14104_v9 = vpop.f32.mrf.mxu1  ;;  %14403 = vmatmul.mubr.msk.f32.gmra.mxu1 %vm643_vm3, %v17328_v17  ;;  %20127 = vst [vmem:[#allocation9_spill] sm:$0xff] %v17346_v20 }
 0x30d   : > { %v14154_v41 = vpop.f32.mrf.mxu0  ;;  %14453 = vmatmul.mubr.msk.f32.gmra.mxu0 %vm643_vm3, %v16812_v52  ;;  %v17336_v22 = vadd.f32 %v3827_v44, %v3503_v30  ;;  %v3506_v45 = vadd.f32 %v14104_v9, %v17075_v25  ;;  %14405 = vmatprep.mubr.msk.f32.mxu1 %vm643_vm3, %v17334_v13  ;;  %v17352_v25 = vld [vmem:[#allocation2 + $0x19a] sm:$0xff] }
 0x30e   : > { %14455 = vmatprep.mubr.msk.f32.mxu0 %vm643_vm3, %v16818_v43  ;;  %v3450_v19 = vpop.f32.mrf.mxu1  ;;  %v5863_v44 = vld [vmem:[#allocation2 + $0x19b] sm:$0xff] }
 0x30f   : > { %v3837_v26 = vpop.f32.mrf.mxu0  ;;  %v17343_v57 = vadd.f32 %v14154_v41, %v3506_v45  ;;  %v3505_v35 = vadd.f32 %v3450_v19, %v17085_v3  ;;  %v17363_v19 = vld [vmem:[#allocation2 + $0x1a2] sm:$0xff] }
 0x310   : > { %v14107_v52 = vpop.f32.mrf.mxu1  ;;  %14406 = vmatmul.mubr.msk.f32.gmra.mxu1 %vm643_vm3, %v17346_v20  ;;  %20128 = vst [vmem:[#allocation35_spill] sm:$0xff] %v17363_v19 }
 0x311   : > { %v14157_v63 = vpop.f32.mrf.mxu0  ;;  %14456 = vmatmul.mubr.msk.f32.gmra.mxu0 %vm643_vm3, %v16829_v31  ;;  %v17354_v43 = vadd.f32 %v3837_v26, %v3505_v35  ;;  %v3508_v30 = vadd.f32 %v14107_v52, %v17091_v58  ;;  %14408 = vmatprep.mubr.msk.f32.mxu1 %vm643_vm3, %v17352_v25  ;;  %v5864_v31 = vld [vmem:[#allocation2 + $0x1a3] sm:$0xff]  ;;  %v6220_v58 = vld [vmem:[#allocation2 + $0x34] sm:$0xff] }
 0x312   : > { %14458 = vmatprep.mubr.msk.f32.mxu0 %vm643_vm3, %v5863_v44  ;;  %v3460_v3 = vpop.f32.mrf.mxu1 }
 0x313   : > { %v3847_v9 = vpop.f32.mrf.mxu0  ;;  %v17360_v41 = vadd.f32 %v14157_v63, %v3508_v30  ;;  %v3507_v45 = vadd.f32 %v3460_v3, %v17099_v59  ;;  %v6221_v30 = vld [vmem:[#allocation2 + $0x3c] sm:$0xff] }
 0x314   : > { %v14110_v20 = vpop.f32.mrf.mxu1  ;;  %14409 = vmatmul.mubr.msk.f32.gmra.mxu1 %vm643_vm3, %v17363_v19 }
 0x315   : > { %v14160_v13 = vpop.f32.mrf.mxu0  ;;  %14459 = vmatmul.mubr.msk.f32.gmra.mxu0 %vm643_vm3, %v5864_v31  ;;  %v17368_v26 = vadd.f32 %v3847_v9, %v3507_v45  ;;  %v3510_v35 = vadd.f32 %v14110_v20, %v17104_v28  ;;  %14463 = vmatprep.mubr.msk.f32.mxu1 %vm643_vm3, %v6220_v58  ;;  %v17380_v28 = vld [vmem:[#allocation2 + $0x4c] sm:$0xff]  ;;  %v17404_v58 = vld [vmem:[#allocation2 + $0x54] sm:$0xff] }
 0x316   : > { %14513 = vmatprep.mubr.msk.f32.mxu0 %vm643_vm3, %v16844_v12  ;;  %v3470_v59 = vpop.f32.mrf.mxu1  ;;  %v17385_v12 = vld [vmem:[%s19837_s3 + $0x98] sm:$0xff] }
 0x317   : > { %v3857_v52 = vpop.f32.mrf.mxu0  ;;  %v17374_v63 = vadd.f32 %v14160_v13, %v3510_v35  ;;  %v3509_v44 = vadd.f32 %v3470_v59, %v17121_v39  ;;  %v17390_v13 = vld [vmem:[%s19837_s3 + $0x90] sm:$0xff] }
 0x318   : > { %v14165_v3 = vpop.f32.mrf.mxu1  ;;  %14464 = vmatmul.mubr.msk.f32.vlgmr.msra.gmra.mxu1 %vm643_vm3, %v6221_v30 }
 0x319   : > { %v14215_v19 = vpop.f32.mrf.mxu0  ;;  %14514 = vmatmul.mubr.msk.f32.vlgmr.msra.gmra.mxu0 %vm643_vm3, %v16867_v38  ;;  %v17392_v39 = vadd.f32 %v3857_v52, %v3509_v44  ;;  %v4254_v20 = vadd.f32 %v14165_v3, %v17129_v32  ;;  %14466 = vmatprep.mubr.msk.f32.mxu1 %vm643_vm3, %v17380_v28  ;;  %v17424_v44 = vld [vmem:[#allocation2 + $0x6c] sm:$0xff] }
 0x31a   : > { %14612 = vmatpush3.msra.mxu0 %v17114_v46  ;;  %14516 = vmatprep.mubr.msk.f32.mxu0 %vm643_vm3, %v16874_v47  ;;  %v4094_v38 = vpop.f32.mrf.mxu1  ;;  %v17412_v47 = vld [vmem:[#allocation2 + $0x64] sm:$0xff] }
 0x31b   : > { %v4481_v9 = vpop.f32.mrf.mxu0  ;;  %14562 = vmatpush3.msra.mxu1 %v17119_v21  ;;  %v17401_v45 = vadd.f32 %v14215_v19, %v4254_v20  ;;  %v4253_v31 = vadd.f32 %v4094_v38, %v17141_v2  ;;  %14711 = vmatprep.subr.mxu0 %v17385_v12 }
 0x31c   : > { %14661 = vmatprep.subr.mxu1 %v17390_v13  ;;  %v14168_v46 = vpop.f32.mrf.mxu1  ;;  %14467 = vmatmul.mubr.msk.f32.gmra.mxu1 %vm643_vm3, %v17404_v58 }
 0x31d   : > { %v14218_v32 = vpop.f32.mrf.mxu0  ;;  %14517 = vmatmul.mubr.msk.f32.gmra.mxu0 %vm643_vm3, %v16885_v14  ;;  %v17414_v21 = vadd.f32 %v4481_v9, %v4253_v31  ;;  %v4256_v2 = vadd.f32 %v14168_v46, %v17147_v27  ;;  %14469 = vmatprep.mubr.msk.f32.mxu1 %vm643_vm3, %v17412_v47  ;;  %v17430_v27 = vld [vmem:[#allocation2 + $0x7c] sm:$0xff]  ;;  %v17442_v31 = vld [vmem:[#allocation2 + $0x84] sm:$0xff] }
 0x31e   : > { %14519 = vmatprep.mubr.msk.f32.mxu0 %vm643_vm3, %v16890_v4  ;;  %v4104_v19 = vpop.f32.mrf.mxu1 }
 0x31f   : > { %v4491_v35 = vpop.f32.mrf.mxu0  ;;  %v17421_v59 = vadd.f32 %v14218_v32, %v4256_v2  ;;  %v4255_v52 = vadd.f32 %v4104_v19, %v17157_v6 }
 0x320   : > { %v14171_v14 = vpop.f32.mrf.mxu1  ;;  %14470 = vmatmul.mubr.msk.f32.gmra.mxu1 %vm643_vm3, %v17424_v44 }
 0x321   : > { %v14221_v30 = vpop.f32.mrf.mxu0  ;;  %14520 = vmatmul.mubr.msk.f32.gmra.mxu0 %vm643_vm3, %v16901_v18  ;;  %v17432_v3 = vadd.f32 %v4491_v35, %v4255_v52  ;;  %v4258_v4 = vadd.f32 %v14171_v14, %v17163_v36  ;;  %14472 = vmatprep.mubr.msk.f32.mxu1 %vm643_vm3, %v17430_v27  ;;  %v17448_v36 = vld [vmem:[#allocation2 + $0x94] sm:$0xff]  ;;  %v17460_v52 = vld [vmem:[#allocation2 + $0x9c] sm:$0xff] }
 0x322   : > { %14522 = vmatprep.mubr.msk.f32.mxu0 %vm643_vm3, %v16906_v34  ;;  %v4114_v6 = vpop.f32.mrf.mxu1 }
 0x323   : > { %v4501_v20 = vpop.f32.mrf.mxu0  ;;  %v17439_v38 = vadd.f32 %v14221_v30, %v4258_v4  ;;  %v4257_v9 = vadd.f32 %v4114_v6, %v17173_v37 }
 0x324   : > { %v14174_v18 = vpop.f32.mrf.mxu1  ;;  %14473 = vmatmul.mubr.msk.f32.gmra.mxu1 %vm643_vm3, %v17442_v31 }
 0x325   : > { %v14224_v46 = vpop.f32.mrf.mxu0  ;;  %14523 = vmatmul.mubr.msk.f32.gmra.mxu0 %vm643_vm3, %v16917_v10  ;;  %v17450_v32 = vadd.f32 %v4501_v20, %v4257_v9  ;;  %v4260_v34 = vadd.f32 %v14174_v18, %v17179_v50  ;;  %14475 = vmatprep.mubr.msk.f32.mxu1 %vm643_vm3, %v17448_v36  ;;  %v17466_v50 = vld [vmem:[#allocation2 + $0xac] sm:$0xff]  ;;  %v17478_v18 = vld [vmem:[#allocation2 + $0xb4] sm:$0xff] }
 0x326   : > { %14525 = vmatprep.mubr.msk.f32.mxu0 %vm643_vm3, %v16922_v49  ;;  %v4124_v37 = vpop.f32.mrf.mxu1  ;;  %20130 = vst [vmem:[#allocation33_spill] sm:$0xff] %v17478_v18 }
 0x327   : > { %v4511_v2 = vpop.f32.mrf.mxu0  ;;  %v17457_v19 = vadd.f32 %v14224_v46, %v4260_v34  ;;  %v4259_v35 = vadd.f32 %v4124_v37, %v17189_v54  ;;  %v20129_v54 = vld [vmem:[#allocation10_spill] sm:$0xff] }
 0x328   : > { %v14177_v10 = vpop.f32.mrf.mxu1  ;;  %14476 = vmatmul.mubr.msk.f32.gmra.mxu1 %vm643_vm3, %v17460_v52  ;;  %v17484_v34 = vld [vmem:[#allocation2 + $0xc4] sm:$0xff] }
 0x329   : > { %v14227_v14 = vpop.f32.mrf.mxu0  ;;  %14526 = vmatmul.mubr.msk.f32.gmra.mxu0 %vm643_vm3, %v16933_v51  ;;  %v17468_v30 = vadd.f32 %v4511_v2, %v4259_v35  ;;  %v4262_v49 = vadd.f32 %v14177_v10, %v17195_v24  ;;  %14478 = vmatprep.mubr.msk.f32.mxu1 %vm643_vm3, %v17466_v50  ;;  %v20131_v24 = vld [vmem:[#allocation36_spill] sm:$0xff]  ;;  %20132 = vst [vmem:[#allocation10_spill] sm:$0xff] %v17484_v34 }
 0x32a   : > { %14528 = vmatprep.mubr.msk.f32.mxu0 %vm643_vm3, %v20129_v54  ;;  %v4134_v4 = vpop.f32.mrf.mxu1  ;;  %v17496_v54 = vld [vmem:[#allocation2 + $0xcc] sm:$0xff] }
 0x32b   : > { %v4521_v6 = vpop.f32.mrf.mxu0  ;;  %v17475_v20 = vadd.f32 %v14227_v14, %v4262_v49  ;;  %v4261_v9 = vadd.f32 %v4134_v4, %v17205_v16  ;;  %v20133_v16 = vld [vmem:[#allocation11_spill] sm:$0xff]  ;;  %20134 = vst [vmem:[#allocation36_spill] sm:$0xff] %v17496_v54 }
 0x32c   : > { %v14180_v51 = vpop.f32.mrf.mxu1  ;;  %14479 = vmatmul.mubr.msk.f32.gmra.mxu1 %vm643_vm3, %v17478_v18 }
 0x32d   : > { %v14230_v46 = vpop.f32.mrf.mxu0  ;;  %14529 = vmatmul.mubr.msk.f32.gmra.mxu0 %vm643_vm3, %v20131_v24  ;;  %v17486_v37 = vadd.f32 %v4521_v6, %v4261_v9  ;;  %v4264_v2 = vadd.f32 %v14180_v51, %v17211_v23  ;;  %14481 = vmatprep.mubr.msk.f32.mxu1 %vm643_vm3, %v17484_v34  ;;  %v20135_v23 = vld [vmem:[#allocation37_spill] sm:$0xff] }
 0x32e   : > { %14531 = vmatprep.mubr.msk.f32.mxu0 %vm643_vm3, %v20133_v16  ;;  %v4144_v35 = vpop.f32.mrf.mxu1  ;;  %v17502_v6 = vld [vmem:[#allocation2 + $0xdc] sm:$0xff] }
 0x32f   : > { %v4531_v10 = vpop.f32.mrf.mxu0  ;;  %v17493_v14 = vadd.f32 %v14230_v46, %v4264_v2  ;;  %v4263_v49 = vadd.f32 %v4144_v35, %v17221_v8  ;;  %20136 = vst [vmem:[#allocation11_spill] sm:$0xff] %v17502_v6  ;;  %v20137_v8 = vld [vmem:[#allocation12_spill] sm:$0xff] }
 0x330   : > { %v14183_v4 = vpop.f32.mrf.mxu1  ;;  %14482 = vmatmul.mubr.msk.f32.gmra.mxu1 %vm643_vm3, %v17496_v54  ;;  %v17514_v54 = vld [vmem:[#allocation2 + $0xe4] sm:$0xff] }
 0x331   : > { %v14233_v24 = vpop.f32.mrf.mxu0  ;;  %14532 = vmatmul.mubr.msk.f32.gmra.mxu0 %vm643_vm3, %v20135_v23  ;;  %v17504_v9 = vadd.f32 %v4531_v10, %v4263_v49  ;;  %v4266_v51 = vadd.f32 %v14183_v4, %v17227_v0  ;;  %14484 = vmatprep.mubr.msk.f32.mxu1 %vm643_vm3, %v17502_v6  ;;  %20138 = vst [vmem:[#allocation37_spill] sm:$0xff] %v17514_v54  ;;  %v20139_v0 = vld [vmem:[#allocation38_spill] sm:$0xff]  ;;  %v17520_v10 = vld [vmem:[#allocation2 + $0xf4] sm:$0xff] }
 0x332   : > { %14534 = vmatprep.mubr.msk.f32.mxu0 %vm643_vm3, %v20137_v8  ;;  %v4154_v46 = vpop.f32.mrf.mxu1  ;;  %20140 = vst [vmem:[#allocation12_spill] sm:$0xff] %v17520_v10 }
 0x333   : > { %v4541_v2 = vpop.f32.mrf.mxu0  ;;  %v17511_v16 = vadd.f32 %v14233_v24, %v4266_v51  ;;  %v4265_v35 = vadd.f32 %v4154_v46, %v17237_v15  ;;  %v20141_v15 = vld [vmem:[#allocation13_spill] sm:$0xff] }
 0x334   : > { %v14186_v23 = vpop.f32.mrf.mxu1  ;;  %14485 = vmatmul.mubr.msk.f32.gmra.mxu1 %vm643_vm3, %v17514_v54  ;;  %v17532_v54 = vld [vmem:[#allocation2 + $0xfc] sm:$0xff] }
 0x335   : > { %v14236_v34 = vpop.f32.mrf.mxu0  ;;  %14535 = vmatmul.mubr.msk.f32.gmra.mxu0 %vm643_vm3, %v20139_v0  ;;  %v17522_v49 = vadd.f32 %v4541_v2, %v4265_v35  ;;  %v4268_v4 = vadd.f32 %v14186_v23, %v17243_v48  ;;  %14487 = vmatprep.mubr.msk.f32.mxu1 %vm643_vm3, %v17520_v10  ;;  %20142 = vst [vmem:[#allocation38_spill] sm:$0xff] %v17532_v54  ;;  %v20143_v48 = vld [vmem:[#allocation39_spill] sm:$0xff] }
 0x336   : > { %14537 = vmatprep.mubr.msk.f32.mxu0 %vm643_vm3, %v20141_v15  ;;  %v4164_v24 = vpop.f32.mrf.mxu1  ;;  %v17538_v2 = vld [vmem:[#allocation2 + $0x10c] sm:$0xff] }
 0x337   : > { %v4551_v51 = vpop.f32.mrf.mxu0  ;;  %v17529_v8 = vadd.f32 %v14236_v34, %v4268_v4  ;;  %v4267_v46 = vadd.f32 %v4164_v24, %v17253_v53  ;;  %20144 = vst [vmem:[#allocation13_spill] sm:$0xff] %v17538_v2  ;;  %v20145_v53 = vld [vmem:[#allocation14_spill] sm:$0xff] }
 0x338   : > { %v14189_v0 = vpop.f32.mrf.mxu1  ;;  %14488 = vmatmul.mubr.msk.f32.gmra.mxu1 %vm643_vm3, %v17532_v54  ;;  %v17550_v54 = vld [vmem:[#allocation2 + $0x114] sm:$0xff] }
 0x339   : > { %v14239_v6 = vpop.f32.mrf.mxu0  ;;  %14538 = vmatmul.mubr.msk.f32.gmra.mxu0 %vm643_vm3, %v20143_v48  ;;  %v17540_v35 = vadd.f32 %v4551_v51, %v4267_v46  ;;  %v4270_v23 = vadd.f32 %v14189_v0, %v17259_v29  ;;  %14490 = vmatprep.mubr.msk.f32.mxu1 %vm643_vm3, %v17538_v2  ;;  %20146 = vst [vmem:[#allocation39_spill] sm:$0xff] %v17550_v54  ;;  %v20147_v29 = vld [vmem:[#allocation40_spill] sm:$0xff]  ;;  %v17556_v51 = vld [vmem:[#allocation2 + $0x124] sm:$0xff] }
 0x33a   : > { %14540 = vmatprep.mubr.msk.f32.mxu0 %vm643_vm3, %v20145_v53  ;;  %v4174_v34 = vpop.f32.mrf.mxu1  ;;  %20148 = vst [vmem:[#allocation14_spill] sm:$0xff] %v17556_v51 }
 0x33b   : > { %v4561_v4 = vpop.f32.mrf.mxu0  ;;  %v17547_v15 = vadd.f32 %v14239_v6, %v4270_v23  ;;  %v4269_v24 = vadd.f32 %v4174_v34, %v17269_v1  ;;  %v20149_v1 = vld [vmem:[#allocation15_spill] sm:$0xff] }
 0x33c   : > { %v14192_v48 = vpop.f32.mrf.mxu1  ;;  %14491 = vmatmul.mubr.msk.f32.gmra.mxu1 %vm643_vm3, %v17550_v54  ;;  %v17568_v54 = vld [vmem:[#allocation2 + $0x12c] sm:$0xff] }
 0x33d   : > { %v14242_v10 = vpop.f32.mrf.mxu0  ;;  %14541 = vmatmul.mubr.msk.f32.gmra.mxu0 %vm643_vm3, %v20147_v29  ;;  %v17558_v46 = vadd.f32 %v4561_v4, %v4269_v24  ;;  %v4272_v0 = vadd.f32 %v14192_v48, %v17275_v61  ;;  %14493 = vmatprep.mubr.msk.f32.mxu1 %vm643_vm3, %v17556_v51  ;;  %20150 = vst [vmem:[#allocation40_spill] sm:$0xff] %v17568_v54  ;;  %v20151_v61 = vld [vmem:[#allocation41_spill] sm:$0xff] }
 0x33e   : > { %14543 = vmatprep.mubr.msk.f32.mxu0 %vm643_vm3, %v20149_v1  ;;  %v4184_v6 = vpop.f32.mrf.mxu1  ;;  %v17574_v4 = vld [vmem:[#allocation2 + $0x13c] sm:$0xff] }
 0x33f   : > { %v4571_v23 = vpop.f32.mrf.mxu0  ;;  %v17565_v53 = vadd.f32 %v14242_v10, %v4272_v0  ;;  %v4271_v34 = vadd.f32 %v4184_v6, %v17285_v56  ;;  %20152 = vst [vmem:[#allocation15_spill] sm:$0xff] %v17574_v4  ;;  %v20153_v56 = vld [vmem:[#allocation16_spill] sm:$0xff] }
 0x340   : > { %v14195_v29 = vpop.f32.mrf.mxu1  ;;  %14494 = vmatmul.mubr.msk.f32.gmra.mxu1 %vm643_vm3, %v17568_v54  ;;  %v17586_v54 = vld [vmem:[#allocation2 + $0x144] sm:$0xff] }
 0x341   : > { %v14245_v2 = vpop.f32.mrf.mxu0  ;;  %14544 = vmatmul.mubr.msk.f32.gmra.mxu0 %vm643_vm3, %v20151_v61  ;;  %v17576_v24 = vadd.f32 %v4571_v23, %v4271_v34  ;;  %v4274_v48 = vadd.f32 %v14195_v29, %v17291_v60  ;;  %14496 = vmatprep.mubr.msk.f32.mxu1 %vm643_vm3, %v17574_v4  ;;  %20154 = vst [vmem:[#allocation41_spill] sm:$0xff] %v17586_v54  ;;  %v20155_v60 = vld [vmem:[#allocation42_spill] sm:$0xff]  ;;  %v17592_v23 = vld [vmem:[#allocation2 + $0x154] sm:$0xff] }
 0x342   : > { %14546 = vmatprep.mubr.msk.f32.mxu0 %vm643_vm3, %v20153_v56  ;;  %v4194_v10 = vpop.f32.mrf.mxu1  ;;  %20156 = vst [vmem:[#allocation16_spill] sm:$0xff] %v17592_v23 }
 0x343   : > { %v4581_v0 = vpop.f32.mrf.mxu0  ;;  %v17583_v1 = vadd.f32 %v14245_v2, %v4274_v48  ;;  %v4273_v6 = vadd.f32 %v4194_v10, %v17301_v40  ;;  %v20157_v40 = vld [vmem:[#allocation17_spill] sm:$0xff] }
 0x344   : > { %v14198_v61 = vpop.f32.mrf.mxu1  ;;  %14497 = vmatmul.mubr.msk.f32.gmra.mxu1 %vm643_vm3, %v17586_v54  ;;  %v17604_v54 = vld [vmem:[#allocation2 + $0x15c] sm:$0xff] }
 0x345   : > { %v14248_v51 = vpop.f32.mrf.mxu0  ;;  %14547 = vmatmul.mubr.msk.f32.gmra.mxu0 %vm643_vm3, %v20155_v60  ;;  %v17594_v34 = vadd.f32 %v4581_v0, %v4273_v6  ;;  %v4276_v29 = vadd.f32 %v14198_v61, %v17307_v42  ;;  %14499 = vmatprep.mubr.msk.f32.mxu1 %vm643_vm3, %v17592_v23  ;;  %20158 = vst [vmem:[#allocation42_spill] sm:$0xff] %v17604_v54  ;;  %v20159_v42 = vld [vmem:[#allocation43_spill] sm:$0xff] }
 0x346   : > { %14549 = vmatprep.mubr.msk.f32.mxu0 %vm643_vm3, %v20157_v40  ;;  %v4204_v2 = vpop.f32.mrf.mxu1  ;;  %v17610_v0 = vld [vmem:[#allocation2 + $0x16c] sm:$0xff] }
 0x347   : > { %v4591_v48 = vpop.f32.mrf.mxu0  ;;  %v17601_v56 = vadd.f32 %v14248_v51, %v4276_v29  ;;  %v4275_v10 = vadd.f32 %v4204_v2, %v17318_v55  ;;  %20160 = vst [vmem:[#allocation17_spill] sm:$0xff] %v17610_v0  ;;  %v20161_v55 = vld [vmem:[#allocation18_spill] sm:$0xff] }
 0x348   : > { %v14201_v60 = vpop.f32.mrf.mxu1  ;;  %14500 = vmatmul.mubr.msk.f32.gmra.mxu1 %vm643_vm3, %v17604_v54  ;;  %v17622_v54 = vld [vmem:[#allocation2 + $0x174] sm:$0xff] }
 0x349   : > { %v14251_v4 = vpop.f32.mrf.mxu0  ;;  %14550 = vmatmul.mubr.msk.f32.gmra.mxu0 %vm643_vm3, %v20159_v42  ;;  %v17612_v6 = vadd.f32 %v4591_v48, %v4275_v10  ;;  %v4278_v61 = vadd.f32 %v14201_v60, %v17325_v7  ;;  %14502 = vmatprep.mubr.msk.f32.mxu1 %vm643_vm3, %v17610_v0  ;;  %20162 = vst [vmem:[#allocation43_spill] sm:$0xff] %v17622_v54  ;;  %v20163_v7 = vld [vmem:[#allocation44_spill] sm:$0xff]  ;;  %v17628_v48 = vld [vmem:[#allocation2 + $0x184] sm:$0xff] }
 0x34a   : > { %14552 = vmatprep.mubr.msk.f32.mxu0 %vm643_vm3, %v20161_v55  ;;  %v4214_v51 = vpop.f32.mrf.mxu1  ;;  %20164 = vst [vmem:[#allocation18_spill] sm:$0xff] %v17628_v48  ;;  %v6638_v55 = vld [vmem:[#allocation2 + $0x1b0] sm:$0xff] }
 0x34b   : > { %v4601_v29 = vpop.f32.mrf.mxu0  ;;  %v17619_v40 = vadd.f32 %v14251_v4, %v4278_v61  ;;  %v4277_v2 = vadd.f32 %v4214_v51, %v17336_v22  ;;  %v20165_v22 = vld [vmem:[#allocation19_spill] sm:$0xff] }
 0x34c   : > { %v14204_v42 = vpop.f32.mrf.mxu1  ;;  %14503 = vmatmul.mubr.msk.f32.gmra.mxu1 %vm643_vm3, %v17622_v54 }
 0x34d   : > { %v14254_v23 = vpop.f32.mrf.mxu0  ;;  %14553 = vmatmul.mubr.msk.f32.gmra.mxu0 %vm643_vm3, %v20163_v7  ;;  %v17630_v10 = vadd.f32 %v4601_v29, %v4277_v2  ;;  %v4280_v60 = vadd.f32 %v14204_v42, %v17343_v57  ;;  %14505 = vmatprep.mubr.msk.f32.mxu1 %vm643_vm3, %v17628_v48  ;;  %v17640_v7 = vld [vmem:[#allocation2 + $0x18c] sm:$0xff]  ;;  %v20167_v57 = vld [vmem:[#allocation45_spill] sm:$0xff] }
 0x34e   : > { %14555 = vmatprep.mubr.msk.f32.mxu0 %vm643_vm3, %v20165_v22  ;;  %v4224_v4 = vpop.f32.mrf.mxu1  ;;  %20166 = vst [vmem:[#allocation44_spill] sm:$0xff] %v17640_v7  ;;  %v17646_v2 = vld [vmem:[#allocation2 + $0x19c] sm:$0xff]  ;;  %v17657_v48 = vld [vmem:[#allocation2 + $0x1a4] sm:$0xff] }
 0x34f   : > { %v4611_v61 = vpop.f32.mrf.mxu0  ;;  %v17637_v51 = vadd.f32 %v14254_v23, %v4280_v60  ;;  %v4279_v54 = vadd.f32 %v4224_v4, %v17354_v43  ;;  %20168 = vst [vmem:[#allocation19_spill] sm:$0xff] %v17646_v2  ;;  %v6639_v43 = vld [vmem:[#allocation2 + $0x1b8] sm:$0xff]  ;;  %20169 = vst [vmem:[#allocation45_spill] sm:$0xff] %v17657_v48 }
 0x350   : > { %v14207_v0 = vpop.f32.mrf.mxu1  ;;  %14506 = vmatmul.mubr.msk.f32.gmra.mxu1 %vm643_vm3, %v17640_v7 }
 0x351   : > { %v14257_v29 = vpop.f32.mrf.mxu0  ;;  %14556 = vmatmul.mubr.msk.f32.gmra.mxu0 %vm643_vm3, %v20167_v57  ;;  %v17648_v42 = vadd.f32 %v4611_v61, %v4279_v54  ;;  %v4282_v22 = vadd.f32 %v14207_v0, %v17360_v41  ;;  %14508 = vmatprep.mubr.msk.f32.mxu1 %vm643_vm3, %v17646_v2  ;;  %v6995_v41 = vld [vmem:[#allocation2 + $0x49] sm:$0xff]  ;;  %v20170_v61 = vld [vmem:[#allocation20_spill] sm:$0xff] }
 0x352   : > { %14558 = vmatprep.mubr.msk.f32.mxu0 %vm643_vm3, %v6638_v55  ;;  %v4234_v23 = vpop.f32.mrf.mxu1 }
 0x353   : > { %v4621_v60 = vpop.f32.mrf.mxu0  ;;  %v17654_v4 = vadd.f32 %v14257_v29, %v4282_v22  ;;  %v4281_v7 = vadd.f32 %v4234_v23, %v17368_v26  ;;  %v6996_v23 = vld [vmem:[#allocation2 + $0x51] sm:$0xff] }
 0x354   : > { %v14210_v57 = vpop.f32.mrf.mxu1  ;;  %14509 = vmatmul.mubr.msk.f32.gmra.mxu1 %vm643_vm3, %v17657_v48 }
 0x355   : > { %v14260_v18 = vpop.f32.mrf.mxu0  ;;  %14559 = vmatmul.mubr.msk.f32.gmra.mxu0 %vm643_vm3, %v6639_v43  ;;  %v17662_v54 = vadd.f32 %v4621_v60, %v4281_v7  ;;  %v4284_v0 = vadd.f32 %v14210_v57, %v17374_v63  ;;  %14563 = vmatprep.mubr.msk.f32.mxu1 %vm643_vm3, %v6995_v41  ;;  %v20171_v7 = vld [vmem:[#allocation46_spill] sm:$0xff]  ;;  %v20172_v57 = vld [vmem:[#allocation21_spill] sm:$0xff] }
 0x356   : > { %14613 = vmatprep.mubr.msk.f32.mxu0 %vm643_vm3, %v20170_v61  ;;  %v4244_v26 = vpop.f32.mrf.mxu1  ;;  %v17674_v63 = vld [vmem:[#allocation2 + $0x61] sm:$0xff] }
 0x357   : > { %v4631_v55 = vpop.f32.mrf.mxu0  ;;  %v17668_v29 = vadd.f32 %v14260_v18, %v4284_v0  ;;  %v4283_v22 = vadd.f32 %v4244_v26, %v17392_v39  ;;  %v17679_v43 = vld [vmem:[%s19837_s3 + $0xa8] sm:$0xff]  ;;  %v17684_v18 = vld [vmem:[%s19837_s3 + $0xa0] sm:$0xff] }
 0x358   : > { %v14265_v48 = vpop.f32.mrf.mxu1  ;;  %14564 = vmatmul.mubr.msk.f32.vlgmr.msra.gmra.mxu1 %vm643_vm3, %v6996_v23 }
 0x359   : > { %v14315_v2 = vpop.f32.mrf.mxu0  ;;  %14614 = vmatmul.mubr.msk.f32.vlgmr.msra.gmra.mxu0 %vm643_vm3, %v20171_v7  ;;  %v17686_v39 = vadd.f32 %v4631_v55, %v4283_v22  ;;  %v5028_v60 = vadd.f32 %v14265_v48, %v17401_v45  ;;  %14566 = vmatprep.mubr.msk.f32.mxu1 %vm643_vm3, %v17674_v63  ;;  %v17698_v55 = vld [vmem:[#allocation2 + $0x69] sm:$0xff]  ;;  %v17706_v22 = vld [vmem:[#allocation2 + $0x79] sm:$0xff] }
 0x35a   : > { %14712 = vmatpush3.msra.mxu0 %v17385_v12  ;;  %14616 = vmatprep.mubr.msk.f32.mxu0 %vm643_vm3, %v20172_v57  ;;  %v4868_v41 = vpop.f32.mrf.mxu1  ;;  %20173 = vst [vmem:[#allocation20_spill] sm:$0xff] %v17698_v55  ;;  %v20174_v48 = vld [vmem:[#allocation22_spill] sm:$0xff]  ;;  %20175 = vst [vmem:[#allocation46_spill] sm:$0xff] %v17706_v22 }
 0x35b   : > { %v5255_v0 = vpop.f32.mrf.mxu0  ;;  %14662 = vmatpush3.msra.mxu1 %v17390_v13  ;;  %v17695_v61 = vadd.f32 %v14315_v2, %v5028_v60  ;;  %v5027_v26 = vadd.f32 %v4868_v41, %v17414_v21  ;;  %14811 = vmatprep.subr.mxu0 %v17679_v43  ;;  %v20176_v2 = vld [vmem:[#allocation23_spill] sm:$0xff]  ;;  %v17718_v41 = vld [vmem:[#allocation2 + $0x81] sm:$0xff] }
 0x35c   : > { %14761 = vmatprep.subr.mxu1 %v17684_v18  ;;  %v14268_v12 = vpop.f32.mrf.mxu1  ;;  %14567 = vmatmul.mubr.msk.f32.gmra.mxu1 %vm643_vm3, %v17698_v55  ;;  %20177 = vst [vmem:[#allocation21_spill] sm:$0xff] %v17718_v41 }
 0x35d   : > { %v14318_v45 = vpop.f32.mrf.mxu0  ;;  %14617 = vmatmul.mubr.msk.f32.gmra.mxu0 %vm643_vm3, %v20174_v48  ;;  %v17708_v13 = vadd.f32 %v5255_v0, %v5027_v26  ;;  %v5030_v21 = vadd.f32 %v14268_v12, %v17421_v59  ;;  %14569 = vmatprep.mubr.msk.f32.mxu1 %vm643_vm3, %v17706_v22  ;;  %v20178_v59 = vld [vmem:[#allocation27_spill] sm:$0xff] }
 0x35e   : > { %14619 = vmatprep.mubr.msk.f32.mxu0 %vm643_vm3, %v20176_v2  ;;  %v4878_v23 = vpop.f32.mrf.mxu1  ;;  %v17724_v0 = vld [vmem:[#allocation2 + $0x91] sm:$0xff] }
 0x35f   : > { %v5265_v7 = vpop.f32.mrf.mxu0  ;;  %v17715_v60 = vadd.f32 %v14318_v45, %v5030_v21  ;;  %v5029_v57 = vadd.f32 %v4878_v23, %v17432_v3  ;;  %20179 = vst [vmem:[#allocation22_spill] sm:$0xff] %v17724_v0  ;;  %v20180_v3 = vld [vmem:[#allocation25_spill] sm:$0xff] }
 0x360   : > { %v14271_v48 = vpop.f32.mrf.mxu1  ;;  %14570 = vmatmul.mubr.msk.f32.gmra.mxu1 %vm643_vm3, %v17718_v41  ;;  %v17736_v41 = vld [vmem:[#allocation2 + $0x99] sm:$0xff] }
 0x361   : > { %v14321_v55 = vpop.f32.mrf.mxu0  ;;  %14620 = vmatmul.mubr.msk.f32.gmra.mxu0 %vm643_vm3, %v20178_v59  ;;  %v17726_v26 = vadd.f32 %v5265_v7, %v5029_v57  ;;  %v5032_v12 = vadd.f32 %v14271_v48, %v17439_v38  ;;  %14572 = vmatprep.mubr.msk.f32.mxu1 %vm643_vm3, %v17724_v0  ;;  %20181 = vst [vmem:[#allocation23_spill] sm:$0xff] %v17736_v41  ;;  %v20182_v38 = vld [vmem:[#allocation26_spill] sm:$0xff] }
 0x362   : > { %14622 = vmatprep.mubr.msk.f32.mxu0 %vm643_vm3, %v20180_v3  ;;  %v4888_v45 = vpop.f32.mrf.mxu1  ;;  %v17742_v7 = vld [vmem:[#allocation2 + $0xa9] sm:$0xff] }
 0x363   : > { %v5275_v21 = vpop.f32.mrf.mxu0  ;;  %v17733_v2 = vadd.f32 %v14321_v55, %v5032_v12  ;;  %v5031_v23 = vadd.f32 %v4888_v45, %v17450_v32  ;;  %20183 = vst [vmem:[#allocation27_spill] sm:$0xff] %v17742_v7  ;;  %v20184_v32 = vld [vmem:[#allocation24_spill] sm:$0xff] }
 0x364   : > { %v14274_v59 = vpop.f32.mrf.mxu1  ;;  %14573 = vmatmul.mubr.msk.f32.gmra.mxu1 %vm643_vm3, %v17736_v41  ;;  %v17754_v41 = vld [vmem:[#allocation2 + $0xb1] sm:$0xff] }
 0x365   : > { %v14324_v22 = vpop.f32.mrf.mxu0  ;;  %14623 = vmatmul.mubr.msk.f32.gmra.mxu0 %vm643_vm3, %v20182_v38  ;;  %v17744_v57 = vadd.f32 %v5275_v21, %v5031_v23  ;;  %v5034_v48 = vadd.f32 %v14274_v59, %v17457_v19  ;;  %14575 = vmatprep.mubr.msk.f32.mxu1 %vm643_vm3, %v17742_v7  ;;  %20185 = vst [vmem:[#allocation25_spill] sm:$0xff] %v17754_v41  ;;  %v20186_v19 = vld [vmem:[#allocation28_spill] sm:$0xff]  ;;  %v17760_v21 = vld [vmem:[#allocation2 + $0xc1] sm:$0xff] }
 0x366   : > { %14625 = vmatprep.mubr.msk.f32.mxu0 %vm643_vm3, %v20184_v32  ;;  %v4898_v55 = vpop.f32.mrf.mxu1  ;;  %20187 = vst [vmem:[#allocation26_spill] sm:$0xff] %v17760_v21 }
 0x367   : > { %v5285_v12 = vpop.f32.mrf.mxu0  ;;  %v17751_v3 = vadd.f32 %v14324_v22, %v5034_v48  ;;  %v5033_v45 = vadd.f32 %v4898_v55, %v17468_v30  ;;  %v20188_v30 = vld [vmem:[#allocation30_spill] sm:$0xff] }
 0x368   : > { %v14277_v38 = vpop.f32.mrf.mxu1  ;;  %14576 = vmatmul.mubr.msk.f32.gmra.mxu1 %vm643_vm3, %v17754_v41  ;;  %v17772_v41 = vld [vmem:[#allocation2 + $0xc9] sm:$0xff] }
 0x369   : > { %v14327_v0 = vpop.f32.mrf.mxu0  ;;  %14626 = vmatmul.mubr.msk.f32.gmra.mxu0 %vm643_vm3, %v20186_v19  ;;  %v17762_v23 = vadd.f32 %v5285_v12, %v5033_v45  ;;  %v5036_v59 = vadd.f32 %v14277_v38, %v17475_v20  ;;  %14578 = vmatprep.mubr.msk.f32.mxu1 %vm643_vm3, %v17760_v21  ;;  %20189 = vst [vmem:[#allocation24_spill] sm:$0xff] %v17772_v41  ;;  %v20190_v20 = vld [vmem:[#allocation29_spill] sm:$0xff] }
 0x36a   : > { %14628 = vmatprep.mubr.msk.f32.mxu0 %vm643_vm3, %v20188_v30  ;;  %v4908_v22 = vpop.f32.mrf.mxu1  ;;  %v17778_v12 = vld [vmem:[#allocation2 + $0xd9] sm:$0xff] }
 0x36b   : > { %v5295_v48 = vpop.f32.mrf.mxu0  ;;  %v17769_v32 = vadd.f32 %v14327_v0, %v5036_v59  ;;  %v5035_v55 = vadd.f32 %v4908_v22, %v17486_v37  ;;  %20191 = vst [vmem:[#allocation28_spill] sm:$0xff] %v17778_v12  ;;  %v20192_v37 = vld [vmem:[#allocation31_spill] sm:$0xff] }
 0x36c   : > { %v14280_v19 = vpop.f32.mrf.mxu1  ;;  %14579 = vmatmul.mubr.msk.f32.gmra.mxu1 %vm643_vm3, %v17772_v41  ;;  %v17790_v41 = vld [vmem:[#allocation2 + $0xe1] sm:$0xff] }
 0x36d   : > { %v14330_v7 = vpop.f32.mrf.mxu0  ;;  %14629 = vmatmul.mubr.msk.f32.gmra.mxu0 %vm643_vm3, %v20190_v20  ;;  %v17780_v45 = vadd.f32 %v5295_v48, %v5035_v55  ;;  %v5038_v38 = vadd.f32 %v14280_v19, %v17493_v14  ;;  %14581 = vmatprep.mubr.msk.f32.mxu1 %vm643_vm3, %v17778_v12  ;;  %20193 = vst [vmem:[#allocation30_spill] sm:$0xff] %v17790_v41  ;;  %v20194_v14 = vld [vmem:[#allocation47_spill] sm:$0xff] }
 0x36e   : > { %14631 = vmatprep.mubr.msk.f32.mxu0 %vm643_vm3, %v20192_v37  ;;  %v4918_v0 = vpop.f32.mrf.mxu1  ;;  %v17796_v48 = vld [vmem:[#allocation2 + $0xf1] sm:$0xff] }
 0x36f   : > { %v5305_v59 = vpop.f32.mrf.mxu0  ;;  %v17787_v30 = vadd.f32 %v14330_v7, %v5038_v38  ;;  %v5037_v22 = vadd.f32 %v4918_v0, %v17504_v9  ;;  %20195 = vst [vmem:[#allocation29_spill] sm:$0xff] %v17796_v48  ;;  %v20196_v9 = vld [vmem:[#allocation48_spill] sm:$0xff] }
 0x370   : > { %v14283_v20 = vpop.f32.mrf.mxu1  ;;  %14582 = vmatmul.mubr.msk.f32.gmra.mxu1 %vm643_vm3, %v17790_v41  ;;  %v17808_v41 = vld [vmem:[#allocation2 + $0xf9] sm:$0xff] }
 0x371   : > { %v14333_v21 = vpop.f32.mrf.mxu0  ;;  %14632 = vmatmul.mubr.msk.f32.gmra.mxu0 %vm643_vm3, %v20194_v14  ;;  %v17798_v55 = vadd.f32 %v5305_v59, %v5037_v22  ;;  %v5040_v19 = vadd.f32 %v14283_v20, %v17511_v16  ;;  %14584 = vmatprep.mubr.msk.f32.mxu1 %vm643_vm3, %v17796_v48  ;;  %20197 = vst [vmem:[#allocation31_spill] sm:$0xff] %v17808_v41  ;;  %v20198_v16 = vld [vmem:[#allocation32_spill] sm:$0xff]  ;;  %v17814_v59 = vld [vmem:[#allocation2 + $0x109] sm:$0xff] }
 0x372   : > { %14634 = vmatprep.mubr.msk.f32.mxu0 %vm643_vm3, %v20196_v9  ;;  %v4928_v7 = vpop.f32.mrf.mxu1  ;;  %20199 = vst [vmem:[#allocation47_spill] sm:$0xff] %v17814_v59 }
 0x373   : > { %v5315_v38 = vpop.f32.mrf.mxu0  ;;  %v17805_v37 = vadd.f32 %v14333_v21, %v5040_v19  ;;  %v5039_v0 = vadd.f32 %v4928_v7, %v17522_v49  ;;  %v20200_v49 = vld [vmem:[#allocation49_spill] sm:$0xff] }
 0x374   : > { %v14286_v14 = vpop.f32.mrf.mxu1  ;;  %14585 = vmatmul.mubr.msk.f32.gmra.mxu1 %vm643_vm3, %v17808_v41  ;;  %v17826_v41 = vld [vmem:[#allocation2 + $0x111] sm:$0xff] }
 0x375   : > { %v14336_v12 = vpop.f32.mrf.mxu0  ;;  %14635 = vmatmul.mubr.msk.f32.gmra.mxu0 %vm643_vm3, %v20198_v16  ;;  %v17816_v22 = vadd.f32 %v5315_v38, %v5039_v0  ;;  %v5042_v20 = vadd.f32 %v14286_v14, %v17529_v8  ;;  %14587 = vmatprep.mubr.msk.f32.mxu1 %vm643_vm3, %v17814_v59  ;;  %20201 = vst [vmem:[#allocation48_spill] sm:$0xff] %v17826_v41  ;;  %v20202_v8 = vld [vmem:[#allocation50_spill] sm:$0xff] }
 0x376   : > { %14637 = vmatprep.mubr.msk.f32.mxu0 %vm643_vm3, %v20200_v49  ;;  %v4938_v21 = vpop.f32.mrf.mxu1  ;;  %v17832_v38 = vld [vmem:[#allocation2 + $0x121] sm:$0xff] }
 0x377   : > { %v5325_v19 = vpop.f32.mrf.mxu0  ;;  %v17823_v9 = vadd.f32 %v14336_v12, %v5042_v20  ;;  %v5041_v7 = vadd.f32 %v4938_v21, %v17540_v35  ;;  %v20203_v35 = vld [vmem:[#allocation7_spill] sm:$0xff] }
 0x378   : > { %v14289_v16 = vpop.f32.mrf.mxu1  ;;  %14588 = vmatmul.mubr.msk.f32.gmra.mxu1 %vm643_vm3, %v17826_v41  ;;  %v17844_v41 = vld [vmem:[#allocation2 + $0x129] sm:$0xff] }
 0x379   : > { %v14339_v48 = vpop.f32.mrf.mxu0  ;;  %14638 = vmatmul.mubr.msk.f32.gmra.mxu0 %vm643_vm3, %v20202_v8  ;;  %v17834_v0 = vadd.f32 %v5325_v19, %v5041_v7  ;;  %v5044_v14 = vadd.f32 %v14289_v16, %v17547_v15  ;;  %14590 = vmatprep.mubr.msk.f32.mxu1 %vm643_vm3, %v17832_v38  ;;  %20204 = vst [vmem:[#allocation32_spill] sm:$0xff] %v17844_v41  ;;  %v20205_v15 = vld [vmem:[#allocation51_spill] sm:$0xff]  ;;  %v17850_v19 = vld [vmem:[#allocation2 + $0x139] sm:$0xff] }
 0x37a   : > { %14640 = vmatprep.mubr.msk.f32.mxu0 %vm643_vm3, %v20203_v35  ;;  %v4948_v12 = vpop.f32.mrf.mxu1 }
 0x37b   : > { %v5335_v20 = vpop.f32.mrf.mxu0  ;;  %v17841_v49 = vadd.f32 %v14339_v48, %v5044_v14  ;;  %v5043_v21 = vadd.f32 %v4948_v12, %v17558_v46  ;;  %v17862_v12 = vld [vmem:[#allocation2 + $0x141] sm:$0xff] }
 0x37c   : > { %v14292_v8 = vpop.f32.mrf.mxu1  ;;  %14591 = vmatmul.mubr.msk.f32.gmra.mxu1 %vm643_vm3, %v17844_v41  ;;  %20206 = vst [vmem:[#allocation49_spill] sm:$0xff] %v17862_v12 }
 0x37d   : > { %v14342_v59 = vpop.f32.mrf.mxu0  ;;  %14641 = vmatmul.mubr.msk.f32.gmra.mxu0 %vm643_vm3, %v20205_v15  ;;  %v17852_v7 = vadd.f32 %v5335_v20, %v5043_v21  ;;  %v5046_v16 = vadd.f32 %v14292_v8, %v17565_v53  ;;  %14593 = vmatprep.mubr.msk.f32.mxu1 %vm643_vm3, %v17850_v19  ;;  %v20207_v53 = vld [vmem:[#allocation8_spill] sm:$0xff] }
 0x37e   : > { %14643 = vmatprep.mubr.msk.f32.mxu0 %vm643_vm3, %v17283_v33  ;;  %v4958_v46 = vpop.f32.mrf.mxu1  ;;  %v17868_v20 = vld [vmem:[#allocation2 + $0x151] sm:$0xff] }
 0x37f   : > { %v5345_v48 = vpop.f32.mrf.mxu0  ;;  %v17859_v14 = vadd.f32 %v14342_v59, %v5046_v16  ;;  %v5045_v35 = vadd.f32 %v4958_v46, %v17576_v24  ;;  %v17880_v46 = vld [vmem:[#allocation2 + $0x159] sm:$0xff] }
 0x380   : > { %v14295_v15 = vpop.f32.mrf.mxu1  ;;  %14594 = vmatmul.mubr.msk.f32.gmra.mxu1 %vm643_vm3, %v17862_v12 }
 0x381   : > { %v14345_v41 = vpop.f32.mrf.mxu0  ;;  %14644 = vmatmul.mubr.msk.f32.gmra.mxu0 %vm643_vm3, %v20207_v53  ;;  %v17870_v21 = vadd.f32 %v5345_v48, %v5045_v35  ;;  %v5048_v33 = vadd.f32 %v14295_v15, %v17583_v1  ;;  %14596 = vmatprep.mubr.msk.f32.mxu1 %vm643_vm3, %v17868_v20  ;;  %v17886_v1 = vld [vmem:[#allocation2 + $0x169] sm:$0xff] }
 0x382   : > { %14646 = vmatprep.mubr.msk.f32.mxu0 %vm643_vm3, %v17299_v5  ;;  %v4968_v24 = vpop.f32.mrf.mxu1 }
 0x383   : > { %v5355_v59 = vpop.f32.mrf.mxu0  ;;  %v17877_v8 = vadd.f32 %v14345_v41, %v5048_v33  ;;  %v5047_v16 = vadd.f32 %v4968_v24, %v17594_v34  ;;  %v17898_v33 = vld [vmem:[#allocation2 + $0x171] sm:$0xff] }
 0x384   : > { %v14298_v53 = vpop.f32.mrf.mxu1  ;;  %14597 = vmatmul.mubr.msk.f32.gmra.mxu1 %vm643_vm3, %v17880_v46  ;;  %20208 = vst [vmem:[#allocation50_spill] sm:$0xff] %v17898_v33 }
 0x385   : > { %v14348_v12 = vpop.f32.mrf.mxu0  ;;  %14647 = vmatmul.mubr.msk.f32.gmra.mxu0 %vm643_vm3, %v17310_v62  ;;  %v17888_v48 = vadd.f32 %v5355_v59, %v5047_v16  ;;  %v5050_v5 = vadd.f32 %v14298_v53, %v17601_v56  ;;  %14599 = vmatprep.mubr.msk.f32.mxu1 %vm643_vm3, %v17886_v1  ;;  %v17904_v56 = vld [vmem:[#allocation2 + $0x181] sm:$0xff] }
 0x386   : > { %14649 = vmatprep.mubr.msk.f32.mxu0 %vm643_vm3, %v17316_v11  ;;  %v4978_v34 = vpop.f32.mrf.mxu1  ;;  %20209 = vst [vmem:[#allocation7_spill] sm:$0xff] %v17904_v56 }
 0x387   : > { %v5365_v41 = vpop.f32.mrf.mxu0  ;;  %v17895_v35 = vadd.f32 %v14348_v12, %v5050_v5  ;;  %v5049_v15 = vadd.f32 %v4978_v34, %v17612_v6  ;;  %v20210_v6 = vld [vmem:[#allocation34_spill] sm:$0xff] }
 0x388   : > { %v14301_v62 = vpop.f32.mrf.mxu1  ;;  %14600 = vmatmul.mubr.msk.f32.gmra.mxu1 %vm643_vm3, %v17898_v33  ;;  %v17916_v34 = vld [vmem:[#allocation2 + $0x189] sm:$0xff] }
 0x389   : > { %v14351_v24 = vpop.f32.mrf.mxu0  ;;  %14650 = vmatmul.mubr.msk.f32.gmra.mxu0 %vm643_vm3, %v17328_v17  ;;  %v17906_v59 = vadd.f32 %v5365_v41, %v5049_v15  ;;  %v5052_v11 = vadd.f32 %v14301_v62, %v17619_v40  ;;  %14602 = vmatprep.mubr.msk.f32.mxu1 %vm643_vm3, %v17904_v56  ;;  %20211 = vst [vmem:[#allocation51_spill] sm:$0xff] %v17916_v34  ;;  %v20212_v40 = vld [vmem:[#allocation9_spill] sm:$0xff] }
 0x38a   : > { %14652 = vmatprep.mubr.msk.f32.mxu0 %vm643_vm3, %v20210_v6  ;;  %v4988_v12 = vpop.f32.mrf.mxu1  ;;  %v17922_v41 = vld [vmem:[#allocation2 + $0x199] sm:$0xff] }
 0x38b   : > { %v5375_v16 = vpop.f32.mrf.mxu0  ;;  %v17913_v53 = vadd.f32 %v14351_v24, %v5052_v11  ;;  %v5051_v5 = vadd.f32 %v4988_v12, %v17630_v10  ;;  %20213 = vst [vmem:[#allocation8_spill] sm:$0xff] %v17922_v41  ;;  %v17931_v11 = vld [vmem:[#allocation2 + $0x1b1] sm:$0xff] }
 0x38c   : > { %v14304_v17 = vpop.f32.mrf.mxu1  ;;  %14603 = vmatmul.mubr.msk.f32.gmra.mxu1 %vm643_vm3, %v17916_v34  ;;  %v7412_v6 = vld [vmem:[#allocation2 + $0x1b2] sm:$0xff]  ;;  %v17936_v34 = vld [vmem:[#allocation2 + $0x1a1] sm:$0xff] }
 0x38d   : > { %v14354_v33 = vpop.f32.mrf.mxu0  ;;  %14653 = vmatmul.mubr.msk.f32.gmra.mxu0 %vm643_vm3, %v20212_v40  ;;  %v17924_v15 = vadd.f32 %v5375_v16, %v5051_v5  ;;  %v5054_v62 = vadd.f32 %v14304_v17, %v17637_v51  ;;  %14605 = vmatprep.mubr.msk.f32.mxu1 %vm643_vm3, %v17922_v41  ;;  %20214 = vst [vmem:[#allocation34_spill] sm:$0xff] %v17936_v34  ;;  %v20215_v51 = vld [vmem:[#allocation35_spill] sm:$0xff] }
 0x38e   : > { %14655 = vmatprep.mubr.msk.f32.mxu0 %vm643_vm3, %v17352_v25  ;;  %v4998_v10 = vpop.f32.mrf.mxu1 }
 0x38f   : > { %v5385_v24 = vpop.f32.mrf.mxu0  ;;  %v17933_v12 = vadd.f32 %v14354_v33, %v5054_v62  ;;  %v5053_v40 = vadd.f32 %v4998_v10, %v17648_v42  ;;  %v17948_v42 = vld [vmem:[#allocation2 + $0x1b9] sm:$0xff] }
 0x390   : > { %v14307_v16 = vpop.f32.mrf.mxu1  ;;  %14606 = vmatmul.mubr.msk.f32.gmra.mxu1 %vm643_vm3, %v17936_v34  ;;  %20216 = vst [vmem:[#allocation9_spill] sm:$0xff] %v17948_v42  ;;  %v7413_v33 = vld [vmem:[#allocation2 + $0x1ba] sm:$0xff] }
 0x391   : > { %v14357_v5 = vpop.f32.mrf.mxu0  ;;  %14656 = vmatmul.mubr.msk.f32.gmra.mxu0 %vm643_vm3, %v20215_v51  ;;  %v17942_v25 = vadd.f32 %v5385_v24, %v5053_v40  ;;  %v5056_v17 = vadd.f32 %v14307_v16, %v17654_v4  ;;  %14608 = vmatprep.mubr.msk.f32.mxu1 %vm643_vm3, %v17931_v11  ;;  %v7769_v4 = vld [vmem:[#allocation2 + $0x4b] sm:$0xff] }
 0x392   : > { %14658 = vmatprep.mubr.msk.f32.mxu0 %vm643_vm3, %v7412_v6  ;;  %v5008_v62 = vpop.f32.mrf.mxu1 }
 0x393   : > { %v5395_v10 = vpop.f32.mrf.mxu0  ;;  %v17950_v41 = vadd.f32 %v14357_v5, %v5056_v17  ;;  %v5055_v34 = vadd.f32 %v5008_v62, %v17662_v54  ;;  %v7770_v17 = vld [vmem:[#allocation2 + $0x53] sm:$0xff] }
 0x394   : > { %v14310_v56 = vpop.f32.mrf.mxu1  ;;  %14609 = vmatmul.mubr.msk.f32.gmra.mxu1 %vm643_vm3, %v17948_v42 }
 0x395   : > { %v14360_v51 = vpop.f32.mrf.mxu0  ;;  %14659 = vmatmul.mubr.msk.f32.gmra.mxu0 %vm643_vm3, %v7413_v33  ;;  %v17956_v24 = vadd.f32 %v5395_v10, %v5055_v34  ;;  %v5058_v6 = vadd.f32 %v14310_v56, %v17668_v29  ;;  %14663 = vmatprep.mubr.msk.f32.mxu1 %vm643_vm3, %v7769_v4  ;;  %v17968_v29 = vld [vmem:[#allocation2 + $0x63] sm:$0xff]  ;;  %v17978_v56 = vld [vmem:[%s19837_s3 + $0xb0] sm:$0xff] }
 0x396   : > { %14713 = vmatprep.mubr.msk.f32.mxu0 %vm643_vm3, %v17380_v28  ;;  %v5018_v40 = vpop.f32.mrf.mxu1  ;;  %v17973_v28 = vld [vmem:[%s19837_s3 + $0xb8] sm:$0xff]  ;;  %v17992_v4 = vld [vmem:[#allocation2 + $0x6b] sm:$0xff] }
 0x397   : > { %v5405_v16 = vpop.f32.mrf.mxu0  ;;  %v17962_v54 = vadd.f32 %v14360_v51, %v5058_v6  ;;  %v5057_v5 = vadd.f32 %v5018_v40, %v17686_v39 }
 0x398   : > { %v14365_v62 = vpop.f32.mrf.mxu1  ;;  %14664 = vmatmul.mubr.msk.f32.vlgmr.msra.gmra.mxu1 %vm643_vm3, %v7770_v17 }
 0x399   : > { %v14415_v42 = vpop.f32.mrf.mxu0  ;;  %14714 = vmatmul.mubr.msk.f32.vlgmr.msra.gmra.mxu0 %vm643_vm3, %v17404_v58  ;;  %v17980_v39 = vadd.f32 %v5405_v16, %v5057_v5  ;;  %v5802_v34 = vadd.f32 %v14365_v62, %v17695_v61  ;;  %14666 = vmatprep.mubr.msk.f32.mxu1 %vm643_vm3, %v17968_v29  ;;  %v18012_v5 = vld [vmem:[#allocation2 + $0x83] sm:$0xff] }
 0x39a   : > { %14812 = vmatpush3.msra.mxu0 %v17679_v43  ;;  %14716 = vmatprep.mubr.msk.f32.mxu0 %vm643_vm3, %v17412_v47  ;;  %v5642_v58 = vpop.f32.mrf.mxu1  ;;  %v18000_v47 = vld [vmem:[#allocation2 + $0x7b] sm:$0xff] }
 0x39b   : > { %v6029_v33 = vpop.f32.mrf.mxu0  ;;  %14762 = vmatpush3.msra.mxu1 %v17684_v18  ;;  %v17989_v10 = vadd.f32 %v14415_v42, %v5802_v34  ;;  %v5801_v51 = vadd.f32 %v5642_v58, %v17708_v13  ;;  %14911 = vmatprep.subr.mxu0 %v17973_v28 }
 0x39c   : > { %14861 = vmatprep.subr.mxu1 %v17978_v56  ;;  %v14368_v43 = vpop.f32.mrf.mxu1  ;;  %14667 = vmatmul.mubr.msk.f32.gmra.mxu1 %vm643_vm3, %v17992_v4 }
 0x39d   : > { %v14418_v61 = vpop.f32.mrf.mxu0  ;;  %14717 = vmatmul.mubr.msk.f32.gmra.mxu0 %vm643_vm3, %v17424_v44  ;;  %v18002_v18 = vadd.f32 %v6029_v33, %v5801_v51  ;;  %v5804_v13 = vadd.f32 %v14368_v43, %v17715_v60  ;;  %14669 = vmatprep.mubr.msk.f32.mxu1 %vm643_vm3, %v18000_v47  ;;  %v18018_v60 = vld [vmem:[#allocation2 + $0x93] sm:$0xff]  ;;  %v18030_v51 = vld [vmem:[#allocation2 + $0x9b] sm:$0xff] }
 0x39e   : > { %14719 = vmatprep.mubr.msk.f32.mxu0 %vm643_vm3, %v17430_v27  ;;  %v5652_v42 = vpop.f32.mrf.mxu1 }
 0x39f   : > { %v6039_v6 = vpop.f32.mrf.mxu0  ;;  %v18009_v40 = vadd.f32 %v14418_v61, %v5804_v13  ;;  %v5803_v16 = vadd.f32 %v5652_v42, %v17726_v26 }
 0x3a0   : > { %v14371_v44 = vpop.f32.mrf.mxu1  ;;  %14670 = vmatmul.mubr.msk.f32.gmra.mxu1 %vm643_vm3, %v18012_v5 }
 0x3a1   : > { %v14421_v17 = vpop.f32.mrf.mxu0  ;;  %14720 = vmatmul.mubr.msk.f32.gmra.mxu0 %vm643_vm3, %v17442_v31  ;;  %v18020_v62 = vadd.f32 %v6039_v6, %v5803_v16  ;;  %v5806_v27 = vadd.f32 %v14371_v44, %v17733_v2  ;;  %14672 = vmatprep.mubr.msk.f32.mxu1 %vm643_vm3, %v18018_v60  ;;  %v18036_v2 = vld [vmem:[#allocation2 + $0xab] sm:$0xff]  ;;  %v18048_v16 = vld [vmem:[#allocation2 + $0xb3] sm:$0xff] }
 0x3a2   : > { %14722 = vmatprep.mubr.msk.f32.mxu0 %vm643_vm3, %v17448_v36  ;;  %v5662_v26 = vpop.f32.mrf.mxu1  ;;  %20217 = vst [vmem:[#allocation35_spill] sm:$0xff] %v18048_v16 }
 0x3a3   : > { %v6049_v34 = vpop.f32.mrf.mxu0  ;;  %v18027_v58 = vadd.f32 %v14421_v17, %v5806_v27  ;;  %v5805_v33 = vadd.f32 %v5662_v26, %v17744_v57  ;;  %v18054_v17 = vld [vmem:[#allocation2 + $0xc3] sm:$0xff] }
 0x3a4   : > { %v14374_v31 = vpop.f32.mrf.mxu1  ;;  %14673 = vmatmul.mubr.msk.f32.gmra.mxu1 %vm643_vm3, %v18030_v51 }
 0x3a5   : > { %v14424_v43 = vpop.f32.mrf.mxu0  ;;  %14723 = vmatmul.mubr.msk.f32.gmra.mxu0 %vm643_vm3, %v17460_v52  ;;  %v18038_v61 = vadd.f32 %v6049_v34, %v5805_v33  ;;  %v5808_v36 = vadd.f32 %v14374_v31, %v17751_v3  ;;  %14675 = vmatprep.mubr.msk.f32.mxu1 %vm643_vm3, %v18036_v2  ;;  %v20218_v3 = vld [vmem:[#allocation33_spill] sm:$0xff] }
 0x3a6   : > { %14725 = vmatprep.mubr.msk.f32.mxu0 %vm643_vm3, %v17466_v50  ;;  %v5672_v57 = vpop.f32.mrf.mxu1  ;;  %20219 = vst [vmem:[#allocation33_spill] sm:$0xff] %v18054_v17 }
 0x3a7   : > { %v6059_v13 = vpop.f32.mrf.mxu0  ;;  %v18045_v42 = vadd.f32 %v14424_v43, %v5808_v36  ;;  %v5807_v6 = vadd.f32 %v5672_v57, %v17762_v23  ;;  %v20220_v23 = vld [vmem:[#allocation10_spill] sm:$0xff] }
 0x3a8   : > { %v14377_v52 = vpop.f32.mrf.mxu1  ;;  %14676 = vmatmul.mubr.msk.f32.gmra.mxu1 %vm643_vm3, %v18048_v16  ;;  %v18066_v43 = vld [vmem:[#allocation2 + $0xcb] sm:$0xff] }
 0x3a9   : > { %v14427_v44 = vpop.f32.mrf.mxu0  ;;  %14726 = vmatmul.mubr.msk.f32.gmra.mxu0 %vm643_vm3, %v20218_v3  ;;  %v18056_v27 = vadd.f32 %v6059_v13, %v5807_v6  ;;  %v5810_v50 = vadd.f32 %v14377_v52, %v17769_v32  ;;  %14678 = vmatprep.mubr.msk.f32.mxu1 %vm643_vm3, %v18054_v17  ;;  %20221 = vst [vmem:[#allocation10_spill] sm:$0xff] %v18066_v43  ;;  %v20222_v32 = vld [vmem:[#allocation36_spill] sm:$0xff] }
 0x3aa   : > { %14728 = vmatprep.mubr.msk.f32.mxu0 %vm643_vm3, %v20220_v23  ;;  %v5682_v26 = vpop.f32.mrf.mxu1  ;;  %v18072_v13 = vld [vmem:[#allocation2 + $0xdb] sm:$0xff] }
 0x3ab   : > { %v6069_v34 = vpop.f32.mrf.mxu0  ;;  %v18063_v33 = vadd.f32 %v14427_v44, %v5810_v50  ;;  %v5809_v31 = vadd.f32 %v5682_v26, %v17780_v45  ;;  %20223 = vst [vmem:[#allocation36_spill] sm:$0xff] %v18072_v13  ;;  %v20224_v45 = vld [vmem:[#allocation11_spill] sm:$0xff]  ;;  %v18084_v26 = vld [vmem:[#allocation2 + $0xe3] sm:$0xff] }
 0x3ac   : > { %v14380_v36 = vpop.f32.mrf.mxu1  ;;  %14679 = vmatmul.mubr.msk.f32.gmra.mxu1 %vm643_vm3, %v18066_v43  ;;  %20225 = vst [vmem:[#allocation11_spill] sm:$0xff] %v18084_v26 }
 0x3ad   : > { %v14430_v57 = vpop.f32.mrf.mxu0  ;;  %14729 = vmatmul.mubr.msk.f32.gmra.mxu0 %vm643_vm3, %v20222_v32  ;;  %v18074_v6 = vadd.f32 %v6069_v34, %v5809_v31  ;;  %v5812_v52 = vadd.f32 %v14380_v36, %v17787_v30  ;;  %14681 = vmatprep.mubr.msk.f32.mxu1 %vm643_vm3, %v18072_v13  ;;  %v20226_v30 = vld [vmem:[#allocation37_spill] sm:$0xff]  ;;  %v18090_v34 = vld [vmem:[#allocation2 + $0xf3] sm:$0xff] }
 0x3ae   : > { %14731 = vmatprep.mubr.msk.f32.mxu0 %vm643_vm3, %v20224_v45  ;;  %v5692_v44 = vpop.f32.mrf.mxu1  ;;  %20227 = vst [vmem:[#allocation37_spill] sm:$0xff] %v18090_v34 }
 0x3af   : > { %v6079_v3 = vpop.f32.mrf.mxu0  ;;  %v18081_v50 = vadd.f32 %v14430_v57, %v5812_v52  ;;  %v5811_v23 = vadd.f32 %v5692_v44, %v17798_v55  ;;  %v20228_v55 = vld [vmem:[#allocation12_spill] sm:$0xff] }
 0x3b0   : > { %v14383_v32 = vpop.f32.mrf.mxu1  ;;  %14682 = vmatmul.mubr.msk.f32.gmra.mxu1 %vm643_vm3, %v18084_v26  ;;  %v7784_v26 = vld [vmem:[#allocation2 + $0xfb] sm:$0xff] }
 0x3b1   : > { %v14433_v43 = vpop.f32.mrf.mxu0  ;;  %14732 = vmatmul.mubr.msk.f32.gmra.mxu0 %vm643_vm3, %v20226_v30  ;;  %v18092_v31 = vadd.f32 %v6079_v3, %v5811_v23  ;;  %v5814_v36 = vadd.f32 %v14383_v32, %v17805_v37  ;;  %14684 = vmatprep.mubr.msk.f32.mxu1 %vm643_vm3, %v18090_v34  ;;  %v20229_v3 = vld [vmem:[#allocation38_spill] sm:$0xff] }
 0x3b2   : > { %14734 = vmatprep.mubr.msk.f32.mxu0 %vm643_vm3, %v20228_v55  ;;  %v5702_v57 = vpop.f32.mrf.mxu1  ;;  %v7785_v37 = vld [vmem:[#allocation2 + $0x10b] sm:$0xff]  ;;  %v20230_v55 = vld [vmem:[#allocation13_spill] sm:$0xff] }
 0x3b3   : > { %v6089_v52 = vpop.f32.mrf.mxu0  ;;  %v18099_v45 = vadd.f32 %v14433_v43, %v5814_v36  ;;  %v5813_v44 = vadd.f32 %v5702_v57, %v17816_v22 }
 0x3b4   : > { %v14386_v30 = vpop.f32.mrf.mxu1  ;;  %14685 = vmatmul.mubr.msk.f32.gmra.mxu1 %vm643_vm3, %v7784_v26  ;;  %v7786_v26 = vld [vmem:[#allocation2 + $0x113] sm:$0xff] }
 0x3b5   : > { %v14436_v13 = vpop.f32.mrf.mxu0  ;;  %14735 = vmatmul.mubr.msk.f32.gmra.mxu0 %vm643_vm3, %v20229_v3  ;;  %v18105_v23 = vadd.f32 %v6089_v52, %v5813_v44  ;;  %v5816_v32 = vadd.f32 %v14386_v30, %v17823_v9  ;;  %14687 = vmatprep.mubr.msk.f32.mxu1 %vm643_vm3, %v7785_v37  ;;  %v20231_v52 = vld [vmem:[#allocation39_spill] sm:$0xff]  ;;  %v7787_v9 = vld [vmem:[#allocation2 + $0x123] sm:$0xff] }
 0x3b6   : > { %14737 = vmatprep.mubr.msk.f32.mxu0 %vm643_vm3, %v20230_v55  ;;  %v5712_v43 = vpop.f32.mrf.mxu1  ;;  %v20232_v3 = vld [vmem:[#allocation14_spill] sm:$0xff] }
 0x3b7   : > { %v6099_v22 = vpop.f32.mrf.mxu0  ;;  %v18111_v36 = vadd.f32 %v14436_v13, %v5816_v32  ;;  %v5815_v57 = vadd.f32 %v5712_v43, %v17834_v0  ;;  %v7788_v55 = vld [vmem:[#allocation2 + $0x12b] sm:$0xff] }
 0x3b8   : > { %v14389_v34 = vpop.f32.mrf.mxu1  ;;  %14688 = vmatmul.mubr.msk.f32.gmra.mxu1 %vm643_vm3, %v7786_v26 }
 0x3b9   : > { %v14439_v17 = vpop.f32.mrf.mxu0  ;;  %14738 = vmatmul.mubr.msk.f32.gmra.mxu0 %vm643_vm3, %v20231_v52  ;;  %v18117_v44 = vadd.f32 %v6099_v22, %v5815_v57  ;;  %v5818_v30 = vadd.f32 %v14389_v34, %v17841_v49  ;;  %14690 = vmatprep.mubr.msk.f32.mxu1 %vm643_vm3, %v7787_v9  ;;  %v20233_v22 = vld [vmem:[#allocation40_spill] sm:$0xff]  ;;  %v20234_v52 = vld [vmem:[#allocation15_spill] sm:$0xff] }
 0x3ba   : > { %14740 = vmatprep.mubr.msk.f32.mxu0 %vm643_vm3, %v20232_v3  ;;  %v5722_v13 = vpop.f32.mrf.mxu1  ;;  %v7789_v49 = vld [vmem:[#allocation2 + $0x13b] sm:$0xff]  ;;  %v7790_v3 = vld [vmem:[#allocation2 + $0x143] sm:$0xff] }
 0x3bb   : > { %v6109_v0 = vpop.f32.mrf.mxu0  ;;  %v18123_v37 = vadd.f32 %v14439_v17, %v5818_v30  ;;  %v5817_v32 = vadd.f32 %v5722_v13, %v17852_v7 }
 0x3bc   : > { %v14392_v43 = vpop.f32.mrf.mxu1  ;;  %14691 = vmatmul.mubr.msk.f32.gmra.mxu1 %vm643_vm3, %v7788_v55 }
 0x3bd   : > { %v14442_v26 = vpop.f32.mrf.mxu0  ;;  %14741 = vmatmul.mubr.msk.f32.gmra.mxu0 %vm643_vm3, %v20233_v22  ;;  %v18129_v34 = vadd.f32 %v6109_v0, %v5817_v32  ;;  %v5820_v57 = vadd.f32 %v14392_v43, %v17859_v14  ;;  %14693 = vmatprep.mubr.msk.f32.mxu1 %vm643_vm3, %v7789_v49  ;;  %v20235_v0 = vld [vmem:[#allocation41_spill] sm:$0xff]  ;;  %v7791_v14 = vld [vmem:[#allocation2 + $0x153] sm:$0xff] }
 0x3be   : > { %14743 = vmatprep.mubr.msk.f32.mxu0 %vm643_vm3, %v20234_v52  ;;  %v5732_v17 = vpop.f32.mrf.mxu1  ;;  %v20236_v22 = vld [vmem:[#allocation16_spill] sm:$0xff] }
 0x3bf   : > { %v6119_v7 = vpop.f32.mrf.mxu0  ;;  %v18135_v9 = vadd.f32 %v14442_v26, %v5820_v57  ;;  %v5819_v30 = vadd.f32 %v5732_v17, %v17870_v21  ;;  %v7792_v52 = vld [vmem:[#allocation2 + $0x15b] sm:$0xff] }
 0x3c0   : > { %v14395_v13 = vpop.f32.mrf.mxu1  ;;  %14694 = vmatmul.mubr.msk.f32.gmra.mxu1 %vm643_vm3, %v7790_v3 }
 0x3c1   : > { %v14445_v55 = vpop.f32.mrf.mxu0  ;;  %14744 = vmatmul.mubr.msk.f32.gmra.mxu0 %vm643_vm3, %v20235_v0  ;;  %v18141_v32 = vadd.f32 %v6119_v7, %v5819_v30  ;;  %v5822_v43 = vadd.f32 %v14395_v13, %v17877_v8  ;;  %14696 = vmatprep.mubr.msk.f32.mxu1 %vm643_vm3, %v7791_v14  ;;  %v20237_v7 = vld [vmem:[#allocation42_spill] sm:$0xff]  ;;  %v20238_v0 = vld [vmem:[#allocation17_spill] sm:$0xff] }
 0x3c2   : > { %14746 = vmatprep.mubr.msk.f32.mxu0 %vm643_vm3, %v20236_v22  ;;  %v5742_v26 = vpop.f32.mrf.mxu1  ;;  %v7793_v8 = vld [vmem:[#allocation2 + $0x16b] sm:$0xff]  ;;  %v7794_v22 = vld [vmem:[#allocation2 + $0x173] sm:$0xff] }
 0x3c3   : > { %v6129_v21 = vpop.f32.mrf.mxu0  ;;  %v18147_v49 = vadd.f32 %v14445_v55, %v5822_v43  ;;  %v5821_v57 = vadd.f32 %v5742_v26, %v17888_v48 }
 0x3c4   : > { %v14398_v17 = vpop.f32.mrf.mxu1  ;;  %14697 = vmatmul.mubr.msk.f32.gmra.mxu1 %vm643_vm3, %v7792_v52 }
 0x3c5   : > { %v14448_v3 = vpop.f32.mrf.mxu0  ;;  %14747 = vmatmul.mubr.msk.f32.gmra.mxu0 %vm643_vm3, %v20237_v7  ;;  %v18153_v30 = vadd.f32 %v6129_v21, %v5821_v57  ;;  %v5824_v13 = vadd.f32 %v14398_v17, %v17895_v35  ;;  %14699 = vmatprep.mubr.msk.f32.mxu1 %vm643_vm3, %v7793_v8  ;;  %v20239_v21 = vld [vmem:[#allocation43_spill] sm:$0xff]  ;;  %v7795_v35 = vld [vmem:[#allocation2 + $0x183] sm:$0xff] }
 0x3c6   : > { %14749 = vmatprep.mubr.msk.f32.mxu0 %vm643_vm3, %v20238_v0  ;;  %v5752_v55 = vpop.f32.mrf.mxu1  ;;  %v20240_v7 = vld [vmem:[#allocation18_spill] sm:$0xff] }
 0x3c7   : > { %v6139_v48 = vpop.f32.mrf.mxu0  ;;  %v18159_v14 = vadd.f32 %v14448_v3, %v5824_v13  ;;  %v5823_v43 = vadd.f32 %v5752_v55, %v17906_v59  ;;  %v7796_v0 = vld [vmem:[#allocation2 + $0x18b] sm:$0xff] }
 0x3c8   : > { %v14401_v26 = vpop.f32.mrf.mxu1  ;;  %14700 = vmatmul.mubr.msk.f32.gmra.mxu1 %vm643_vm3, %v7794_v22 }
 0x3c9   : > { %v14451_v52 = vpop.f32.mrf.mxu0  ;;  %14750 = vmatmul.mubr.msk.f32.gmra.mxu0 %vm643_vm3, %v20239_v21  ;;  %v18165_v57 = vadd.f32 %v6139_v48, %v5823_v43  ;;  %v5826_v17 = vadd.f32 %v14401_v26, %v17913_v53  ;;  %14702 = vmatprep.mubr.msk.f32.mxu1 %vm643_vm3, %v7795_v35  ;;  %v20241_v48 = vld [vmem:[#allocation44_spill] sm:$0xff]  ;;  %v20242_v21 = vld [vmem:[#allocation19_spill] sm:$0xff] }
 0x3ca   : > { %14752 = vmatprep.mubr.msk.f32.mxu0 %vm643_vm3, %v20240_v7  ;;  %v5762_v3 = vpop.f32.mrf.mxu1  ;;  %v7797_v53 = vld [vmem:[#allocation2 + $0x19b] sm:$0xff]  ;;  %v7799_v35 = vld [vmem:[#allocation2 + $0x1b3] sm:$0xff] }
 0x3cb   : > { %v6149_v59 = vpop.f32.mrf.mxu0  ;;  %v18171_v8 = vadd.f32 %v14451_v52, %v5826_v17  ;;  %v5825_v13 = vadd.f32 %v5762_v3, %v17924_v15  ;;  %v8186_v17 = vld [vmem:[#allocation2 + $0x1b4] sm:$0xff] }
 0x3cc   : > { %v14404_v55 = vpop.f32.mrf.mxu1  ;;  %14703 = vmatmul.mubr.msk.f32.gmra.mxu1 %vm643_vm3, %v7796_v0  ;;  %v7798_v0 = vld [vmem:[#allocation2 + $0x1a3] sm:$0xff] }
 0x3cd   : > { %v14454_v22 = vpop.f32.mrf.mxu0  ;;  %14753 = vmatmul.mubr.msk.f32.gmra.mxu0 %vm643_vm3, %v20241_v48  ;;  %v18177_v43 = vadd.f32 %v6149_v59, %v5825_v13  ;;  %v5828_v26 = vadd.f32 %v14404_v55, %v17933_v12  ;;  %14705 = vmatprep.mubr.msk.f32.mxu1 %vm643_vm3, %v7797_v53  ;;  %v20243_v59 = vld [vmem:[#allocation45_spill] sm:$0xff] }
 0x3ce   : > { %14755 = vmatprep.mubr.msk.f32.mxu0 %vm643_vm3, %v20242_v21  ;;  %v5772_v52 = vpop.f32.mrf.mxu1  ;;  %v7800_v55 = vld [vmem:[#allocation2 + $0x1bb] sm:$0xff] }
 0x3cf   : > { %v6159_v15 = vpop.f32.mrf.mxu0  ;;  %v18183_v7 = vadd.f32 %v14454_v22, %v5828_v26  ;;  %v5827_v3 = vadd.f32 %v5772_v52, %v17942_v25  ;;  %v8187_v22 = vld [vmem:[#allocation2 + $0x1bc] sm:$0xff] }
 0x3d0   : > { %v14407_v48 = vpop.f32.mrf.mxu1  ;;  %14706 = vmatmul.mubr.msk.f32.gmra.mxu1 %vm643_vm3, %v7798_v0 }
 0x3d1   : > { %v14457_v16 = vpop.f32.mrf.mxu0  ;;  %14756 = vmatmul.mubr.msk.f32.gmra.mxu0 %vm643_vm3, %v20243_v59  ;;  %v18189_v12 = vadd.f32 %v6159_v15, %v5827_v3  ;;  %v5830_v13 = vadd.f32 %v14407_v48, %v17950_v41  ;;  %14708 = vmatprep.mubr.msk.f32.mxu1 %vm643_vm3, %v7799_v35  ;;  %v8544_v15 = vld [vmem:[#allocation2 + $0x60] sm:$0xff]  ;;  %v8545_v48 = vld [vmem:[#allocation2 + $0x68] sm:$0xff] }
 0x3d2   : > { %14758 = vmatprep.mubr.msk.f32.mxu0 %vm643_vm3, %v8186_v17  ;;  %v5782_v53 = vpop.f32.mrf.mxu1 }
 0x3d3   : > { %v6169_v25 = vpop.f32.mrf.mxu0  ;;  %v18194_v26 = vadd.f32 %v14457_v16, %v5830_v13  ;;  %v5829_v21 = vadd.f32 %v5782_v53, %v17956_v24 }
 0x3d4   : > { %v14410_v52 = vpop.f32.mrf.mxu1  ;;  %14709 = vmatmul.mubr.msk.f32.gmra.mxu1 %vm643_vm3, %v7800_v55  ;;  %v20244_v55 = vld [vmem:[#allocation20_spill] sm:$0xff] }
 0x3d5   : > { %v14460_v0 = vpop.f32.mrf.mxu0  ;;  %14759 = vmatmul.mubr.msk.f32.gmra.mxu0 %vm643_vm3, %v8187_v22  ;;  %v18199_v41 = vadd.f32 %v6169_v25, %v5829_v21  ;;  %v5832_v35 = vadd.f32 %v14410_v52, %v17962_v54  ;;  %14763 = vmatprep.mubr.msk.f32.mxu1 %vm643_vm3, %v8544_v15  ;;  %v8546_v54 = vld [vmem:[#allocation2 + $0x78] sm:$0xff]  ;;  %v18214_v22 = vld [vmem:[%s19839_s5] sm:$0xf]  ;;  %v20245_v25 = vld [vmem:[#allocation46_spill] sm:$0xff] }
 0x3d6   : > { %14813 = vmatprep.mubr.msk.f32.mxu0 %vm643_vm3, %v17674_v63  ;;  %v5792_v16 = vpop.f32.mrf.mxu1  ;;  %v18219_v63 = vld [vmem:[%s19837_s3 + $0xc0] sm:$0xff] }
 0x3d7   : > { %v6179_v17 = vpop.f32.mrf.mxu0  ;;  %v18205_v3 = vadd.f32 %v14460_v0, %v5832_v35  ;;  %v5831_v24 = vadd.f32 %v5792_v16, %v17980_v39  ;;  %v8547_v35 = vld [vmem:[#allocation2 + $0x80] sm:$0xff] }
 0x3d8   : > { %v14465_v59 = vpop.f32.mrf.mxu1  ;;  %14764 = vmatmul.mubr.msk.f32.vlgmr.msra.gmra.mxu1 %vm643_vm3, %v8545_v48  ;;  %v20246_v16 = vld [vmem:[#allocation21_spill] sm:$0xff] }
 0x3d9   : > { %v14515_v13 = vpop.f32.mrf.mxu0  ;;  %14814 = vmatmul.mubr.msk.f32.vlgmr.msra.gmra.mxu0 %vm643_vm3, %v20244_v55  ;;  %v18221_v39 = vadd.f32 %v6179_v17, %v5831_v24  ;;  %v6576_v53 = vadd.f32 %v14465_v59, %v17989_v10  ;;  %14766 = vmatprep.mubr.msk.f32.mxu1 %vm643_vm3, %v8546_v54  ;;  %v8548_v17 = vld [vmem:[#allocation2 + $0x90] sm:$0xff]  ;;  %v8549_v54 = vld [vmem:[#allocation2 + $0x98] sm:$0xff] }
 0x3da   : > { %14912 = vmatpush3.msra.mxu0 %v17973_v28  ;;  %14816 = vmatprep.mubr.msk.f32.mxu0 %vm643_vm3, %v20245_v25  ;;  %v6416_v21 = vpop.f32.mrf.mxu1 }
 0x3db   : > { %v6804_v52 = vpop.f32.mrf.mxu0  ;;  %14862 = vmatpush3.msra.mxu1 %v17978_v56  ;;  %v18229_v0 = vadd.f32 %v14515_v13, %v6576_v53  ;;  %v6575_v15 = vadd.f32 %v6416_v21, %v18002_v18  ;;  %15011 = vmatprep.subr.msk.mxu0 %vm414_vm0, %v18214_v22  ;;  %v20247_v18 = vld [vmem:[#allocation22_spill] sm:$0xff]  ;;  %v20248_v21 = vld [vmem:[#allocation23_spill] sm:$0xff] }
 0x3dc   : > { %14961 = vmatprep.subr.mxu1 %v18219_v63  ;;  %v14468_v28 = vpop.f32.mrf.mxu1  ;;  %14767 = vmatmul.mubr.msk.f32.gmra.mxu1 %vm643_vm3, %v8547_v35  ;;  %v20249_v35 = vld [vmem:[#allocation27_spill] sm:$0xff] }
 0x3dd   : > { %v14518_v10 = vpop.f32.mrf.mxu0  ;;  %14817 = vmatmul.mubr.msk.f32.gmra.mxu0 %vm643_vm3, %v20246_v16  ;;  %v18238_v24 = vadd.f32 %v6804_v52, %v6575_v15  ;;  %v6578_v56 = vadd.f32 %v14468_v28, %v18009_v40  ;;  %14769 = vmatprep.mubr.msk.f32.mxu1 %vm643_vm3, %v8548_v17  ;;  %v8550_v40 = vld [vmem:[#allocation2 + $0xa8] sm:$0xff]  ;;  %v8551_v17 = vld [vmem:[#allocation2 + $0xb0] sm:$0xff] }
 0x3de   : > { %14819 = vmatprep.mubr.msk.f32.mxu0 %vm643_vm3, %v20247_v18  ;;  %v6426_v48 = vpop.f32.mrf.mxu1 }
 0x3df   : > { %v6814_v59 = vpop.f32.mrf.mxu0  ;;  %v18244_v13 = vadd.f32 %v14518_v10, %v6578_v56  ;;  %v6577_v55 = vadd.f32 %v6426_v48, %v18020_v62  ;;  %v20250_v48 = vld [vmem:[#allocation25_spill] sm:$0xff] }
 0x3e0   : > { %v14471_v53 = vpop.f32.mrf.mxu1  ;;  %14770 = vmatmul.mubr.msk.f32.gmra.mxu1 %vm643_vm3, %v8549_v54  ;;  %v20251_v54 = vld [vmem:[#allocation26_spill] sm:$0xff] }
 0x3e1   : > { %v14521_v25 = vpop.f32.mrf.mxu0  ;;  %14820 = vmatmul.mubr.msk.f32.gmra.mxu0 %vm643_vm3, %v20248_v21  ;;  %v18250_v52 = vadd.f32 %v6814_v59, %v6577_v55  ;;  %v6580_v15 = vadd.f32 %v14471_v53, %v18027_v58  ;;  %14772 = vmatprep.mubr.msk.f32.mxu1 %vm643_vm3, %v8550_v40  ;;  %v8552_v58 = vld [vmem:[#allocation2 + $0xc0] sm:$0xff]  ;;  %v8553_v40 = vld [vmem:[#allocation2 + $0xc8] sm:$0xff] }
 0x3e2   : > { %14822 = vmatprep.mubr.msk.f32.mxu0 %vm643_vm3, %v20249_v35  ;;  %v6436_v28 = vpop.f32.mrf.mxu1 }
 0x3e3   : > { %v6824_v62 = vpop.f32.mrf.mxu0  ;;  %v18256_v10 = vadd.f32 %v14521_v25, %v6580_v15  ;;  %v6579_v16 = vadd.f32 %v6436_v28, %v18038_v61  ;;  %v20252_v28 = vld [vmem:[#allocation24_spill] sm:$0xff] }
 0x3e4   : > { %v14474_v56 = vpop.f32.mrf.mxu1  ;;  %14773 = vmatmul.mubr.msk.f32.gmra.mxu1 %vm643_vm3, %v8551_v17  ;;  %v20253_v17 = vld [vmem:[#allocation28_spill] sm:$0xff] }
 0x3e5   : > { %v14524_v18 = vpop.f32.mrf.mxu0  ;;  %14823 = vmatmul.mubr.msk.f32.gmra.mxu0 %vm643_vm3, %v20250_v48  ;;  %v18262_v59 = vadd.f32 %v6824_v62, %v6579_v16  ;;  %v6582_v55 = vadd.f32 %v14474_v56, %v18045_v42  ;;  %14775 = vmatprep.mubr.msk.f32.mxu1 %vm643_vm3, %v8552_v58  ;;  %v8554_v42 = vld [vmem:[#allocation2 + $0xd8] sm:$0xff]  ;;  %v8555_v58 = vld [vmem:[#allocation2 + $0xe0] sm:$0xff] }
 0x3e6   : > { %14825 = vmatprep.mubr.msk.f32.mxu0 %vm643_vm3, %v20251_v54  ;;  %v6446_v53 = vpop.f32.mrf.mxu1 }
 0x3e7   : > { %v6834_v61 = vpop.f32.mrf.mxu0  ;;  %v18268_v25 = vadd.f32 %v14524_v18, %v6582_v55  ;;  %v6581_v21 = vadd.f32 %v6446_v53, %v18056_v27  ;;  %v20254_v53 = vld [vmem:[#allocation30_spill] sm:$0xff] }
 0x3e8   : > { %v14477_v15 = vpop.f32.mrf.mxu1  ;;  %14776 = vmatmul.mubr.msk.f32.gmra.mxu1 %vm643_vm3, %v8553_v40  ;;  %v20255_v40 = vld [vmem:[#allocation29_spill] sm:$0xff] }
 0x3e9   : > { %v14527_v35 = vpop.f32.mrf.mxu0  ;;  %14826 = vmatmul.mubr.msk.f32.gmra.mxu0 %vm643_vm3, %v20252_v28  ;;  %v18274_v62 = vadd.f32 %v6834_v61, %v6581_v21  ;;  %v6584_v16 = vadd.f32 %v14477_v15, %v18063_v33  ;;  %14778 = vmatprep.mubr.msk.f32.mxu1 %vm643_vm3, %v8554_v42  ;;  %v8556_v33 = vld [vmem:[#allocation2 + $0xf0] sm:$0xff]  ;;  %v8557_v42 = vld [vmem:[#allocation2 + $0xf8] sm:$0xff] }
 0x3ea   : > { %14828 = vmatprep.mubr.msk.f32.mxu0 %vm643_vm3, %v20253_v17  ;;  %v6456_v56 = vpop.f32.mrf.mxu1 }
 0x3eb   : > { %v6844_v27 = vpop.f32.mrf.mxu0  ;;  %v18280_v18 = vadd.f32 %v14527_v35, %v6584_v16  ;;  %v6583_v48 = vadd.f32 %v6456_v56, %v18074_v6  ;;  %v20256_v56 = vld [vmem:[#allocation31_spill] sm:$0xff] }
 0x3ec   : > { %v14480_v55 = vpop.f32.mrf.mxu1  ;;  %14779 = vmatmul.mubr.msk.f32.gmra.mxu1 %vm643_vm3, %v8555_v58  ;;  %v20257_v58 = vld [vmem:[#allocation47_spill] sm:$0xff] }
 0x3ed   : > { %v14530_v54 = vpop.f32.mrf.mxu0  ;;  %14829 = vmatmul.mubr.msk.f32.gmra.mxu0 %vm643_vm3, %v20254_v53  ;;  %v18286_v61 = vadd.f32 %v6844_v27, %v6583_v48  ;;  %v6586_v21 = vadd.f32 %v14480_v55, %v18081_v50  ;;  %14781 = vmatprep.mubr.msk.f32.mxu1 %vm643_vm3, %v8556_v33  ;;  %v8558_v50 = vld [vmem:[#allocation2 + $0x108] sm:$0xff]  ;;  %v8559_v33 = vld [vmem:[#allocation2 + $0x110] sm:$0xff] }
 0x3ee   : > { %14831 = vmatprep.mubr.msk.f32.mxu0 %vm643_vm3, %v20255_v40  ;;  %v6466_v15 = vpop.f32.mrf.mxu1 }
 0x3ef   : > { %v6854_v6 = vpop.f32.mrf.mxu0  ;;  %v18292_v35 = vadd.f32 %v14530_v54, %v6586_v21  ;;  %v6585_v28 = vadd.f32 %v6466_v15, %v18092_v31  ;;  %v20258_v15 = vld [vmem:[#allocation48_spill] sm:$0xff] }
 0x3f0   : > { %v14483_v16 = vpop.f32.mrf.mxu1  ;;  %14782 = vmatmul.mubr.msk.f32.gmra.mxu1 %vm643_vm3, %v8557_v42 }
 0x3f1   : > { %v14533_v17 = vpop.f32.mrf.mxu0  ;;  %14832 = vmatmul.mubr.msk.f32.gmra.mxu0 %vm643_vm3, %v20256_v56  ;;  %v18298_v27 = vadd.f32 %v6854_v6, %v6585_v28  ;;  %v6588_v48 = vadd.f32 %v14483_v16, %v18099_v45  ;;  %14784 = vmatprep.mubr.msk.f32.mxu1 %vm643_vm3, %v8558_v50  ;;  %v8560_v45 = vld [vmem:[#allocation2 + $0x120] sm:$0xff]  ;;  %v8561_v56 = vld [vmem:[#allocation2 + $0x128] sm:$0xff] }
 0x3f2   : > { %14834 = vmatprep.mubr.msk.f32.mxu0 %vm643_vm3, %v20257_v58  ;;  %v6476_v55 = vpop.f32.mrf.mxu1  ;;  %v20259_v58 = vld [vmem:[#allocation32_spill] sm:$0xff] }
 0x3f3   : > { %v6864_v31 = vpop.f32.mrf.mxu0  ;;  %v18304_v54 = vadd.f32 %v14533_v17, %v6588_v48  ;;  %v6587_v53 = vadd.f32 %v6476_v55, %v18105_v23 }
 0x3f4   : > { %v14486_v21 = vpop.f32.mrf.mxu1  ;;  %14785 = vmatmul.mubr.msk.f32.gmra.mxu1 %vm643_vm3, %v8559_v33 }
 0x3f5   : > { %v14536_v40 = vpop.f32.mrf.mxu0  ;;  %14835 = vmatmul.mubr.msk.f32.gmra.mxu0 %vm643_vm3, %v20258_v15  ;;  %v18310_v6 = vadd.f32 %v6864_v31, %v6587_v53  ;;  %v6590_v28 = vadd.f32 %v14486_v21, %v18111_v36  ;;  %14787 = vmatprep.mubr.msk.f32.mxu1 %vm643_vm3, %v8560_v45  ;;  %v8562_v36 = vld [vmem:[#allocation2 + $0x138] sm:$0xff]  ;;  %v8563_v21 = vld [vmem:[#allocation2 + $0x140] sm:$0xff] }
 0x3f6   : > { %14837 = vmatprep.mubr.msk.f32.mxu0 %vm643_vm3, %v17832_v38  ;;  %v6486_v42 = vpop.f32.mrf.mxu1  ;;  %v20260_v45 = vld [vmem:[#allocation49_spill] sm:$0xff] }
 0x3f7   : > { %v6874_v23 = vpop.f32.mrf.mxu0  ;;  %v18316_v16 = vadd.f32 %v14536_v40, %v6590_v28  ;;  %v6589_v17 = vadd.f32 %v6486_v42, %v18117_v44 }
 0x3f8   : > { %v14489_v50 = vpop.f32.mrf.mxu1  ;;  %14788 = vmatmul.mubr.msk.f32.gmra.mxu1 %vm643_vm3, %v8561_v56  ;;  %v8565_v56 = vld [vmem:[#allocation2 + $0x158] sm:$0xff] }
 0x3f9   : > { %v14539_v48 = vpop.f32.mrf.mxu0  ;;  %14838 = vmatmul.mubr.msk.f32.gmra.mxu0 %vm643_vm3, %v20259_v58  ;;  %v18322_v55 = vadd.f32 %v6874_v23, %v6589_v17  ;;  %v6592_v31 = vadd.f32 %v14489_v50, %v18123_v37  ;;  %14790 = vmatprep.mubr.msk.f32.mxu1 %vm643_vm3, %v8562_v36  ;;  %v8564_v37 = vld [vmem:[#allocation2 + $0x150] sm:$0xff] }
 0x3fa   : > { %14840 = vmatprep.mubr.msk.f32.mxu0 %vm643_vm3, %v17850_v19  ;;  %v6496_v38 = vpop.f32.mrf.mxu1 }
 0x3fb   : > { %v6884_v44 = vpop.f32.mrf.mxu0  ;;  %v18328_v53 = vadd.f32 %v14539_v48, %v6592_v31  ;;  %v6591_v33 = vadd.f32 %v6496_v38, %v18129_v34 }
 0x3fc   : > { %v14492_v40 = vpop.f32.mrf.mxu1  ;;  %14791 = vmatmul.mubr.msk.f32.gmra.mxu1 %vm643_vm3, %v8563_v21 }
 0x3fd   : > { %v14542_v15 = vpop.f32.mrf.mxu0  ;;  %14841 = vmatmul.mubr.msk.f32.gmra.mxu0 %vm643_vm3, %v20260_v45  ;;  %v18334_v28 = vadd.f32 %v6884_v44, %v6591_v33  ;;  %v6594_v42 = vadd.f32 %v14492_v40, %v18135_v9  ;;  %14793 = vmatprep.mubr.msk.f32.mxu1 %vm643_vm3, %v8564_v37  ;;  %v8566_v9 = vld [vmem:[#allocation2 + $0x168] sm:$0xff]  ;;  %v8567_v44 = vld [vmem:[#allocation2 + $0x170] sm:$0xff] }
 0x3fe   : > { %14843 = vmatprep.mubr.msk.f32.mxu0 %vm643_vm3, %v17868_v20  ;;  %v6506_v19 = vpop.f32.mrf.mxu1 }
 0x3ff   : > { %v6894_v34 = vpop.f32.mrf.mxu0  ;;  %v18340_v23 = vadd.f32 %v14542_v15, %v6594_v42  ;;  %v6593_v17 = vadd.f32 %v6506_v19, %v18141_v32  ;;  %v8569_v19 = vld [vmem:[#allocation2 + $0x188] sm:$0xff] }
 0x400   : > { %v14495_v50 = vpop.f32.mrf.mxu1  ;;  %14794 = vmatmul.mubr.msk.f32.gmra.mxu1 %vm643_vm3, %v8565_v56  ;;  %v20263_v56 = vld [vmem:[#allocation51_spill] sm:$0xff] }
 0x401   : > { %v14545_v48 = vpop.f32.mrf.mxu0  ;;  %14844 = vmatmul.mubr.msk.f32.gmra.mxu0 %vm643_vm3, %v17880_v46  ;;  %v18346_v58 = vadd.f32 %v6894_v34, %v6593_v17  ;;  %v6596_v36 = vadd.f32 %v14495_v50, %v18147_v49  ;;  %14796 = vmatprep.mubr.msk.f32.mxu1 %vm643_vm3, %v8566_v9  ;;  %v20261_v46 = vld [vmem:[#allocation50_spill] sm:$0xff]  ;;  %v8568_v49 = vld [vmem:[#allocation2 + $0x180] sm:$0xff]  ;;  %v20264_v9 = vld [vmem:[#allocation8_spill] sm:$0xff] }
 0x402   : > { %14846 = vmatprep.mubr.msk.f32.mxu0 %vm643_vm3, %v17886_v1  ;;  %v6516_v20 = vpop.f32.mrf.mxu1  ;;  %v20262_v1 = vld [vmem:[#allocation7_spill] sm:$0xff] }
 0x403   : > { %v6904_v32 = vpop.f32.mrf.mxu0  ;;  %v18352_v31 = vadd.f32 %v14545_v48, %v6596_v36  ;;  %v6595_v38 = vadd.f32 %v6516_v20, %v18153_v30  ;;  %v8572_v20 = vld [vmem:[#allocation2 + $0x1b0] sm:$0xff] }
 0x404   : > { %v14498_v33 = vpop.f32.mrf.mxu1  ;;  %14797 = vmatmul.mubr.msk.f32.gmra.mxu1 %vm643_vm3, %v8567_v44  ;;  %v8571_v44 = vld [vmem:[#allocation2 + $0x1a0] sm:$0xff] }
 0x405   : > { %v14548_v21 = vpop.f32.mrf.mxu0  ;;  %14847 = vmatmul.mubr.msk.f32.gmra.mxu0 %vm643_vm3, %v20261_v46  ;;  %v18358_v40 = vadd.f32 %v6904_v32, %v6595_v38  ;;  %v6598_v15 = vadd.f32 %v14498_v33, %v18159_v14  ;;  %14799 = vmatprep.mubr.msk.f32.mxu1 %vm643_vm3, %v8568_v49  ;;  %v8570_v14 = vld [vmem:[#allocation2 + $0x198] sm:$0xff]  ;;  %v20265_v46 = vld [vmem:[#allocation34_spill] sm:$0xff] }
 0x406   : > { %14849 = vmatprep.mubr.msk.f32.mxu0 %vm643_vm3, %v20262_v1  ;;  %v6526_v45 = vpop.f32.mrf.mxu1  ;;  %v8574_v1 = vld [vmem:[#allocation2 + $0x1c8] sm:$0xff] }
 0x407   : > { %v6914_v30 = vpop.f32.mrf.mxu0  ;;  %v18364_v37 = vadd.f32 %v14548_v21, %v6598_v15  ;;  %v6597_v42 = vadd.f32 %v6526_v45, %v18165_v57  ;;  %v8573_v15 = vld [vmem:[#allocation2 + $0x1b8] sm:$0xff] }
 0x408   : > { %v14501_v34 = vpop.f32.mrf.mxu1  ;;  %14800 = vmatmul.mubr.msk.f32.gmra.mxu1 %vm643_vm3, %v8569_v19  ;;  %v10638_v19 = vld [vmem:[#allocation3 + $0x1] sm:$0xff] }
 0x409   : > { %v14551_v17 = vpop.f32.mrf.mxu0  ;;  %14850 = vmatmul.mubr.msk.f32.gmra.mxu0 %vm643_vm3, %v20263_v56  ;;  %v18370_v50 = vadd.f32 %v6914_v30, %v6597_v42  ;;  %v6600_v48 = vadd.f32 %v14501_v34, %v18171_v8  ;;  %14802 = vmatprep.mubr.msk.f32.mxu1 %vm643_vm3, %v8570_v14  ;;  %v8961_v30 = vld [vmem:[#allocation2 + $0x1c9] sm:$0xff]  ;;  %v10606_v42 = vld [vmem:[#allocation3] sm:$0xff] }
 0x40a   : > { %14852 = vmatprep.mubr.msk.f32.mxu0 %vm643_vm3, %v20264_v9  ;;  %v6536_v36 = vpop.f32.mrf.mxu1  ;;  %v8575_v9 = vld [vmem:[#allocation2 + $0x1d0] sm:$0xff] }
 0x40b   : > { %v6924_v57 = vpop.f32.mrf.mxu0  ;;  %v18376_v32 = vadd.f32 %v14551_v17, %v6600_v48  ;;  %v6599_v38 = vadd.f32 %v6536_v36, %v18177_v43  ;;  %v8962_v36 = vld [vmem:[#allocation2 + $0x1d1] sm:$0xff] }
 0x40c   : > { %v14504_v33 = vpop.f32.mrf.mxu1  ;;  %14803 = vmatmul.mubr.msk.f32.gmra.mxu1 %vm643_vm3, %v8571_v44 }
 0x40d   : > { %v14554_v21 = vpop.f32.mrf.mxu0  ;;  %14853 = vmatmul.mubr.msk.f32.gmra.mxu0 %vm643_vm3, %v20265_v46  ;;  %v18382_v8 = vadd.f32 %v6924_v57, %v6599_v38  ;;  %v6602_v49 = vadd.f32 %v14504_v33, %v18183_v7  ;;  %14805 = vmatprep.mubr.msk.f32.mxu1 %vm643_vm3, %v8572_v20  ;;  %v20266_v7 = vld [vmem:[#allocation9_spill] sm:$0xff]  ;;  %v10670_v57 = vmax.f32 %v10606_v42, %v10638_v19  ;;  %v10639_v46 = vld [vmem:[#allocation3 + $0x9] sm:$0xff]  ;;  %v10766_v42 = vld [vmem:[#allocation3 + $0x18] sm:$0xff] }
 0x40e   : > { %14855 = vmatprep.mubr.msk.f32.mxu0 %vm643_vm3, %v17931_v11  ;;  %v6546_v43 = vpop.f32.mrf.mxu1  ;;  %v10702_v38 = vld [vmem:[#allocation3 + $0x2] sm:$0xff] }
 0x40f   : > { %v6934_v45 = vpop.f32.mrf.mxu0  ;;  %v18388_v34 = vadd.f32 %v14554_v21, %v6602_v49  ;;  %v6601_v17 = vadd.f32 %v6546_v43, %v18189_v12  ;;  %v10607_v21 = vld [vmem:[#allocation3 + $0x8] sm:$0xff] }
 0x410   : > { %v14507_v56 = vpop.f32.mrf.mxu1  ;;  %14806 = vmatmul.mubr.msk.f32.gmra.mxu1 %vm643_vm3, %v8573_v15  ;;  %v10671_v19 = vmax.f32 %v10607_v21, %v10639_v46  ;;  %v10767_v21 = vld [vmem:[#allocation3 + $0x20] sm:$0xff] }
 0x411   : > { %v14557_v14 = vpop.f32.mrf.mxu0  ;;  %14856 = vmatmul.mubr.msk.f32.gmra.mxu0 %vm643_vm3, %v20266_v7  ;;  %v18394_v48 = vadd.f32 %v6934_v45, %v6601_v17  ;;  %v6604_v11 = vadd.f32 %v14507_v56, %v18194_v26  ;;  %14808 = vmatprep.mubr.msk.f32.mxu1 %vm643_vm3, %v8574_v1  ;;  %v9318_v26 = vld [vmem:[#allocation2 + $0x62] sm:$0xff]  ;;  %v10734_v45 = vmax.f32 %v10670_v57, %v10702_v38  ;;  %v10703_v7 = vld [vmem:[#allocation3 + $0xa] sm:$0xff]  ;;  %v10830_v57 = vld [vmem:[#allocation3 + $0x19] sm:$0xff] }
 0x412   : > { %14858 = vmatprep.mubr.msk.f32.mxu0 %vm643_vm3, %v8961_v30  ;;  %v6556_v20 = vpop.f32.mrf.mxu1 }
 0x413   : > { %v6944_v12 = vpop.f32.mrf.mxu0  ;;  %v18399_v44 = vadd.f32 %v14557_v14, %v6604_v11  ;;  %v6603_v33 = vadd.f32 %v6556_v20, %v18199_v41  ;;  %v9319_v14 = vld [vmem:[#allocation2 + $0x6a] sm:$0xff] }
 0x414   : > { %v14510_v49 = vpop.f32.mrf.mxu1  ;;  %14809 = vmatmul.mubr.msk.f32.gmra.mxu1 %vm643_vm3, %v8575_v9 }
 0x415   : > { %v14560_v15 = vpop.f32.mrf.mxu0  ;;  %14859 = vmatmul.mubr.msk.f32.gmra.mxu0 %vm643_vm3, %v8962_v36  ;;  %v18404_v1 = vadd.f32 %v6944_v12, %v6603_v33  ;;  %v6606_v43 = vadd.f32 %v14510_v49, %v18205_v3  ;;  %14863 = vmatprep.mubr.msk.f32.mxu1 %vm643_vm3, %v9318_v26  ;;  %v9320_v3 = vld [vmem:[#allocation2 + $0x7a] sm:$0xff]  ;;  %v9322_v49 = vld [vmem:[#allocation2 + $0x92] sm:$0xff] }
 0x416   : > { %14913 = vmatprep.mubr.msk.f32.mxu0 %vm643_vm3, %v17968_v29  ;;  %v6566_v41 = vpop.f32.mrf.mxu1  ;;  %v10894_v26 = vld [vmem:[#allocation3 + $0x1a] sm:$0xff] }
 0x417   : > { %v6954_v30 = vpop.f32.mrf.mxu0  ;;  %v18410_v17 = vadd.f32 %v14560_v15, %v6606_v43  ;;  %v6605_v56 = vadd.f32 %v6566_v41, %v18221_v39  ;;  %v10798_v39 = vmax.f32 %v10734_v45, %v10766_v42 }
 0x418   : > { %v14565_v11 = vpop.f32.mrf.mxu1  ;;  %14864 = vmatmul.mubr.msk.f32.vlgmr.msra.gmra.mxu1 %vm643_vm3, %v9319_v14 }
 0x419   : > { %v14615_v9 = vpop.f32.mrf.mxu0  ;;  %14914 = vmatmul.mubr.msk.f32.vlgmr.msra.gmra.mxu0 %vm643_vm3, %v17992_v4  ;;  %v18416_v29 = vadd.f32 %v6954_v30, %v6605_v56  ;;  %v7351_v36 = vadd.f32 %v14565_v11, %v18229_v0  ;;  %14866 = vmatprep.mubr.msk.f32.mxu1 %vm643_vm3, %v9320_v3  ;;  %v10735_v4 = vmax.f32 %v10671_v19, %v10703_v7  ;;  %v9321_v0 = vld [vmem:[#allocation2 + $0x82] sm:$0xff]  ;;  %v9323_v19 = vld [vmem:[#allocation2 + $0x9a] sm:$0xff]  ;;  %v18449_v3 = vld [vmem:[#allocation3 + $0x31] sm:$0xff] }
 0x41a   : > { %15012 = vmatpush3.msk.msra.mxu0 %vm414_vm0, %v18214_v22  ;;  %14916 = vmatprep.mubr.msk.f32.mxu0 %vm643_vm3, %v18000_v47  ;;  %v7191_v20 = vpop.f32.mrf.mxu1  ;;  %v10672_v47 = vmax.f32 %v10766_v42, %v10830_v57  ;;  %v10831_v42 = vld [vmem:[#allocation3 + $0x21] sm:$0xff] }
 0x41b   : > { %v7578_v12 = vpop.f32.mrf.mxu0  ;;  %14962 = vmatpush3.msra.mxu1 %v18219_v63  ;;  %v18425_v38 = vadd.f32 %v14615_v9, %v7351_v36  ;;  %v7350_v33 = vadd.f32 %v7191_v20, %v18238_v24  ;;  %v10862_v24 = vmax.f32 %v10798_v39, %v10830_v57  ;;  %v10799_v41 = vmax.f32 %v10735_v4, %v10767_v21  ;;  %v10959_v9 = vld [vmem:[#allocation3 + $0x30] sm:$0xff] }
 0x41c   : > { %v14568_v46 = vpop.f32.mrf.mxu1  ;;  %14867 = vmatmul.mubr.msk.f32.gmra.mxu1 %vm643_vm3, %v9321_v0  ;;  %v10673_v20 = vmax.f32 %v10767_v21, %v10831_v42 }
 0x41d   : > { %v14618_v22 = vpop.f32.mrf.mxu0  ;;  %14917 = vmatmul.mubr.msk.f32.gmra.mxu0 %vm643_vm3, %v18012_v5  ;;  %v18431_v15 = vadd.f32 %v7578_v12, %v7350_v33  ;;  %v7353_v63 = vadd.f32 %v14568_v46, %v18244_v13  ;;  %14869 = vmatprep.mubr.msk.f32.mxu1 %vm643_vm3, %v9322_v49  ;;  %v9324_v13 = vld [vmem:[#allocation2 + $0xaa] sm:$0xff]  ;;  %v10863_v57 = vmax.f32 %v10799_v41, %v10831_v42  ;;  %v10895_v33 = vld [vmem:[#allocation3 + $0x22] sm:$0xff] }
 0x41e   : > { %14919 = vmatprep.mubr.msk.f32.mxu0 %vm643_vm3, %v18018_v60  ;;  %v7201_v43 = vpop.f32.mrf.mxu1  ;;  %v10736_v60 = vmax.f32 %v10672_v47, %v10894_v26  ;;  %v18470_v42 = vld [vmem:[#allocation3 + $0x49] sm:$0xff] }
 0x41f   : > { %v7588_v45 = vpop.f32.mrf.mxu0  ;;  %v18437_v30 = vadd.f32 %v14618_v22, %v7353_v63  ;;  %v7352_v5 = vadd.f32 %v7201_v43, %v18250_v52  ;;  %v10926_v52 = vmax.f32 %v10862_v24, %v10894_v26  ;;  %v9326_v22 = vld [vmem:[#allocation2 + $0xc2] sm:$0xff]  ;;  %v18464_v24 = vld [vmem:[#allocation3 + $0x32] sm:$0xff] }
 0x420   : > { %v14571_v56 = vpop.f32.mrf.mxu1  ;;  %14870 = vmatmul.mubr.msk.f32.gmra.mxu1 %vm643_vm3, %v9323_v19  ;;  %v10800_v49 = vmax.f32 %v10736_v60, %v10959_v9  ;;  %v20271_v63 = vld [vmem:[#allocation33_spill] sm:$0xff]  ;;  %v10960_v26 = vld [vmem:[#allocation3 + $0x38] sm:$0xff]  ;;  %v18468_v19 = vld [vmem:[#allocation3 + $0x48] sm:$0xff] }
 0x421   : > { %v14621_v14 = vpop.f32.mrf.mxu0  ;;  %14920 = vmatmul.mubr.msk.f32.gmra.mxu0 %vm643_vm3, %v18030_v51  ;;  %v18443_v7 = vadd.f32 %v7588_v45, %v7352_v5  ;;  %v7355_v11 = vadd.f32 %v14571_v56, %v18256_v10  ;;  %14872 = vmatprep.mubr.msk.f32.mxu1 %vm643_vm3, %v9324_v13  ;;  %v10674_v51 = vmax.f32 %v10959_v9, %v18449_v3  ;;  %v9325_v10 = vld [vmem:[#allocation2 + $0xb2] sm:$0xff] }
 0x422   : > { %14922 = vmatprep.mubr.msk.f32.mxu0 %vm643_vm3, %v18036_v2  ;;  %v7211_v36 = vpop.f32.mrf.mxu1  ;;  %v20269_v2 = vld [vmem:[#allocation35_spill] sm:$0xff]  ;;  %v18466_v43 = vld [vmem:[#allocation3 + $0x39] sm:$0xff]  ;;  %v10927_v5 = vmax.f32 %v10863_v57, %v10895_v33  ;;  %v10737_v56 = vmax.f32 %v10673_v20, %v10895_v33  ;;  %v10864_v20 = vmax.f32 %v10800_v49, %v18449_v3 }
 0x423   : > { %20267 = vst [vmem:[#allocation12_spill] sm:$0xff] %v18443_v7  ;;  %v7598_v39 = vpop.f32.mrf.mxu0  ;;  %v18452_v12 = vadd.f32 %v14621_v14, %v7355_v11  ;;  %v7354_v4 = vadd.f32 %v7211_v36, %v18262_v59  ;;  %v10991_v59 = vmax.f32 %v10926_v52, %v10959_v9  ;;  %v10675_v14 = vmax.f32 %v10960_v26, %v18466_v43  ;;  %v9327_v11 = vld [vmem:[#allocation2 + $0xca] sm:$0xff]  ;;  %v9328_v57 = vld [vmem:[#allocation2 + $0xda] sm:$0xff] }
 0x424   : > { %v14574_v0 = vpop.f32.mrf.mxu1  ;;  %14873 = vmatmul.mubr.msk.f32.gmra.mxu1 %vm643_vm3, %v9325_v10  ;;  %v10676_v52 = vmax.f32 %v18468_v19, %v18470_v42  ;;  %v18490_v33 = vld [vmem:[#allocation3 + $0x3a] sm:$0xff]  ;;  %v18494_v49 = vld [vmem:[#allocation3 + $0x50] sm:$0xff] }
 0x425   : > { %20268 = vst [vmem:[#allocation38_spill] sm:$0xff] %v18452_v12  ;;  %v14624_v46 = vpop.f32.mrf.mxu0  ;;  %14923 = vmatmul.mubr.msk.f32.gmra.mxu0 %vm643_vm3, %v20269_v2  ;;  %v18458_v47 = vadd.f32 %v7598_v39, %v7354_v4  ;;  %v7357_v21 = vadd.f32 %v14574_v0, %v18268_v25  ;;  %14875 = vmatprep.mubr.msk.f32.mxu1 %vm643_vm3, %v9326_v22  ;;  %v20273_v39 = vld [vmem:[#allocation10_spill] sm:$0xff] }
 0x426   : > { %14925 = vmatprep.mubr.msk.f32.mxu0 %vm643_vm3, %v20271_v63  ;;  %v7221_v45 = vpop.f32.mrf.mxu1  ;;  %v10738_v25 = vmax.f32 %v10674_v51, %v18464_v24  ;;  %v11055_v10 = vmax.f32 %v10991_v59, %v18449_v3  ;;  %v10992_v2 = vmax.f32 %v10927_v5, %v10960_v26  ;;  %v18492_v22 = vld [vmem:[#allocation3 + $0x4a] sm:$0xff]  ;;  %v9329_v59 = vld [vmem:[#allocation2 + $0xe2] sm:$0xff] }
 0x427   : > { %20270 = vst [vmem:[#allocation13_spill] sm:$0xff] %v18458_v47  ;;  %v7608_v41 = vpop.f32.mrf.mxu0  ;;  %v18474_v13 = vadd.f32 %v14624_v46, %v7357_v21  ;;  %v7356_v60 = vadd.f32 %v7221_v45, %v18274_v62  ;;  %v20275_v62 = vld [vmem:[#allocation36_spill] sm:$0xff]  ;;  %v10801_v21 = vmax.f32 %v10737_v56, %v10960_v26  ;;  %v10739_v45 = vmax.f32 %v10675_v14, %v18490_v33 }
 0x428   : > { %v14577_v9 = vpop.f32.mrf.mxu1  ;;  %14876 = vmatmul.mubr.msk.f32.gmra.mxu1 %vm643_vm3, %v9327_v11  ;;  %v18496_v63 = vld [vmem:[#allocation3 + $0x51] sm:$0xff]  ;;  %v18505_v11 = vld [vmem:[#allocation3 + $0x61] sm:$0xff]  ;;  %v10740_v5 = vmax.f32 %v10676_v52, %v18492_v22 }
 0x429   : > { %20272 = vst [vmem:[#allocation39_spill] sm:$0xff] %v18474_v13  ;;  %v14627_v36 = vpop.f32.mrf.mxu0  ;;  %14926 = vmatmul.mubr.msk.f32.gmra.mxu0 %vm643_vm3, %v20273_v39  ;;  %v18483_v51 = vadd.f32 %v7608_v41, %v7356_v60  ;;  %v7359_v4 = vadd.f32 %v14577_v9, %v18280_v18  ;;  %14878 = vmatprep.mubr.msk.f32.mxu1 %vm643_vm3, %v9328_v57  ;;  %v18503_v60 = vld [vmem:[#allocation3 + $0x60] sm:$0xff]  ;;  %v9330_v14 = vld [vmem:[#allocation2 + $0xf2] sm:$0xff] }
 0x42a   : > { %14928 = vmatprep.mubr.msk.f32.mxu0 %vm643_vm3, %v20275_v62  ;;  %v7231_v0 = vpop.f32.mrf.mxu1  ;;  %v10802_v18 = vmax.f32 %v10738_v25, %v18468_v19  ;;  %v10677_v26 = vmax.f32 %v18494_v49, %v18496_v63  ;;  %v20277_v25 = vld [vmem:[#allocation11_spill] sm:$0xff]  ;;  %v20279_v57 = vld [vmem:[#allocation37_spill] sm:$0xff] }
 0x42b   : > { %20274 = vst [vmem:[#allocation14_spill] sm:$0xff] %v18483_v51  ;;  %v7618_v46 = vpop.f32.mrf.mxu0  ;;  %v18500_v41 = vadd.f32 %v14627_v36, %v7359_v4  ;;  %v7358_v3 = vadd.f32 %v7231_v0, %v18286_v61  ;;  %v10928_v61 = vmax.f32 %v10864_v20, %v18464_v24  ;;  %v10678_v36 = vmax.f32 %v18503_v60, %v18505_v11  ;;  %v18574_v13 = vld [vmem:[#allocation3 + $0x80] sm:$0xff] }
 0x42c   : > { %v14580_v56 = vpop.f32.mrf.mxu1  ;;  %14879 = vmatmul.mubr.msk.f32.gmra.mxu1 %vm643_vm3, %v9329_v59  ;;  %v18523_v4 = vmax.f32 %v11055_v10, %v18464_v24  ;;  %v9331_v59 = vld [vmem:[#allocation2 + $0xfa] sm:$0xff]  ;;  %v11056_v20 = vmax.f32 %v10992_v2, %v18466_v43  ;;  %v18536_v24 = vld [vmem:[#allocation3 + $0x68] sm:$0xff]  ;;  %v10804_v2 = vmax.f32 %v10740_v5, %v18503_v60 }
 0x42d   : > { %20276 = vst [vmem:[#allocation40_spill] sm:$0xff] %v18500_v41  ;;  %v14630_v9 = vpop.f32.mrf.mxu0  ;;  %14929 = vmatmul.mubr.msk.f32.gmra.mxu0 %vm643_vm3, %v20277_v25  ;;  %v18516_v39 = vadd.f32 %v7618_v46, %v7358_v3  ;;  %v7361_v52 = vadd.f32 %v14580_v56, %v18292_v35  ;;  %14881 = vmatprep.mubr.msk.f32.mxu1 %vm643_vm3, %v9330_v14  ;;  %v18527_v41 = vld [vmem:[#allocation3 + $0x52] sm:$0xff]  ;;  %v18534_v14 = vld [vmem:[#allocation3 + $0x62] sm:$0xff] }
 0x42e   : > { %14931 = vmatprep.mubr.msk.f32.mxu0 %vm643_vm3, %v20279_v57  ;;  %v7241_v62 = vpop.f32.mrf.mxu1  ;;  %v10865_v25 = vmax.f32 %v10801_v21, %v18466_v43  ;;  %v10866_v46 = vmax.f32 %v10802_v18, %v18470_v42  ;;  %v10803_v35 = vmax.f32 %v10739_v45, %v18494_v49  ;;  %v18538_v10 = vld [vmem:[#allocation3 + $0x69] sm:$0xff]  ;;  %v10741_v43 = vmax.f32 %v10677_v26, %v18527_v41  ;;  %v15110_v18 = vld [vmem:[#allocation2 + $0xfb] sm:$0xff] }
 0x42f   : > { %20278 = vst [vmem:[#allocation15_spill] sm:$0xff] %v18516_v39  ;;  %v7628_v0 = vpop.f32.mrf.mxu0  ;;  %v18531_v3 = vadd.f32 %v14630_v9, %v7361_v52  ;;  %v7360_v56 = vadd.f32 %v7241_v62, %v18298_v27  ;;  %v9332_v45 = vld [vmem:[#allocation2 + $0x10a] sm:$0xff]  ;;  %v18545_v27 = vmax.f32 %v10928_v61, %v18468_v19  ;;  %v18547_v9 = vld [vmem:[#allocation3 + $0x78] sm:$0xff]  ;;  %v10742_v62 = vmax.f32 %v10678_v36, %v18534_v14 }
 0x430   : > { %v14583_v21 = vpop.f32.mrf.mxu1  ;;  %14882 = vmatmul.mubr.msk.f32.gmra.mxu1 %vm643_vm3, %v9331_v59  ;;  %v18549_v52 = vld [vmem:[#allocation3 + $0x79] sm:$0xff]  ;;  %v10679_v5 = vmax.f32 %v18536_v24, %v18538_v10  ;;  %v18562_v36 = vmax.f32 %v11056_v20, %v18490_v33  ;;  %v10929_v51 = vmax.f32 %v10865_v25, %v18490_v33  ;;  %v18576_v20 = vld [vmem:[#allocation3 + $0x81] sm:$0xff] }
 0x431   : > { %20280 = vst [vmem:[#allocation41_spill] sm:$0xff] %v18531_v3  ;;  %v14633_v57 = vpop.f32.mrf.mxu0  ;;  %14932 = vmatmul.mubr.msk.f32.gmra.mxu0 %vm643_vm3, %v15110_v18  ;;  %v18554_v26 = vadd.f32 %v7628_v0, %v7360_v56  ;;  %v7363_v59 = vadd.f32 %v14583_v21, %v18304_v54  ;;  %14884 = vmatprep.mubr.msk.f32.mxu1 %vm643_vm3, %v9332_v45  ;;  %v15111_v18 = vld [vmem:[#allocation2 + $0x10b] sm:$0xff]  ;;  %v15112_v25 = vld [vmem:[#allocation2 + $0x113] sm:$0xff] }
 0x432   : > { %14934 = vmatprep.mubr.msk.f32.mxu0 %vm643_vm3, %v15111_v18  ;;  %v10680_v19 = vmax.f32 %v18547_v9, %v18549_v52  ;;  %v7251_v61 = vpop.f32.mrf.mxu1  ;;  %v9333_v39 = vld [vmem:[#allocation2 + $0x112] sm:$0xff]  ;;  %v10930_v0 = vmax.f32 %v10866_v46, %v18492_v22  ;;  %v10867_v54 = vmax.f32 %v10803_v35, %v18496_v63  ;;  %v18570_v45 = vld [vmem:[#allocation3 + $0x6a] sm:$0xff]  ;;  %v10868_v18 = vmax.f32 %v10804_v2, %v18505_v11  ;;  %v9334_v46 = vld [vmem:[#allocation2 + $0x122] sm:$0xff] }
 0x433   : > { %20281 = vst [vmem:[#allocation16_spill] sm:$0xff] %v18554_v26  ;;  %v7638_v3 = vpop.f32.mrf.mxu0  ;;  %v18567_v56 = vadd.f32 %v14633_v57, %v7363_v59  ;;  %v7362_v21 = vadd.f32 %v7251_v61, %v18310_v6  ;;  %v10805_v26 = vmax.f32 %v10741_v43, %v18536_v24  ;;  %v18580_v35 = vld [vmem:[#allocation3 + $0x7a] sm:$0xff]  ;;  %v10806_v6 = vmax.f32 %v10742_v62, %v18547_v9 }
 0x434   : > { %v14586_v47 = vpop.f32.mrf.mxu1  ;;  %14885 = vmatmul.mubr.msk.f32.gmra.mxu1 %vm643_vm3, %v9333_v39  ;;  %v10743_v2 = vmax.f32 %v10679_v5, %v18570_v45  ;;  %v10681_v43 = vmax.f32 %v18574_v13, %v18576_v20  ;;  %v15113_v39 = vld [vmem:[#allocation2 + $0x123] sm:$0xff]  ;;  %v10744_v61 = vmax.f32 %v10680_v19, %v18580_v35  ;;  %v11057_v62 = vmax.f32 %v18545_v27, %v18470_v42  ;;  %v15114_v42 = vld [vmem:[#allocation2 + $0x12b] sm:$0xff] }
 0x435   : > { %20282 = vst [vmem:[#allocation42_spill] sm:$0xff] %v18567_v56  ;;  %v14636_v33 = vpop.f32.mrf.mxu0  ;;  %14935 = vmatmul.mubr.msk.f32.gmra.mxu0 %vm643_vm3, %v15112_v25  ;;  %v18586_v57 = vadd.f32 %v7638_v3, %v7362_v21  ;;  %v7365_v59 = vadd.f32 %v14586_v47, %v18316_v16  ;;  %14887 = vmatprep.mubr.msk.f32.mxu1 %vm643_vm3, %v9334_v46  ;;  %v9335_v47 = vld [vmem:[#allocation2 + $0x12a] sm:$0xff] }
 0x436   : > { %14937 = vmatprep.mubr.msk.f32.mxu0 %vm643_vm3, %v15113_v39  ;;  %v7261_v25 = vpop.f32.mrf.mxu1  ;;  %v10994_v5 = vmax.f32 %v10929_v51, %v18494_v49  ;;  %v10995_v12 = vmax.f32 %v10930_v0, %v18503_v60  ;;  %v10931_v3 = vmax.f32 %v10867_v54, %v18527_v41  ;;  %v10932_v46 = vmax.f32 %v10868_v18, %v18534_v14  ;;  %v18602_v39 = vld [vmem:[#allocation3 + $0x82] sm:$0xff]  ;;  %v9336_v51 = vld [vmem:[#allocation2 + $0x13a] sm:$0xff]  ;;  %v18607_v60 = vld [vmem:[#allocation3 + $0x90] sm:$0xff] }
 0x437   : > { %20283 = vst [vmem:[#allocation17_spill] sm:$0xff] %v18586_v57  ;;  %v7648_v56 = vpop.f32.mrf.mxu0  ;;  %v18597_v21 = vadd.f32 %v14636_v33, %v7365_v59  ;;  %v7364_v16 = vadd.f32 %v7261_v25, %v18322_v55  ;;  %v10869_v19 = vmax.f32 %v10805_v26, %v18538_v10  ;;  %v10870_v49 = vmax.f32 %v10806_v6, %v18549_v52  ;;  %v15115_v54 = vld [vmem:[#allocation2 + $0x13b] sm:$0xff] }
 0x438   : > { %v14589_v57 = vpop.f32.mrf.mxu1  ;;  %14888 = vmatmul.mubr.msk.f32.gmra.mxu1 %vm643_vm3, %v9335_v47  ;;  %v10807_v55 = vmax.f32 %v10743_v2, %v18574_v13  ;;  %v10745_v27 = vmax.f32 %v10681_v43, %v18602_v39  ;;  %v10808_v18 = vmax.f32 %v10744_v61, %v18607_v60  ;;  %v18618_v6 = vmax.f32 %v11057_v62, %v18492_v22  ;;  %v18628_v47 = vld [vmem:[#allocation3 + $0x98] sm:$0xff] }
 0x439   : > { %v14639_v7 = vpop.f32.mrf.mxu0  ;;  %14938 = vmatmul.mubr.msk.f32.gmra.mxu0 %vm643_vm3, %v15114_v42  ;;  %v18611_v0 = vadd.f32 %v7648_v56, %v7364_v16  ;;  %v7367_v26 = vadd.f32 %v14589_v57, %v18328_v53  ;;  %14890 = vmatprep.mubr.msk.f32.mxu1 %vm643_vm3, %v9336_v51  ;;  %v11058_v2 = vmax.f32 %v10994_v5, %v18496_v63  ;;  %v9337_v57 = vld [vmem:[#allocation2 + $0x142] sm:$0xff]  ;;  %v15117_v5 = vld [vmem:[#allocation2 + $0x153] sm:$0xff] }
 0x43a   : > { %14940 = vmatprep.mubr.msk.f32.mxu0 %vm643_vm3, %v15115_v54  ;;  %v7271_v33 = vpop.f32.mrf.mxu1  ;;  %v11059_v43 = vmax.f32 %v10995_v12, %v18505_v11  ;;  %v10996_v56 = vmax.f32 %v10931_v3, %v18536_v24  ;;  %v10997_v16 = vmax.f32 %v10932_v46, %v18547_v9  ;;  %v10933_v61 = vmax.f32 %v10869_v19, %v18570_v45  ;;  %v15116_v63 = vld [vmem:[#allocation2 + $0x143] sm:$0xff]  ;;  %v9338_v12 = vld [vmem:[#allocation2 + $0x152] sm:$0xff]  ;;  %v9339_v54 = vld [vmem:[#allocation2 + $0x15a] sm:$0xff] }
 0x43b   : > { %v7658_v59 = vpop.f32.mrf.mxu0  ;;  %v18623_v25 = vadd.f32 %v14639_v7, %v7367_v26  ;;  %v7366_v53 = vadd.f32 %v7271_v33, %v18334_v28  ;;  %v10934_v7 = vmax.f32 %v10870_v49, %v18580_v35  ;;  %v18633_v11 = vld [vmem:[#allocation3 + $0x91] sm:$0xff]  ;;  %v10871_v28 = vmax.f32 %v10807_v55, %v18576_v20 }
 0x43c   : > { %v14592_v42 = vpop.f32.mrf.mxu1  ;;  %14891 = vmatmul.mubr.msk.f32.gmra.mxu1 %vm643_vm3, %v9337_v57  ;;  %v10809_v24 = vmax.f32 %v10745_v27, %v18628_v47  ;;  %v10872_v3 = vmax.f32 %v10808_v18, %v18633_v11  ;;  %v18644_v51 = vmax.f32 %v11058_v2, %v18527_v41  ;;  %v18647_v49 = vmax.f32 %v11059_v43, %v18534_v14  ;;  %v15118_v14 = vld [vmem:[#allocation2 + $0x15b] sm:$0xff]  ;;  %v15119_v57 = vld [vmem:[#allocation2 + $0x16b] sm:$0xff] }
 0x43d   : > { %v14642_v22 = vpop.f32.mrf.mxu0  ;;  %14941 = vmatmul.mubr.msk.f32.gmra.mxu0 %vm643_vm3, %v15116_v63  ;;  %v18637_v9 = vadd.f32 %v7658_v59, %v7366_v53  ;;  %v7369_v62 = vadd.f32 %v14592_v42, %v18340_v23  ;;  %14893 = vmatprep.mubr.msk.f32.mxu1 %vm643_vm3, %v9338_v12  ;;  %v11060_v55 = vmax.f32 %v10996_v56, %v18538_v10  ;;  %v18657_v59 = vld [vmem:[#allocation3 + $0x99] sm:$0xff]  ;;  %v9340_v10 = vld [vmem:[#allocation2 + $0x16a] sm:$0xff] }
 0x43e   : > { %14943 = vmatprep.mubr.msk.f32.mxu0 %vm643_vm3, %v15117_v5  ;;  %v7281_v46 = vpop.f32.mrf.mxu1  ;;  %v10682_v23 = vmax.f32 %v18607_v60, %v18633_v11  ;;  %v11061_v18 = vmax.f32 %v10997_v16, %v18549_v52  ;;  %v10998_v33 = vmax.f32 %v10933_v61, %v18574_v13  ;;  %v10999_v43 = vmax.f32 %v10934_v7, %v18607_v60  ;;  %v11095_v56 = vld [vmem:[#allocation3 + $0x92] sm:$0xff]  ;;  %v18669_v61 = vld [vmem:[#allocation3 + $0xa8] sm:$0xff] }
 0x43f   : > { %v7668_v19 = vpop.f32.mrf.mxu0  ;;  %v18652_v27 = vadd.f32 %v14642_v22, %v7369_v62  ;;  %v7368_v26 = vadd.f32 %v7281_v46, %v18346_v58  ;;  %v10935_v58 = vmax.f32 %v10871_v28, %v18602_v39  ;;  %v10873_v53 = vmax.f32 %v10809_v24, %v18657_v59  ;;  %v18671_v42 = vld [vmem:[#allocation3 + $0xa9] sm:$0xff]  ;;  %v9341_v62 = vld [vmem:[#allocation2 + $0x172] sm:$0xff]  ;;  %v18687_v46 = vld [vmem:[#allocation3 + $0x9a] sm:$0xff] }
 0x440   : > { %v14595_v41 = vpop.f32.mrf.mxu1  ;;  %14894 = vmatmul.mubr.msk.f32.gmra.mxu1 %vm643_vm3, %v9339_v54  ;;  %v10936_v16 = vmax.f32 %v10872_v3, %v11095_v56  ;;  %v18674_v63 = vmax.f32 %v11060_v55, %v18570_v45  ;;  %v10746_v12 = vmax.f32 %v10682_v23, %v11095_v56  ;;  %v10683_v7 = vmax.f32 %v18628_v47, %v18657_v59  ;;  %v15120_v55 = vld [vmem:[#allocation2 + $0x173] sm:$0xff]  ;;  %v9342_v23 = vld [vmem:[#allocation2 + $0x182] sm:$0xff] }
 0x441   : > { %v14645_v2 = vpop.f32.mrf.mxu0  ;;  %14944 = vmatmul.mubr.msk.f32.gmra.mxu0 %vm643_vm3, %v15118_v14  ;;  %v18664_v52 = vadd.f32 %v7668_v19, %v7368_v26  ;;  %v7371_v13 = vadd.f32 %v14595_v41, %v18352_v31  ;;  %14896 = vmatprep.mubr.msk.f32.mxu1 %vm643_vm3, %v9340_v10  ;;  %v10684_v31 = vmax.f32 %v18669_v61, %v18671_v42  ;;  %v18704_v41 = vld [vmem:[#allocation3 + $0xaa] sm:$0xff] }
 0x442   : > { %14946 = vmatprep.mubr.msk.f32.mxu0 %vm643_vm3, %v15119_v57  ;;  %v7291_v60 = vpop.f32.mrf.mxu1  ;;  %v18684_v5 = vmax.f32 %v11061_v18, %v18580_v35  ;;  %v11062_v3 = vmax.f32 %v10998_v33, %v18576_v20  ;;  %v11063_v26 = vmax.f32 %v10999_v43, %v18633_v11  ;;  %v10937_v35 = vmax.f32 %v10873_v53, %v18687_v46  ;;  %v15121_v18 = vld [vmem:[#allocation2 + $0x183] sm:$0xff]  ;;  %v18706_v11 = vld [vmem:[#allocation3 + $0xb0] sm:$0xff] }
 0x443   : > { %v7678_v22 = vpop.f32.mrf.mxu0  ;;  %v18680_v28 = vadd.f32 %v14645_v2, %v7371_v13  ;;  %v7370_v24 = vadd.f32 %v7291_v60, %v18358_v40  ;;  %v18693_v40 = vmax.f32 %v10935_v58, %v18628_v47  ;;  %v18702_v33 = vmax.f32 %v10936_v16, %v18669_v61  ;;  %v18708_v47 = vld [vmem:[#allocation3 + $0xb1] sm:$0xff]  ;;  %v18711_v43 = vld [vmem:[#allocation3 + $0xc0] sm:$0xff] }
 0x444   : > { %v14598_v45 = vpop.f32.mrf.mxu1  ;;  %14897 = vmatmul.mubr.msk.f32.gmra.mxu1 %vm643_vm3, %v9341_v62  ;;  %v10810_v10 = vmax.f32 %v10746_v12, %v18669_v61  ;;  %v10747_v58 = vmax.f32 %v10683_v7, %v18687_v46  ;;  %v18717_v53 = vmax.f32 %v10684_v31, %v18704_v41  ;;  %v10685_v13 = vmax.f32 %v18706_v11, %v18708_v47  ;;  %v9343_v60 = vld [vmem:[#allocation2 + $0x18a] sm:$0xff]  ;;  %v9344_v31 = vld [vmem:[#allocation2 + $0x19a] sm:$0xff] }
 0x445   : > { %20284 = vst [vmem:[#allocation43_spill] sm:$0xff] %v18680_v28  ;;  %v14648_v19 = vpop.f32.mrf.mxu0  ;;  %14947 = vmatmul.mubr.msk.f32.gmra.mxu0 %vm643_vm3, %v15120_v55  ;;  %v18696_v54 = vadd.f32 %v7678_v22, %v7370_v24  ;;  %v7373_v20 = vadd.f32 %v14598_v45, %v18364_v37  ;;  %14899 = vmatprep.mubr.msk.f32.mxu1 %vm643_vm3, %v9342_v23  ;;  %v18713_v37 = vld [vmem:[#allocation3 + $0xc1] sm:$0xff]  ;;  %v15122_v7 = vld [vmem:[#allocation2 + $0x18b] sm:$0xff]  ;;  %v18834_v28 = vld [vmem:[#allocation3 + $0xf9] sm:$0xff] }
 0x446   : > { %14949 = vmatprep.mubr.msk.f32.mxu0 %vm643_vm3, %v15121_v18  ;;  %v7301_v2 = vpop.f32.mrf.mxu1  ;;  %v18725_v22 = vmax.f32 %v11062_v3, %v18602_v39  ;;  %v10686_v61 = vmax.f32 %v18711_v43, %v18713_v37  ;;  %v18731_v62 = vmax.f32 %v11063_v26, %v11095_v56  ;;  %v11002_v45 = vmax.f32 %v10937_v35, %v18706_v11  ;;  %v9346_v55 = vld [vmem:[#allocation2 + $0x1b2] sm:$0xff]  ;;  %v18751_v35 = vld [vmem:[#allocation3 + $0xc8] sm:$0xff] }
 0x447   : > { %20285 = vst [vmem:[#allocation18_spill] sm:$0xff] %v18696_v54  ;;  %v7688_v14 = vpop.f32.mrf.mxu0  ;;  %v18721_v57 = vadd.f32 %v14648_v19, %v7373_v20  ;;  %v7372_v16 = vadd.f32 %v7301_v2, %v18370_v50  ;;  %v11064_v50 = vmax.f32 %v18693_v40, %v18657_v59  ;;  %v15123_v19 = vld [vmem:[#allocation2 + $0x19b] sm:$0xff]  ;;  %v11065_v23 = vmax.f32 %v18702_v33, %v18671_v42  ;;  %v18743_v56 = vld [vmem:[#allocation3 + $0xb2] sm:$0xff]  ;;  %v18753_v18 = vld [vmem:[#allocation3 + $0xc9] sm:$0xff] }
 0x448   : > { %v14601_v12 = vpop.f32.mrf.mxu1  ;;  %14900 = vmatmul.mubr.msk.f32.gmra.mxu1 %vm643_vm3, %v9343_v60  ;;  %v18746_v59 = vmax.f32 %v10810_v10, %v18671_v42  ;;  %v18748_v40 = vld [vmem:[#allocation3 + $0xc2] sm:$0xff]  ;;  %v10812_v2 = vmax.f32 %v18717_v53, %v18711_v43  ;;  %v10749_v33 = vmax.f32 %v10685_v13, %v18743_v56  ;;  %v18761_v42 = vld [vmem:[#allocation3 + $0xd8] sm:$0xff] }
 0x449   : > { %20286 = vst [vmem:[#allocation44_spill] sm:$0xff] %v18721_v57  ;;  %v14651_v24 = vpop.f32.mrf.mxu0  ;;  %14950 = vmatmul.mubr.msk.f32.gmra.mxu0 %vm643_vm3, %v15122_v7  ;;  %v18736_v39 = vadd.f32 %v7688_v14, %v7372_v16  ;;  %v7375_v3 = vadd.f32 %v14601_v12, %v18376_v32  ;;  %14902 = vmatprep.mubr.msk.f32.mxu1 %vm643_vm3, %v9344_v31  ;;  %v9345_v60 = vld [vmem:[#allocation2 + $0x1a2] sm:$0xff]  ;;  %v18763_v10 = vld [vmem:[#allocation3 + $0xd9] sm:$0xff] }
 0x44a   : > { %14952 = vmatprep.mubr.msk.f32.mxu0 %vm643_vm3, %v15123_v19  ;;  %v7311_v26 = vpop.f32.mrf.mxu1  ;;  %v10811_v32 = vmax.f32 %v10747_v58, %v18706_v11  ;;  %v10750_v11 = vmax.f32 %v10686_v61, %v18748_v40  ;;  %v10687_v58 = vmax.f32 %v18751_v35, %v18753_v18  ;;  %v15124_v53 = vld [vmem:[#allocation2 + $0x1a3] sm:$0xff]  ;;  %v18771_v13 = vmax.f32 %v11064_v50, %v18687_v46  ;;  %v9347_v19 = vld [vmem:[#allocation2 + $0x1ba] sm:$0xff] }
 0x44b   : > { %20287 = vst [vmem:[#allocation19_spill] sm:$0xff] %v18736_v39  ;;  %v7698_v20 = vpop.f32.mrf.mxu0  ;;  %v18758_v14 = vadd.f32 %v14651_v24, %v7375_v3  ;;  %v7374_v16 = vadd.f32 %v7311_v26, %v18382_v8  ;;  %v11066_v8 = vmax.f32 %v11002_v45, %v18708_v47  ;;  %v10688_v24 = vmax.f32 %v18761_v42, %v18763_v10  ;;  %v15125_v3 = vld [vmem:[#allocation2 + $0x1b3] sm:$0xff]  ;;  %v9735_v45 = vld [vmem:[#allocation2 + $0x1cb] sm:$0xff] }
 0x44c   : > { %v14604_v12 = vpop.f32.mrf.mxu1  ;;  %14903 = vmatmul.mubr.msk.f32.gmra.mxu1 %vm643_vm3, %v9345_v60  ;;  %v18782_v26 = vmax.f32 %v11065_v23, %v18704_v41  ;;  %v9348_v60 = vld [vmem:[#allocation2 + $0x1ca] sm:$0xff]  ;;  %v18832_v54 = vld [vmem:[#allocation3 + $0xf8] sm:$0xff] }
 0x44d   : > { %20288 = vst [vmem:[#allocation45_spill] sm:$0xff] %v18758_v14  ;;  %v14654_v7 = vpop.f32.mrf.mxu0  ;;  %14953 = vmatmul.mubr.msk.f32.gmra.mxu0 %vm643_vm3, %v15124_v53  ;;  %v18776_v31 = vadd.f32 %v7698_v20, %v7374_v16  ;;  %v7377_v61 = vadd.f32 %v14604_v12, %v18388_v34  ;;  %14905 = vmatprep.mubr.msk.f32.mxu1 %vm643_vm3, %v9346_v55  ;;  %v18787_v16 = vld [vmem:[#allocation3 + $0xca] sm:$0xff]  ;;  %v18798_v14 = vld [vmem:[#allocation3 + $0xe1] sm:$0xff] }
 0x44e   : > { %14955 = vmatprep.mubr.msk.f32.mxu0 %vm643_vm3, %v15125_v3  ;;  %v7321_v46 = vpop.f32.mrf.mxu1  ;;  %v10938_v53 = vmax.f32 %v18746_v59, %v18704_v41  ;;  %v10875_v20 = vmax.f32 %v10811_v32, %v18708_v47  ;;  %v10876_v34 = vmax.f32 %v10812_v2, %v18713_v37  ;;  %v10813_v55 = vmax.f32 %v10749_v33, %v18751_v35  ;;  %v18794_v3 = vld [vmem:[#allocation3 + $0xda] sm:$0xff] }
 0x44f   : > { %20289 = vst [vmem:[#allocation20_spill] sm:$0xff] %v18776_v31  ;;  %v7708_v50 = vpop.f32.mrf.mxu0  ;;  %v18791_v12 = vadd.f32 %v14654_v7, %v7377_v61  ;;  %v7376_v23 = vadd.f32 %v7321_v46, %v18394_v48  ;;  %v18796_v31 = vld [vmem:[#allocation3 + $0xe0] sm:$0xff]  ;;  %v10814_v41 = vmax.f32 %v10750_v11, %v18761_v42  ;;  %v10751_v47 = vmax.f32 %v10687_v58, %v18787_v16  ;;  %v18807_v48 = vld [vmem:[#allocation3 + $0xf0] sm:$0xff] }
 0x450   : > { %v14607_v59 = vpop.f32.mrf.mxu1  ;;  %14906 = vmatmul.mubr.msk.f32.gmra.mxu1 %vm643_vm3, %v9347_v19  ;;  %v15126_v2 = vld [vmem:[#allocation2 + $0x1bb] sm:$0xff]  ;;  %v18805_v33 = vmax.f32 %v11066_v8, %v18743_v56  ;;  %v18809_v7 = vld [vmem:[#allocation3 + $0xf1] sm:$0xff]  ;;  %v10752_v61 = vmax.f32 %v10688_v24, %v18794_v3  ;;  %v10689_v11 = vmax.f32 %v18796_v31, %v18798_v14  ;;  %v11003_v24 = vmax.f32 %v10938_v53, %v18711_v43  ;;  %v10092_v53 = vld [vmem:[#allocation2 + $0x64] sm:$0xff] }
 0x451   : > { %20290 = vst [vmem:[#allocation46_spill] sm:$0xff] %v18791_v12  ;;  %v14657_v32 = vpop.f32.mrf.mxu0  ;;  %14956 = vmatmul.mubr.msk.f32.gmra.mxu0 %vm643_vm3, %v15126_v2  ;;  %v18814_v58 = vadd.f32 %v7708_v50, %v7376_v23  ;;  %v7379_v46 = vadd.f32 %v14607_v59, %v18399_v44  ;;  %14908 = vmatprep.mubr.msk.f32.mxu1 %vm643_vm3, %v9348_v60  ;;  %v9349_v19 = vld [vmem:[#allocation2 + $0x1d2] sm:$0xff] }
 0x452   : > { %14958 = vmatprep.mubr.msk.f32.mxu0 %vm643_vm3, %v9735_v45  ;;  %v9736_v8 = vld [vmem:[#allocation2 + $0x1d3] sm:$0xff]  ;;  %v10690_v2 = vmax.f32 %v18807_v48, %v18809_v7  ;;  %v7331_v12 = vpop.f32.mrf.mxu1  ;;  %v10939_v57 = vmax.f32 %v10875_v20, %v18743_v56  ;;  %v10940_v50 = vmax.f32 %v10876_v34, %v18748_v40  ;;  %v10877_v23 = vmax.f32 %v10813_v55, %v18753_v18  ;;  %v18828_v45 = vld [vmem:[#allocation3 + $0xe2] sm:$0xff] }
 0x453   : > { %20291 = vst [vmem:[#allocation21_spill] sm:$0xff] %v18814_v58  ;;  %v7718_v39 = vpop.f32.mrf.mxu0  ;;  %v18825_v44 = vadd.f32 %v14657_v32, %v7379_v46  ;;  %v7378_v60 = vadd.f32 %v7331_v12, %v18404_v1  ;;  %v10878_v59 = vmax.f32 %v10814_v41, %v18763_v10  ;;  %v10815_v58 = vmax.f32 %v10751_v47, %v18796_v31  ;;  %v18838_v20 = vld [vmem:[#allocation3 + $0xf2] sm:$0xff] }
 0x454   : > { %v14610_v43 = vpop.f32.mrf.mxu1  ;;  %14909 = vmatmul.mubr.msk.f32.gmra.mxu1 %vm643_vm3, %v9349_v19  ;;  %v10816_v1 = vmax.f32 %v10752_v61, %v18807_v48  ;;  %v10753_v34 = vmax.f32 %v10689_v11, %v18828_v45  ;;  %v10691_v55 = vmax.f32 %v18832_v54, %v18834_v28  ;;  %v10754_v47 = vmax.f32 %v10690_v2, %v18838_v20  ;;  %v18860_v2 = vld [vmem:[#allocation3 + $0xfa] sm:$0xff] }
 0x455   : > { %v14660_v56 = vpop.f32.mrf.mxu0  ;;  %14959 = vmatmul.mubr.msk.f32.gmra.mxu0 %vm643_vm3, %v9736_v8  ;;  %v18844_v12 = vadd.f32 %v7718_v39, %v7378_v60  ;;  %v7381_v41 = vadd.f32 %v14610_v43, %v18410_v17  ;;  %14963 = vmatprep.mubr.msk.f32.mxu1 %vm643_vm3, %v10092_v53  ;;  %v11067_v61 = vmax.f32 %v11003_v24, %v18713_v37  ;;  %v10093_v60 = vld [vmem:[#allocation2 + $0x6c] sm:$0xff]  ;;  %v10094_v37 = vld [vmem:[#allocation2 + $0x7c] sm:$0xff] }
 0x456   : > { %15013 = vmatprep.mubr.msk.f32.mxu0 %vm317_vm1, %v18523_v4  ;;  %v7341_v32 = vpop.f32.mrf.mxu1  ;;  %v11004_v11 = vmax.f32 %v10939_v57, %v18751_v35  ;;  %v11005_v19 = vmax.f32 %v10940_v50, %v18761_v42  ;;  %v10941_v39 = vmax.f32 %v10877_v23, %v18787_v16  ;;  %v10942_v43 = vmax.f32 %v10878_v59, %v18794_v3  ;;  %v18866_v35 = vld [vmem:[#allocation3 + $0x108] sm:$0xff] }
 0x457   : > { %20292 = vst [vmem:[#allocation22_spill] sm:$0xff] %v18844_v12  ;;  %v7728_v46 = vpop.f32.mrf.mxu0  ;;  %v18855_v8 = vadd.f32 %v14660_v56, %v7381_v41  ;;  %v7380_v17 = vadd.f32 %v7341_v32, %v18416_v29  ;;  %v10879_v4 = vmax.f32 %v10815_v58, %v18798_v14  ;;  %v10880_v57 = vmax.f32 %v10816_v1, %v18809_v7  ;;  %v10095_v41 = vld [vmem:[#allocation2 + $0x84] sm:$0xff]  ;;  %v18888_v32 = vld [vmem:[#allocation3 + $0x110] sm:$0xff] }
 0x458   : > { %v14665_v53 = vpop.f32.mrf.mxu1  ;;  %14964 = vmatmul.mubr.msk.f32.vlgmr.msra.gmra.mxu1 %vm643_vm3, %v10093_v60  ;;  %v10817_v29 = vmax.f32 %v10753_v34, %v18832_v54  ;;  %v10755_v42 = vmax.f32 %v10691_v55, %v18860_v2  ;;  %v18878_v59 = vmax.f32 %v11067_v61, %v18748_v40  ;;  %v11068_v56 = vmax.f32 %v11004_v11, %v18753_v18  ;;  %v10096_v18 = vld [vmem:[#allocation2 + $0x94] sm:$0xff] }
 0x459   : > { %v14715_v12 = vpop.f32.mrf.mxu0  ;;  %15014 = vmatmul.mubr.msk.f32.vlgmr.msra.gmra.mxu0 %vm317_vm1, %v18562_v36  ;;  %v18870_v24 = vadd.f32 %v7728_v46, %v7380_v17  ;;  %v8125_v58 = vadd.f32 %v14665_v53, %v18425_v38  ;;  %14966 = vmatprep.mubr.msk.f32.mxu1 %vm643_vm3, %v10094_v37  ;;  %v10818_v36 = vmax.f32 %v10754_v47, %v18866_v35 }
 0x45a   : > { %15016 = vmatprep.mubr.msk.f32.mxu0 %vm317_vm1, %v18618_v6  ;;  %v7965_v50 = vpop.f32.mrf.mxu1  ;;  %v11069_v1 = vmax.f32 %v11005_v19, %v18763_v10  ;;  %v11006_v34 = vmax.f32 %v10941_v39, %v18796_v31  ;;  %v11007_v6 = vmax.f32 %v10942_v43, %v18807_v48  ;;  %v10943_v47 = vmax.f32 %v10879_v4, %v18828_v45  ;;  %v18894_v31 = vld [vmem:[#allocation3 + $0x109] sm:$0xff]  ;;  %v20293_v4 = vld [vmem:[#allocation12_spill] sm:$0xff] }
 0x45b   : > { %v8352_v23 = vpop.f32.mrf.mxu0  ;;  %v18883_v55 = vadd.f32 %v14715_v12, %v8125_v58  ;;  %v8124_v38 = vadd.f32 %v7965_v50, %v18431_v15  ;;  %v10944_v10 = vmax.f32 %v10880_v57, %v18838_v20  ;;  %v10881_v15 = vmax.f32 %v10817_v29, %v18834_v28  ;;  %v18919_v29 = vld [vmem:[#allocation3 + $0x111] sm:$0xff] }
 0x45c   : > { %v14668_v46 = vpop.f32.mrf.mxu1  ;;  %14967 = vmatmul.mubr.msk.f32.gmra.mxu1 %vm643_vm3, %v10095_v41  ;;  %v10819_v48 = vmax.f32 %v10755_v42, %v18888_v32  ;;  %v10882_v11 = vmax.f32 %v10818_v36, %v18894_v31  ;;  %v18906_v39 = vmax.f32 %v11068_v56, %v18787_v16  ;;  %v18909_v17 = vmax.f32 %v11069_v1, %v18794_v3  ;;  %v10098_v3 = vld [vmem:[#allocation2 + $0xac] sm:$0xff]  ;;  %v10979_v1 = vld [vmem:[#allocation3 + $0x120] sm:$0xff] }
 0x45d   : > { %v14718_v40 = vpop.f32.mrf.mxu0  ;;  %15017 = vmatmul.mubr.msk.f32.gmra.mxu0 %vm317_vm1, %v18644_v51  ;;  %v18898_v12 = vadd.f32 %v8352_v23, %v8124_v38  ;;  %v8127_v61 = vadd.f32 %v14668_v46, %v18437_v30  ;;  %14969 = vmatprep.mubr.msk.f32.mxu1 %vm643_vm3, %v10096_v18  ;;  %v11070_v60 = vmax.f32 %v11006_v34, %v18798_v14  ;;  %v11105_v58 = vld [vmem:[#allocation3 + $0x10a] sm:$0xff]  ;;  %v18933_v34 = vld [vmem:[#allocation3 + $0x121] sm:$0xff] }
 0x45e   : > { %15019 = vmatprep.mubr.msk.f32.mxu0 %vm317_vm1, %v18647_v49  ;;  %v7975_v51 = vpop.f32.mrf.mxu1  ;;  %v10692_v30 = vmax.f32 %v18866_v35, %v18894_v31  ;;  %v10097_v49 = vld [vmem:[#allocation2 + $0x9c] sm:$0xff]  ;;  %v11071_v37 = vmax.f32 %v11007_v6, %v18809_v7  ;;  %v11008_v57 = vmax.f32 %v10943_v47, %v18832_v54  ;;  %v11009_v14 = vmax.f32 %v10944_v10, %v18866_v35  ;;  %v20294_v54 = vld [vmem:[#allocation38_spill] sm:$0xff] }
 0x45f   : > { %v8362_v19 = vpop.f32.mrf.mxu0  ;;  %v18914_v43 = vadd.f32 %v14718_v40, %v8127_v61  ;;  %v8126_v53 = vadd.f32 %v7975_v51, %v20293_v4  ;;  %v10945_v36 = vmax.f32 %v10881_v15, %v18860_v2  ;;  %v10883_v50 = vmax.f32 %v10819_v48, %v18919_v29  ;;  %v20295_v40 = vld [vmem:[#allocation13_spill] sm:$0xff]  ;;  %v18948_v48 = vld [vmem:[#allocation3 + $0x112] sm:$0xff] }
 0x460   : > { %v14671_v16 = vpop.f32.mrf.mxu1  ;;  %14970 = vmatmul.mubr.msk.f32.gmra.mxu1 %vm643_vm3, %v10097_v49  ;;  %v10946_v56 = vmax.f32 %v10882_v11, %v11105_v58  ;;  %v18936_v38 = vmax.f32 %v11070_v60, %v18828_v45  ;;  %v10756_v41 = vmax.f32 %v10692_v30, %v11105_v58  ;;  %v10693_v6 = vmax.f32 %v18888_v32, %v18919_v29  ;;  %v10100_v11 = vld [vmem:[#allocation2 + $0xc4] sm:$0xff]  ;;  %v20296_v30 = vld [vmem:[#allocation39_spill] sm:$0xff] }
 0x461   : > { %v14721_v42 = vpop.f32.mrf.mxu0  ;;  %15020 = vmatmul.mubr.msk.f32.gmra.mxu0 %vm317_vm1, %v18674_v63  ;;  %v18927_v7 = vadd.f32 %v8362_v19, %v8126_v53  ;;  %v8129_v23 = vadd.f32 %v14671_v16, %v20294_v54  ;;  %14972 = vmatprep.mubr.msk.f32.mxu1 %vm643_vm3, %v10098_v3  ;;  %v10694_v47 = vmax.f32 %v10979_v1, %v18933_v34  ;;  %v18962_v53 = vld [vmem:[#allocation3 + $0x122] sm:$0xff]  ;;  %v18970_v16 = vld [vmem:[#allocation3 + $0x139] sm:$0xff]  ;;  %v10101_v54 = vld [vmem:[#allocation2 + $0xcc] sm:$0xff] }
 0x462   : > { %15022 = vmatprep.mubr.msk.f32.mxu0 %vm317_vm1, %v18684_v5  ;;  %v7985_v63 = vpop.f32.mrf.mxu1  ;;  %v10099_v5 = vld [vmem:[#allocation2 + $0xb4] sm:$0xff]  ;;  %v18945_v10 = vmax.f32 %v11071_v37, %v18838_v20  ;;  %v11072_v15 = vmax.f32 %v11008_v57, %v18834_v28  ;;  %v11073_v51 = vmax.f32 %v11009_v14, %v18894_v31  ;;  %v11010_v19 = vmax.f32 %v10945_v36, %v18888_v32  ;;  %v18964_v49 = vld [vmem:[#allocation3 + $0x128] sm:$0xff] }
 0x463   : > { %v8372_v35 = vpop.f32.mrf.mxu0  ;;  %v18941_v46 = vadd.f32 %v14721_v42, %v8129_v23  ;;  %v8128_v18 = vadd.f32 %v7985_v63, %v20295_v40  ;;  %v10947_v60 = vmax.f32 %v10883_v50, %v18948_v48  ;;  %v11011_v4 = vmax.f32 %v10946_v56, %v10979_v1  ;;  %v18968_v57 = vld [vmem:[#allocation3 + $0x138] sm:$0xff]  ;;  %v20297_v36 = vld [vmem:[#allocation14_spill] sm:$0xff] }
 0x464   : > { %v14674_v45 = vpop.f32.mrf.mxu1  ;;  %14973 = vmatmul.mubr.msk.f32.gmra.mxu1 %vm643_vm3, %v10099_v5  ;;  %v10820_v37 = vmax.f32 %v10756_v41, %v10979_v1  ;;  %v10757_v42 = vmax.f32 %v10693_v6, %v18948_v48  ;;  %v10758_v3 = vmax.f32 %v10694_v47, %v18962_v53  ;;  %v18980_v23 = vmax.f32 %v11072_v15, %v18860_v2  ;;  %v20298_v2 = vld [vmem:[#allocation40_spill] sm:$0xff]  ;;  %v18998_v15 = vld [vmem:[#allocation3 + $0x12a] sm:$0xff] }
 0x465   : > { %v14724_v61 = vpop.f32.mrf.mxu0  ;;  %15023 = vmatmul.mubr.msk.f32.gmra.mxu0 %vm317_vm1, %v18725_v22  ;;  %v18956_v20 = vadd.f32 %v8372_v35, %v8128_v18  ;;  %v8131_v28 = vadd.f32 %v14674_v45, %v20296_v30  ;;  %14975 = vmatprep.mubr.msk.f32.mxu1 %vm643_vm3, %v10100_v11  ;;  %v18966_v22 = vld [vmem:[#allocation3 + $0x129] sm:$0xff]  ;;  %v10696_v56 = vmax.f32 %v18968_v57, %v18970_v16  ;;  %v10102_v35 = vld [vmem:[#allocation2 + $0xdc] sm:$0xff] }
 0x466   : > { %15025 = vmatprep.mubr.msk.f32.mxu0 %vm317_vm1, %v18731_v62  ;;  %v7995_v31 = vpop.f32.mrf.mxu1  ;;  %v10695_v62 = vmax.f32 %v18964_v49, %v18966_v22  ;;  %v18987_v41 = vmax.f32 %v11073_v51, %v11105_v58  ;;  %v11074_v6 = vmax.f32 %v11010_v19, %v18919_v29  ;;  %v11012_v47 = vmax.f32 %v10947_v60, %v18964_v49  ;;  %v19001_v29 = vld [vmem:[#allocation3 + $0x13a] sm:$0xff]  ;;  %v20300_v30 = vld [vmem:[#allocation15_spill] sm:$0xff] }
 0x467   : > { %v8382_v32 = vpop.f32.mrf.mxu0  ;;  %v18976_v14 = vadd.f32 %v14724_v61, %v8131_v28  ;;  %v8130_v50 = vadd.f32 %v7995_v31, %v20297_v36  ;;  %v11075_v5 = vmax.f32 %v11011_v4, %v18933_v34  ;;  %v10884_v45 = vmax.f32 %v10820_v37, %v18933_v34  ;;  %v19004_v11 = vld [vmem:[#allocation3 + $0x140] sm:$0xff]  ;;  %v19013_v31 = vld [vmem:[#allocation3 + $0x150] sm:$0xff] }
 0x468   : > { %v14677_v1 = vpop.f32.mrf.mxu1  ;;  %14976 = vmatmul.mubr.msk.f32.gmra.mxu1 %vm643_vm3, %v10101_v54  ;;  %v10821_v61 = vmax.f32 %v10757_v42, %v18964_v49  ;;  %v19006_v51 = vld [vmem:[#allocation3 + $0x141] sm:$0xff]  ;;  %v10822_v19 = vmax.f32 %v10758_v3, %v18968_v57  ;;  %v19015_v34 = vld [vmem:[#allocation3 + $0x151] sm:$0xff]  ;;  %v11076_v36 = vmax.f32 %v11012_v47, %v18966_v22 }
 0x469   : > { %v14727_v63 = vpop.f32.mrf.mxu0  ;;  %15026 = vmatmul.mubr.msk.f32.gmra.mxu0 %vm317_vm1, %v18771_v13  ;;  %v18991_v40 = vadd.f32 %v8382_v32, %v8130_v50  ;;  %v8133_v18 = vadd.f32 %v14677_v1, %v20298_v2  ;;  %14978 = vmatprep.mubr.msk.f32.mxu1 %vm643_vm3, %v10102_v35  ;;  %v10103_v4 = vld [vmem:[#allocation2 + $0xe4] sm:$0xff]  ;;  %v10760_v32 = vmax.f32 %v10696_v56, %v19001_v29  ;;  %v10104_v3 = vld [vmem:[#allocation2 + $0xf4] sm:$0xff]  ;;  %v10105_v35 = vld [vmem:[#allocation2 + $0xfc] sm:$0xff] }
 0x46a   : > { %15028 = vmatprep.mubr.msk.f32.mxu0 %vm317_vm1, %v18782_v26  ;;  %v8005_v13 = vpop.f32.mrf.mxu1  ;;  %v10759_v26 = vmax.f32 %v10695_v62, %v18998_v15  ;;  %v10697_v49 = vmax.f32 %v19004_v11, %v19006_v51  ;;  %v19024_v62 = vmax.f32 %v11074_v6, %v18948_v48  ;;  %v10698_v50 = vmax.f32 %v19013_v31, %v19015_v34  ;;  %v20302_v56 = vld [vmem:[#allocation41_spill] sm:$0xff] }
 0x46b   : > { %v8392_v58 = vpop.f32.mrf.mxu0  ;;  %v19010_v60 = vadd.f32 %v14727_v63, %v8133_v18  ;;  %v8132_v28 = vadd.f32 %v8005_v13, %v20300_v30  ;;  %v19036_v63 = vmax.f32 %v11075_v5, %v18962_v53  ;;  %v10948_v6 = vmax.f32 %v10884_v45, %v18962_v53  ;;  %v19040_v2 = vld [vmem:[#allocation3 + $0x142] sm:$0xff]  ;;  %v20304_v30 = vld [vmem:[#allocation16_spill] sm:$0xff] }
 0x46c   : > { %v14680_v37 = vpop.f32.mrf.mxu1  ;;  %14979 = vmatmul.mubr.msk.f32.gmra.mxu1 %vm643_vm3, %v10103_v4  ;;  %v10885_v47 = vmax.f32 %v10821_v61, %v18966_v22  ;;  %v10886_v18 = vmax.f32 %v10822_v19, %v18970_v16  ;;  %v10823_v13 = vmax.f32 %v10759_v26, %v19004_v11  ;;  %v19049_v5 = vld [vmem:[#allocation3 + $0x158] sm:$0xff]  ;;  %v10824_v53 = vmax.f32 %v10760_v32, %v19013_v31  ;;  %v10106_v19 = vld [vmem:[#allocation2 + $0x10c] sm:$0xff] }
 0x46d   : > { %20299 = vst [vmem:[#allocation23_spill] sm:$0xff] %v19010_v60  ;;  %v14730_v42 = vpop.f32.mrf.mxu0  ;;  %15029 = vmatmul.mubr.msk.f32.gmra.mxu0 %vm317_vm1, %v18805_v33  ;;  %v19029_v54 = vadd.f32 %v8392_v58, %v8132_v28  ;;  %v8135_v1 = vadd.f32 %v14680_v37, %v20302_v56  ;;  %14981 = vmatprep.mubr.msk.f32.mxu1 %vm643_vm3, %v10104_v3  ;;  %v19047_v28 = vld [vmem:[#allocation3 + $0x152] sm:$0xff]  ;;  %v19061_v37 = vld [vmem:[#allocation3 + $0x168] sm:$0xff] }
 0x46e   : > { %15031 = vmatprep.mubr.msk.f32.mxu0 %vm317_vm1, %v18878_v59  ;;  %v8015_v33 = vpop.f32.mrf.mxu1  ;;  %v19051_v4 = vld [vmem:[#allocation3 + $0x159] sm:$0xff]  ;;  %v10761_v22 = vmax.f32 %v10697_v49, %v19040_v2  ;;  %v19059_v26 = vmax.f32 %v11076_v36, %v18998_v15  ;;  %v10762_v3 = vmax.f32 %v10698_v50, %v19047_v28  ;;  %v20306_v56 = vld [vmem:[#allocation42_spill] sm:$0xff]  ;;  %v11013_v50 = vmax.f32 %v10948_v6, %v18968_v57  ;;  %v19089_v60 = vld [vmem:[#allocation3 + $0x171] sm:$0xff] }
 0x46f   : > { %20301 = vst [vmem:[#allocation27_spill] sm:$0xff] %v19029_v54  ;;  %v8402_v48 = vpop.f32.mrf.mxu0  ;;  %v19044_v58 = vadd.f32 %v14730_v42, %v8135_v1  ;;  %v8134_v59 = vadd.f32 %v8015_v33, %v20304_v30  ;;  %v19063_v42 = vld [vmem:[#allocation3 + $0x169] sm:$0xff]  ;;  %v10699_v32 = vmax.f32 %v19049_v5, %v19051_v4  ;;  %v10949_v30 = vmax.f32 %v10885_v47, %v18998_v15 }
 0x470   : > { %v14683_v45 = vpop.f32.mrf.mxu1  ;;  %14982 = vmatmul.mubr.msk.f32.gmra.mxu1 %vm643_vm3, %v10105_v35  ;;  %v10107_v35 = vld [vmem:[#allocation2 + $0x114] sm:$0xff]  ;;  %v10108_v6 = vld [vmem:[#allocation2 + $0x124] sm:$0xff] }
 0x471   : > { %20303 = vst [vmem:[#allocation25_spill] sm:$0xff] %v19044_v58  ;;  %v14733_v61 = vpop.f32.mrf.mxu0  ;;  %15032 = vmatmul.mubr.msk.f32.gmra.mxu0 %vm317_vm1, %v18906_v39  ;;  %v19068_v49 = vadd.f32 %v8402_v48, %v8134_v59  ;;  %v8137_v1 = vadd.f32 %v14683_v45, %v20306_v56  ;;  %14984 = vmatprep.mubr.msk.f32.mxu1 %vm643_vm3, %v10106_v19  ;;  %v20307_v19 = vld [vmem:[#allocation17_spill] sm:$0xff]  ;;  %v19087_v54 = vld [vmem:[#allocation3 + $0x170] sm:$0xff] }
 0x472   : > { %15034 = vmatprep.mubr.msk.f32.mxu0 %vm317_vm1, %v18909_v17  ;;  %v10700_v39 = vmax.f32 %v19061_v37, %v19063_v42  ;;  %v8025_v36 = vpop.f32.mrf.mxu1  ;;  %v10950_v48 = vmax.f32 %v10886_v18, %v19001_v29  ;;  %v10887_v59 = vmax.f32 %v10823_v13, %v19006_v51  ;;  %v10888_v17 = vmax.f32 %v10824_v53, %v19015_v34  ;;  %v19094_v47 = vld [vmem:[#allocation3 + $0x16a] sm:$0xff] }
 0x473   : > { %20305 = vst [vmem:[#allocation26_spill] sm:$0xff] %v19068_v49  ;;  %v8412_v33 = vpop.f32.mrf.mxu0  ;;  %v19080_v45 = vadd.f32 %v14733_v61, %v8137_v1  ;;  %v8136_v56 = vadd.f32 %v8025_v36, %v20307_v19  ;;  %v19083_v49 = vld [vmem:[#allocation3 + $0x15a] sm:$0xff]  ;;  %v10825_v58 = vmax.f32 %v10761_v22, %v19049_v5  ;;  %v10826_v18 = vmax.f32 %v10762_v3, %v19061_v37 }
 0x474   : > { %v14686_v57 = vpop.f32.mrf.mxu1  ;;  %14985 = vmatmul.mubr.msk.f32.gmra.mxu1 %vm643_vm3, %v10107_v35  ;;  %v10763_v13 = vmax.f32 %v10699_v32, %v19083_v49  ;;  %v10701_v53 = vmax.f32 %v19087_v54, %v19089_v60  ;;  %v11077_v3 = vmax.f32 %v11013_v50, %v18970_v16  ;;  %v11014_v32 = vmax.f32 %v10949_v30, %v19004_v11  ;;  %v10110_v16 = vld [vmem:[#allocation2 + $0x13c] sm:$0xff] }
 0x475   : > { %v14736_v15 = vpop.f32.mrf.mxu0  ;;  %15035 = vmatmul.mubr.msk.f32.gmra.mxu0 %vm317_vm1, %v18936_v38  ;;  %v19100_v22 = vadd.f32 %v8412_v33, %v8136_v56  ;;  %v8139_v61 = vadd.f32 %v14686_v57, %v18597_v21  ;;  %14987 = vmatprep.mubr.msk.f32.mxu1 %vm643_vm3, %v10108_v6  ;;  %v10764_v38 = vmax.f32 %v10700_v39, %v19094_v47  ;;  %v10109_v56 = vld [vmem:[#allocation2 + $0x12c] sm:$0xff] }
 0x476   : > { %15037 = vmatprep.mubr.msk.f32.mxu0 %vm317_vm1, %v18945_v10  ;;  %v8035_v1 = vpop.f32.mrf.mxu1  ;;  %v11015_v35 = vmax.f32 %v10950_v48, %v19013_v31  ;;  %v10951_v33 = vmax.f32 %v10887_v59, %v19040_v2  ;;  %v10952_v57 = vmax.f32 %v10888_v17, %v19047_v28  ;;  %v10889_v10 = vmax.f32 %v10825_v58, %v19051_v4  ;;  %v19116_v39 = vld [vmem:[#allocation3 + $0x172] sm:$0xff]  ;;  %v10987_v31 = vld [vmem:[#allocation3 + $0x180] sm:$0xff] }
 0x477   : > { %20308 = vst [vmem:[#allocation24_spill] sm:$0xff] %v19100_v22  ;;  %v8422_v36 = vpop.f32.mrf.mxu0  ;;  %v19111_v19 = vadd.f32 %v14736_v15, %v8139_v61  ;;  %v8138_v21 = vadd.f32 %v8035_v1, %v18611_v0  ;;  %v10890_v11 = vmax.f32 %v10826_v18, %v19063_v42  ;;  %v10827_v0 = vmax.f32 %v10763_v13, %v19087_v54  ;;  %v10111_v61 = vld [vmem:[#allocation2 + $0x144] sm:$0xff] }
 0x478   : > { %v14689_v6 = vpop.f32.mrf.mxu1  ;;  %14988 = vmatmul.mubr.msk.f32.gmra.mxu1 %vm643_vm3, %v10109_v56  ;;  %v10765_v50 = vmax.f32 %v10701_v53, %v19116_v39  ;;  %v10828_v48 = vmax.f32 %v10764_v38, %v10987_v31  ;;  %v11078_v15 = vmax.f32 %v11014_v32, %v19006_v51  ;;  %v11079_v18 = vmax.f32 %v11015_v35, %v19015_v34  ;;  %v10988_v38 = vld [vmem:[#allocation3 + $0x188] sm:$0xff] }
 0x479   : > { %v14739_v22 = vpop.f32.mrf.mxu0  ;;  %15038 = vmatmul.mubr.msk.f32.gmra.mxu0 %vm317_vm1, %v18980_v23  ;;  %v19124_v30 = vadd.f32 %v8422_v36, %v8138_v21  ;;  %v8141_v58 = vadd.f32 %v14689_v6, %v18623_v25  ;;  %14990 = vmatprep.mubr.msk.f32.mxu1 %vm643_vm3, %v10110_v16  ;;  %v11141_v23 = vmax.f32 %v11077_v3, %v19001_v29  ;;  %v10112_v29 = vld [vmem:[#allocation2 + $0x154] sm:$0xff]  ;;  %v19143_v34 = vld [vmem:[#allocation3 + $0x181] sm:$0xff] }
 0x47a   : > { %15040 = vmatprep.mubr.msk.f32.mxu0 %vm317_vm1, %v18987_v41  ;;  %v8045_v59 = vpop.f32.mrf.mxu1  ;;  %v11016_v13 = vmax.f32 %v10951_v33, %v19049_v5  ;;  %v11017_v1 = vmax.f32 %v10952_v57, %v19061_v37  ;;  %v10953_v41 = vmax.f32 %v10889_v10, %v19083_v49  ;;  %v10954_v51 = vmax.f32 %v10890_v11, %v19094_v47 }
 0x47b   : > { %v8432_v17 = vpop.f32.mrf.mxu0  ;;  %v19134_v53 = vadd.f32 %v14739_v22, %v8141_v58  ;;  %v8140_v25 = vadd.f32 %v8045_v59, %v18637_v9  ;;  %v10891_v9 = vmax.f32 %v10827_v0, %v19089_v60  ;;  %v10829_v5 = vmax.f32 %v10765_v50, %v10988_v38 }
 0x47c   : > { %v14692_v36 = vpop.f32.mrf.mxu1  ;;  %14991 = vmatmul.mubr.msk.f32.gmra.mxu1 %vm643_vm3, %v10111_v61  ;;  %v10892_v3 = vmax.f32 %v10828_v48, %v19143_v34  ;;  %v11142_v35 = vmax.f32 %v11078_v15, %v19040_v2  ;;  %v11143_v33 = vmax.f32 %v11079_v18, %v19047_v28  ;;  %v11080_v56 = vmax.f32 %v11016_v13, %v19051_v4  ;;  %v10114_v2 = vld [vmem:[#allocation2 + $0x16c] sm:$0xff]  ;;  %v11115_v4 = vld [vmem:[#allocation3 + $0x182] sm:$0xff] }
 0x47d   : > { %v14742_v21 = vpop.f32.mrf.mxu0  ;;  %15041 = vmatmul.mubr.msk.f32.gmra.mxu0 %vm317_vm1, %v19024_v62  ;;  %v19146_v22 = vadd.f32 %v8432_v17, %v8140_v25  ;;  %v8143_v37 = vadd.f32 %v14692_v36, %v18652_v27  ;;  %14993 = vmatprep.mubr.msk.f32.mxu1 %vm643_vm3, %v10112_v29  ;;  %v10113_v27 = vld [vmem:[#allocation2 + $0x15c] sm:$0xff]  ;;  %v11081_v6 = vmax.f32 %v11017_v1, %v19063_v42  ;;  %v20309_v42 = vld [vmem:[#allocation43_spill] sm:$0xff]  ;;  %v20310_v18 = vld [vmem:[#allocation18_spill] sm:$0xff] }
 0x47e   : > { %15043 = vmatprep.mubr.msk.f32.mxu0 %vm317_vm1, %v19036_v63  ;;  %v8055_v32 = vpop.f32.mrf.mxu1  ;;  %v11018_v16 = vmax.f32 %v10953_v41, %v19087_v54  ;;  %v19161_v63 = vld [vmem:[#allocation3 + $0x189] sm:$0xff]  ;;  %v11019_v28 = vmax.f32 %v10954_v51, %v10987_v31  ;;  %v10955_v50 = vmax.f32 %v10891_v9, %v19116_v39  ;;  %v10956_v48 = vmax.f32 %v10892_v3, %v11115_v4  ;;  %v10115_v25 = vld [vmem:[#allocation2 + $0x174] sm:$0xff] }
 0x47f   : > { %v8442_v62 = vpop.f32.mrf.mxu0  ;;  %v19156_v57 = vadd.f32 %v14742_v21, %v8143_v37  ;;  %v8142_v10 = vadd.f32 %v8055_v32, %v18664_v52  ;;  %v10893_v52 = vmax.f32 %v10829_v5, %v19161_v63  ;;  %v11144_v15 = vmax.f32 %v11080_v56, %v19083_v49  ;;  %v11116_v41 = vld [vmem:[#allocation3 + $0x18a] sm:$0xff]  ;;  %v20311_v5 = vld [vmem:[#allocation44_spill] sm:$0xff] }
 0x480   : > { %v14695_v11 = vpop.f32.mrf.mxu1  ;;  %14994 = vmatmul.mubr.msk.f32.gmra.mxu1 %vm643_vm3, %v10113_v27  ;;  %v11145_v61 = vmax.f32 %v11081_v6, %v19094_v47  ;;  %v11082_v1 = vmax.f32 %v11018_v16, %v19089_v60  ;;  %v11083_v49 = vmax.f32 %v11019_v28, %v19143_v34  ;;  %v11020_v29 = vmax.f32 %v10955_v50, %v10988_v38  ;;  %v10990_v47 = vld [vmem:[#allocation3 + $0x1a0] sm:$0xff]  ;;  %v10117_v34 = vld [vmem:[#allocation2 + $0x18c] sm:$0xff] }
 0x481   : > { %v14745_v0 = vpop.f32.mrf.mxu0  ;;  %15044 = vmatmul.mubr.msk.f32.gmra.mxu0 %vm317_vm1, %v19059_v26  ;;  %v19168_v58 = vadd.f32 %v8442_v62, %v8142_v10  ;;  %v8145_v54 = vadd.f32 %v14695_v11, %v20309_v42  ;;  %14996 = vmatprep.mubr.msk.f32.mxu1 %vm643_vm3, %v10114_v2  ;;  %v10989_v26 = vld [vmem:[#allocation3 + $0x198] sm:$0xff]  ;;  %v10957_v51 = vmax.f32 %v10893_v52, %v11116_v41  ;;  %v20313_v28 = vld [vmem:[#allocation45_spill] sm:$0xff] }
 0x482   : > { %15046 = vmatprep.mubr.msk.f32.mxu0 %vm317_vm1, %v11141_v23  ;;  %v8065_v59 = vpop.f32.mrf.mxu1  ;;  %v10116_v23 = vld [vmem:[#allocation2 + $0x184] sm:$0xff]  ;;  %v11021_v60 = vmax.f32 %v10956_v48, %v10989_v26  ;;  %v11053_v62 = vld [vmem:[#allocation3 + $0x199] sm:$0xff]  ;;  %v11146_v38 = vmax.f32 %v11082_v1, %v19116_v39  ;;  %v11084_v11 = vmax.f32 %v11020_v29, %v19161_v63 }
 0x483   : > { %v8452_v17 = vpop.f32.mrf.mxu0  ;;  %v19174_v31 = vadd.f32 %v14745_v0, %v8145_v54  ;;  %v8144_v13 = vadd.f32 %v8065_v59, %v20310_v18  ;;  %v10118_v16 = vld [vmem:[#allocation2 + $0x19c] sm:$0xff]  ;;  %v11022_v0 = vmax.f32 %v10957_v51, %v10990_v47  ;;  %v10120_v48 = vld [vmem:[#allocation2 + $0x1b4] sm:$0xff]  ;;  %v10119_v63 = vld [vmem:[#allocation2 + $0x1a4] sm:$0xff] }
 0x484   : > { %v14698_v36 = vpop.f32.mrf.mxu1  ;;  %14997 = vmatmul.mubr.msk.f32.gmra.mxu1 %vm643_vm3, %v10115_v25  ;;  %v11085_v39 = vmax.f32 %v11021_v60, %v11053_v62  ;;  %v11054_v52 = vld [vmem:[#allocation3 + $0x1a1] sm:$0xff] }
 0x485   : > { %v14748_v21 = vpop.f32.mrf.mxu0  ;;  %15047 = vmatmul.mubr.msk.f32.gmra.mxu0 %vm317_vm1, %v11142_v35  ;;  %v19182_v9 = vadd.f32 %v8452_v17, %v8144_v13  ;;  %v8147_v37 = vadd.f32 %v14698_v36, %v20311_v5  ;;  %14999 = vmatprep.mubr.msk.f32.mxu1 %vm643_vm3, %v10116_v23  ;;  %v20312_v35 = vld [vmem:[#allocation19_spill] sm:$0xff]  ;;  %v11117_v59 = vld [vmem:[#allocation3 + $0x19a] sm:$0xff]  ;;  %v11148_v13 = vmax.f32 %v11084_v11, %v11116_v41  ;;  %v20315_v1 = vld [vmem:[#allocation46_spill] sm:$0xff] }
 0x486   : > { %15049 = vmatprep.mubr.msk.f32.mxu0 %vm317_vm1, %v11143_v33  ;;  %v8075_v3 = vpop.f32.mrf.mxu1  ;;  %v11147_v33 = vmax.f32 %v11083_v49, %v11115_v4  ;;  %v20314_v4 = vld [vmem:[#allocation20_spill] sm:$0xff]  ;;  %v11086_v25 = vmax.f32 %v11022_v0, %v11054_v52  ;;  %v11149_v23 = vmax.f32 %v11085_v39, %v11117_v59  ;;  %v11118_v49 = vld [vmem:[#allocation3 + $0x1a2] sm:$0xff]  ;;  %v10122_v5 = vld [vmem:[#allocation2 + $0x1cc] sm:$0xff] }
 0x487   : > { %v8462_v32 = vpop.f32.mrf.mxu0  ;;  %v19187_v56 = vadd.f32 %v14748_v21, %v8147_v37  ;;  %v8146_v10 = vadd.f32 %v8075_v3, %v20312_v35  ;;  %v10121_v21 = vld [vmem:[#allocation2 + $0x1bc] sm:$0xff] }
 0x488   : > { %v14701_v27 = vpop.f32.mrf.mxu1  ;;  %15000 = vmatmul.mubr.msk.f32.gmra.mxu1 %vm643_vm3, %v10117_v34  ;;  %v20316_v60 = vld [vmem:[#allocation21_spill] sm:$0xff] }
 0x489   : > { %v14751_v6 = vpop.f32.mrf.mxu0  ;;  %15050 = vmatmul.mubr.msk.f32.gmra.mxu0 %vm317_vm1, %v11144_v15  ;;  %v19194_v2 = vadd.f32 %v8462_v32, %v8146_v10  ;;  %v8149_v50 = vadd.f32 %v14701_v27, %v20313_v28  ;;  %15002 = vmatprep.mubr.msk.f32.mxu1 %vm643_vm3, %v10118_v16  ;;  %v11150_v32 = vmax.f32 %v11086_v25, %v11118_v49  ;;  %v10123_v10 = vld [vmem:[#allocation2 + $0x1d4] sm:$0xff] }
 0x48a   : > { %15052 = vmatprep.mubr.msk.f32.mxu0 %vm317_vm1, %v11145_v61  ;;  %v8085_v42 = vpop.f32.mrf.mxu1 }
 0x48b   : > { %v8472_v54 = vpop.f32.mrf.mxu0  ;;  %v19199_v17 = vadd.f32 %v14751_v6, %v8149_v50  ;;  %v8148_v15 = vadd.f32 %v8085_v42, %v20314_v4  ;;  %v20317_v6 = vld [vmem:[#allocation22_spill] sm:$0xff] }
 0x48c   : > { %v14704_v26 = vpop.f32.mrf.mxu1  ;;  %15003 = vmatmul.mubr.msk.f32.gmra.mxu1 %vm643_vm3, %v10119_v63 }
 0x48d   : > { %v14754_v18 = vpop.f32.mrf.mxu0  ;;  %15053 = vmatmul.mubr.msk.f32.gmra.mxu0 %vm317_vm1, %v11146_v38  ;;  %v19204_v61 = vadd.f32 %v8472_v54, %v8148_v15  ;;  %v8151_v36 = vadd.f32 %v14704_v26, %v20315_v1  ;;  %15005 = vmatprep.mubr.msk.f32.mxu1 %vm643_vm3, %v10120_v48 }
 0x48e   : > { %15055 = vmatprep.mubr.msk.f32.mxu0 %vm317_vm1, %v11147_v33  ;;  %v8095_v29 = vpop.f32.mrf.mxu1 }
 0x48f   : > { %v8482_v51 = vpop.f32.mrf.mxu0  ;;  %v19209_v37 = vadd.f32 %v14754_v18, %v8151_v36  ;;  %v8150_v47 = vadd.f32 %v8095_v29, %v20316_v60 }
 0x490   : > { %v14707_v41 = vpop.f32.mrf.mxu1  ;;  %15006 = vmatmul.mubr.msk.f32.gmra.mxu1 %vm643_vm3, %v10121_v21 }
 0x491   : > { %v14757_v3 = vpop.f32.mrf.mxu0  ;;  %15056 = vmatmul.mubr.msk.f32.gmra.mxu0 %vm317_vm1, %v11148_v13  ;;  %v19214_v62 = vadd.f32 %v8482_v51, %v8150_v47  ;;  %v8153_v35 = vadd.f32 %v14707_v41, %v18825_v44  ;;  %15008 = vmatprep.mubr.msk.f32.mxu1 %vm643_vm3, %v10122_v5 }
 0x492   : > { %15058 = vmatprep.mubr.msk.f32.mxu0 %vm317_vm1, %v11149_v23  ;;  %v8105_v34 = vpop.f32.mrf.mxu1 }
 0x493   : > { %v8492_v38 = vpop.f32.mrf.mxu0  ;;  %v19219_v27 = vadd.f32 %v14757_v3, %v8153_v35  ;;  %v8152_v16 = vadd.f32 %v8105_v34, %v20317_v6  ;;  %v20318_v6 = vld [vmem:[#allocation23_spill] sm:$0xff] }
 0x494   : > { %v14710_v33 = vpop.f32.mrf.mxu1  ;;  %15009 = vmatmul.mubr.msk.f32.gmra.mxu1 %vm643_vm3, %v10123_v10 }
 0x495   : > { %v14760_v11 = vpop.f32.mrf.mxu0  ;;  %15059 = vmatmul.mubr.msk.f32.gmra.mxu0 %vm317_vm1, %v11150_v32  ;;  %v19224_v0 = vadd.f32 %v8492_v38, %v8152_v16  ;;  %v8155_v44 = vadd.f32 %v14710_v33, %v18855_v8 }
 0x496   : > { %v8115_v28 = vpop.f32.mrf.mxu1 }
 0x497   : > { %v8502_v50 = vpop.f32.mrf.mxu0  ;;  %v19227_v39 = vadd.f32 %v14760_v11, %v8155_v44  ;;  %v8154_v52 = vadd.f32 %v8115_v28, %v18870_v24  ;;  %v20319_v44 = vld [vmem:[#allocation27_spill] sm:$0xff] }
 0x498   : > { %v14765_v42 = vpop.f32.mrf.mxu1 }
 0x499   : > { %v14815_v54 = vpop.f32.mrf.mxu0  ;;  %v19230_v48 = vadd.f32 %v8502_v50, %v8154_v52  ;;  %v8900_v59 = vadd.f32 %v14765_v42, %v18883_v55  ;;  %v20320_v42 = vld [vmem:[#allocation25_spill] sm:$0xff] }
 0x49a   : > { %v8740_v4 = vpop.f32.mrf.mxu1 }
 0x49b   : > { %v9127_v15 = vpop.f32.mrf.mxu0  ;;  %v19233_v63 = vadd.f32 %v14815_v54, %v8900_v59  ;;  %v8899_v26 = vadd.f32 %v8740_v4, %v18898_v12 }
 0x49c   : > { %v14768_v18 = vpop.f32.mrf.mxu1 }
 0x49d   : > { %v14818_v8 = vpop.f32.mrf.mxu0  ;;  %v19236_v13 = vadd.f32 %v9127_v15, %v8899_v26  ;;  %v8902_v25 = vadd.f32 %v14768_v18, %v18914_v43  ;;  %v20321_v15 = vld [vmem:[#allocation26_spill] sm:$0xff] }
 0x49e   : > { %v8750_v1 = vpop.f32.mrf.mxu1 }
 0x49f   : > { %v9137_v24 = vpop.f32.mrf.mxu0  ;;  %v19239_v36 = vadd.f32 %v14818_v8, %v8902_v25  ;;  %v8901_v21 = vadd.f32 %v8750_v1, %v18927_v7 }
 0x4a0   : > { %v14771_v23 = vpop.f32.mrf.mxu1 }
 0x4a1   : > { %v14821_v55 = vpop.f32.mrf.mxu0  ;;  %v19242_v49 = vadd.f32 %v9137_v24, %v8901_v21  ;;  %v8904_v29 = vadd.f32 %v14771_v23, %v18941_v46 }
 0x4a2   : > { %v8760_v51 = vpop.f32.mrf.mxu1 }
 0x4a3   : > { %v9147_v12 = vpop.f32.mrf.mxu0  ;;  %v19245_v5 = vadd.f32 %v14821_v55, %v8904_v29  ;;  %v8903_v60 = vadd.f32 %v8760_v51, %v18956_v20  ;;  %v20322_v55 = vld [vmem:[#allocation24_spill] sm:$0xff] }
 0x4a4   : > { %v14774_v47 = vpop.f32.mrf.mxu1 }
 0x4a5   : > { %v14824_v43 = vpop.f32.mrf.mxu0  ;;  %v19248_v41 = vadd.f32 %v9147_v12, %v8903_v60  ;;  %v8906_v3 = vadd.f32 %v14774_v47, %v18976_v14 }
 0x4a6   : > { %v8770_v32 = vpop.f32.mrf.mxu1 }
 0x4a7   : > { %v9157_v7 = vpop.f32.mrf.mxu0  ;;  %v19251_v35 = vadd.f32 %v14824_v43, %v8906_v3  ;;  %v8905_v10 = vadd.f32 %v8770_v32, %v18991_v40 }
 0x4a8   : > { %v14777_v34 = vpop.f32.mrf.mxu1 }
 0x4a9   : > { %v14827_v46 = vpop.f32.mrf.mxu0  ;;  %v19254_v38 = vadd.f32 %v9157_v7, %v8905_v10  ;;  %v8908_v16 = vadd.f32 %v14777_v34, %v20318_v6 }
 0x4aa   : > { %v8780_v33 = vpop.f32.mrf.mxu1 }
 0x4ab   : > { %v9167_v20 = vpop.f32.mrf.mxu0  ;;  %v19257_v11 = vadd.f32 %v14827_v46, %v8908_v16  ;;  %v8907_v28 = vadd.f32 %v8780_v33, %v20319_v44 }
 0x4ac   : > { %v14780_v50 = vpop.f32.mrf.mxu1 }
 0x4ad   : > { %v14830_v14 = vpop.f32.mrf.mxu0  ;;  %v19260_v52 = vadd.f32 %v9167_v20, %v8907_v28  ;;  %v8910_v54 = vadd.f32 %v14780_v50, %v20320_v42 }
 0x4ae   : > { %v8790_v59 = vpop.f32.mrf.mxu1 }
 0x4af   : > { %v9177_v40 = vpop.f32.mrf.mxu0  ;;  %v19263_v4 = vadd.f32 %v14830_v14, %v8910_v54  ;;  %v8909_v26 = vadd.f32 %v8790_v59, %v20321_v15 }
 0x4b0   : > { %v14783_v18 = vpop.f32.mrf.mxu1 }
 0x4b1   : > { %v14833_v8 = vpop.f32.mrf.mxu0  ;;  %v19266_v25 = vadd.f32 %v9177_v40, %v8909_v26  ;;  %v8912_v1 = vadd.f32 %v14783_v18, %v19080_v45 }
 0x4b2   : > { %v8800_v24 = vpop.f32.mrf.mxu1 }
 0x4b3   : > { %v9187_v21 = vpop.f32.mrf.mxu0  ;;  %v19269_v23 = vadd.f32 %v14833_v8, %v8912_v1  ;;  %v8911_v29 = vadd.f32 %v8800_v24, %v20322_v55 }
 0x4b4   : > { %v14786_v51 = vpop.f32.mrf.mxu1 }
 0x4b5   : > { %v14836_v12 = vpop.f32.mrf.mxu0  ;;  %v19272_v60 = vadd.f32 %v9187_v21, %v8911_v29  ;;  %v8914_v47 = vadd.f32 %v14786_v51, %v19111_v19 }
 0x4b6   : > { %v8810_v43 = vpop.f32.mrf.mxu1 }
 0x4b7   : > { %v9197_v3 = vpop.f32.mrf.mxu0  ;;  %v19275_v32 = vadd.f32 %v14836_v12, %v8914_v47  ;;  %v8913_v7 = vadd.f32 %v8810_v43, %v19124_v30 }
 0x4b8   : > { %v14789_v10 = vpop.f32.mrf.mxu1 }
 0x4b9   : > { %v14839_v45 = vpop.f32.mrf.mxu0  ;;  %v19278_v34 = vadd.f32 %v9197_v3, %v8913_v7  ;;  %v8916_v46 = vadd.f32 %v14789_v10, %v19134_v53 }
 0x4ba   : > { %v8820_v6 = vpop.f32.mrf.mxu1 }
 0x4bb   : > { %v9207_v16 = vpop.f32.mrf.mxu0  ;;  %v19281_v33 = vadd.f32 %v14839_v45, %v8916_v46  ;;  %v8915_v20 = vadd.f32 %v8820_v6, %v19146_v22 }
 0x4bc   : > { %v14792_v44 = vpop.f32.mrf.mxu1 }
 0x4bd   : > { %v14842_v19 = vpop.f32.mrf.mxu0  ;;  %v19284_v28 = vadd.f32 %v9207_v16, %v8915_v20  ;;  %v8918_v50 = vadd.f32 %v14792_v44, %v19156_v57 }
 0x4be   : > { %v8830_v14 = vpop.f32.mrf.mxu1 }
 0x4bf   : > { %v9217_v30 = vpop.f32.mrf.mxu0  ;;  %v19287_v42 = vadd.f32 %v14842_v19, %v8918_v50  ;;  %v8917_v54 = vadd.f32 %v8830_v14, %v19168_v58 }
 0x4c0   : > { %v14795_v59 = vpop.f32.mrf.mxu1 }
 0x4c1   : > { %v14845_v53 = vpop.f32.mrf.mxu0  ;;  %v19290_v40 = vadd.f32 %v9217_v30, %v8917_v54  ;;  %v8920_v15 = vadd.f32 %v14795_v59, %v19174_v31 }
 0x4c2   : > { %v8840_v26 = vpop.f32.mrf.mxu1 }
 0x4c3   : > { %v9227_v22 = vpop.f32.mrf.mxu0  ;;  %v19293_v18 = vadd.f32 %v14845_v53, %v8920_v15  ;;  %v8919_v8 = vadd.f32 %v8840_v26, %v19182_v9 }
 0x4c4   : > { %v14798_v1 = vpop.f32.mrf.mxu1 }
 0x4c5   : > { %v14848_v57 = vpop.f32.mrf.mxu0  ;;  %v19296_v24 = vadd.f32 %v9227_v22, %v8919_v8  ;;  %v8922_v21 = vadd.f32 %v14798_v1, %v19187_v56 }
 0x4c6   : > { %v8850_v55 = vpop.f32.mrf.mxu1 }
 0x4c7   : > { %v9237_v58 = vpop.f32.mrf.mxu0  ;;  %v19299_v29 = vadd.f32 %v14848_v57, %v8922_v21  ;;  %v8921_v51 = vadd.f32 %v8850_v55, %v19194_v2 }
 0x4c8   : > { %v14801_v12 = vpop.f32.mrf.mxu1 }
 0x4c9   : > { %v14851_v31 = vpop.f32.mrf.mxu0  ;;  %v19302_v47 = vadd.f32 %v9237_v58, %v8921_v51  ;;  %v8924_v43 = vadd.f32 %v14801_v12, %v19199_v17 }
 0x4ca   : > { %v8860_v3 = vpop.f32.mrf.mxu1 }
 0x4cb   : > { %v9247_v9 = vpop.f32.mrf.mxu0  ;;  %v19305_v7 = vadd.f32 %v14851_v31, %v8924_v43  ;;  %v8923_v10 = vadd.f32 %v8860_v3, %v19204_v61 }
 0x4cc   : > { %v14804_v45 = vpop.f32.mrf.mxu1 }
 0x4cd   : > { %v14854_v56 = vpop.f32.mrf.mxu0  ;;  %v19308_v46 = vadd.f32 %v9247_v9, %v8923_v10  ;;  %v8926_v6 = vadd.f32 %v14804_v45, %v19209_v37 }
 0x4ce   : > { %v8870_v16 = vpop.f32.mrf.mxu1 }
 0x4cf   : > { %v9257_v2 = vpop.f32.mrf.mxu0  ;;  %v19311_v20 = vadd.f32 %v14854_v56, %v8926_v6  ;;  %v8925_v44 = vadd.f32 %v8870_v16, %v19214_v62 }
 0x4d0   : > { %v14807_v19 = vpop.f32.mrf.mxu1 }
 0x4d1   : > { %v14857_v17 = vpop.f32.mrf.mxu0  ;;  %v19314_v50 = vadd.f32 %v9257_v2, %v8925_v44  ;;  %v8928_v14 = vadd.f32 %v14807_v19, %v19219_v27 }
 0x4d2   : > { %v8880_v30 = vpop.f32.mrf.mxu1 }
 0x4d3   : > { %v9267_v61 = vpop.f32.mrf.mxu0  ;;  %v19317_v54 = vadd.f32 %v14857_v17, %v8928_v14  ;;  %v8927_v59 = vadd.f32 %v8880_v30, %v19224_v0 }
 0x4d4   : > { %v14810_v53 = vpop.f32.mrf.mxu1 }
 0x4d5   : > { %v14860_v37 = vpop.f32.mrf.mxu0  ;;  %v19320_v15 = vadd.f32 %v9267_v61, %v8927_v59  ;;  %v8930_v26 = vadd.f32 %v14810_v53, %v19227_v39 }
 0x4d6   : > { %v8890_v22 = vpop.f32.mrf.mxu1 }
 0x4d7   : > { %v9277_v62 = vpop.f32.mrf.mxu0  ;;  %v19323_v8 = vadd.f32 %v14860_v37, %v8930_v26  ;;  %v8929_v1 = vadd.f32 %v8890_v22, %v19230_v48 }
 0x4d8   : > { %v14865_v57 = vpop.f32.mrf.mxu1 }
 0x4d9   : > { %v14915_v27 = vpop.f32.mrf.mxu0  ;;  %v19326_v21 = vadd.f32 %v9277_v62, %v8929_v1  ;;  %v9674_v55 = vadd.f32 %v14865_v57, %v19233_v63 }
 0x4da   : > { %v9514_v58 = vpop.f32.mrf.mxu1 }
 0x4db   : > { %v9901_v0 = vpop.f32.mrf.mxu0  ;;  %v19329_v51 = vadd.f32 %v14915_v27, %v9674_v55  ;;  %v9673_v12 = vadd.f32 %v9514_v58, %v19236_v13 }
 0x4dc   : > { %v14868_v31 = vpop.f32.mrf.mxu1 }
 0x4dd   : > { %v14918_v39 = vpop.f32.mrf.mxu0  ;;  %v19332_v43 = vadd.f32 %v9901_v0, %v9673_v12  ;;  %v9676_v3 = vadd.f32 %v14868_v31, %v19239_v36 }
 0x4de   : > { %v9524_v9 = vpop.f32.mrf.mxu1 }
 0x4df   : > { %v9911_v48 = vpop.f32.mrf.mxu0  ;;  %v19335_v10 = vadd.f32 %v14918_v39, %v9676_v3  ;;  %v9675_v45 = vadd.f32 %v9524_v9, %v19242_v49 }
 0x4e0   : > { %v14871_v56 = vpop.f32.mrf.mxu1 }
 0x4e1   : > { %v14921_v63 = vpop.f32.mrf.mxu0  ;;  %v19338_v6 = vadd.f32 %v9911_v48, %v9675_v45  ;;  %v9678_v16 = vadd.f32 %v14871_v56, %v19245_v5 }
 0x4e2   : > { %v9534_v2 = vpop.f32.mrf.mxu1 }
 0x4e3   : > { %v9921_v13 = vpop.f32.mrf.mxu0  ;;  %v19341_v44 = vadd.f32 %v14921_v63, %v9678_v16  ;;  %v9677_v19 = vadd.f32 %v9534_v2, %v19248_v41 }
 0x4e4   : > { %v14874_v17 = vpop.f32.mrf.mxu1 }
 0x4e5   : > { %v14924_v36 = vpop.f32.mrf.mxu0  ;;  %v19344_v14 = vadd.f32 %v9921_v13, %v9677_v19  ;;  %v9680_v30 = vadd.f32 %v14874_v17, %v19251_v35 }
 0x4e6   : > { %v9544_v61 = vpop.f32.mrf.mxu1 }
 0x4e7   : > { %v9931_v49 = vpop.f32.mrf.mxu0  ;;  %v19347_v59 = vadd.f32 %v14924_v36, %v9680_v30  ;;  %v9679_v53 = vadd.f32 %v9544_v61, %v19254_v38 }
 0x4e8   : > { %v14877_v37 = vpop.f32.mrf.mxu1 }
 0x4e9   : > { %v14927_v5 = vpop.f32.mrf.mxu0  ;;  %v19350_v26 = vadd.f32 %v9931_v49, %v9679_v53  ;;  %v9682_v22 = vadd.f32 %v14877_v37, %v19257_v11 }
 0x4ea   : > { %v9554_v62 = vpop.f32.mrf.mxu1 }
 0x4eb   : > { %v9941_v41 = vpop.f32.mrf.mxu0  ;;  %v19353_v1 = vadd.f32 %v14927_v5, %v9682_v22  ;;  %v9681_v57 = vadd.f32 %v9554_v62, %v19260_v52 }
 0x4ec   : > { %v14880_v27 = vpop.f32.mrf.mxu1 }
 0x4ed   : > { %v14930_v35 = vpop.f32.mrf.mxu0  ;;  %v19356_v55 = vadd.f32 %v9941_v41, %v9681_v57  ;;  %v9684_v58 = vadd.f32 %v14880_v27, %v19263_v4 }
 0x4ee   : > { %v9564_v0 = vpop.f32.mrf.mxu1 }
 0x4ef   : > { %v9951_v38 = vpop.f32.mrf.mxu0  ;;  %v19359_v12 = vadd.f32 %v14930_v35, %v9684_v58  ;;  %v9683_v31 = vadd.f32 %v9564_v0, %v19266_v25 }
 0x4f0   : > { %v14883_v39 = vpop.f32.mrf.mxu1 }
 0x4f1   : > { %v14933_v11 = vpop.f32.mrf.mxu0  ;;  %v19362_v3 = vadd.f32 %v9951_v38, %v9683_v31  ;;  %v9686_v9 = vadd.f32 %v14883_v39, %v19269_v23 }
 0x4f2   : > { %v9574_v48 = vpop.f32.mrf.mxu1 }
 0x4f3   : > { %v9961_v52 = vpop.f32.mrf.mxu0  ;;  %v19365_v45 = vadd.f32 %v14933_v11, %v9686_v9  ;;  %v9685_v56 = vadd.f32 %v9574_v48, %v19272_v60 }
 0x4f4   : > { %v14886_v63 = vpop.f32.mrf.mxu1 }
 0x4f5   : > { %v14936_v4 = vpop.f32.mrf.mxu0  ;;  %v19368_v16 = vadd.f32 %v9961_v52, %v9685_v56  ;;  %v9688_v2 = vadd.f32 %v14886_v63, %v19275_v32 }
 0x4f6   : > { %v9584_v13 = vpop.f32.mrf.mxu1 }
 0x4f7   : > { %v9971_v25 = vpop.f32.mrf.mxu0  ;;  %v19371_v19 = vadd.f32 %v14936_v4, %v9688_v2  ;;  %v9687_v17 = vadd.f32 %v9584_v13, %v19278_v34 }
 0x4f8   : > { %v14889_v36 = vpop.f32.mrf.mxu1 }
 0x4f9   : > { %v14939_v23 = vpop.f32.mrf.mxu0  ;;  %v19374_v30 = vadd.f32 %v9971_v25, %v9687_v17  ;;  %v9690_v61 = vadd.f32 %v14889_v36, %v19281_v33 }
 0x4fa   : > { %v9594_v49 = vpop.f32.mrf.mxu1 }
 0x4fb   : > { %v9981_v60 = vpop.f32.mrf.mxu0  ;;  %v19377_v53 = vadd.f32 %v14939_v23, %v9690_v61  ;;  %v9689_v37 = vadd.f32 %v9594_v49, %v19284_v28 }
 0x4fc   : > { %v14892_v5 = vpop.f32.mrf.mxu1 }
 0x4fd   : > { %v14942_v32 = vpop.f32.mrf.mxu0  ;;  %v19380_v22 = vadd.f32 %v9981_v60, %v9689_v37  ;;  %v9692_v62 = vadd.f32 %v14892_v5, %v19287_v42 }
 0x4fe   : > { %v9604_v41 = vpop.f32.mrf.mxu1 }
 0x4ff   : > { %v9991_v34 = vpop.f32.mrf.mxu0  ;;  %v19383_v57 = vadd.f32 %v14942_v32, %v9692_v62  ;;  %v9691_v27 = vadd.f32 %v9604_v41, %v19290_v40 }
 0x500   : > { %v14895_v35 = vpop.f32.mrf.mxu1 }
 0x501   : > { %v14945_v33 = vpop.f32.mrf.mxu0  ;;  %v19386_v58 = vadd.f32 %v9991_v34, %v9691_v27  ;;  %v9694_v0 = vadd.f32 %v14895_v35, %v19293_v18 }
 0x502   : > { %v9614_v38 = vpop.f32.mrf.mxu1 }
 0x503   : > { %v10001_v28 = vpop.f32.mrf.mxu0  ;;  %v19389_v31 = vadd.f32 %v14945_v33, %v9694_v0  ;;  %v9693_v39 = vadd.f32 %v9614_v38, %v19296_v24 }
 0x504   : > { %v14898_v11 = vpop.f32.mrf.mxu1 }
 0x505   : > { %v14948_v42 = vpop.f32.mrf.mxu0  ;;  %v19392_v9 = vadd.f32 %v10001_v28, %v9693_v39  ;;  %v9696_v48 = vadd.f32 %v14898_v11, %v19299_v29  ;;  %v19422_v39 = vld [vmem:[%s19840_s6] ss:$0 sm:$0xff] }
 0x506   : > { %v9624_v52 = vpop.f32.mrf.mxu1 }
 0x507   : > { %v10011_v40 = vpop.f32.mrf.mxu0  ;;  %v19395_v56 = vadd.f32 %v14948_v42, %v9696_v48  ;;  %v9695_v63 = vadd.f32 %v9624_v52, %v19302_v47 }
 0x508   : > { %v14901_v4 = vpop.f32.mrf.mxu1 }
 0x509   : > { %v14951_v18 = vpop.f32.mrf.mxu0  ;;  %v19398_v2 = vadd.f32 %v10011_v40, %v9695_v63  ;;  %v9698_v13 = vadd.f32 %v14901_v4, %v19305_v7 }
 0x50a   : > { %v9634_v25 = vpop.f32.mrf.mxu1 }
 0x50b   : > { %v10021_v24 = vpop.f32.mrf.mxu0  ;;  %v19401_v17 = vadd.f32 %v14951_v18, %v9698_v13  ;;  %v9697_v36 = vadd.f32 %v9634_v25, %v19308_v46 }
 0x50c   : > { %v14904_v23 = vpop.f32.mrf.mxu1 }
 0x50d   : > { %v14954_v29 = vpop.f32.mrf.mxu0  ;;  %v19404_v61 = vadd.f32 %v10021_v24, %v9697_v36  ;;  %v9700_v49 = vadd.f32 %v14904_v23, %v19311_v20 }
 0x50e   : > { %v9644_v60 = vpop.f32.mrf.mxu1 }
 0x50f   : > { %v10031_v47 = vpop.f32.mrf.mxu0  ;;  %v19407_v37 = vadd.f32 %v14954_v29, %v9700_v49  ;;  %v9699_v5 = vadd.f32 %v9644_v60, %v19314_v50 }
 0x510   : > { %v14907_v32 = vpop.f32.mrf.mxu1 }
 0x511   : > { %v14957_v7 = vpop.f32.mrf.mxu0  ;;  %v19410_v62 = vadd.f32 %v10031_v47, %v9699_v5  ;;  %v9702_v41 = vadd.f32 %v14907_v32, %v19317_v54 }
 0x512   : > { %v9654_v34 = vpop.f32.mrf.mxu1 }
 0x513   : > { %v10041_v46 = vpop.f32.mrf.mxu0  ;;  %v19413_v27 = vadd.f32 %v14957_v7, %v9702_v41  ;;  %v9701_v35 = vadd.f32 %v9654_v34, %v19320_v15 }
 0x514   : > { %v14910_v33 = vpop.f32.mrf.mxu1 }
 0x515   : > { %v14960_v20 = vpop.f32.mrf.mxu0  ;;  %v19416_v0 = vadd.f32 %v10041_v46, %v9701_v35  ;;  %v9704_v38 = vadd.f32 %v14910_v33, %v19323_v8  ;;  %v19434_v8 = vld [vmem:[%s19838_s4] ss:$0 sm:$0xff] }
 0x516   : > { %v9664_v28 = vpop.f32.mrf.mxu1 }
 0x517   : > { %v10051_v50 = vpop.f32.mrf.mxu0  ;;  %v19424_v54 = vadd.f32 %v14960_v20, %v9704_v38  ;;  %v9703_v11 = vadd.f32 %v9664_v28, %v19326_v21 }
 0x518   : > { %v14965_v42 = vpop.f32.mrf.mxu1 }
 0x519   : > { %v15015_v48 = vpop.f32.mrf.mxu0  ;;  %v19427_v15 = vadd.f32 %v10051_v50, %v9703_v11  ;;  %v10448_v52 = vadd.f32 %v14965_v42, %v19329_v51 }
 0x51a   : > { %v11330_v40 = vadd.f32 %v15015_v48, %v19422_v39  ;;  %v10288_v63 = vpop.f32.mrf.mxu1 }
 0x51b   : > { %v11324_v4 = vpop.f32.mrf.mxu0  ;;  %v10447_v18 = vadd.f32 %v10288_v63, %v19332_v43  ;;  %v10487_v51 = vadd.f32 %v19434_v8, %v10448_v52 }
 0x51c   : > { %v11325_v13 = vadd.f32 %v19422_v39, %v11324_v4  ;;  %11710 = vrot.lane.b32.xlu1 %v11330_v40, %s15192_s20  ;;  %v14968_v21 = vpop.f32.mrf.mxu1 }
 0x51d   : > { %v15018_v25 = vpop.f32.mrf.mxu0  ;;  %v10486_v36 = vadd.f32 %v19434_v8, %v10447_v18  ;;  %v10450_v49 = vadd.f32 %v14968_v21, %v19335_v10 }
 0x51e   : > { %11708 = vrot.lane.b32.xlu0 %v11325_v13, %s15192_s20  ;;  %v10298_v24 = vpop.f32.mrf.mxu1  ;;  %v11340_v23 = vadd.f32 %v15018_v25, %v19422_v39 }
 0x51f   : > { %v11334_v29 = vpop.f32.mrf.mxu0  ;;  %v10449_v47 = vadd.f32 %v10298_v24, %v19338_v6  ;;  %v10489_v41 = vadd.f32 %v19434_v8, %v10450_v49 }
 0x520   : > { %11549 = vrot.lane.b32.xlu1 %v10487_v51, %s15193_s21  ;;  %v14971_v43 = vpop.f32.mrf.mxu1  ;;  %v11335_v5 = vadd.f32 %v19422_v39, %v11334_v29 }
 0x521   : > { %v15021_v7 = vpop.f32.mrf.mxu0  ;;  %v10488_v46 = vadd.f32 %v19434_v8, %v10449_v47  ;;  %v10452_v6 = vadd.f32 %v14971_v43, %v19341_v44 }
 0x522   : > { %11547 = vrot.lane.b32.xlu0 %v10486_v36, %s15193_s21  ;;  %v10308_v60 = vpop.f32.mrf.mxu1  ;;  %v11350_v10 = vadd.f32 %v15021_v7, %v19422_v39 }
 0x523   : > { %v11344_v33 = vpop.f32.mrf.mxu0  ;;  %v10451_v38 = vadd.f32 %v10308_v60, %v19344_v14  ;;  %v10491_v42 = vadd.f32 %v19434_v8, %v10452_v6 }
 0x524   : > { %11714 = vrot.lane.b32.xlu1 %v11340_v23, %s15192_s20  ;;  %v14974_v32 = vpop.f32.mrf.mxu1  ;;  %v11345_v28 = vadd.f32 %v19422_v39, %v11344_v33 }
 0x525   : > { %v15024_v11 = vpop.f32.mrf.mxu0  ;;  %v10490_v52 = vadd.f32 %v19434_v8, %v10451_v38  ;;  %v10454_v63 = vadd.f32 %v14974_v32, %v19347_v59 }
 0x526   : > { %11712 = vrot.lane.b32.xlu0 %v11335_v5, %s15192_s20  ;;  %v10318_v34 = vpop.f32.mrf.mxu1  ;;  %v11360_v44 = vadd.f32 %v15024_v11, %v19422_v39 }
 0x527   : > { %v11354_v14 = vpop.f32.mrf.mxu0  ;;  %v10453_v18 = vadd.f32 %v10318_v34, %v19350_v26  ;;  %v10493_v51 = vadd.f32 %v19434_v8, %v10454_v63 }
 0x528   : > { %11553 = vrot.lane.b32.xlu1 %v10489_v41, %s15193_s21  ;;  %v14977_v35 = vpop.f32.mrf.mxu1  ;;  %v11355_v13 = vadd.f32 %v19422_v39, %v11354_v14 }
 0x529   : > { %v15027_v25 = vpop.f32.mrf.mxu0  ;;  %v10492_v59 = vadd.f32 %v19434_v8, %v10453_v18  ;;  %v10456_v43 = vadd.f32 %v14977_v35, %v19353_v1 }
 0x52a   : > { %11551 = vrot.lane.b32.xlu0 %v10488_v46, %s15193_s21  ;;  %v10328_v20 = vpop.f32.mrf.mxu1  ;;  %v11370_v36 = vadd.f32 %v15027_v25, %v19422_v39 }
 0x52b   : > { %v11364_v23 = vpop.f32.mrf.mxu0  ;;  %v10455_v60 = vadd.f32 %v10328_v20, %v19356_v55  ;;  %v10495_v1 = vadd.f32 %v19434_v8, %v10456_v43 }
 0x52c   : > { %11718 = vrot.lane.b32.xlu1 %v11350_v10, %s15192_s20  ;;  %v14980_v50 = vpop.f32.mrf.mxu1  ;;  %v11365_v5 = vadd.f32 %v19422_v39, %v11364_v23 }
 0x52d   : > { %v15030_v41 = vpop.f32.mrf.mxu0  ;;  %v10494_v46 = vadd.f32 %v19434_v8, %v10455_v60  ;;  %v10458_v20 = vadd.f32 %v14980_v50, %v19359_v12 }
 0x52e   : > { %11716 = vrot.lane.b32.xlu0 %v11345_v28, %s15192_s20  ;;  %v10338_v48 = vpop.f32.mrf.mxu1  ;;  %v11380_v35 = vadd.f32 %v15030_v41, %v19422_v39 }
 0x52f   : > { %v11374_v6 = vpop.f32.mrf.mxu0  ;;  %v10457_v11 = vadd.f32 %v10338_v48, %v19362_v3 }
 0x530   : > { %11557 = vrot.lane.b32.xlu1 %v10491_v42, %s15193_s21  ;;  %v19464_v40 = vpop.f32.mrf.mxu1  ;;  %v11375_v42 = vadd.f32 %v19422_v39, %v11374_v6 }
 0x531   : > { %v15033_v50 = vpop.f32.mrf.mxu0  ;;  %v10496_v48 = vadd.f32 %v19434_v8, %v10457_v11 }
 0x532   : > { %11555 = vrot.lane.b32.xlu0 %v10490_v52, %s15193_s21  ;;  %v19468_v4 = vpop.f32.mrf.mxu1  ;;  %v11390_v18 = vadd.f32 %v15033_v50, %v19422_v39 }
 0x533   : > { %v11384_v25 = vpop.f32.mrf.mxu0 }
 0x534   : > { %11722 = vrot.lane.b32.xlu1 %v11360_v44, %s15192_s20  ;;  %v19473_v21 = vpop.f32.mrf.mxu1  ;;  %v10497_v44 = vadd.f32 %v19434_v8, %v10458_v20  ;;  %v11385_v23 = vadd.f32 %v19422_v39, %v11384_v25 }
 0x535   : > { %v10462_v41 = vadd.f32 %v19473_v21, %v19371_v19 }
 0x536   : > { %11720 = vrot.lane.b32.xlu0 %v11355_v13, %s15192_s20  ;;  %v19477_v24 = vpop.f32.mrf.mxu1 }
 0x538   : > { %11561 = vrot.lane.b32.xlu1 %v10493_v51, %s15193_s21  ;;  %v14989_v26 = vpop.f32.mrf.mxu1  ;;  %v10460_v51 = vadd.f32 %v19464_v40, %v19365_v45  ;;  %v15036_v40 = vpop.f32.mrf.mxu0 }
 0x539   : > { %v10464_v29 = vadd.f32 %v14989_v26, %v19377_v53 }
 0x53a   : > { %11559 = vrot.lane.b32.xlu0 %v10492_v59, %s15193_s21  ;;  %v10368_v49 = vpop.f32.mrf.mxu1 }
 0x53b   : > { %v19487_v47 = vadd.f32 %v19434_v8, %v10464_v29  ;;  %v10463_v32 = vadd.f32 %v10368_v49, %v19380_v22  ;;  %v10499_v29 = vadd.f32 %v19434_v8, %v10460_v51 }
 0x53c   : > { %11726 = vrot.lane.b32.xlu1 %v11370_v36, %s15192_s20  ;;  %v14992_v7 = vpop.f32.mrf.mxu1 }
 0x53d   : > { %v19494_v53 = vadd.f32 %v19434_v8, %v10463_v32  ;;  %v10466_v34 = vadd.f32 %v14992_v7, %v19383_v57  ;;  %v11394_v7 = vpop.f32.mrf.mxu0 }
 0x53e   : > { %11724 = vrot.lane.b32.xlu0 %v11365_v5, %s15192_s20  ;;  %v10378_v55 = vpop.f32.mrf.mxu1  ;;  %v11400_v5 = vadd.f32 %v15036_v40, %v19422_v39 }
 0x53f   : > { %v19500_v10 = vadd.f32 %v19434_v8, %v10466_v34  ;;  %v10465_v22 = vadd.f32 %v10378_v55, %v19386_v58  ;;  %v15039_v21 = vpop.f32.mrf.mxu0 }
 0x540   : > { %11565 = vrot.lane.b32.xlu1 %v10495_v1, %s15193_s21  ;;  %v14995_v33 = vpop.f32.mrf.mxu1  ;;  %v11410_v20 = vadd.f32 %v15039_v21, %v19422_v39 }
 0x541   : > { %v19507_v57 = vadd.f32 %v19434_v8, %v10465_v22  ;;  %v10468_v38 = vadd.f32 %v14995_v33, %v19389_v31 }
 0x542   : > { %11563 = vrot.lane.b32.xlu0 %v10494_v46, %s15193_s21  ;;  %v10388_v28 = vpop.f32.mrf.mxu1  ;;  %v11395_v46 = vadd.f32 %v19422_v39, %v11394_v7 }
 0x543   : > { %v19513_v58 = vadd.f32 %v19434_v8, %v10468_v38  ;;  %v10467_v52 = vadd.f32 %v10388_v28, %v19392_v9  ;;  %v11404_v38 = vpop.f32.mrf.mxu0 }
 0x544   : > { %11730 = vrot.lane.b32.xlu1 %v11380_v35, %s15192_s20  ;;  %v14998_v12 = vpop.f32.mrf.mxu1  ;;  %v10501_v35 = vadd.f32 %v19434_v8, %v10462_v41 }
 0x545   : > { %v19520_v31 = vadd.f32 %v19434_v8, %v10467_v52  ;;  %v10470_v14 = vadd.f32 %v14998_v12, %v19395_v56  ;;  %v15042_v11 = vpop.f32.mrf.mxu0 }
 0x546   : > { %11728 = vrot.lane.b32.xlu0 %v11375_v42, %s15192_s20  ;;  %v10398_v3 = vpop.f32.mrf.mxu1  ;;  %v11420_v42 = vadd.f32 %v15042_v11, %v19422_v39 }
 0x547   : > { %v19526_v63 = vadd.f32 %v19434_v8, %v10470_v14  ;;  %v10469_v9 = vadd.f32 %v10398_v3, %v19398_v2  ;;  %v10459_v2 = vadd.f32 %v19468_v4, %v19368_v16 }
 0x548   : > { %11569 = vrot.lane.b32.xlu1 %v10497_v44, %s15193_s21  ;;  %v15001_v13 = vpop.f32.mrf.mxu1 }
 0x549   : > { %v19534_v56 = vadd.f32 %v19434_v8, %v10469_v9  ;;  %v10472_v59 = vadd.f32 %v15001_v13, %v19401_v17  ;;  %v10498_v4 = vadd.f32 %v19434_v8, %v10459_v2 }
 0x54a   : > { %11567 = vrot.lane.b32.xlu0 %v10496_v48, %s15193_s21  ;;  %v10408_v36 = vpop.f32.mrf.mxu1 }
 0x54b   : > { %v19541_v26 = vadd.f32 %v19434_v8, %v10472_v59  ;;  %v10471_v43 = vadd.f32 %v10408_v36, %v19404_v61 }
 0x54c   : > { %11734 = vrot.lane.b32.xlu1 %v11390_v18, %s15192_s20  ;;  %v15004_v45 = vpop.f32.mrf.mxu1 }
 0x54d   : > { %v19548_v17 = vadd.f32 %v19434_v8, %v10471_v43  ;;  %v10474_v49 = vadd.f32 %v15004_v45, %v19407_v37 }
 0x54e   : > { %11732 = vrot.lane.b32.xlu0 %v11385_v23, %s15192_s20  ;;  %v10418_v16 = vpop.f32.mrf.mxu1 }
 0x54f   : > { %v19554_v60 = vadd.f32 %v19434_v8, %v10474_v49  ;;  %v10473_v61 = vadd.f32 %v10418_v16, %v19410_v62  ;;  %v10461_v62 = vadd.f32 %v19477_v24, %v19374_v30 }
 0x550   : > { %11573 = vrot.lane.b32.xlu1 %v10499_v29, %s15193_s21  ;;  %v15007_v32 = vpop.f32.mrf.mxu1 }
 0x551   : > { %v19562_v37 = vadd.f32 %v19434_v8, %v10473_v61  ;;  %v10476_v1 = vadd.f32 %v15007_v32, %v19413_v27  ;;  %v10500_v24 = vadd.f32 %v19434_v8, %v10461_v62 }
 0x552   : > { %11571 = vrot.lane.b32.xlu0 %v10498_v4, %s15193_s21  ;;  %v10428_v34 = vpop.f32.mrf.mxu1 }
 0x553   : > { %v19569_v55 = vadd.f32 %v19434_v8, %v10476_v1  ;;  %v10475_v22 = vadd.f32 %v10428_v34, %v19416_v0 }
 0x554   : > { %11738 = vrot.lane.b32.xlu1 %v11400_v5, %s15192_s20  ;;  %v15010_v19 = vpop.f32.mrf.mxu1 }
 0x555   : > { %v19576_v27 = vadd.f32 %v19434_v8, %v10475_v22  ;;  %v10478_v33 = vadd.f32 %v15010_v19, %v19424_v54  ;;  %v11405_v54 = vadd.f32 %v19422_v39, %v11404_v38 }
 0x556   : > { %11736 = vrot.lane.b32.xlu0 %v11395_v46, %s15192_s20  ;;  %v10438_v30 = vpop.f32.mrf.mxu1 }
 0x557   : > { %v19582_v6 = vadd.f32 %v19434_v8, %v10478_v33  ;;  %v10477_v0 = vadd.f32 %v10438_v30, %v19427_v15  ;;  %v11414_v15 = vpop.f32.mrf.mxu0 }
 0x558   : > { %11577 = vrot.lane.b32.xlu1 %v10501_v35, %s15193_s21 }
 0x559   : > { %v19588_v28 = vadd.f32 %v19434_v8, %v10477_v0  ;;  %v11415_v8 = vadd.f32 %v19422_v39, %v11414_v15  ;;  %v15045_v52 = vpop.f32.mrf.mxu0 }
 0x55a   : > { %11575 = vrot.lane.b32.xlu0 %v10500_v24, %s15193_s21  ;;  %v11430_v12 = vadd.f32 %v15045_v52, %v19422_v39 }
 0x55b   : > { %v11424_v50 = vpop.f32.mrf.mxu0 }
 0x55c   : > { %11742 = vrot.lane.b32.xlu1 %v11410_v20, %s15192_s20 }
 0x55e   : > { %11740 = vrot.lane.b32.xlu0 %v11405_v54, %s15192_s20 }
 0x560   : > { %11581 = vrot.lane.b32.xlu1 %v19487_v47, %s15193_s21  ;;  %v11425_v47 = vadd.f32 %v19422_v39, %v11424_v50 }
 0x562   : > { %11579 = vrot.lane.b32.xlu0 %v19494_v53, %s15193_s21  ;;  %v15048_v53 = vpop.f32.mrf.mxu0 }
 0x563   : > { %v11440_v44 = vadd.f32 %v15048_v53, %v19422_v39 }
 0x564   : > { %11746 = vrot.lane.b32.xlu1 %v11420_v42, %s15192_s20  ;;  %v11434_v14 = vpop.f32.mrf.mxu0 }
 0x566   : > { %11744 = vrot.lane.b32.xlu0 %v11415_v8, %s15192_s20 }
 0x568   : > { %11585 = vrot.lane.b32.xlu1 %v19500_v10, %s15193_s21  ;;  %v11435_v10 = vadd.f32 %v19422_v39, %v11434_v14 }
 0x56a   : > { %11583 = vrot.lane.b32.xlu0 %v19507_v57, %s15193_s21  ;;  %v15051_v57 = vpop.f32.mrf.mxu0 }
 0x56b   : > { %v11450_v3 = vadd.f32 %v15051_v57, %v19422_v39 }
 0x56c   : > { %11750 = vrot.lane.b32.xlu1 %v11430_v12, %s15192_s20  ;;  %v11444_v48 = vpop.f32.mrf.mxu0 }
 0x56e   : > { %11748 = vrot.lane.b32.xlu0 %v11425_v47, %s15192_s20 }
 0x570   : > { %11589 = vrot.lane.b32.xlu1 %v19513_v58, %s15193_s21  ;;  %v11445_v58 = vadd.f32 %v19422_v39, %v11444_v48 }
 0x572   : > { %11587 = vrot.lane.b32.xlu0 %v19520_v31, %s15193_s21  ;;  %v15054_v31 = vpop.f32.mrf.mxu0 }
 0x573   : > { %v11460_v9 = vadd.f32 %v15054_v31, %v19422_v39 }
 0x574   : > { %11754 = vrot.lane.b32.xlu1 %v11440_v44, %s15192_s20  ;;  %v11454_v18 = vpop.f32.mrf.mxu0 }
 0x576   : > { %11752 = vrot.lane.b32.xlu0 %v11435_v10, %s15192_s20  ;;  %v15057_v13 = vpop.f32.mrf.mxu0 }
 0x577   : > { %v11470_v25 = vadd.f32 %v15057_v13, %v19422_v39 }
 0x578   : > { %11593 = vrot.lane.b32.xlu1 %v19526_v63, %s15193_s21  ;;  %v11455_v63 = vadd.f32 %v19422_v39, %v11454_v18  ;;  %v11464_v51 = vpop.f32.mrf.mxu0 }
 0x57a   : > { %11591 = vrot.lane.b32.xlu0 %v19534_v56, %s15193_s21  ;;  %v11465_v56 = vadd.f32 %v19422_v39, %v11464_v51  ;;  %v15060_v2 = vpop.f32.mrf.mxu0 }
 0x57b   : > { %v11480_v23 = vadd.f32 %v15060_v2, %v19422_v39 }
 0x57c   : > { %11758 = vrot.lane.b32.xlu1 %v11450_v3, %s15192_s20  ;;  %v11474_v45 = vpop.f32.mrf.mxu0 }
 0x57d   : > { %v11475_v29 = vadd.f32 %v19422_v39, %v11474_v45 }
 0x57e   : > { %11756 = vrot.lane.b32.xlu0 %v11445_v58, %s15192_s20 }
 0x580   : > { %11597 = vrot.lane.b32.xlu1 %v19541_v26, %s15193_s21 }
 0x582   : > { %11595 = vrot.lane.b32.xlu0 %v19548_v17, %s15193_s21 }
 0x584   : > { %11762 = vrot.lane.b32.xlu1 %v11460_v9, %s15192_s20 }
 0x586   : > { %11760 = vrot.lane.b32.xlu0 %v11455_v63, %s15192_s20 }
 0x588   : > { %11601 = vrot.lane.b32.xlu1 %v19554_v60, %s15193_s21 }
 0x58a   : > { %11599 = vrot.lane.b32.xlu0 %v19562_v37, %s15193_s21 }
 0x58c   : > { %11766 = vrot.lane.b32.xlu1 %v11470_v25, %s15192_s20 }
 0x58e   : > { %v11711_v59 = vpop.permute.xlu1 %11710  ;;  %11764 = vrot.lane.b32.xlu0 %v11465_v56, %s15192_s20 }
 0x590   : > { %v11709_v36 = vpop.permute.xlu0 %11708  ;;  %11605 = vrot.lane.b32.xlu1 %v19569_v55, %s15193_s21 }
 0x592   : > { %v11550_v26 = vpop.permute.xlu1 %11549  ;;  %11603 = vrot.lane.b32.xlu0 %v19576_v27, %s15193_s21 }
 0x593   : > { %11645 = vst.msk [vmem:[%s15611_s18 + $0x8] sm:$0xff] %vm11643_vm5, %v11550_v26 }
 0x594   : > { %11806 = vst.msk [vmem:[%s15611_s18 + $0x8] sm:$0xff] %vm11804_vm6, %v11711_v59  ;;  %v11548_v43 = vpop.permute.xlu0 %11547  ;;  %11609 = vrot.lane.b32.xlu1 %v19582_v6, %s15193_s21 }
 0x595   : > { %11644 = vst.msk [vmem:[%s15611_s18] sm:$0xff] %vm11643_vm5, %v11548_v43 }
 0x596   : > { %11805 = vst.msk [vmem:[%s15611_s18] sm:$0xff] %vm11804_vm6, %v11709_v36  ;;  %v11715_v40 = vpop.permute.xlu1 %11714  ;;  %11607 = vrot.lane.b32.xlu0 %v19588_v28, %s15193_s21 }
 0x598   : > { %v11713_v17 = vpop.permute.xlu0 %11712  ;;  %11770 = vrot.lane.b32.xlu1 %v11480_v23, %s15192_s20 }
 0x59a   : > { %v11554_v49 = vpop.permute.xlu1 %11553  ;;  %11768 = vrot.lane.b32.xlu0 %v11475_v29, %s15192_s20 }
 0x59b   : > { %11647 = vst.msk [vmem:[%s15611_s18 + $0x18] sm:$0xff] %vm11643_vm5, %v11554_v49 }
 0x59c   : > { %11808 = vst.msk [vmem:[%s15611_s18 + $0x18] sm:$0xff] %vm11804_vm6, %v11715_v40  ;;  %v11552_v16 = vpop.permute.xlu0 %11551 }
 0x59d   : > { %11646 = vst.msk [vmem:[%s15611_s18 + $0x10] sm:$0xff] %vm11643_vm5, %v11552_v16 }
 0x59e   : > { %11807 = vst.msk [vmem:[%s15611_s18 + $0x10] sm:$0xff] %vm11804_vm6, %v11713_v17  ;;  %v11719_v39 = vpop.permute.xlu1 %11718 }
 0x5a0   : > { %v11717_v4 = vpop.permute.xlu0 %11716 }
 0x5a2   : > { %v11558_v60 = vpop.permute.xlu1 %11557 }
 0x5a3   : > { %11649 = vst.msk [vmem:[%s15611_s18 + $0x28] sm:$0xff] %vm11643_vm5, %v11558_v60 }
 0x5a4   : > { %11810 = vst.msk [vmem:[%s15611_s18 + $0x28] sm:$0xff] %vm11804_vm6, %v11719_v39  ;;  %v11556_v61 = vpop.permute.xlu0 %11555 }
 0x5a5   : > { %11648 = vst.msk [vmem:[%s15611_s18 + $0x20] sm:$0xff] %vm11643_vm5, %v11556_v61 }
 0x5a6   : > { %11809 = vst.msk [vmem:[%s15611_s18 + $0x20] sm:$0xff] %vm11804_vm6, %v11717_v4  ;;  %v11723_v5 = vpop.permute.xlu1 %11722 }
 0x5a8   : > { %v11721_v32 = vpop.permute.xlu0 %11720 }
 0x5aa   : > { %v11562_v7 = vpop.permute.xlu1 %11561 }
 0x5ab   : > { %11651 = vst.msk [vmem:[%s15611_s18 + $0x38] sm:$0xff] %vm11643_vm5, %v11562_v7 }
 0x5ac   : > { %11812 = vst.msk [vmem:[%s15611_s18 + $0x38] sm:$0xff] %vm11804_vm6, %v11723_v5  ;;  %v11560_v41 = vpop.permute.xlu0 %11559 }
 0x5ad   : > { %11650 = vst.msk [vmem:[%s15611_s18 + $0x30] sm:$0xff] %vm11643_vm5, %v11560_v41 }
 0x5ae   : > { %11811 = vst.msk [vmem:[%s15611_s18 + $0x30] sm:$0xff] %vm11804_vm6, %v11721_v32  ;;  %v11727_v37 = vpop.permute.xlu1 %11726 }
 0x5b0   : > { %v11725_v1 = vpop.permute.xlu0 %11724 }
 0x5b2   : > { %v11566_v34 = vpop.permute.xlu1 %11565 }
 0x5b3   : > { %11653 = vst.msk [vmem:[%s15611_s18 + $0x48] sm:$0xff] %vm11643_vm5, %v11566_v34 }
 0x5b4   : > { %11814 = vst.msk [vmem:[%s15611_s18 + $0x48] sm:$0xff] %vm11804_vm6, %v11727_v37  ;;  %v11564_v62 = vpop.permute.xlu0 %11563 }
 0x5b5   : > { %11652 = vst.msk [vmem:[%s15611_s18 + $0x40] sm:$0xff] %vm11643_vm5, %v11564_v62 }
 0x5b6   : > { %11813 = vst.msk [vmem:[%s15611_s18 + $0x40] sm:$0xff] %vm11804_vm6, %v11725_v1  ;;  %v11731_v55 = vpop.permute.xlu1 %11730 }
 0x5b8   : > { %v11729_v46 = vpop.permute.xlu0 %11728 }
 0x5ba   : > { %v11570_v22 = vpop.permute.xlu1 %11569 }
 0x5bb   : > { %11655 = vst.msk [vmem:[%s15611_s18 + $0x58] sm:$0xff] %vm11643_vm5, %v11570_v22 }
 0x5bc   : > { %11816 = vst.msk [vmem:[%s15611_s18 + $0x58] sm:$0xff] %vm11804_vm6, %v11731_v55  ;;  %v11568_v19 = vpop.permute.xlu0 %11567 }
 0x5bd   : > { %11654 = vst.msk [vmem:[%s15611_s18 + $0x50] sm:$0xff] %vm11643_vm5, %v11568_v19 }
 0x5be   : > { %11815 = vst.msk [vmem:[%s15611_s18 + $0x50] sm:$0xff] %vm11804_vm6, %v11729_v46  ;;  %v11735_v21 = vpop.permute.xlu1 %11734 }
 0x5c0   : > { %v11733_v35 = vpop.permute.xlu0 %11732 }
 0x5c2   : > { %v11574_v27 = vpop.permute.xlu1 %11573 }
 0x5c3   : > { %11657 = vst.msk [vmem:[%s15611_s18 + $0x68] sm:$0xff] %vm11643_vm5, %v11574_v27 }
 0x5c4   : > { %11818 = vst.msk [vmem:[%s15611_s18 + $0x68] sm:$0xff] %vm11804_vm6, %v11735_v21  ;;  %v11572_v33 = vpop.permute.xlu0 %11571 }
 0x5c5   : > { %11656 = vst.msk [vmem:[%s15611_s18 + $0x60] sm:$0xff] %vm11643_vm5, %v11572_v33 }
 0x5c6   : > { %11817 = vst.msk [vmem:[%s15611_s18 + $0x60] sm:$0xff] %vm11804_vm6, %v11733_v35  ;;  %v11739_v30 = vpop.permute.xlu1 %11738 }
 0x5c8   : > { %v11737_v24 = vpop.permute.xlu0 %11736 }
 0x5ca   : > { %v11578_v6 = vpop.permute.xlu1 %11577 }
 0x5cb   : > { %11659 = vst.msk [vmem:[%s15611_s18 + $0x78] sm:$0xff] %vm11643_vm5, %v11578_v6 }
 0x5cc   : > { %11820 = vst.msk [vmem:[%s15611_s18 + $0x78] sm:$0xff] %vm11804_vm6, %v11739_v30  ;;  %v11576_v0 = vpop.permute.xlu0 %11575 }
 0x5cd   : > { %11658 = vst.msk [vmem:[%s15611_s18 + $0x70] sm:$0xff] %vm11643_vm5, %v11576_v0 }
 0x5ce   : > { %11819 = vst.msk [vmem:[%s15611_s18 + $0x70] sm:$0xff] %vm11804_vm6, %v11737_v24  ;;  %v11743_v20 = vpop.permute.xlu1 %11742 }
 0x5d0   : > { %v11741_v38 = vpop.permute.xlu0 %11740 }
 0x5d2   : > { %v11582_v28 = vpop.permute.xlu1 %11581 }
 0x5d3   : > { %11661 = vst.msk [vmem:[%s15611_s18 + $0x88] sm:$0xff] %vm11643_vm5, %v11582_v28 }
 0x5d4   : > { %11822 = vst.msk [vmem:[%s15611_s18 + $0x88] sm:$0xff] %vm11804_vm6, %v11743_v20  ;;  %v11580_v54 = vpop.permute.xlu0 %11579 }
 0x5d5   : > { %11660 = vst.msk [vmem:[%s15611_s18 + $0x80] sm:$0xff] %vm11643_vm5, %v11580_v54 }
 0x5d6   : > { %11821 = vst.msk [vmem:[%s15611_s18 + $0x80] sm:$0xff] %vm11804_vm6, %v11741_v38  ;;  %v11747_v11 = vpop.permute.xlu1 %11746 }
 0x5d8   : > { %v11745_v42 = vpop.permute.xlu0 %11744 }
 0x5da   : > { %v11586_v15 = vpop.permute.xlu1 %11585 }
 0x5db   : > { %11663 = vst.msk [vmem:[%s15611_s18 + $0x98] sm:$0xff] %vm11643_vm5, %v11586_v15 }
 0x5dc   : > { %11824 = vst.msk [vmem:[%s15611_s18 + $0x98] sm:$0xff] %vm11804_vm6, %v11747_v11  ;;  %v11584_v8 = vpop.permute.xlu0 %11583 }
 0x5dd   : > { %11662 = vst.msk [vmem:[%s15611_s18 + $0x90] sm:$0xff] %vm11643_vm5, %v11584_v8 }
 0x5de   : > { %11823 = vst.msk [vmem:[%s15611_s18 + $0x90] sm:$0xff] %vm11804_vm6, %v11745_v42  ;;  %v11751_v52 = vpop.permute.xlu1 %11750 }
 0x5e0   : > { %v11749_v12 = vpop.permute.xlu0 %11748 }
 0x5e2   : > { %v11590_v50 = vpop.permute.xlu1 %11589 }
 0x5e3   : > { %11665 = vst.msk [vmem:[%s15611_s18 + $0xa8] sm:$0xff] %vm11643_vm5, %v11590_v50 }
 0x5e4   : > { %11826 = vst.msk [vmem:[%s15611_s18 + $0xa8] sm:$0xff] %vm11804_vm6, %v11751_v52  ;;  %v11588_v47 = vpop.permute.xlu0 %11587 }
 0x5e5   : > { %11664 = vst.msk [vmem:[%s15611_s18 + $0xa0] sm:$0xff] %vm11643_vm5, %v11588_v47 }
 0x5e6   : > { %11825 = vst.msk [vmem:[%s15611_s18 + $0xa0] sm:$0xff] %vm11804_vm6, %v11749_v12  ;;  %v11755_v53 = vpop.permute.xlu1 %11754 }
 0x5e8   : > { %v11753_v44 = vpop.permute.xlu0 %11752 }
 0x5ea   : > { %v11594_v14 = vpop.permute.xlu1 %11593 }
 0x5eb   : > { %11667 = vst.msk [vmem:[%s15611_s18 + $0xb8] sm:$0xff] %vm11643_vm5, %v11594_v14 }
 0x5ec   : > { %11828 = vst.msk [vmem:[%s15611_s18 + $0xb8] sm:$0xff] %vm11804_vm6, %v11755_v53  ;;  %v11592_v10 = vpop.permute.xlu0 %11591 }
 0x5ed   : > { %11666 = vst.msk [vmem:[%s15611_s18 + $0xb0] sm:$0xff] %vm11643_vm5, %v11592_v10 }
 0x5ee   : > { %11827 = vst.msk [vmem:[%s15611_s18 + $0xb0] sm:$0xff] %vm11804_vm6, %v11753_v44  ;;  %v11759_v57 = vpop.permute.xlu1 %11758 }
 0x5f0   : > { %v11757_v3 = vpop.permute.xlu0 %11756 }
 0x5f2   : > { %v11598_v48 = vpop.permute.xlu1 %11597 }
 0x5f3   : > { %11669 = vst.msk [vmem:[%s15611_s18 + $0xc8] sm:$0xff] %vm11643_vm5, %v11598_v48 }
 0x5f4   : > { %11830 = vst.msk [vmem:[%s15611_s18 + $0xc8] sm:$0xff] %vm11804_vm6, %v11759_v57  ;;  %v11596_v58 = vpop.permute.xlu0 %11595 }
 0x5f5   : > { %11668 = vst.msk [vmem:[%s15611_s18 + $0xc0] sm:$0xff] %vm11643_vm5, %v11596_v58 }
 0x5f6   : > { %11829 = vst.msk [vmem:[%s15611_s18 + $0xc0] sm:$0xff] %vm11804_vm6, %v11757_v3  ;;  %v11763_v31 = vpop.permute.xlu1 %11762 }
 0x5f8   : > { %v11761_v9 = vpop.permute.xlu0 %11760 }
 0x5fa   : > { %v11602_v18 = vpop.permute.xlu1 %11601 }
 0x5fb   : > { %11671 = vst.msk [vmem:[%s15611_s18 + $0xd8] sm:$0xff] %vm11643_vm5, %v11602_v18 }
 0x5fc   : > { %11832 = vst.msk [vmem:[%s15611_s18 + $0xd8] sm:$0xff] %vm11804_vm6, %v11763_v31  ;;  %v11600_v63 = vpop.permute.xlu0 %11599 }
 0x5fd   : > { %11670 = vst.msk [vmem:[%s15611_s18 + $0xd0] sm:$0xff] %vm11643_vm5, %v11600_v63 }
 0x5fe   : > { %11831 = vst.msk [vmem:[%s15611_s18 + $0xd0] sm:$0xff] %vm11804_vm6, %v11761_v9  ;;  %v11767_v13 = vpop.permute.xlu1 %11766 }
 0x600   : > { %v11765_v25 = vpop.permute.xlu0 %11764 }
 0x602   : > { %v11606_v51 = vpop.permute.xlu1 %11605 }
 0x603   : > { %11673 = vst.msk [vmem:[%s15611_s18 + $0xe8] sm:$0xff] %vm11643_vm5, %v11606_v51 }
 0x604   : > { %11834 = vst.msk [vmem:[%s15611_s18 + $0xe8] sm:$0xff] %vm11804_vm6, %v11767_v13  ;;  %v11604_v56 = vpop.permute.xlu0 %11603 }
 0x605   : > { %11672 = vst.msk [vmem:[%s15611_s18 + $0xe0] sm:$0xff] %vm11643_vm5, %v11604_v56 }
 0x606   : > { %11833 = vst.msk [vmem:[%s15611_s18 + $0xe0] sm:$0xff] %vm11804_vm6, %v11765_v25  ;;  %v11610_v59 = vpop.permute.xlu1 %11609 }
 0x607   : > { %11675 = vst.msk [vmem:[%s15611_s18 + $0xf8] sm:$0xff] %vm11643_vm5, %v11610_v59 }
 0x608   : > { %v11608_v36 = vpop.permute.xlu0 %11607 }
 0x609   : > { %11674 = vst.msk [vmem:[%s15611_s18 + $0xf0] sm:$0xff] %vm11643_vm5, %v11608_v36 }
 0x60a   : > { %v11771_v2 = vpop.permute.xlu1 %11770 }
 0x60b   : > { %11836 = vst.msk [vmem:[%s15611_s18 + $0xf8] sm:$0xff] %vm11804_vm6, %v11771_v2 }
 0x60c   : > { %v11769_v26 = vpop.permute.xlu0 %11768 }
 0x60d   : > { %11835 = vst.msk [vmem:[%s15611_s18 + $0xf0] sm:$0xff] %vm11804_vm6, %v11769_v26 }
 0x60e   : > { %15140 = shalt.err (!%p15137_p3)
}
 0x60f   : > { %s15141_s9 = scalar_lea.hbm %s19783_s13, 4096  ;;  %s15145_s20 = scalar_lea.hbm %s19841_s7, 8192 }
 0x610   : > { %p15142_p4 = scmp.ne.s32.totalorder %s19783_s13, %s15141_s9  ;;  %p15146_p9 = scmp.lt.s32.totalorder %s19783_s13, %s19841_s7 }
 0x611   : > { %p15147_p10 = scmp.lt.s32.totalorder %s15145_s20, %s15141_s9 }
 0x612   : > { %p15143_p7 = pnand %p15142_p4, %p15274_p5 }
 0x613   : > { %p15148_p11 = por %p15147_p10, %p15146_p9 }
 0x614   : > { %p15144_p8 = pneg %p15143_p7 }
 0x616   : > { %p15149_p12 = pnand %p15148_p11, %p15144_p8 }
 0x618   : > { %15152 = shalt.err (!%p15149_p12)
}
 0x619   : > { %s15195_s8 = smov 128  }
 0x61a   : > { %15063 = dma.vmem_to_hbm [thread:$0]  (%p15274_p5), %s19787_s23, 4096, %s19783_s13, %s19793_s28, %s15195_s8, %s15195_s8, %s15193_s21  }
 0x61b PF: > { %p15069_p13 = scmp.ge.s32.totalorder %s15187_s27, 2  ;;  %s11866_s14 = sand.u32 1, %s15175_s24  }
 0x61c   : > { %s11867_s15 = scalar_lea.sflag [#allocation5], %s11866_s14 }
 0x61d   : > { %p15066_p0 = pnand %p15069_p13, %p15278_p6 }
 0x61f   : > { %p15067_p1 = pneg %p15066_p0 }
 0x621   : > { %15170 = dma.done.wait (%p15067_p1), %s11867_s15, 4096  }
 0x622   : > { %15172 = vsyncadd (%p15067_p1), %s11867_s15, 4294963200  ;;  %p17_p2 = scmp.ge.s32.totalorder %s15261_s30, 4   ;;  %s20323_s24 = smov %s15179_s25 }
 0x623   : > { %s20324_s25 = smov %s15183_s26  ;;  %s20325_s26 = smov %s15272_s10 }
 0x624   : > { %s20326_s27 = smov %s15261_s30  ;;  %19 = sbr.rel (!%p17_p2) target bundleno = 3 (0x3), region = 113 }
 0x629   :  { %11872 = vsyncpa [#allocation5], 1 }
 0x62a   :  { %11874 = vsyncpa [#allocation5 + $0x1], 1 }

</bundles_post_ra>
